<compile_context>
chip_gen: v6e
topology: v6e:2x2x1
jax: 0.10.0
libtpu: 0.0.40
codegen_flags: <defaults>
</compile_context>

<pallas_src>
import functools
import math

import jax
import jax.numpy as jnp
from jax.experimental import pallas as pl
from jax.experimental.pallas import tpu as pltpu

_EPS = 1e-5

_COMPILER_PARAMS = pltpu.CompilerParams(
    dimension_semantics=("parallel",),      # batch axis -> 2 TCs on v7x
    vmem_limit_bytes=32 * 1024 * 1024,
)


# ----------------------------------------------------------------------------
# Kernel 1: 3x3 conv (pad=1, optional fused channel-concat of inputs)
#           + InstanceNorm(affine) + ReLU        -- one batch sample per step
# ----------------------------------------------------------------------------
def _conv3x3_in_relu_kernel(*refs, n_in):
    x_refs = refs[:n_in]
    w_ref, g_ref, b_ref, o_ref = refs[n_in:]
    # Fused skip-connection concat (torch.cat along channels) on the lane axis.
    parts = [r[0] for r in x_refs]                    # each (H, W, Cin_k)
    x = parts[0] if n_in == 1 else jnp.concatenate(parts, axis=-1)
    H, W, Cin = x.shape
    Cout = w_ref.shape[1]

    # Fused zero padding (padding=1): no XLA pad op / extra HBM pass.
    zr = jnp.zeros((1, W, Cin), x.dtype)
    xp = jnp.concatenate([zr, x, zr], axis=0)         # (H+2, W, Cin)
    zc = jnp.zeros((H + 2, 1, Cin), x.dtype)
    xp = jnp.concatenate([zc, xp, zc], axis=1)        # (H+2, W+2, Cin)

    # im2col: build the (H*W, 9*Cin) patch once -> single K=9*Cin MXU matmul.
    taps = [xp[dy:dy + H, dx:dx + W, :] for dy in range(3) for dx in range(3)]
    patch = jnp.concatenate(taps, axis=-1).reshape(H * W, 9 * Cin)
    y = jnp.dot(patch, w_ref[...], preferred_element_type=jnp.float32)

    # Conv bias omitted: InstanceNorm subtracts the per-channel mean right
    # after, so the bias cancels exactly.
    mean = jnp.mean(y, axis=0, keepdims=True)
    var = jnp.mean((y - mean) ** 2, axis=0, keepdims=True)
    yn = (y - mean) * jax.lax.rsqrt(var + _EPS) * g_ref[...] + b_ref[...]
    o_ref[...] = jnp.maximum(yn, 0.0).reshape(1, H, W, Cout).astype(o_ref.dtype)


def conv3x3_in_relu(x_parts, w, gamma, beta):
    """Fused Conv2d(k=3, p=1) + InstanceNorm(affine) + ReLU.

    x_parts: tuple of NHWC tensors, concatenated along channels in-kernel.
    w: PyTorch layout (Cout, Cin_total, 3, 3).
    """
    x_parts = tuple(x_parts)
    N, H, W, _ = x_parts[0].shape
    Cin = sum(p.shape[-1] for p in x_parts)
    Cout = w.shape[0]
    # (Cout, Cin, 3, 3) -> (9*Cin, Cout), row = (dy*3+dx)*Cin + ci
    w9 = jnp.transpose(w, (2, 3, 1, 0)).reshape(9 * Cin, Cout)

    in_specs = [pl.BlockSpec((1, H, W, p.shape[-1]), lambda n: (n, 0, 0, 0))
                for p in x_parts]
    in_specs += [
        pl.BlockSpec((9 * Cin, Cout), lambda n: (0, 0)),
        pl.BlockSpec((1, Cout), lambda n: (0, 0)),
        pl.BlockSpec((1, Cout), lambda n: (0, 0)),
    ]
    return pl.pallas_call(
        functools.partial(_conv3x3_in_relu_kernel, n_in=len(x_parts)),
        out_shape=jax.ShapeDtypeStruct((N, H, W, Cout), x_parts[0].dtype),
        grid=(N,),
        in_specs=in_specs,
        out_specs=pl.BlockSpec((1, H, W, Cout), lambda n: (n, 0, 0, 0)),
        compiler_params=_COMPILER_PARAMS,
    )(*x_parts, w9, gamma.reshape(1, Cout), beta.reshape(1, Cout))


# ----------------------------------------------------------------------------
# Kernel 2: 2x2 stride-2 conv (downsample) + InstanceNorm(affine) + ReLU
# ----------------------------------------------------------------------------
def _conv_down_in_relu_kernel(x_ref, w_ref, g_ref, b_ref, o_ref):
    # x_ref: (1, h, 2, wd, 2*Cin)  (free view of NHWC), w_ref: (4*Cin, Cout)
    _, h, _, wd, twoC = x_ref.shape
    Cout = w_ref.shape[1]
    xb = x_ref[0]                                              # (h, 2, wd, 2C)
    # Finish the space-to-depth with one lane concat: cols = (ky, kx, ci).
    xs = jnp.concatenate([xb[:, 0, :, :], xb[:, 1, :, :]], axis=-1)
    xs = xs.reshape(h * wd, 2 * twoC)                          # (M, 4*Cin)
    y = jnp.dot(xs, w_ref[...], preferred_element_type=jnp.float32)
    # bias omitted (cancelled by InstanceNorm)
    mean = jnp.mean(y, axis=0, keepdims=True)
    var = jnp.mean((y - mean) ** 2, axis=0, keepdims=True)
    yn = (y - mean) * jax.lax.rsqrt(var + _EPS) * g_ref[...] + b_ref[...]
    o_ref[...] = jnp.maximum(yn, 0.0).reshape(1, h, wd, Cout).astype(o_ref.dtype)


def conv_down_in_relu(x, w, gamma, beta):
    """Fused Conv2d(k=2, s=2) + InstanceNorm(affine) + ReLU. x: NHWC."""
    N, H, W, C = x.shape
    Cout = w.shape[0]
    h, wd = H // 2, W // 2
    x5 = x.reshape(N, h, 2, wd, 2 * C)                 # free (view-only) reshape
    w2 = jnp.transpose(w, (2, 3, 1, 0)).reshape(4 * C, Cout)
    return pl.pallas_call(
        _conv_down_in_relu_kernel,
        out_shape=jax.ShapeDtypeStruct((N, h, wd, Cout), x.dtype),
        grid=(N,),
        in_specs=[
            pl.BlockSpec((1, h, 2, wd, 2 * C), lambda n: (n, 0, 0, 0, 0)),
            pl.BlockSpec((4 * C, Cout), lambda n: (0, 0)),
            pl.BlockSpec((1, Cout), lambda n: (0, 0)),
            pl.BlockSpec((1, Cout), lambda n: (0, 0)),
        ],
        out_specs=pl.BlockSpec((1, h, wd, Cout), lambda n: (n, 0, 0, 0)),
        compiler_params=_COMPILER_PARAMS,
    )(x5, w2, gamma.reshape(1, Cout), beta.reshape(1, Cout))


# ----------------------------------------------------------------------------
# Kernel 3: ConvTranspose2d(k=2, s=2) + InstanceNorm(affine) + ReLU
# ----------------------------------------------------------------------------
def _convt2x2_in_relu_kernel(x_ref, w_ref, g4_ref, b4_ref, o_ref):
    # x_ref: (1, M, Cin); w_ref: (Cin, 4*Cout) with cols = (dy, dx, cout)
    # g4/b4: (1, 4*Cout) gamma/beta tiled per sub-position
    # o_ref: (1, h, 2, wd, 2*Cout) -> free reshape to (2h, 2wd, Cout) outside.
    _, M, _ = x_ref.shape
    _, h, _, wd, twoC = o_ref.shape
    Cout = twoC // 2
    y = jnp.dot(x_ref[0], w_ref[...], preferred_element_type=jnp.float32)
    # bias omitted (cancelled by InstanceNorm)

    # InstanceNorm stats per output channel, pooled over all M rows and the
    # four 2x2 sub-positions (single pass over one (M, 4*Cout) tile).
    inv_cnt = 1.0 / (4.0 * M)
    csum = jnp.sum(y, axis=0, keepdims=True)                     # (1, 4*Cout)
    mean_c = (csum[:, 0:Cout] + csum[:, Cout:2 * Cout]
              + csum[:, 2 * Cout:3 * Cout] + csum[:, 3 * Cout:4 * Cout]) * inv_cnt
    mean4 = jnp.concatenate([mean_c] * 4, axis=1)
    d = y - mean4
    csq = jnp.sum(d * d, axis=0, keepdims=True)
    var_c = (csq[:, 0:Cout] + csq[:, Cout:2 * Cout]
             + csq[:, 2 * Cout:3 * Cout] + csq[:, 3 * Cout:4 * Cout]) * inv_cnt
    inv4 = jnp.concatenate([jax.lax.rsqrt(var_c + _EPS)] * 4, axis=1)
    out = jnp.maximum(d * inv4 * g4_ref[...] + b4_ref[...], 0.0).astype(o_ref.dtype)

    # Scatter the two dy halves so the HBM layout is already de-interleaved
    # (wrapper-side fix-up is a free view reshape, no XLA transpose pass).
    o_ref[:, :, 0:1, :, :] = out[:, 0:twoC].reshape(1, h, 1, wd, twoC)
    o_ref[:, :, 1:2, :, :] = out[:, twoC:2 * twoC].reshape(1, h, 1, wd, twoC)


def convt2x2_in_relu(x, w, gamma, beta):
    """Fused ConvTranspose2d(k=2, s=2) + InstanceNorm(affine) + ReLU.

    x: (N, h, w, Cin) NHWC; w: PyTorch ConvTranspose2d layout (Cin, Cout, 2, 2).
    """
    N, h, wd, Cin = x.shape
    Cout = w.shape[1]
    M = h * wd
    w4 = jnp.transpose(w, (0, 2, 3, 1)).reshape(Cin, 4 * Cout)  # cols=(dy,dx,c)
    g4 = jnp.tile(gamma.reshape(1, Cout), (1, 4))
    b4 = jnp.tile(beta.reshape(1, Cout), (1, 4))
    xf = x.reshape(N, M, Cin)                                   # free view
    out = pl.pallas_call(
        _convt2x2_in_relu_kernel,
        out_shape=jax.ShapeDtypeStruct((N, h, 2, wd, 2 * Cout), x.dtype),
        grid=(N,),
        in_specs=[
            pl.BlockSpec((1, M, Cin), lambda n: (n, 0, 0)),
            pl.BlockSpec((Cin, 4 * Cout), lambda n: (0, 0)),
            pl.BlockSpec((1, 4 * Cout), lambda n: (0, 0)),
            pl.BlockSpec((1, 4 * Cout), lambda n: (0, 0)),
        ],
        out_specs=pl.BlockSpec((1, h, 2, wd, 2 * Cout), lambda n: (n, 0, 0, 0, 0)),
        compiler_params=_COMPILER_PARAMS,
    )(xf, w4, g4, b4)
    return out.reshape(N, 2 * h, 2 * wd, Cout)                  # free view


# ----------------------------------------------------------------------------
# Deterministic parameter initialization (shapes follow the PyTorch module)
# ----------------------------------------------------------------------------
def _conv_init(key, cout, cin, k):
    kw, kb = jax.random.split(key)
    bound = 1.0 / math.sqrt(cin * k * k)
    w = jax.random.uniform(kw, (cout, cin, k, k), jnp.float32, -bound, bound)
    b = jax.random.uniform(kb, (cout,), jnp.float32, -bound, bound)
    return w, b


def _convt_init(key, cin, cout, k):
    kw, kb = jax.random.split(key)
    bound = 1.0 / math.sqrt(cout * k * k)
    w = jax.random.uniform(kw, (cin, cout, k, k), jnp.float32, -bound, bound)
    b = jax.random.uniform(kb, (cout,), jnp.float32, -bound, bound)
    return w, b


def _norm_init(key, c):
    kg, kb = jax.random.split(key)
    gamma = 1.0 + 0.1 * jax.random.normal(kg, (c,), jnp.float32)
    beta = 0.1 * jax.random.normal(kb, (c,), jnp.float32)
    return gamma, beta


def init_subnet2conv(key, n_in, n_out):
    k1, k2, k3, k4 = jax.random.split(key, 4)
    w1, b1 = _conv_init(k1, n_out, n_in, 3)
    w2, b2 = _conv_init(k2, n_out, n_out, 3)
    g1, bt1 = _norm_init(k3, n_out)
    g2, bt2 = _norm_init(k4, n_out)
    return dict(w1=w1, b1=b1, g1=g1, bt1=bt1, w2=w2, b2=b2, g2=g2, bt2=bt2)


def init_netrecurse(key, n_in, mult_chan=2, depth=0):
    n_out = n_in * mult_chan
    keys = jax.random.split(key, 8)
    p = {"sub_2conv_more": init_subnet2conv(keys[0], n_in, n_out)}
    if depth > 0:
        p["sub_2conv_less"] = init_subnet2conv(keys[1], 2 * n_out, n_out)
        p["conv_down"] = _conv_init(keys[2], n_out, n_out, 2)
        p["bn0"] = _norm_init(keys[3], n_out)
        p["convt"] = _convt_init(keys[4], 2 * n_out, n_out, 2)
        p["bn1"] = _norm_init(keys[5], n_out)
        p["sub_u"] = init_netrecurse(keys[6], n_out, mult_chan=2, depth=depth - 1)
    return p


# ----------------------------------------------------------------------------
# Forward (NHWC internally; all HBM-level pad / transpose / concat glue fused)
# ----------------------------------------------------------------------------
def subnet2conv_forward(p, x_parts):
    x = conv3x3_in_relu(x_parts, p["w1"], p["g1"], p["bt1"])
    x = conv3x3_in_relu((x,), p["w2"], p["g2"], p["bt2"])
    # TODO(synk): Dropout2d with p>0 not implemented (p=0 here -> identity).
    return x


def _netrecurse_nhwc(p, x_parts):
    if "sub_u" not in p:                       # depth == 0
        return subnet2conv_forward(p["sub_2conv_more"], x_parts)
    x_more = subnet2conv_forward(p["sub_2conv_more"], x_parts)
    w_down, _ = p["conv_down"]                 # conv bias cancelled by IN
    g0, bt0 = p["bn0"]
    x_down = conv_down_in_relu(x_more, w_down, g0, bt0)
    x_sub = _netrecurse_nhwc(p["sub_u"], (x_down,))
    w_t, _ = p["convt"]                        # convT bias cancelled by IN
    g1, bt1 = p["bn1"]
    x_up = convt2x2_in_relu(x_sub, w_t, g1, bt1)
    # torch.cat((x_more, x_up), dim=channels) fused into the next conv kernel.
    return subnet2conv_forward(p["sub_2conv_less"], (x_more, x_up))


def net_recurse_forward(params, x_nchw):
    """Matches NetRecurse.forward. Input/output are NCHW like PyTorch."""
    x = jnp.transpose(x_nchw, (0, 2, 3, 1))    # NCHW -> NHWC
    y = _netrecurse_nhwc(params, (x,))
    return jnp.transpose(y, (0, 3, 1, 2))      # NHWC -> NCHW


# ----------------------------------------------------------------------------
# Pure-JAX (XLA) reference of the PyTorch module, used as a self-check.
# ----------------------------------------------------------------------------
def _in_ref(y, gamma, beta):
    mean = jnp.mean(y, axis=(2, 3), keepdims=True)
    var = jnp.mean((y - mean) ** 2, axis=(2, 3), keepdims=True)
    yn = (y - mean) * jax.lax.rsqrt(var + _EPS)
    return yn * gamma.reshape(1, -1, 1, 1) + beta.reshape(1, -1, 1, 1)


def _conv3x3_ref(x, w, b):
    y = jax.lax.conv_general_dilated(x, w, (1, 1), ((1, 1), (1, 1)),
                                     dimension_numbers=("NCHW", "OIHW", "NCHW"))
    return y + b.reshape(1, -1, 1, 1)


def _conv_down_ref(x, w, b):
    y = jax.lax.conv_general_dilated(x, w, (2, 2), ((0, 0), (0, 0)),
                                     dimension_numbers=("NCHW", "OIHW", "NCHW"))
    return y + b.reshape(1, -1, 1, 1)


def _convt_ref(x, w, b):
    # x: (N, Ci, h, w); w: (Ci, Co, 2, 2); out[n,o,2i+k,2j+l] = sum_c x*w
    t = jnp.einsum("ncij,cokl->noikjl", x, w)
    N, Co, h, _, wd, _ = t.shape
    return t.reshape(N, Co, 2 * h, 2 * wd) + b.reshape(1, -1, 1, 1)


def _subnet_ref(p, x):
    x = jnp.maximum(_in_ref(_conv3x3_ref(x, p["w1"], p["b1"]), p["g1"], p["bt1"]), 0.0)
    x = jnp.maximum(_in_ref(_conv3x3_ref(x, p["w2"], p["b2"]), p["g2"], p["bt2"]), 0.0)
    return x


def _netrecurse_ref(p, x):
    if "sub_u" not in p:
        return _subnet_ref(p["sub_2conv_more"], x)
    x_more = _subnet_ref(p["sub_2conv_more"], x)
    w_down, b_down = p["conv_down"]
    g0, bt0 = p["bn0"]
    x_down = jnp.maximum(_in_ref(_conv_down_ref(x_more, w_down, b_down), g0, bt0), 0.0)
    x_sub = _netrecurse_ref(p["sub_u"], x_down)
    w_t, b_t = p["convt"]
    g1, bt1 = p["bn1"]
    x_up = jnp.maximum(_in_ref(_convt_ref(x_sub, w_t, b_t), g1, bt1), 0.0)
    x_cat = jnp.concatenate([x_more, x_up], axis=1)
    return _subnet_ref(p["sub_2conv_less"], x_cat)


# ----------------------------------------------------------------------------
if __name__ == "__main__":
    key = jax.random.PRNGKey(0)
    kx, kp = jax.random.split(key)

    N, C, H, W = 2, 4, 16, 16
    depth, mult_chan = 1, 2

    x = jax.random.normal(kx, (N, C, H, W), jnp.float32)
    params = init_netrecurse(kp, C, mult_chan=mult_chan, depth=depth)

    fwd = jax.jit(net_recurse_forward)
    y = jax.block_until_ready(fwd(params, x))

    assert y.shape == (N, C * mult_chan, H, W), y.shape
    assert bool(jnp.all(jnp.isfinite(y)))

    # Numerical self-check against the pure-JAX reference (also validates that
    # dropping the pre-InstanceNorm conv biases is exact).
    y_ref = jax.block_until_ready(_netrecurse_ref(params, x))
    rel = float(jnp.linalg.norm(y - y_ref) / (jnp.linalg.norm(y_ref) + 1e-12))
    assert rel < 5e-2, f"relative error too large: {rel}"

    print("KERNEL_OK")
</pallas_src>

<mosaic_0001>
module attributes {stable_mosaic.version = 11 : i64} {
  func.func @_conv3x3_in_relu_kernel(%arg0: i32, %arg1: memref<1x16x16x4xf32, #tpu.memory_space<vmem>>, %arg2: memref<36x8xf32, #tpu.memory_space<vmem>>, %arg3: memref<1x8xf32, #tpu.memory_space<vmem>>, %arg4: memref<1x8xf32, #tpu.memory_space<vmem>>, %arg5: memref<1x16x16x8xf32, #tpu.memory_space<vmem>>) attributes {dimension_semantics = [#tpu.dimension_semantics<parallel>], iteration_bounds = array<i64: 2>, scalar_prefetch = 0 : i64, scratch_operands = 0 : i64, tpu.core_type = #tpu.core_type<tc>, window_params = [{transform_indices = @transform_0, window_bounds = array<i64: 1, 16, 16, 4>}, {pipeline_mode = #tpu.pipeline_mode<synchronous>, transform_indices = @transform_1, window_bounds = array<i64: 36, 8>}, {pipeline_mode = #tpu.pipeline_mode<synchronous>, transform_indices = @transform_2, window_bounds = array<i64: 1, 8>}, {pipeline_mode = #tpu.pipeline_mode<synchronous>, transform_indices = @transform_3, window_bounds = array<i64: 1, 8>}, {transform_indices = @transform_4, window_bounds = array<i64: 1, 16, 16, 8>}]} {
    %c0 = arith.constant 0 : index
    %c0_0 = arith.constant 0 : index
    %c0_1 = arith.constant 0 : index
    %c0_2 = arith.constant 0 : index
    %0 = vector.load %arg1[%c0, %c0_0, %c0_1, %c0_2] : memref<1x16x16x4xf32, #tpu.memory_space<vmem>>, vector<1x16x16x4xf32>
    %1 = vector.shape_cast %0 : vector<1x16x16x4xf32> to vector<16x16x4xf32>
    %cst = arith.constant 0.000000e+00 : f32
    %2 = vector.broadcast %cst : f32 to vector<1x16x4xf32>
    %3 = tpu.concatenate %2, %1, %2 in 0 : vector<1x16x4xf32>, vector<16x16x4xf32>, vector<1x16x4xf32> -> vector<18x16x4xf32>
    %cst_3 = arith.constant 0.000000e+00 : f32
    %4 = vector.broadcast %cst_3 : f32 to vector<18x1x4xf32>
    %5 = tpu.concatenate %4, %3, %4 in 1 : vector<18x1x4xf32>, vector<18x16x4xf32>, vector<18x1x4xf32> -> vector<18x18x4xf32>
    %6 = vector.extract_strided_slice %5 {offsets = [0, 0, 0], sizes = [16, 16, 4], strides = [1, 1, 1]} : vector<18x18x4xf32> to vector<16x16x4xf32>
    %7 = vector.extract_strided_slice %5 {offsets = [0, 1, 0], sizes = [16, 16, 4], strides = [1, 1, 1]} : vector<18x18x4xf32> to vector<16x16x4xf32>
    %8 = vector.extract_strided_slice %5 {offsets = [0, 2, 0], sizes = [16, 16, 4], strides = [1, 1, 1]} : vector<18x18x4xf32> to vector<16x16x4xf32>
    %9 = vector.extract_strided_slice %5 {offsets = [1, 0, 0], sizes = [16, 16, 4], strides = [1, 1, 1]} : vector<18x18x4xf32> to vector<16x16x4xf32>
    %10 = vector.extract_strided_slice %5 {offsets = [1, 1, 0], sizes = [16, 16, 4], strides = [1, 1, 1]} : vector<18x18x4xf32> to vector<16x16x4xf32>
    %11 = vector.extract_strided_slice %5 {offsets = [1, 2, 0], sizes = [16, 16, 4], strides = [1, 1, 1]} : vector<18x18x4xf32> to vector<16x16x4xf32>
    %12 = vector.extract_strided_slice %5 {offsets = [2, 0, 0], sizes = [16, 16, 4], strides = [1, 1, 1]} : vector<18x18x4xf32> to vector<16x16x4xf32>
    %13 = vector.extract_strided_slice %5 {offsets = [2, 1, 0], sizes = [16, 16, 4], strides = [1, 1, 1]} : vector<18x18x4xf32> to vector<16x16x4xf32>
    %14 = vector.extract_strided_slice %5 {offsets = [2, 2, 0], sizes = [16, 16, 4], strides = [1, 1, 1]} : vector<18x18x4xf32> to vector<16x16x4xf32>
    %15 = tpu.concatenate %6, %7, %8, %9, %10, %11, %12, %13, %14 in 2 : vector<16x16x4xf32>, vector<16x16x4xf32>, vector<16x16x4xf32>, vector<16x16x4xf32>, vector<16x16x4xf32>, vector<16x16x4xf32>, vector<16x16x4xf32>, vector<16x16x4xf32>, vector<16x16x4xf32> -> vector<16x16x36xf32>
    %16 = vector.shape_cast %15 : vector<16x16x36xf32> to vector<256x36xf32>
    %c0_4 = arith.constant 0 : index
    %c0_5 = arith.constant 0 : index
    %17 = vector.load %arg2[%c0_4, %c0_5] : memref<36x8xf32, #tpu.memory_space<vmem>>, vector<36x8xf32>
    %cst_6 = arith.constant dense<0.000000e+00> : vector<256x8xf32>
    %18 = tpu.matmul %16, %17, %cst_6 {dimension_numbers = #tpu.dot_dimension_numbers<[1], [0], [0], [1], [0, 0, 1, 1], [], []>} : vector<256x36xf32>, vector<36x8xf32>, vector<256x8xf32> -> vector<256x8xf32>
    %cst_7 = arith.constant dense<0.000000e+00> : vector<8xf32>
    %19 = vector.multi_reduction <add>, %18, %cst_7 [0] : vector<256x8xf32> to vector<8xf32>
    %20 = vector.shape_cast %19 : vector<8xf32> to vector<1x8xf32>
    %cst_8 = arith.constant 2.560000e+02 : f32
    %21 = vector.broadcast %cst_8 : f32 to vector<1x8xf32>
    %22 = arith.divf %20, %21 : vector<1x8xf32>
    %23 = vector.broadcast %22 : vector<1x8xf32> to vector<256x8xf32>
    %24 = arith.subf %18, %23 : vector<256x8xf32>
    %25 = arith.mulf %24, %24 : vector<256x8xf32>
    %cst_9 = arith.constant dense<0.000000e+00> : vector<8xf32>
    %26 = vector.multi_reduction <add>, %25, %cst_9 [0] : vector<256x8xf32> to vector<8xf32>
    %27 = vector.shape_cast %26 : vector<8xf32> to vector<1x8xf32>
    %cst_10 = arith.constant 2.560000e+02 : f32
    %28 = vector.broadcast %cst_10 : f32 to vector<1x8xf32>
    %29 = arith.divf %27, %28 : vector<1x8xf32>
    %30 = vector.broadcast %22 : vector<1x8xf32> to vector<256x8xf32>
    %31 = arith.subf %18, %30 : vector<256x8xf32>
    %cst_11 = arith.constant 9.99999974E-6 : f32
    %32 = vector.broadcast %cst_11 : f32 to vector<1x8xf32>
    %33 = arith.addf %29, %32 : vector<1x8xf32>
    %34 = math.rsqrt %33 : vector<1x8xf32>
    %35 = vector.broadcast %34 : vector<1x8xf32> to vector<256x8xf32>
    %36 = arith.mulf %31, %35 : vector<256x8xf32>
    %c0_12 = arith.constant 0 : index
    %c0_13 = arith.constant 0 : index
    %37 = vector.load %arg3[%c0_12, %c0_13] : memref<1x8xf32, #tpu.memory_space<vmem>>, vector<1x8xf32>
    %38 = vector.broadcast %37 : vector<1x8xf32> to vector<256x8xf32>
    %39 = arith.mulf %36, %38 : vector<256x8xf32>
    %c0_14 = arith.constant 0 : index
    %c0_15 = arith.constant 0 : index
    %40 = vector.load %arg4[%c0_14, %c0_15] : memref<1x8xf32, #tpu.memory_space<vmem>>, vector<1x8xf32>
    %41 = vector.broadcast %40 : vector<1x8xf32> to vector<256x8xf32>
    %42 = arith.addf %39, %41 : vector<256x8xf32>
    %cst_16 = arith.constant 0.000000e+00 : f32
    %43 = vector.broadcast %cst_16 : f32 to vector<256x8xf32>
    %44 = arith.maximumf %42, %43 : vector<256x8xf32>
    %45 = vector.shape_cast %44 : vector<256x8xf32> to vector<1x16x16x8xf32>
    %c0_17 = arith.constant 0 : index
    %c0_18 = arith.constant 0 : index
    %c0_19 = arith.constant 0 : index
    %c0_20 = arith.constant 0 : index
    %46 = vector.load %arg5[%c0_17, %c0_18, %c0_19, %c0_20] : memref<1x16x16x8xf32, #tpu.memory_space<vmem>>, vector<1x16x16x8xf32>
    tpu.vector_store %arg5[%c0_17, %c0_18, %c0_19, %c0_20], %45 {strides = array<i32>} : memref<1x16x16x8xf32, #tpu.memory_space<vmem>>, vector<1x16x16x8xf32>,
    return
  }
  func.func @transform_0(%arg0: i32) -> (i32, i32, i32, i32) {
    %c0_i32 = arith.constant 0 : i32
    %c0_i32_0 = arith.constant 0 : i32
    %c0_i32_1 = arith.constant 0 : i32
    %c0_i32_2 = arith.constant 0 : i32
    return %arg0, %c0_i32, %c0_i32_0, %c0_i32_1 : i32, i32, i32, i32
  }
  func.func @transform_1(%arg0: i32) -> (i32, i32) {
    %c0_i32 = arith.constant 0 : i32
    %c0_i32_0 = arith.constant 0 : i32
    %c0_i32_1 = arith.constant 0 : i32
    return %c0_i32, %c0_i32_0 : i32, i32
  }
  func.func @transform_2(%arg0: i32) -> (i32, i32) {
    %c0_i32 = arith.constant 0 : i32
    %c0_i32_0 = arith.constant 0 : i32
    %c0_i32_1 = arith.constant 0 : i32
    return %c0_i32, %c0_i32_0 : i32, i32
  }
  func.func @transform_3(%arg0: i32) -> (i32, i32) {
    %c0_i32 = arith.constant 0 : i32
    %c0_i32_0 = arith.constant 0 : i32
    %c0_i32_1 = arith.constant 0 : i32
    return %c0_i32, %c0_i32_0 : i32, i32
  }
  func.func @transform_4(%arg0: i32) -> (i32, i32, i32, i32) {
    %c0_i32 = arith.constant 0 : i32
    %c0_i32_0 = arith.constant 0 : i32
    %c0_i32_1 = arith.constant 0 : i32
    %c0_i32_2 = arith.constant 0 : i32
    return %arg0, %c0_i32, %c0_i32_0, %c0_i32_1 : i32, i32, i32, i32
  }
}

module attributes {stable_mosaic.version = 11 : i64} {
  func.func @_conv_down_in_relu_kernel(%arg0: i32, %arg1: memref<1x8x2x8x16xf32, #tpu.memory_space<vmem>>, %arg2: memref<32x8xf32, #tpu.memory_space<vmem>>, %arg3: memref<1x8xf32, #tpu.memory_space<vmem>>, %arg4: memref<1x8xf32, #tpu.memory_space<vmem>>, %arg5: memref<1x8x8x8xf32, #tpu.memory_space<vmem>>) attributes {dimension_semantics = [#tpu.dimension_semantics<parallel>], iteration_bounds = array<i64: 2>, scalar_prefetch = 0 : i64, scratch_operands = 0 : i64, tpu.core_type = #tpu.core_type<tc>, window_params = [{transform_indices = @transform_0, window_bounds = array<i64: 1, 8, 2, 8, 16>}, {pipeline_mode = #tpu.pipeline_mode<synchronous>, transform_indices = @transform_1, window_bounds = array<i64: 32, 8>}, {pipeline_mode = #tpu.pipeline_mode<synchronous>, transform_indices = @transform_2, window_bounds = array<i64: 1, 8>}, {pipeline_mode = #tpu.pipeline_mode<synchronous>, transform_indices = @transform_3, window_bounds = array<i64: 1, 8>}, {transform_indices = @transform_4, window_bounds = array<i64: 1, 8, 8, 8>}]} {
    %c0 = arith.constant 0 : index
    %c0_0 = arith.constant 0 : index
    %c0_1 = arith.constant 0 : index
    %c0_2 = arith.constant 0 : index
    %c0_3 = arith.constant 0 : index
    %0 = vector.load %arg1[%c0, %c0_0, %c0_1, %c0_2, %c0_3] : memref<1x8x2x8x16xf32, #tpu.memory_space<vmem>>, vector<1x8x2x8x16xf32>
    %1 = vector.shape_cast %0 : vector<1x8x2x8x16xf32> to vector<8x2x8x16xf32>
    %2 = vector.extract_strided_slice %1 {offsets = [0, 0, 0, 0], sizes = [8, 1, 8, 16], strides = [1, 1, 1, 1]} : vector<8x2x8x16xf32> to vector<8x1x8x16xf32>
    %3 = vector.shape_cast %2 : vector<8x1x8x16xf32> to vector<8x8x16xf32>
    %4 = vector.extract_strided_slice %1 {offsets = [0, 1, 0, 0], sizes = [8, 1, 8, 16], strides = [1, 1, 1, 1]} : vector<8x2x8x16xf32> to vector<8x1x8x16xf32>
    %5 = vector.shape_cast %4 : vector<8x1x8x16xf32> to vector<8x8x16xf32>
    %6 = tpu.concatenate %3, %5 in 2 : vector<8x8x16xf32>, vector<8x8x16xf32> -> vector<8x8x32xf32>
    %7 = vector.shape_cast %6 : vector<8x8x32xf32> to vector<64x32xf32>
    %c0_4 = arith.constant 0 : index
    %c0_5 = arith.constant 0 : index
    %8 = vector.load %arg2[%c0_4, %c0_5] : memref<32x8xf32, #tpu.memory_space<vmem>>, vector<32x8xf32>
    %cst = arith.constant dense<0.000000e+00> : vector<64x8xf32>
    %9 = tpu.matmul %7, %8, %cst {dimension_numbers = #tpu.dot_dimension_numbers<[1], [0], [0], [1], [0, 0, 1, 1], [], []>} : vector<64x32xf32>, vector<32x8xf32>, vector<64x8xf32> -> vector<64x8xf32>
    %cst_6 = arith.constant dense<0.000000e+00> : vector<8xf32>
    %10 = vector.multi_reduction <add>, %9, %cst_6 [0] : vector<64x8xf32> to vector<8xf32>
    %11 = vector.shape_cast %10 : vector<8xf32> to vector<1x8xf32>
    %cst_7 = arith.constant 6.400000e+01 : f32
    %12 = vector.broadcast %cst_7 : f32 to vector<1x8xf32>
    %13 = arith.divf %11, %12 : vector<1x8xf32>
    %14 = vector.broadcast %13 : vector<1x8xf32> to vector<64x8xf32>
    %15 = arith.subf %9, %14 : vector<64x8xf32>
    %16 = arith.mulf %15, %15 : vector<64x8xf32>
    %cst_8 = arith.constant dense<0.000000e+00> : vector<8xf32>
    %17 = vector.multi_reduction <add>, %16, %cst_8 [0] : vector<64x8xf32> to vector<8xf32>
    %18 = vector.shape_cast %17 : vector<8xf32> to vector<1x8xf32>
    %cst_9 = arith.constant 6.400000e+01 : f32
    %19 = vector.broadcast %cst_9 : f32 to vector<1x8xf32>
    %20 = arith.divf %18, %19 : vector<1x8xf32>
    %21 = vector.broadcast %13 : vector<1x8xf32> to vector<64x8xf32>
    %22 = arith.subf %9, %21 : vector<64x8xf32>
    %cst_10 = arith.constant 9.99999974E-6 : f32
    %23 = vector.broadcast %cst_10 : f32 to vector<1x8xf32>
    %24 = arith.addf %20, %23 : vector<1x8xf32>
    %25 = math.rsqrt %24 : vector<1x8xf32>
    %26 = vector.broadcast %25 : vector<1x8xf32> to vector<64x8xf32>
    %27 = arith.mulf %22, %26 : vector<64x8xf32>
    %c0_11 = arith.constant 0 : index
    %c0_12 = arith.constant 0 : index
    %28 = vector.load %arg3[%c0_11, %c0_12] : memref<1x8xf32, #tpu.memory_space<vmem>>, vector<1x8xf32>
    %29 = vector.broadcast %28 : vector<1x8xf32> to vector<64x8xf32>
    %30 = arith.mulf %27, %29 : vector<64x8xf32>
    %c0_13 = arith.constant 0 : index
    %c0_14 = arith.constant 0 : index
    %31 = vector.load %arg4[%c0_13, %c0_14] : memref<1x8xf32, #tpu.memory_space<vmem>>, vector<1x8xf32>
    %32 = vector.broadcast %31 : vector<1x8xf32> to vector<64x8xf32>
    %33 = arith.addf %30, %32 : vector<64x8xf32>
    %cst_15 = arith.constant 0.000000e+00 : f32
    %34 = vector.broadcast %cst_15 : f32 to vector<64x8xf32>
    %35 = arith.maximumf %33, %34 : vector<64x8xf32>
    %36 = vector.shape_cast %35 : vector<64x8xf32> to vector<1x8x8x8xf32>
    %c0_16 = arith.constant 0 : index
    %c0_17 = arith.constant 0 : index
    %c0_18 = arith.constant 0 : index
    %c0_19 = arith.constant 0 : index
    %37 = vector.load %arg5[%c0_16, %c0_17, %c0_18, %c0_19] : memref<1x8x8x8xf32, #tpu.memory_space<vmem>>, vector<1x8x8x8xf32>
    tpu.vector_store %arg5[%c0_16, %c0_17, %c0_18, %c0_19], %36 {strides = array<i32>} : memref<1x8x8x8xf32, #tpu.memory_space<vmem>>, vector<1x8x8x8xf32>,
    return
  }
  func.func @transform_0(%arg0: i32) -> (i32, i32, i32, i32, i32) {
    %c0_i32 = arith.constant 0 : i32
    %c0_i32_0 = arith.constant 0 : i32
    %c0_i32_1 = arith.constant 0 : i32
    %c0_i32_2 = arith.constant 0 : i32
    %c0_i32_3 = arith.constant 0 : i32
    return %arg0, %c0_i32, %c0_i32_0, %c0_i32_1, %c0_i32_2 : i32, i32, i32, i32, i32
  }
  func.func @transform_1(%arg0: i32) -> (i32, i32) {
    %c0_i32 = arith.constant 0 : i32
    %c0_i32_0 = arith.constant 0 : i32
    %c0_i32_1 = arith.constant 0 : i32
    return %c0_i32, %c0_i32_0 : i32, i32
  }
  func.func @transform_2(%arg0: i32) -> (i32, i32) {
    %c0_i32 = arith.constant 0 : i32
    %c0_i32_0 = arith.constant 0 : i32
    %c0_i32_1 = arith.constant 0 : i32
    return %c0_i32, %c0_i32_0 : i32, i32
  }
  func.func @transform_3(%arg0: i32) -> (i32, i32) {
    %c0_i32 = arith.constant 0 : i32
    %c0_i32_0 = arith.constant 0 : i32
    %c0_i32_1 = arith.constant 0 : i32
    return %c0_i32, %c0_i32_0 : i32, i32
  }
  func.func @transform_4(%arg0: i32) -> (i32, i32, i32, i32) {
    %c0_i32 = arith.constant 0 : i32
    %c0_i32_0 = arith.constant 0 : i32
    %c0_i32_1 = arith.constant 0 : i32
    %c0_i32_2 = arith.constant 0 : i32
    return %arg0, %c0_i32, %c0_i32_0, %c0_i32_1 : i32, i32, i32, i32
  }
}

module attributes {stable_mosaic.version = 11 : i64} {
  func.func @_conv3x3_in_relu_kernel(%arg0: i32, %arg1: memref<1x16x16x8xf32, #tpu.memory_space<vmem>>, %arg2: memref<72x8xf32, #tpu.memory_space<vmem>>, %arg3: memref<1x8xf32, #tpu.memory_space<vmem>>, %arg4: memref<1x8xf32, #tpu.memory_space<vmem>>, %arg5: memref<1x16x16x8xf32, #tpu.memory_space<vmem>>) attributes {dimension_semantics = [#tpu.dimension_semantics<parallel>], iteration_bounds = array<i64: 2>, scalar_prefetch = 0 : i64, scratch_operands = 0 : i64, tpu.core_type = #tpu.core_type<tc>, window_params = [{transform_indices = @transform_0, window_bounds = array<i64: 1, 16, 16, 8>}, {pipeline_mode = #tpu.pipeline_mode<synchronous>, transform_indices = @transform_1, window_bounds = array<i64: 72, 8>}, {pipeline_mode = #tpu.pipeline_mode<synchronous>, transform_indices = @transform_2, window_bounds = array<i64: 1, 8>}, {pipeline_mode = #tpu.pipeline_mode<synchronous>, transform_indices = @transform_3, window_bounds = array<i64: 1, 8>}, {transform_indices = @transform_4, window_bounds = array<i64: 1, 16, 16, 8>}]} {
    %c0 = arith.constant 0 : index
    %c0_0 = arith.constant 0 : index
    %c0_1 = arith.constant 0 : index
    %c0_2 = arith.constant 0 : index
    %0 = vector.load %arg1[%c0, %c0_0, %c0_1, %c0_2] : memref<1x16x16x8xf32, #tpu.memory_space<vmem>>, vector<1x16x16x8xf32>
    %1 = vector.shape_cast %0 : vector<1x16x16x8xf32> to vector<16x16x8xf32>
    %cst = arith.constant 0.000000e+00 : f32
    %2 = vector.broadcast %cst : f32 to vector<1x16x8xf32>
    %3 = tpu.concatenate %2, %1, %2 in 0 : vector<1x16x8xf32>, vector<16x16x8xf32>, vector<1x16x8xf32> -> vector<18x16x8xf32>
    %cst_3 = arith.constant 0.000000e+00 : f32
    %4 = vector.broadcast %cst_3 : f32 to vector<18x1x8xf32>
    %5 = tpu.concatenate %4, %3, %4 in 1 : vector<18x1x8xf32>, vector<18x16x8xf32>, vector<18x1x8xf32> -> vector<18x18x8xf32>
    %6 = vector.extract_strided_slice %5 {offsets = [0, 0, 0], sizes = [16, 16, 8], strides = [1, 1, 1]} : vector<18x18x8xf32> to vector<16x16x8xf32>
    %7 = vector.extract_strided_slice %5 {offsets = [0, 1, 0], sizes = [16, 16, 8], strides = [1, 1, 1]} : vector<18x18x8xf32> to vector<16x16x8xf32>
    %8 = vector.extract_strided_slice %5 {offsets = [0, 2, 0], sizes = [16, 16, 8], strides = [1, 1, 1]} : vector<18x18x8xf32> to vector<16x16x8xf32>
    %9 = vector.extract_strided_slice %5 {offsets = [1, 0, 0], sizes = [16, 16, 8], strides = [1, 1, 1]} : vector<18x18x8xf32> to vector<16x16x8xf32>
    %10 = vector.extract_strided_slice %5 {offsets = [1, 1, 0], sizes = [16, 16, 8], strides = [1, 1, 1]} : vector<18x18x8xf32> to vector<16x16x8xf32>
    %11 = vector.extract_strided_slice %5 {offsets = [1, 2, 0], sizes = [16, 16, 8], strides = [1, 1, 1]} : vector<18x18x8xf32> to vector<16x16x8xf32>
    %12 = vector.extract_strided_slice %5 {offsets = [2, 0, 0], sizes = [16, 16, 8], strides = [1, 1, 1]} : vector<18x18x8xf32> to vector<16x16x8xf32>
    %13 = vector.extract_strided_slice %5 {offsets = [2, 1, 0], sizes = [16, 16, 8], strides = [1, 1, 1]} : vector<18x18x8xf32> to vector<16x16x8xf32>
    %14 = vector.extract_strided_slice %5 {offsets = [2, 2, 0], sizes = [16, 16, 8], strides = [1, 1, 1]} : vector<18x18x8xf32> to vector<16x16x8xf32>
    %15 = tpu.concatenate %6, %7, %8, %9, %10, %11, %12, %13, %14 in 2 : vector<16x16x8xf32>, vector<16x16x8xf32>, vector<16x16x8xf32>, vector<16x16x8xf32>, vector<16x16x8xf32>, vector<16x16x8xf32>, vector<16x16x8xf32>, vector<16x16x8xf32>, vector<16x16x8xf32> -> vector<16x16x72xf32>
    %16 = vector.shape_cast %15 : vector<16x16x72xf32> to vector<256x72xf32>
    %c0_4 = arith.constant 0 : index
    %c0_5 = arith.constant 0 : index
    %17 = vector.load %arg2[%c0_4, %c0_5] : memref<72x8xf32, #tpu.memory_space<vmem>>, vector<72x8xf32>
    %cst_6 = arith.constant dense<0.000000e+00> : vector<256x8xf32>
    %18 = tpu.matmul %16, %17, %cst_6 {dimension_numbers = #tpu.dot_dimension_numbers<[1], [0], [0], [1], [0, 0, 1, 1], [], []>} : vector<256x72xf32>, vector<72x8xf32>, vector<256x8xf32> -> vector<256x8xf32>
    %cst_7 = arith.constant dense<0.000000e+00> : vector<8xf32>
    %19 = vector.multi_reduction <add>, %18, %cst_7 [0] : vector<256x8xf32> to vector<8xf32>
    %20 = vector.shape_cast %19 : vector<8xf32> to vector<1x8xf32>
    %cst_8 = arith.constant 2.560000e+02 : f32
    %21 = vector.broadcast %cst_8 : f32 to vector<1x8xf32>
    %22 = arith.divf %20, %21 : vector<1x8xf32>
    %23 = vector.broadcast %22 : vector<1x8xf32> to vector<256x8xf32>
    %24 = arith.subf %18, %23 : vector<256x8xf32>
    %25 = arith.mulf %24, %24 : vector<256x8xf32>
    %cst_9 = arith.constant dense<0.000000e+00> : vector<8xf32>
    %26 = vector.multi_reduction <add>, %25, %cst_9 [0] : vector<256x8xf32> to vector<8xf32>
    %27 = vector.shape_cast %26 : vector<8xf32> to vector<1x8xf32>
    %cst_10 = arith.constant 2.560000e+02 : f32
    %28 = vector.broadcast %cst_10 : f32 to vector<1x8xf32>
    %29 = arith.divf %27, %28 : vector<1x8xf32>
    %30 = vector.broadcast %22 : vector<1x8xf32> to vector<256x8xf32>
    %31 = arith.subf %18, %30 : vector<256x8xf32>
    %cst_11 = arith.constant 9.99999974E-6 : f32
    %32 = vector.broadcast %cst_11 : f32 to vector<1x8xf32>
    %33 = arith.addf %29, %32 : vector<1x8xf32>
    %34 = math.rsqrt %33 : vector<1x8xf32>
    %35 = vector.broadcast %34 : vector<1x8xf32> to vector<256x8xf32>
    %36 = arith.mulf %31, %35 : vector<256x8xf32>
    %c0_12 = arith.constant 0 : index
    %c0_13 = arith.constant 0 : index
    %37 = vector.load %arg3[%c0_12, %c0_13] : memref<1x8xf32, #tpu.memory_space<vmem>>, vector<1x8xf32>
    %38 = vector.broadcast %37 : vector<1x8xf32> to vector<256x8xf32>
    %39 = arith.mulf %36, %38 : vector<256x8xf32>
    %c0_14 = arith.constant 0 : index
    %c0_15 = arith.constant 0 : index
    %40 = vector.load %arg4[%c0_14, %c0_15] : memref<1x8xf32, #tpu.memory_space<vmem>>, vector<1x8xf32>
    %41 = vector.broadcast %40 : vector<1x8xf32> to vector<256x8xf32>
    %42 = arith.addf %39, %41 : vector<256x8xf32>
    %cst_16 = arith.constant 0.000000e+00 : f32
    %43 = vector.broadcast %cst_16 : f32 to vector<256x8xf32>
    %44 = arith.maximumf %42, %43 : vector<256x8xf32>
    %45 = vector.shape_cast %44 : vector<256x8xf32> to vector<1x16x16x8xf32>
    %c0_17 = arith.constant 0 : index
    %c0_18 = arith.constant 0 : index
    %c0_19 = arith.constant 0 : index
    %c0_20 = arith.constant 0 : index
    %46 = vector.load %arg5[%c0_17, %c0_18, %c0_19, %c0_20] : memref<1x16x16x8xf32, #tpu.memory_space<vmem>>, vector<1x16x16x8xf32>
    tpu.vector_store %arg5[%c0_17, %c0_18, %c0_19, %c0_20], %45 {strides = array<i32>} : memref<1x16x16x8xf32, #tpu.memory_space<vmem>>, vector<1x16x16x8xf32>,
    return
  }
  func.func @transform_0(%arg0: i32) -> (i32, i32, i32, i32) {
    %c0_i32 = arith.constant 0 : i32
    %c0_i32_0 = arith.constant 0 : i32
    %c0_i32_1 = arith.constant 0 : i32
    %c0_i32_2 = arith.constant 0 : i32
    return %arg0, %c0_i32, %c0_i32_0, %c0_i32_1 : i32, i32, i32, i32
  }
  func.func @transform_1(%arg0: i32) -> (i32, i32) {
    %c0_i32 = arith.constant 0 : i32
    %c0_i32_0 = arith.constant 0 : i32
    %c0_i32_1 = arith.constant 0 : i32
    return %c0_i32, %c0_i32_0 : i32, i32
  }
  func.func @transform_2(%arg0: i32) -> (i32, i32) {
    %c0_i32 = arith.constant 0 : i32
    %c0_i32_0 = arith.constant 0 : i32
    %c0_i32_1 = arith.constant 0 : i32
    return %c0_i32, %c0_i32_0 : i32, i32
  }
  func.func @transform_3(%arg0: i32) -> (i32, i32) {
    %c0_i32 = arith.constant 0 : i32
    %c0_i32_0 = arith.constant 0 : i32
    %c0_i32_1 = arith.constant 0 : i32
    return %c0_i32, %c0_i32_0 : i32, i32
  }
  func.func @transform_4(%arg0: i32) -> (i32, i32, i32, i32) {
    %c0_i32 = arith.constant 0 : i32
    %c0_i32_0 = arith.constant 0 : i32
    %c0_i32_1 = arith.constant 0 : i32
    %c0_i32_2 = arith.constant 0 : i32
    return %arg0, %c0_i32, %c0_i32_0, %c0_i32_1 : i32, i32, i32, i32
  }
}

module attributes {stable_mosaic.version = 11 : i64} {
  func.func @_conv3x3_in_relu_kernel(%arg0: i32, %arg1: memref<1x8x8x8xf32, #tpu.memory_space<vmem>>, %arg2: memref<72x16xf32, #tpu.memory_space<vmem>>, %arg3: memref<1x16xf32, #tpu.memory_space<vmem>>, %arg4: memref<1x16xf32, #tpu.memory_space<vmem>>, %arg5: memref<1x8x8x16xf32, #tpu.memory_space<vmem>>) attributes {dimension_semantics = [#tpu.dimension_semantics<parallel>], iteration_bounds = array<i64: 2>, scalar_prefetch = 0 : i64, scratch_operands = 0 : i64, tpu.core_type = #tpu.core_type<tc>, window_params = [{transform_indices = @transform_0, window_bounds = array<i64: 1, 8, 8, 8>}, {pipeline_mode = #tpu.pipeline_mode<synchronous>, transform_indices = @transform_1, window_bounds = array<i64: 72, 16>}, {pipeline_mode = #tpu.pipeline_mode<synchronous>, transform_indices = @transform_2, window_bounds = array<i64: 1, 16>}, {pipeline_mode = #tpu.pipeline_mode<synchronous>, transform_indices = @transform_3, window_bounds = array<i64: 1, 16>}, {transform_indices = @transform_4, window_bounds = array<i64: 1, 8, 8, 16>}]} {
    %c0 = arith.constant 0 : index
    %c0_0 = arith.constant 0 : index
    %c0_1 = arith.constant 0 : index
    %c0_2 = arith.constant 0 : index
    %0 = vector.load %arg1[%c0, %c0_0, %c0_1, %c0_2] : memref<1x8x8x8xf32, #tpu.memory_space<vmem>>, vector<1x8x8x8xf32>
    %1 = vector.shape_cast %0 : vector<1x8x8x8xf32> to vector<8x8x8xf32>
    %cst = arith.constant 0.000000e+00 : f32
    %2 = vector.broadcast %cst : f32 to vector<1x8x8xf32>
    %3 = tpu.concatenate %2, %1, %2 in 0 : vector<1x8x8xf32>, vector<8x8x8xf32>, vector<1x8x8xf32> -> vector<10x8x8xf32>
    %cst_3 = arith.constant 0.000000e+00 : f32
    %4 = vector.broadcast %cst_3 : f32 to vector<10x1x8xf32>
    %5 = tpu.concatenate %4, %3, %4 in 1 : vector<10x1x8xf32>, vector<10x8x8xf32>, vector<10x1x8xf32> -> vector<10x10x8xf32>
    %6 = vector.extract_strided_slice %5 {offsets = [0, 0, 0], sizes = [8, 8, 8], strides = [1, 1, 1]} : vector<10x10x8xf32> to vector<8x8x8xf32>
    %7 = vector.extract_strided_slice %5 {offsets = [0, 1, 0], sizes = [8, 8, 8], strides = [1, 1, 1]} : vector<10x10x8xf32> to vector<8x8x8xf32>
    %8 = vector.extract_strided_slice %5 {offsets = [0, 2, 0], sizes = [8, 8, 8], strides = [1, 1, 1]} : vector<10x10x8xf32> to vector<8x8x8xf32>
    %9 = vector.extract_strided_slice %5 {offsets = [1, 0, 0], sizes = [8, 8, 8], strides = [1, 1, 1]} : vector<10x10x8xf32> to vector<8x8x8xf32>
    %10 = vector.extract_strided_slice %5 {offsets = [1, 1, 0], sizes = [8, 8, 8], strides = [1, 1, 1]} : vector<10x10x8xf32> to vector<8x8x8xf32>
    %11 = vector.extract_strided_slice %5 {offsets = [1, 2, 0], sizes = [8, 8, 8], strides = [1, 1, 1]} : vector<10x10x8xf32> to vector<8x8x8xf32>
    %12 = vector.extract_strided_slice %5 {offsets = [2, 0, 0], sizes = [8, 8, 8], strides = [1, 1, 1]} : vector<10x10x8xf32> to vector<8x8x8xf32>
    %13 = vector.extract_strided_slice %5 {offsets = [2, 1, 0], sizes = [8, 8, 8], strides = [1, 1, 1]} : vector<10x10x8xf32> to vector<8x8x8xf32>
    %14 = vector.extract_strided_slice %5 {offsets = [2, 2, 0], sizes = [8, 8, 8], strides = [1, 1, 1]} : vector<10x10x8xf32> to vector<8x8x8xf32>
    %15 = tpu.concatenate %6, %7, %8, %9, %10, %11, %12, %13, %14 in 2 : vector<8x8x8xf32>, vector<8x8x8xf32>, vector<8x8x8xf32>, vector<8x8x8xf32>, vector<8x8x8xf32>, vector<8x8x8xf32>, vector<8x8x8xf32>, vector<8x8x8xf32>, vector<8x8x8xf32> -> vector<8x8x72xf32>
    %16 = vector.shape_cast %15 : vector<8x8x72xf32> to vector<64x72xf32>
    %c0_4 = arith.constant 0 : index
    %c0_5 = arith.constant 0 : index
    %17 = vector.load %arg2[%c0_4, %c0_5] : memref<72x16xf32, #tpu.memory_space<vmem>>, vector<72x16xf32>
    %cst_6 = arith.constant dense<0.000000e+00> : vector<64x16xf32>
    %18 = tpu.matmul %16, %17, %cst_6 {dimension_numbers = #tpu.dot_dimension_numbers<[1], [0], [0], [1], [0, 0, 1, 1], [], []>} : vector<64x72xf32>, vector<72x16xf32>, vector<64x16xf32> -> vector<64x16xf32>
    %cst_7 = arith.constant dense<0.000000e+00> : vector<16xf32>
    %19 = vector.multi_reduction <add>, %18, %cst_7 [0] : vector<64x16xf32> to vector<16xf32>
    %20 = vector.shape_cast %19 : vector<16xf32> to vector<1x16xf32>
    %cst_8 = arith.constant 6.400000e+01 : f32
    %21 = vector.broadcast %cst_8 : f32 to vector<1x16xf32>
    %22 = arith.divf %20, %21 : vector<1x16xf32>
    %23 = vector.broadcast %22 : vector<1x16xf32> to vector<64x16xf32>
    %24 = arith.subf %18, %23 : vector<64x16xf32>
    %25 = arith.mulf %24, %24 : vector<64x16xf32>
    %cst_9 = arith.constant dense<0.000000e+00> : vector<16xf32>
    %26 = vector.multi_reduction <add>, %25, %cst_9 [0] : vector<64x16xf32> to vector<16xf32>
    %27 = vector.shape_cast %26 : vector<16xf32> to vector<1x16xf32>
    %cst_10 = arith.constant 6.400000e+01 : f32
    %28 = vector.broadcast %cst_10 : f32 to vector<1x16xf32>
    %29 = arith.divf %27, %28 : vector<1x16xf32>
    %30 = vector.broadcast %22 : vector<1x16xf32> to vector<64x16xf32>
    %31 = arith.subf %18, %30 : vector<64x16xf32>
    %cst_11 = arith.constant 9.99999974E-6 : f32
    %32 = vector.broadcast %cst_11 : f32 to vector<1x16xf32>
    %33 = arith.addf %29, %32 : vector<1x16xf32>
    %34 = math.rsqrt %33 : vector<1x16xf32>
    %35 = vector.broadcast %34 : vector<1x16xf32> to vector<64x16xf32>
    %36 = arith.mulf %31, %35 : vector<64x16xf32>
    %c0_12 = arith.constant 0 : index
    %c0_13 = arith.constant 0 : index
    %37 = vector.load %arg3[%c0_12, %c0_13] : memref<1x16xf32, #tpu.memory_space<vmem>>, vector<1x16xf32>
    %38 = vector.broadcast %37 : vector<1x16xf32> to vector<64x16xf32>
    %39 = arith.mulf %36, %38 : vector<64x16xf32>
    %c0_14 = arith.constant 0 : index
    %c0_15 = arith.constant 0 : index
    %40 = vector.load %arg4[%c0_14, %c0_15] : memref<1x16xf32, #tpu.memory_space<vmem>>, vector<1x16xf32>
    %41 = vector.broadcast %40 : vector<1x16xf32> to vector<64x16xf32>
    %42 = arith.addf %39, %41 : vector<64x16xf32>
    %cst_16 = arith.constant 0.000000e+00 : f32
    %43 = vector.broadcast %cst_16 : f32 to vector<64x16xf32>
    %44 = arith.maximumf %42, %43 : vector<64x16xf32>
    %45 = vector.shape_cast %44 : vector<64x16xf32> to vector<1x8x8x16xf32>
    %c0_17 = arith.constant 0 : index
    %c0_18 = arith.constant 0 : index
    %c0_19 = arith.constant 0 : index
    %c0_20 = arith.constant 0 : index
    %46 = vector.load %arg5[%c0_17, %c0_18, %c0_19, %c0_20] : memref<1x8x8x16xf32, #tpu.memory_space<vmem>>, vector<1x8x8x16xf32>
    tpu.vector_store %arg5[%c0_17, %c0_18, %c0_19, %c0_20], %45 {strides = array<i32>} : memref<1x8x8x16xf32, #tpu.memory_space<vmem>>, vector<1x8x8x16xf32>,
    return
  }
  func.func @transform_0(%arg0: i32) -> (i32, i32, i32, i32) {
    %c0_i32 = arith.constant 0 : i32
    %c0_i32_0 = arith.constant 0 : i32
    %c0_i32_1 = arith.constant 0 : i32
    %c0_i32_2 = arith.constant 0 : i32
    return %arg0, %c0_i32, %c0_i32_0, %c0_i32_1 : i32, i32, i32, i32
  }
  func.func @transform_1(%arg0: i32) -> (i32, i32) {
    %c0_i32 = arith.constant 0 : i32
    %c0_i32_0 = arith.constant 0 : i32
    %c0_i32_1 = arith.constant 0 : i32
    return %c0_i32, %c0_i32_0 : i32, i32
  }
  func.func @transform_2(%arg0: i32) -> (i32, i32) {
    %c0_i32 = arith.constant 0 : i32
    %c0_i32_0 = arith.constant 0 : i32
    %c0_i32_1 = arith.constant 0 : i32
    return %c0_i32, %c0_i32_0 : i32, i32
  }
  func.func @transform_3(%arg0: i32) -> (i32, i32) {
    %c0_i32 = arith.constant 0 : i32
    %c0_i32_0 = arith.constant 0 : i32
    %c0_i32_1 = arith.constant 0 : i32
    return %c0_i32, %c0_i32_0 : i32, i32
  }
  func.func @transform_4(%arg0: i32) -> (i32, i32, i32, i32) {
    %c0_i32 = arith.constant 0 : i32
    %c0_i32_0 = arith.constant 0 : i32
    %c0_i32_1 = arith.constant 0 : i32
    %c0_i32_2 = arith.constant 0 : i32
    return %arg0, %c0_i32, %c0_i32_0, %c0_i32_1 : i32, i32, i32, i32
  }
}

module attributes {stable_mosaic.version = 11 : i64} {
  func.func @_conv3x3_in_relu_kernel(%arg0: i32, %arg1: memref<1x8x8x16xf32, #tpu.memory_space<vmem>>, %arg2: memref<144x16xf32, #tpu.memory_space<vmem>>, %arg3: memref<1x16xf32, #tpu.memory_space<vmem>>, %arg4: memref<1x16xf32, #tpu.memory_space<vmem>>, %arg5: memref<1x8x8x16xf32, #tpu.memory_space<vmem>>) attributes {dimension_semantics = [#tpu.dimension_semantics<parallel>], iteration_bounds = array<i64: 2>, scalar_prefetch = 0 : i64, scratch_operands = 0 : i64, tpu.core_type = #tpu.core_type<tc>, window_params = [{transform_indices = @transform_0, window_bounds = array<i64: 1, 8, 8, 16>}, {pipeline_mode = #tpu.pipeline_mode<synchronous>, transform_indices = @transform_1, window_bounds = array<i64: 144, 16>}, {pipeline_mode = #tpu.pipeline_mode<synchronous>, transform_indices = @transform_2, window_bounds = array<i64: 1, 16>}, {pipeline_mode = #tpu.pipeline_mode<synchronous>, transform_indices = @transform_3, window_bounds = array<i64: 1, 16>}, {transform_indices = @transform_4, window_bounds = array<i64: 1, 8, 8, 16>}]} {
    %c0 = arith.constant 0 : index
    %c0_0 = arith.constant 0 : index
    %c0_1 = arith.constant 0 : index
    %c0_2 = arith.constant 0 : index
    %0 = vector.load %arg1[%c0, %c0_0, %c0_1, %c0_2] : memref<1x8x8x16xf32, #tpu.memory_space<vmem>>, vector<1x8x8x16xf32>
    %1 = vector.shape_cast %0 : vector<1x8x8x16xf32> to vector<8x8x16xf32>
    %cst = arith.constant 0.000000e+00 : f32
    %2 = vector.broadcast %cst : f32 to vector<1x8x16xf32>
    %3 = tpu.concatenate %2, %1, %2 in 0 : vector<1x8x16xf32>, vector<8x8x16xf32>, vector<1x8x16xf32> -> vector<10x8x16xf32>
    %cst_3 = arith.constant 0.000000e+00 : f32
    %4 = vector.broadcast %cst_3 : f32 to vector<10x1x16xf32>
    %5 = tpu.concatenate %4, %3, %4 in 1 : vector<10x1x16xf32>, vector<10x8x16xf32>, vector<10x1x16xf32> -> vector<10x10x16xf32>
    %6 = vector.extract_strided_slice %5 {offsets = [0, 0, 0], sizes = [8, 8, 16], strides = [1, 1, 1]} : vector<10x10x16xf32> to vector<8x8x16xf32>
    %7 = vector.extract_strided_slice %5 {offsets = [0, 1, 0], sizes = [8, 8, 16], strides = [1, 1, 1]} : vector<10x10x16xf32> to vector<8x8x16xf32>
    %8 = vector.extract_strided_slice %5 {offsets = [0, 2, 0], sizes = [8, 8, 16], strides = [1, 1, 1]} : vector<10x10x16xf32> to vector<8x8x16xf32>
    %9 = vector.extract_strided_slice %5 {offsets = [1, 0, 0], sizes = [8, 8, 16], strides = [1, 1, 1]} : vector<10x10x16xf32> to vector<8x8x16xf32>
    %10 = vector.extract_strided_slice %5 {offsets = [1, 1, 0], sizes = [8, 8, 16], strides = [1, 1, 1]} : vector<10x10x16xf32> to vector<8x8x16xf32>
    %11 = vector.extract_strided_slice %5 {offsets = [1, 2, 0], sizes = [8, 8, 16], strides = [1, 1, 1]} : vector<10x10x16xf32> to vector<8x8x16xf32>
    %12 = vector.extract_strided_slice %5 {offsets = [2, 0, 0], sizes = [8, 8, 16], strides = [1, 1, 1]} : vector<10x10x16xf32> to vector<8x8x16xf32>
    %13 = vector.extract_strided_slice %5 {offsets = [2, 1, 0], sizes = [8, 8, 16], strides = [1, 1, 1]} : vector<10x10x16xf32> to vector<8x8x16xf32>
    %14 = vector.extract_strided_slice %5 {offsets = [2, 2, 0], sizes = [8, 8, 16], strides = [1, 1, 1]} : vector<10x10x16xf32> to vector<8x8x16xf32>
    %15 = tpu.concatenate %6, %7, %8, %9, %10, %11, %12, %13, %14 in 2 : vector<8x8x16xf32>, vector<8x8x16xf32>, vector<8x8x16xf32>, vector<8x8x16xf32>, vector<8x8x16xf32>, vector<8x8x16xf32>, vector<8x8x16xf32>, vector<8x8x16xf32>, vector<8x8x16xf32> -> vector<8x8x144xf32>
    %16 = vector.shape_cast %15 : vector<8x8x144xf32> to vector<64x144xf32>
    %c0_4 = arith.constant 0 : index
    %c0_5 = arith.constant 0 : index
    %17 = vector.load %arg2[%c0_4, %c0_5] : memref<144x16xf32, #tpu.memory_space<vmem>>, vector<144x16xf32>
    %cst_6 = arith.constant dense<0.000000e+00> : vector<64x16xf32>
    %18 = tpu.matmul %16, %17, %cst_6 {dimension_numbers = #tpu.dot_dimension_numbers<[1], [0], [0], [1], [0, 0, 1, 1], [], []>} : vector<64x144xf32>, vector<144x16xf32>, vector<64x16xf32> -> vector<64x16xf32>
    %cst_7 = arith.constant dense<0.000000e+00> : vector<16xf32>
    %19 = vector.multi_reduction <add>, %18, %cst_7 [0] : vector<64x16xf32> to vector<16xf32>
    %20 = vector.shape_cast %19 : vector<16xf32> to vector<1x16xf32>
    %cst_8 = arith.constant 6.400000e+01 : f32
    %21 = vector.broadcast %cst_8 : f32 to vector<1x16xf32>
    %22 = arith.divf %20, %21 : vector<1x16xf32>
    %23 = vector.broadcast %22 : vector<1x16xf32> to vector<64x16xf32>
    %24 = arith.subf %18, %23 : vector<64x16xf32>
    %25 = arith.mulf %24, %24 : vector<64x16xf32>
    %cst_9 = arith.constant dense<0.000000e+00> : vector<16xf32>
    %26 = vector.multi_reduction <add>, %25, %cst_9 [0] : vector<64x16xf32> to vector<16xf32>
    %27 = vector.shape_cast %26 : vector<16xf32> to vector<1x16xf32>
    %cst_10 = arith.constant 6.400000e+01 : f32
    %28 = vector.broadcast %cst_10 : f32 to vector<1x16xf32>
    %29 = arith.divf %27, %28 : vector<1x16xf32>
    %30 = vector.broadcast %22 : vector<1x16xf32> to vector<64x16xf32>
    %31 = arith.subf %18, %30 : vector<64x16xf32>
    %cst_11 = arith.constant 9.99999974E-6 : f32
    %32 = vector.broadcast %cst_11 : f32 to vector<1x16xf32>
    %33 = arith.addf %29, %32 : vector<1x16xf32>
    %34 = math.rsqrt %33 : vector<1x16xf32>
    %35 = vector.broadcast %34 : vector<1x16xf32> to vector<64x16xf32>
    %36 = arith.mulf %31, %35 : vector<64x16xf32>
    %c0_12 = arith.constant 0 : index
    %c0_13 = arith.constant 0 : index
    %37 = vector.load %arg3[%c0_12, %c0_13] : memref<1x16xf32, #tpu.memory_space<vmem>>, vector<1x16xf32>
    %38 = vector.broadcast %37 : vector<1x16xf32> to vector<64x16xf32>
    %39 = arith.mulf %36, %38 : vector<64x16xf32>
    %c0_14 = arith.constant 0 : index
    %c0_15 = arith.constant 0 : index
    %40 = vector.load %arg4[%c0_14, %c0_15] : memref<1x16xf32, #tpu.memory_space<vmem>>, vector<1x16xf32>
    %41 = vector.broadcast %40 : vector<1x16xf32> to vector<64x16xf32>
    %42 = arith.addf %39, %41 : vector<64x16xf32>
    %cst_16 = arith.constant 0.000000e+00 : f32
    %43 = vector.broadcast %cst_16 : f32 to vector<64x16xf32>
    %44 = arith.maximumf %42, %43 : vector<64x16xf32>
    %45 = vector.shape_cast %44 : vector<64x16xf32> to vector<1x8x8x16xf32>
    %c0_17 = arith.constant 0 : index
    %c0_18 = arith.constant 0 : index
    %c0_19 = arith.constant 0 : index
    %c0_20 = arith.constant 0 : index
    %46 = vector.load %arg5[%c0_17, %c0_18, %c0_19, %c0_20] : memref<1x8x8x16xf32, #tpu.memory_space<vmem>>, vector<1x8x8x16xf32>
    tpu.vector_store %arg5[%c0_17, %c0_18, %c0_19, %c0_20], %45 {strides = array<i32>} : memref<1x8x8x16xf32, #tpu.memory_space<vmem>>, vector<1x8x8x16xf32>,
    return
  }
  func.func @transform_0(%arg0: i32) -> (i32, i32, i32, i32) {
    %c0_i32 = arith.constant 0 : i32
    %c0_i32_0 = arith.constant 0 : i32
    %c0_i32_1 = arith.constant 0 : i32
    %c0_i32_2 = arith.constant 0 : i32
    return %arg0, %c0_i32, %c0_i32_0, %c0_i32_1 : i32, i32, i32, i32
  }
  func.func @transform_1(%arg0: i32) -> (i32, i32) {
    %c0_i32 = arith.constant 0 : i32
    %c0_i32_0 = arith.constant 0 : i32
    %c0_i32_1 = arith.constant 0 : i32
    return %c0_i32, %c0_i32_0 : i32, i32
  }
  func.func @transform_2(%arg0: i32) -> (i32, i32) {
    %c0_i32 = arith.constant 0 : i32
    %c0_i32_0 = arith.constant 0 : i32
    %c0_i32_1 = arith.constant 0 : i32
    return %c0_i32, %c0_i32_0 : i32, i32
  }
  func.func @transform_3(%arg0: i32) -> (i32, i32) {
    %c0_i32 = arith.constant 0 : i32
    %c0_i32_0 = arith.constant 0 : i32
    %c0_i32_1 = arith.constant 0 : i32
    return %c0_i32, %c0_i32_0 : i32, i32
  }
  func.func @transform_4(%arg0: i32) -> (i32, i32, i32, i32) {
    %c0_i32 = arith.constant 0 : i32
    %c0_i32_0 = arith.constant 0 : i32
    %c0_i32_1 = arith.constant 0 : i32
    %c0_i32_2 = arith.constant 0 : i32
    return %arg0, %c0_i32, %c0_i32_0, %c0_i32_1 : i32, i32, i32, i32
  }
}

module attributes {stable_mosaic.version = 11 : i64} {
  func.func @_convt2x2_in_relu_kernel(%arg0: i32, %arg1: memref<1x64x16xf32, #tpu.memory_space<vmem>>, %arg2: memref<16x32xf32, #tpu.memory_space<vmem>>, %arg3: memref<1x32xf32, #tpu.memory_space<vmem>>, %arg4: memref<1x32xf32, #tpu.memory_space<vmem>>, %arg5: memref<1x8x2x8x16xf32, #tpu.memory_space<vmem>>) attributes {dimension_semantics = [#tpu.dimension_semantics<parallel>], iteration_bounds = array<i64: 2>, scalar_prefetch = 0 : i64, scratch_operands = 0 : i64, tpu.core_type = #tpu.core_type<tc>, window_params = [{transform_indices = @transform_0, window_bounds = array<i64: 1, 64, 16>}, {pipeline_mode = #tpu.pipeline_mode<synchronous>, transform_indices = @transform_1, window_bounds = array<i64: 16, 32>}, {pipeline_mode = #tpu.pipeline_mode<synchronous>, transform_indices = @transform_2, window_bounds = array<i64: 1, 32>}, {pipeline_mode = #tpu.pipeline_mode<synchronous>, transform_indices = @transform_3, window_bounds = array<i64: 1, 32>}, {transform_indices = @transform_4, window_bounds = array<i64: 1, 8, 2, 8, 16>}]} {
    %c0 = arith.constant 0 : index
    %c0_0 = arith.constant 0 : index
    %c0_1 = arith.constant 0 : index
    %0 = vector.load %arg1[%c0, %c0_0, %c0_1] : memref<1x64x16xf32, #tpu.memory_space<vmem>>, vector<1x64x16xf32>
    %1 = vector.shape_cast %0 : vector<1x64x16xf32> to vector<64x16xf32>
    %c0_2 = arith.constant 0 : index
    %c0_3 = arith.constant 0 : index
    %2 = vector.load %arg2[%c0_2, %c0_3] : memref<16x32xf32, #tpu.memory_space<vmem>>, vector<16x32xf32>
    %cst = arith.constant dense<0.000000e+00> : vector<64x32xf32>
    %3 = tpu.matmul %1, %2, %cst {dimension_numbers = #tpu.dot_dimension_numbers<[1], [0], [0], [1], [0, 0, 1, 1], [], []>} : vector<64x16xf32>, vector<16x32xf32>, vector<64x32xf32> -> vector<64x32xf32>
    %cst_4 = arith.constant dense<0.000000e+00> : vector<32xf32>
    %4 = vector.multi_reduction <add>, %3, %cst_4 [0] : vector<64x32xf32> to vector<32xf32>
    %5 = vector.shape_cast %4 : vector<32xf32> to vector<1x32xf32>
    %6 = vector.extract_strided_slice %5 {offsets = [0, 0], sizes = [1, 8], strides = [1, 1]} : vector<1x32xf32> to vector<1x8xf32>
    %7 = vector.extract_strided_slice %5 {offsets = [0, 8], sizes = [1, 8], strides = [1, 1]} : vector<1x32xf32> to vector<1x8xf32>
    %8 = arith.addf %6, %7 : vector<1x8xf32>
    %9 = vector.extract_strided_slice %5 {offsets = [0, 16], sizes = [1, 8], strides = [1, 1]} : vector<1x32xf32> to vector<1x8xf32>
    %10 = arith.addf %8, %9 : vector<1x8xf32>
    %11 = vector.extract_strided_slice %5 {offsets = [0, 24], sizes = [1, 8], strides = [1, 1]} : vector<1x32xf32> to vector<1x8xf32>
    %12 = arith.addf %10, %11 : vector<1x8xf32>
    %cst_5 = arith.constant 3.906250e-03 : f32
    %13 = vector.broadcast %cst_5 : f32 to vector<1x8xf32>
    %14 = arith.mulf %12, %13 : vector<1x8xf32>
    %15 = tpu.concatenate %14, %14, %14, %14 in 1 : vector<1x8xf32>, vector<1x8xf32>, vector<1x8xf32>, vector<1x8xf32> -> vector<1x32xf32>
    %16 = vector.broadcast %15 : vector<1x32xf32> to vector<64x32xf32>
    %17 = arith.subf %3, %16 : vector<64x32xf32>
    %18 = arith.mulf %17, %17 : vector<64x32xf32>
    %cst_6 = arith.constant dense<0.000000e+00> : vector<32xf32>
    %19 = vector.multi_reduction <add>, %18, %cst_6 [0] : vector<64x32xf32> to vector<32xf32>
    %20 = vector.shape_cast %19 : vector<32xf32> to vector<1x32xf32>
    %21 = vector.extract_strided_slice %20 {offsets = [0, 0], sizes = [1, 8], strides = [1, 1]} : vector<1x32xf32> to vector<1x8xf32>
    %22 = vector.extract_strided_slice %20 {offsets = [0, 8], sizes = [1, 8], strides = [1, 1]} : vector<1x32xf32> to vector<1x8xf32>
    %23 = arith.addf %21, %22 : vector<1x8xf32>
    %24 = vector.extract_strided_slice %20 {offsets = [0, 16], sizes = [1, 8], strides = [1, 1]} : vector<1x32xf32> to vector<1x8xf32>
    %25 = arith.addf %23, %24 : vector<1x8xf32>
    %26 = vector.extract_strided_slice %20 {offsets = [0, 24], sizes = [1, 8], strides = [1, 1]} : vector<1x32xf32> to vector<1x8xf32>
    %27 = arith.addf %25, %26 : vector<1x8xf32>
    %cst_7 = arith.constant 3.906250e-03 : f32
    %28 = vector.broadcast %cst_7 : f32 to vector<1x8xf32>
    %29 = arith.mulf %27, %28 : vector<1x8xf32>
    %cst_8 = arith.constant 9.99999974E-6 : f32
    %30 = vector.broadcast %cst_8 : f32 to vector<1x8xf32>
    %31 = arith.addf %29, %30 : vector<1x8xf32>
    %32 = math.rsqrt %31 : vector<1x8xf32>
    %33 = tpu.concatenate %32, %32, %32, %32 in 1 : vector<1x8xf32>, vector<1x8xf32>, vector<1x8xf32>, vector<1x8xf32> -> vector<1x32xf32>
    %34 = vector.broadcast %33 : vector<1x32xf32> to vector<64x32xf32>
    %35 = arith.mulf %17, %34 : vector<64x32xf32>
    %c0_9 = arith.constant 0 : index
    %c0_10 = arith.constant 0 : index
    %36 = vector.load %arg3[%c0_9, %c0_10] : memref<1x32xf32, #tpu.memory_space<vmem>>, vector<1x32xf32>
    %37 = vector.broadcast %36 : vector<1x32xf32> to vector<64x32xf32>
    %38 = arith.mulf %35, %37 : vector<64x32xf32>
    %c0_11 = arith.constant 0 : index
    %c0_12 = arith.constant 0 : index
    %39 = vector.load %arg4[%c0_11, %c0_12] : memref<1x32xf32, #tpu.memory_space<vmem>>, vector<1x32xf32>
    %40 = vector.broadcast %39 : vector<1x32xf32> to vector<64x32xf32>
    %41 = arith.addf %38, %40 : vector<64x32xf32>
    %cst_13 = arith.constant 0.000000e+00 : f32
    %42 = vector.broadcast %cst_13 : f32 to vector<64x32xf32>
    %43 = arith.maximumf %41, %42 : vector<64x32xf32>
    %44 = vector.extract_strided_slice %43 {offsets = [0, 0], sizes = [64, 16], strides = [1, 1]} : vector<64x32xf32> to vector<64x16xf32>
    %45 = vector.shape_cast %44 : vector<64x16xf32> to vector<1x8x1x8x16xf32>
    %c0_14 = arith.constant 0 : index
    %c0_15 = arith.constant 0 : index
    %c0_16 = arith.constant 0 : index
    %c0_17 = arith.constant 0 : index
    %c0_18 = arith.constant 0 : index
    %46 = vector.load %arg5[%c0_14, %c0_15, %c0_16, %c0_17, %c0_18] : memref<1x8x2x8x16xf32, #tpu.memory_space<vmem>>, vector<1x8x1x8x16xf32>
    tpu.vector_store %arg5[%c0_14, %c0_15, %c0_16, %c0_17, %c0_18], %45 {strides = array<i32>} : memref<1x8x2x8x16xf32, #tpu.memory_space<vmem>>, vector<1x8x1x8x16xf32>,
    %47 = vector.extract_strided_slice %43 {offsets = [0, 16], sizes = [64, 16], strides = [1, 1]} : vector<64x32xf32> to vector<64x16xf32>
    %48 = vector.shape_cast %47 : vector<64x16xf32> to vector<1x8x1x8x16xf32>
    %c0_19 = arith.constant 0 : index
    %c0_20 = arith.constant 0 : index
    %c1 = arith.constant 1 : index
    %c0_21 = arith.constant 0 : index
    %c0_22 = arith.constant 0 : index
    %49 = vector.load %arg5[%c0_19, %c0_20, %c1, %c0_21, %c0_22] : memref<1x8x2x8x16xf32, #tpu.memory_space<vmem>>, vector<1x8x1x8x16xf32>
    tpu.vector_store %arg5[%c0_19, %c0_20, %c1, %c0_21, %c0_22], %48 {strides = array<i32>} : memref<1x8x2x8x16xf32, #tpu.memory_space<vmem>>, vector<1x8x1x8x16xf32>,
    return
  }
  func.func @transform_0(%arg0: i32) -> (i32, i32, i32) {
    %c0_i32 = arith.constant 0 : i32
    %c0_i32_0 = arith.constant 0 : i32
    %c0_i32_1 = arith.constant 0 : i32
    return %arg0, %c0_i32, %c0_i32_0 : i32, i32, i32
  }
  func.func @transform_1(%arg0: i32) -> (i32, i32) {
    %c0_i32 = arith.constant 0 : i32
    %c0_i32_0 = arith.constant 0 : i32
    %c0_i32_1 = arith.constant 0 : i32
    return %c0_i32, %c0_i32_0 : i32, i32
  }
  func.func @transform_2(%arg0: i32) -> (i32, i32) {
    %c0_i32 = arith.constant 0 : i32
    %c0_i32_0 = arith.constant 0 : i32
    %c0_i32_1 = arith.constant 0 : i32
    return %c0_i32, %c0_i32_0 : i32, i32
  }
  func.func @transform_3(%arg0: i32) -> (i32, i32) {
    %c0_i32 = arith.constant 0 : i32
    %c0_i32_0 = arith.constant 0 : i32
    %c0_i32_1 = arith.constant 0 : i32
    return %c0_i32, %c0_i32_0 : i32, i32
  }
  func.func @transform_4(%arg0: i32) -> (i32, i32, i32, i32, i32) {
    %c0_i32 = arith.constant 0 : i32
    %c0_i32_0 = arith.constant 0 : i32
    %c0_i32_1 = arith.constant 0 : i32
    %c0_i32_2 = arith.constant 0 : i32
    %c0_i32_3 = arith.constant 0 : i32
    return %arg0, %c0_i32, %c0_i32_0, %c0_i32_1, %c0_i32_2 : i32, i32, i32, i32, i32
  }
}

module attributes {stable_mosaic.version = 11 : i64} {
  func.func @_conv3x3_in_relu_kernel(%arg0: i32, %arg1: memref<1x16x16x8xf32, #tpu.memory_space<vmem>>, %arg2: memref<1x16x16x8xf32, #tpu.memory_space<vmem>>, %arg3: memref<144x8xf32, #tpu.memory_space<vmem>>, %arg4: memref<1x8xf32, #tpu.memory_space<vmem>>, %arg5: memref<1x8xf32, #tpu.memory_space<vmem>>, %arg6: memref<1x16x16x8xf32, #tpu.memory_space<vmem>>) attributes {dimension_semantics = [#tpu.dimension_semantics<parallel>], iteration_bounds = array<i64: 2>, scalar_prefetch = 0 : i64, scratch_operands = 0 : i64, tpu.core_type = #tpu.core_type<tc>, window_params = [{transform_indices = @transform_0, window_bounds = array<i64: 1, 16, 16, 8>}, {transform_indices = @transform_1, window_bounds = array<i64: 1, 16, 16, 8>}, {pipeline_mode = #tpu.pipeline_mode<synchronous>, transform_indices = @transform_2, window_bounds = array<i64: 144, 8>}, {pipeline_mode = #tpu.pipeline_mode<synchronous>, transform_indices = @transform_3, window_bounds = array<i64: 1, 8>}, {pipeline_mode = #tpu.pipeline_mode<synchronous>, transform_indices = @transform_4, window_bounds = array<i64: 1, 8>}, {transform_indices = @transform_5, window_bounds = array<i64: 1, 16, 16, 8>}]} {
    %c0 = arith.constant 0 : index
    %c0_0 = arith.constant 0 : index
    %c0_1 = arith.constant 0 : index
    %c0_2 = arith.constant 0 : index
    %0 = vector.load %arg1[%c0, %c0_0, %c0_1, %c0_2] : memref<1x16x16x8xf32, #tpu.memory_space<vmem>>, vector<1x16x16x8xf32>
    %1 = vector.shape_cast %0 : vector<1x16x16x8xf32> to vector<16x16x8xf32>
    %c0_3 = arith.constant 0 : index
    %c0_4 = arith.constant 0 : index
    %c0_5 = arith.constant 0 : index
    %c0_6 = arith.constant 0 : index
    %2 = vector.load %arg2[%c0_3, %c0_4, %c0_5, %c0_6] : memref<1x16x16x8xf32, #tpu.memory_space<vmem>>, vector<1x16x16x8xf32>
    %3 = vector.shape_cast %2 : vector<1x16x16x8xf32> to vector<16x16x8xf32>
    %4 = tpu.concatenate %1, %3 in 2 : vector<16x16x8xf32>, vector<16x16x8xf32> -> vector<16x16x16xf32>
    %cst = arith.constant 0.000000e+00 : f32
    %5 = vector.broadcast %cst : f32 to vector<1x16x16xf32>
    %6 = tpu.concatenate %5, %4, %5 in 0 : vector<1x16x16xf32>, vector<16x16x16xf32>, vector<1x16x16xf32> -> vector<18x16x16xf32>
    %cst_7 = arith.constant 0.000000e+00 : f32
    %7 = vector.broadcast %cst_7 : f32 to vector<18x1x16xf32>
    %8 = tpu.concatenate %7, %6, %7 in 1 : vector<18x1x16xf32>, vector<18x16x16xf32>, vector<18x1x16xf32> -> vector<18x18x16xf32>
    %9 = vector.extract_strided_slice %8 {offsets = [0, 0, 0], sizes = [16, 16, 16], strides = [1, 1, 1]} : vector<18x18x16xf32> to vector<16x16x16xf32>
    %10 = vector.extract_strided_slice %8 {offsets = [0, 1, 0], sizes = [16, 16, 16], strides = [1, 1, 1]} : vector<18x18x16xf32> to vector<16x16x16xf32>
    %11 = vector.extract_strided_slice %8 {offsets = [0, 2, 0], sizes = [16, 16, 16], strides = [1, 1, 1]} : vector<18x18x16xf32> to vector<16x16x16xf32>
    %12 = vector.extract_strided_slice %8 {offsets = [1, 0, 0], sizes = [16, 16, 16], strides = [1, 1, 1]} : vector<18x18x16xf32> to vector<16x16x16xf32>
    %13 = vector.extract_strided_slice %8 {offsets = [1, 1, 0], sizes = [16, 16, 16], strides = [1, 1, 1]} : vector<18x18x16xf32> to vector<16x16x16xf32>
    %14 = vector.extract_strided_slice %8 {offsets = [1, 2, 0], sizes = [16, 16, 16], strides = [1, 1, 1]} : vector<18x18x16xf32> to vector<16x16x16xf32>
    %15 = vector.extract_strided_slice %8 {offsets = [2, 0, 0], sizes = [16, 16, 16], strides = [1, 1, 1]} : vector<18x18x16xf32> to vector<16x16x16xf32>
    %16 = vector.extract_strided_slice %8 {offsets = [2, 1, 0], sizes = [16, 16, 16], strides = [1, 1, 1]} : vector<18x18x16xf32> to vector<16x16x16xf32>
    %17 = vector.extract_strided_slice %8 {offsets = [2, 2, 0], sizes = [16, 16, 16], strides = [1, 1, 1]} : vector<18x18x16xf32> to vector<16x16x16xf32>
    %18 = tpu.concatenate %9, %10, %11, %12, %13, %14, %15, %16, %17 in 2 : vector<16x16x16xf32>, vector<16x16x16xf32>, vector<16x16x16xf32>, vector<16x16x16xf32>, vector<16x16x16xf32>, vector<16x16x16xf32>, vector<16x16x16xf32>, vector<16x16x16xf32>, vector<16x16x16xf32> -> vector<16x16x144xf32>
    %19 = vector.shape_cast %18 : vector<16x16x144xf32> to vector<256x144xf32>
    %c0_8 = arith.constant 0 : index
    %c0_9 = arith.constant 0 : index
    %20 = vector.load %arg3[%c0_8, %c0_9] : memref<144x8xf32, #tpu.memory_space<vmem>>, vector<144x8xf32>
    %cst_10 = arith.constant dense<0.000000e+00> : vector<256x8xf32>
    %21 = tpu.matmul %19, %20, %cst_10 {dimension_numbers = #tpu.dot_dimension_numbers<[1], [0], [0], [1], [0, 0, 1, 1], [], []>} : vector<256x144xf32>, vector<144x8xf32>, vector<256x8xf32> -> vector<256x8xf32>
    %cst_11 = arith.constant dense<0.000000e+00> : vector<8xf32>
    %22 = vector.multi_reduction <add>, %21, %cst_11 [0] : vector<256x8xf32> to vector<8xf32>
    %23 = vector.shape_cast %22 : vector<8xf32> to vector<1x8xf32>
    %cst_12 = arith.constant 2.560000e+02 : f32
    %24 = vector.broadcast %cst_12 : f32 to vector<1x8xf32>
    %25 = arith.divf %23, %24 : vector<1x8xf32>
    %26 = vector.broadcast %25 : vector<1x8xf32> to vector<256x8xf32>
    %27 = arith.subf %21, %26 : vector<256x8xf32>
    %28 = arith.mulf %27, %27 : vector<256x8xf32>
    %cst_13 = arith.constant dense<0.000000e+00> : vector<8xf32>
    %29 = vector.multi_reduction <add>, %28, %cst_13 [0] : vector<256x8xf32> to vector<8xf32>
    %30 = vector.shape_cast %29 : vector<8xf32> to vector<1x8xf32>
    %cst_14 = arith.constant 2.560000e+02 : f32
    %31 = vector.broadcast %cst_14 : f32 to vector<1x8xf32>
    %32 = arith.divf %30, %31 : vector<1x8xf32>
    %33 = vector.broadcast %25 : vector<1x8xf32> to vector<256x8xf32>
    %34 = arith.subf %21, %33 : vector<256x8xf32>
    %cst_15 = arith.constant 9.99999974E-6 : f32
    %35 = vector.broadcast %cst_15 : f32 to vector<1x8xf32>
    %36 = arith.addf %32, %35 : vector<1x8xf32>
    %37 = math.rsqrt %36 : vector<1x8xf32>
    %38 = vector.broadcast %37 : vector<1x8xf32> to vector<256x8xf32>
    %39 = arith.mulf %34, %38 : vector<256x8xf32>
    %c0_16 = arith.constant 0 : index
    %c0_17 = arith.constant 0 : index
    %40 = vector.load %arg4[%c0_16, %c0_17] : memref<1x8xf32, #tpu.memory_space<vmem>>, vector<1x8xf32>
    %41 = vector.broadcast %40 : vector<1x8xf32> to vector<256x8xf32>
    %42 = arith.mulf %39, %41 : vector<256x8xf32>
    %c0_18 = arith.constant 0 : index
    %c0_19 = arith.constant 0 : index
    %43 = vector.load %arg5[%c0_18, %c0_19] : memref<1x8xf32, #tpu.memory_space<vmem>>, vector<1x8xf32>
    %44 = vector.broadcast %43 : vector<1x8xf32> to vector<256x8xf32>
    %45 = arith.addf %42, %44 : vector<256x8xf32>
    %cst_20 = arith.constant 0.000000e+00 : f32
    %46 = vector.broadcast %cst_20 : f32 to vector<256x8xf32>
    %47 = arith.maximumf %45, %46 : vector<256x8xf32>
    %48 = vector.shape_cast %47 : vector<256x8xf32> to vector<1x16x16x8xf32>
    %c0_21 = arith.constant 0 : index
    %c0_22 = arith.constant 0 : index
    %c0_23 = arith.constant 0 : index
    %c0_24 = arith.constant 0 : index
    %49 = vector.load %arg6[%c0_21, %c0_22, %c0_23, %c0_24] : memref<1x16x16x8xf32, #tpu.memory_space<vmem>>, vector<1x16x16x8xf32>
    tpu.vector_store %arg6[%c0_21, %c0_22, %c0_23, %c0_24], %48 {strides = array<i32>} : memref<1x16x16x8xf32, #tpu.memory_space<vmem>>, vector<1x16x16x8xf32>,
    return
  }
  func.func @transform_0(%arg0: i32) -> (i32, i32, i32, i32) {
    %c0_i32 = arith.constant 0 : i32
    %c0_i32_0 = arith.constant 0 : i32
    %c0_i32_1 = arith.constant 0 : i32
    %c0_i32_2 = arith.constant 0 : i32
    return %arg0, %c0_i32, %c0_i32_0, %c0_i32_1 : i32, i32, i32, i32
  }
  func.func @transform_1(%arg0: i32) -> (i32, i32, i32, i32) {
    %c0_i32 = arith.constant 0 : i32
    %c0_i32_0 = arith.constant 0 : i32
    %c0_i32_1 = arith.constant 0 : i32
    %c0_i32_2 = arith.constant 0 : i32
    return %arg0, %c0_i32, %c0_i32_0, %c0_i32_1 : i32, i32, i32, i32
  }
  func.func @transform_2(%arg0: i32) -> (i32, i32) {
    %c0_i32 = arith.constant 0 : i32
    %c0_i32_0 = arith.constant 0 : i32
    %c0_i32_1 = arith.constant 0 : i32
    return %c0_i32, %c0_i32_0 : i32, i32
  }
  func.func @transform_3(%arg0: i32) -> (i32, i32) {
    %c0_i32 = arith.constant 0 : i32
    %c0_i32_0 = arith.constant 0 : i32
    %c0_i32_1 = arith.constant 0 : i32
    return %c0_i32, %c0_i32_0 : i32, i32
  }
  func.func @transform_4(%arg0: i32) -> (i32, i32) {
    %c0_i32 = arith.constant 0 : i32
    %c0_i32_0 = arith.constant 0 : i32
    %c0_i32_1 = arith.constant 0 : i32
    return %c0_i32, %c0_i32_0 : i32, i32
  }
  func.func @transform_5(%arg0: i32) -> (i32, i32, i32, i32) {
    %c0_i32 = arith.constant 0 : i32
    %c0_i32_0 = arith.constant 0 : i32
    %c0_i32_1 = arith.constant 0 : i32
    %c0_i32_2 = arith.constant 0 : i32
    return %arg0, %c0_i32, %c0_i32_0, %c0_i32_1 : i32, i32, i32, i32
  }
}

</mosaic_0001>

<bundles_post_ra>
// kernel: net_recurse_forward.10
= control target key start
LH: loop header
LB: loop body
LE: loop exit
PB: predicated region body
PF: predicated region fallthrough
CT: control target
= control target key end

     0   :  { %s670_s15 = smov 0   ;;  %s767_s0 = inlined_call_operand.vmem [shape: f32[2,8,2,8,16], index: 0, kind: input, shape index: {}]   ;;  %s768_s1 = inlined_call_operand.vmem [shape: f32[32,8], index: 1, kind: input, shape index: {}]   ;;  %s769_s2 = inlined_call_operand.vmem [shape: f32[1,8], index: 2, kind: input, shape index: {}]   ;;  %s770_s3 = inlined_call_operand.vmem [shape: f32[1,8], index: 3, kind: input, shape index: {}]   ;;  %s771_s4 = inlined_call_operand.vmem [shape: f32[2,8,8,8], index: 4, kind: output, shape index: {}]  }
   0x1 LB: > { %s562_s16 = sadd.s32 4294967295, %s642_s15   ;;  %p566_p0 = scmp.ge.s32.totalorder %s642_s15, 1  ;;  %s642_s15 = sphi %s670_s15, %s14_s15  }
   0x2   : > { %p162_p1 = scmp.lt.s32.totalorder %s642_s15, 3 }
   0x4   : > { %p163_p2 = pnand %p566_p0, %p162_p1 }
   0x5   : > { %p188_p3 = scmp.lt.s32.totalorder (!%p163_p2), %s562_s16, 1  ;;  %s644_s29 = smov (!%p163_p2), 16  }
   0x6   : > { %166 = sbr.rel (%p163_p2) target bundleno = 425 (0x1a9), region = 36 }
   0xb   : > { %v258_v0 = vld [vmem:[%s768_s1 + $0x18] sm:$0xff]  ;;  %v257_v1 = vld [vmem:[%s768_s1 + $0x10] sm:$0xff]  ;;  %s773_s16 = smov (!%p188_p3, %s562_s16), 1  ;;  %v256_v2 = vld [vmem:[%s768_s1 + $0x8] sm:$0xff]  ;;  %vm246_vm0 = vcmask 130048   ;;  %vm259_vm1 = vcmask 261120  }
   0xc   : > { %597 = vmatprep.subr.mxu0 %v258_v0  ;;  %617 = vmatprep.subr.mxu1 %v258_v0  ;;  %s583_s23 = sshll.u32 %s773_s16, 7  ;;  %v255_v3 = vld [vmem:[%s768_s1] sm:$0xff]  ;;  %vm389_vm2 = vcmask 64512   ;;  %s584_s8 = sshll.u32 %s773_s16, 6 }
   0xd   : > { %598 = vmatpush3.msra.mxu0 %v258_v0  ;;  %621 = vmatpush3.msra.mxu1 %v258_v0  ;;  %s693_s26 = scalar_lea.vmem %s767_s0, %s583_s23  ;;  %s197_s11 = scalar_lea.vmem %s771_s4, %s584_s8 }
   0xe   : > { %599 = vmatprep.subr.mxu0 %v257_v1  ;;  %618 = vmatprep.subr.mxu1 %v257_v1  ;;  %v199_v4 = vld [vmem:[%s693_s26 + $0x8] sm:$0xff]  ;;  %v201_v6 = vld [vmem:[%s693_s26 + $0x18] sm:$0xff]  ;;  %v198_v12 = vld [vmem:[%s693_s26] sm:$0xff] }
   0xf   : > { %600 = vmatpush3.msra.mxu0 %v257_v1  ;;  %622 = vmatpush3.msra.mxu1 %v257_v1  ;;  %v203_v5 = vld [vmem:[%s693_s26 + $0x28] sm:$0xff]  ;;  %v205_v7 = vld [vmem:[%s693_s26 + $0x38] sm:$0xff]  ;;  %v202_v15 = vld [vmem:[%s693_s26 + $0x20] sm:$0xff] }
  0x10   : > { %601 = vmatprep.subr.mxu0 %v256_v2  ;;  %619 = vmatprep.subr.mxu1 %v256_v2  ;;  %v207_v8 = vld [vmem:[%s693_s26 + $0x48] sm:$0xff]  ;;  %v209_v9 = vld [vmem:[%s693_s26 + $0x58] sm:$0xff]  ;;  %v200_v17 = vld [vmem:[%s693_s26 + $0x10] sm:$0xff] }
  0x11   : > { %602 = vmatpush3.msra.mxu0 %v256_v2  ;;  %623 = vmatpush3.msra.mxu1 %v256_v2  ;;  %v211_v10 = vld [vmem:[%s693_s26 + $0x68] sm:$0xff]  ;;  %v213_v11 = vld [vmem:[%s693_s26 + $0x78] sm:$0xff]  ;;  %v204_v20 = vld [vmem:[%s693_s26 + $0x30] sm:$0xff] }
  0x12   : > { %222 = vrot.lane.b32.xlu0 %v199_v4, %s644_s29  ;;  %226 = vrot.lane.b32.xlu1 %v203_v5, %s644_s29  ;;  %v208_v23 = vld [vmem:[%s693_s26 + $0x50] sm:$0xff]  ;;  %v206_v24 = vld [vmem:[%s693_s26 + $0x40] sm:$0xff] }
  0x13   : > { %603 = vmatprep.subr.mxu0 %v255_v3  ;;  %620 = vmatprep.subr.mxu1 %v255_v3  ;;  %v210_v30 = vld [vmem:[%s693_s26 + $0x60] sm:$0xff]  ;;  %v212_v31 = vld [vmem:[%s693_s26 + $0x70] sm:$0xff] }
  0x14   : > { %604 = vmatpush3.msra.mxu0 %v255_v3  ;;  %624 = vmatpush3.msra.mxu1 %v255_v3 }
  0x16   : > { %224 = vrot.lane.b32.xlu0 %v201_v6, %s644_s29  ;;  %228 = vrot.lane.b32.xlu1 %v205_v7, %s644_s29 }
  0x1a   : > { %230 = vrot.lane.b32.xlu0 %v207_v8, %s644_s29  ;;  %232 = vrot.lane.b32.xlu1 %v209_v9, %s644_s29 }
  0x1e   : > { %234 = vrot.lane.b32.xlu0 %v211_v10, %s644_s29  ;;  %236 = vrot.lane.b32.xlu1 %v213_v11, %s644_s29 }
  0x84   : > { %v223_v13 = vpop.permute.xlu0 %222  ;;  %v227_v14 = vpop.permute.xlu1 %226 }
  0x85   : > { %v247_v16 = vsel %vm246_vm0, %v198_v12, %v223_v13  ;;  %v249_v18 = vsel %vm246_vm0, %v202_v15, %v227_v14 }
  0x86   : > { %605 = vmatprep.mubr.msk.f32.mxu0 %vm259_vm1, %v247_v16 }
  0x88   : > { %v225_v19 = vpop.permute.xlu0 %224  ;;  %v229_v21 = vpop.permute.xlu1 %228 }
  0x89   : > { %v248_v22 = vsel %vm246_vm0, %v200_v17, %v225_v19  ;;  %v250_v25 = vsel %vm246_vm0, %v204_v20, %v229_v21 }
  0x8a   : > { %606 = vmatmul.mubr.msk.f32.vlgmr.msra.gmra.mxu0 %vm259_vm1, %v248_v22 }
  0x8b   : > { %608 = vmatprep.mubr.msk.f32.mxu0 %vm259_vm1, %v249_v18 }
  0x8c   : > { %v231_v26 = vpop.permute.xlu0 %230  ;;  %v233_v27 = vpop.permute.xlu1 %232 }
  0x8d   : > { %v252_v28 = vsel %vm246_vm0, %v208_v23, %v233_v27  ;;  %v251_v29 = vsel %vm246_vm0, %v206_v24, %v231_v26 }
  0x8e   : > { %609 = vmatmul.mubr.msk.f32.gmra.mxu0 %vm259_vm1, %v250_v25  ;;  %611 = vmatprep.mubr.msk.f32.mxu1 %vm259_vm1, %v251_v29 }
  0x8f   : > { %612 = vmatmul.mubr.msk.f32.vlgmr.msra.gmra.mxu1 %vm259_vm1, %v252_v28 }
  0x90   : > { %v235_v32 = vpop.permute.xlu0 %234  ;;  %v237_v33 = vpop.permute.xlu1 %236 }
  0x91   : > { %v253_v34 = vsel %vm246_vm0, %v210_v30, %v235_v32  ;;  %v254_v35 = vsel %vm246_vm0, %v212_v31, %v237_v33 }
  0x92   : > { %614 = vmatprep.mubr.msk.f32.mxu1 %vm259_vm1, %v253_v34 }
  0x93   : > { %615 = vmatmul.mubr.msk.f32.gmra.mxu1 %vm259_vm1, %v254_v35 }
 0x14a   : > { %v607_v36 = vpop.f32.mrf.mxu0 }
 0x14b   : > { %v391_v40 = vsel %vm389_vm2, %v607_v36, 0.0 }
 0x14c   : > { %v350_v37 = vpop.f32.mrf.mxu0 }
 0x14d   : > { %v390_v38 = vsel %vm389_vm2, %v350_v37, 0.0 }
 0x14e   : > { %v610_v39 = vpop.f32.mrf.mxu0  ;;  %v392_v42 = vadd.f32 %v391_v40, %v390_v38 }
 0x14f   : > { %v613_v41 = vpop.f32.mrf.mxu1  ;;  %v395_v47 = vsel %vm389_vm2, %v610_v39, 0.0 }
 0x150   : > { %v360_v43 = vpop.f32.mrf.mxu0  ;;  %v399_v53 = vsel %vm389_vm2, %v613_v41, 0.0 }
 0x151   : > { %v393_v44 = vsel %vm389_vm2, %v360_v43, 0.0  ;;  %v370_v45 = vpop.f32.mrf.mxu1 }
 0x152   : > { %v394_v46 = vadd.f32 %v393_v44, %v392_v42  ;;  %v397_v50 = vsel %vm389_vm2, %v370_v45, 0.0  ;;  %v579_v42 = vld [vmem:[%s769_s2] ss:$0 sm:$0xff] }
 0x153   : > { %v616_v48 = vpop.f32.mrf.mxu1 }
 0x154   : > { %v396_v49 = vadd.f32 %v395_v47, %v394_v46  ;;  %v403_v57 = vsel %vm389_vm2, %v616_v48, 0.0 }
 0x155   : > { %v380_v52 = vpop.f32.mrf.mxu1 }
 0x156   : > { %v398_v51 = vadd.f32 %v397_v50, %v396_v49  ;;  %v401_v55 = vsel %vm389_vm2, %v380_v52, 0.0 }
 0x158   : > { %v400_v54 = vadd.f32 %v399_v53, %v398_v51  ;;  %v580_v51 = vld [vmem:[%s770_s3] ss:$0 sm:$0xff] }
 0x15a   : > { %v402_v56 = vadd.f32 %v401_v55, %v400_v54 }
 0x15c   : > { %v404_v58 = vadd.f32 %v403_v57, %v402_v56 }
 0x15e   : > { %v405_v59 = vrot.slane %v404_v58, 4 }
 0x160   : > { %v406_v60 = vadd.f32 %v405_v59, %v404_v58 }
 0x162   : > { %v407_v61 = vrot.slane %v406_v60, 2 }
 0x164   : > { %v408_v62 = vadd.f32 %v407_v61, %v406_v60 }
 0x166   : > { %v409_v63 = vrot.slane %v408_v62, 1 }
 0x168   : > { %v410_v0 = vadd.f32 %v409_v63, %v408_v62 }
 0x16a   : > { %v412_v1 = vmul.f32 0.015625, %v410_v0 }
 0x16c   : > { %v413_v2 = vsub.f32 %v350_v37, %v412_v1  ;;  %v414_v3 = vsub.f32 %v607_v36, %v412_v1  ;;  %v415_v4 = vsub.f32 %v360_v43, %v412_v1  ;;  %v416_v5 = vsub.f32 %v610_v39, %v412_v1 }
 0x16d   : > { %v417_v6 = vsub.f32 %v370_v45, %v412_v1  ;;  %v418_v10 = vsub.f32 %v613_v41, %v412_v1  ;;  %v419_v15 = vsub.f32 %v380_v52, %v412_v1  ;;  %v420_v19 = vsub.f32 %v616_v48, %v412_v1 }
 0x16e   : > { %v421_v7 = vmul.f32 %v413_v2, %v413_v2  ;;  %v422_v8 = vmul.f32 %v414_v3, %v414_v3  ;;  %v423_v9 = vmul.f32 %v415_v4, %v415_v4  ;;  %v424_v11 = vmul.f32 %v416_v5, %v416_v5 }
 0x16f   : > { %v425_v16 = vmul.f32 %v417_v6, %v417_v6  ;;  %v426_v20 = vmul.f32 %v418_v10, %v418_v10  ;;  %v427_v23 = vmul.f32 %v419_v15, %v419_v15  ;;  %v428_v26 = vmul.f32 %v420_v19, %v420_v19 }
 0x170   : > { %v429_v12 = vsel %vm389_vm2, %v421_v7, 0.0  ;;  %v430_v13 = vsel %vm389_vm2, %v422_v8, 0.0  ;;  %v432_v17 = vsel %vm389_vm2, %v423_v9, 0.0  ;;  %v434_v21 = vsel %vm389_vm2, %v424_v11, 0.0 }
 0x171   : > { %v431_v14 = vadd.f32 %v430_v13, %v429_v12  ;;  %v436_v24 = vsel %vm389_vm2, %v425_v16, 0.0  ;;  %v438_v27 = vsel %vm389_vm2, %v426_v20, 0.0  ;;  %v440_v29 = vsel %vm389_vm2, %v427_v23, 0.0 }
 0x172   : > { %v442_v31 = vsel %vm389_vm2, %v428_v26, 0.0 }
 0x173   : > { %v433_v18 = vadd.f32 %v432_v17, %v431_v14 }
 0x175   : > { %v435_v22 = vadd.f32 %v434_v21, %v433_v18 }
 0x177   : > { %v437_v25 = vadd.f32 %v436_v24, %v435_v22 }
 0x179   : > { %v439_v28 = vadd.f32 %v438_v27, %v437_v25 }
 0x17b   : > { %v441_v30 = vadd.f32 %v440_v29, %v439_v28 }
 0x17d   : > { %v443_v32 = vadd.f32 %v442_v31, %v441_v30 }
 0x17f   : > { %v444_v33 = vrot.slane %v443_v32, 4 }
 0x181   : > { %v445_v34 = vadd.f32 %v444_v33, %v443_v32 }
 0x183   : > { %v446_v35 = vrot.slane %v445_v34, 2 }
 0x185   : > { %v447_v36 = vadd.f32 %v446_v35, %v445_v34 }
 0x187   : > { %v448_v37 = vrot.slane %v447_v36, 1 }
 0x189   : > { %v449_v38 = vadd.f32 %v448_v37, %v447_v36 }
 0x18b   : > { %v450_v39 = vmul.f32 0.015625, %v449_v38 }
 0x18d   : > { %v451_v40 = vadd.f32 1e-05, %v450_v39 }
 0x18f   : > { %634 = vrsqrt.f32 %v451_v40 }
 0x19c   : > { %v635_v41 = vpop.eup %634 }
 0x19d   : > { %v453_v43 = vmul.f32 %v635_v41, %v413_v2  ;;  %v454_v44 = vmul.f32 %v635_v41, %v414_v3  ;;  %v455_v45 = vmul.f32 %v635_v41, %v415_v4  ;;  %v456_v46 = vmul.f32 %v635_v41, %v416_v5 }
 0x19e   : > { %v457_v47 = vmul.f32 %v635_v41, %v417_v6  ;;  %v458_v48 = vmul.f32 %v635_v41, %v418_v10  ;;  %v459_v49 = vmul.f32 %v635_v41, %v419_v15  ;;  %v460_v50 = vmul.f32 %v635_v41, %v420_v19 }
 0x19f   : > { %v468_v52 = vmul.f32 %v579_v42, %v453_v43  ;;  %v469_v53 = vmul.f32 %v579_v42, %v454_v44  ;;  %v470_v54 = vmul.f32 %v579_v42, %v455_v45  ;;  %v471_v55 = vmul.f32 %v579_v42, %v456_v46 }
 0x1a0   : > { %v472_v56 = vmul.f32 %v579_v42, %v457_v47  ;;  %v473_v57 = vmul.f32 %v579_v42, %v458_v48  ;;  %v474_v58 = vmul.f32 %v579_v42, %v459_v49  ;;  %v475_v59 = vmul.f32 %v579_v42, %v460_v50 }
 0x1a1   : > { %v483_v60 = vadd.f32 %v580_v51, %v468_v52  ;;  %v484_v61 = vadd.f32 %v580_v51, %v469_v53  ;;  %v485_v62 = vadd.f32 %v580_v51, %v470_v54  ;;  %v486_v63 = vadd.f32 %v580_v51, %v471_v55 }
 0x1a2   : > { %v487_v0 = vadd.f32 %v580_v51, %v472_v56  ;;  %v488_v1 = vadd.f32 %v580_v51, %v473_v57  ;;  %v489_v2 = vadd.f32 %v580_v51, %v474_v58  ;;  %v490_v3 = vadd.f32 %v580_v51, %v475_v59 }
 0x1a3   : > { %v491_v4 = vmax.f32 %v483_v60, 0.0  ;;  %v492_v5 = vmax.f32 %v484_v61, 0.0  ;;  %v493_v6 = vmax.f32 %v485_v62, 0.0  ;;  %v494_v7 = vmax.f32 %v486_v63, 0.0 }
 0x1a4   : > { %v495_v8 = vmax.f32 %v487_v0, 0.0  ;;  %v496_v9 = vmax.f32 %v488_v1, 0.0  ;;  %v497_v10 = vmax.f32 %v489_v2, 0.0  ;;  %v498_v11 = vmax.f32 %v490_v3, 0.0 }
 0x1a5   : > { %499 = vst.msk [vmem:[%s197_s11] sm:$0xff] %vm389_vm2, %v491_v4  ;;  %500 = vst.msk [vmem:[%s197_s11 + $0x8] sm:$0xff] %vm389_vm2, %v492_v5 }
 0x1a6   : > { %501 = vst.msk [vmem:[%s197_s11 + $0x10] sm:$0xff] %vm389_vm2, %v493_v6  ;;  %502 = vst.msk [vmem:[%s197_s11 + $0x18] sm:$0xff] %vm389_vm2, %v494_v7 }
 0x1a7   : > { %503 = vst.msk [vmem:[%s197_s11 + $0x20] sm:$0xff] %vm389_vm2, %v495_v8  ;;  %504 = vst.msk [vmem:[%s197_s11 + $0x28] sm:$0xff] %vm389_vm2, %v496_v9 }
 0x1a8   : > { %505 = vst.msk [vmem:[%s197_s11 + $0x30] sm:$0xff] %vm389_vm2, %v497_v10  ;;  %506 = vst.msk [vmem:[%s197_s11 + $0x38] sm:$0xff] %vm389_vm2, %v498_v11 }
 0x1a9 PF: > { %s14_s15 = sadd.s32 1, %s642_s15  }
 0x1aa   : > { %p11_p4 = scmp.ge.s32.totalorder %s14_s15, 4  }
 0x1ac   :  { %13 = sbr.rel (!%p11_p4) target bundleno = 1 (0x1), region = 66 }

// kernel: net_recurse_forward.11
= control target key start
LH: loop header
LB: loop body
LE: loop exit
PB: predicated region body
PF: predicated region fallthrough
CT: control target
= control target key end

     0   :  { %s1050_s15 = smov 0   ;;  %s1431_s0 = inlined_call_operand.vmem [shape: f32[2,8,8,8], index: 0, kind: input, shape index: {}]   ;;  %s1432_s1 = inlined_call_operand.vmem [shape: f32[72,16], index: 1, kind: input, shape index: {}]   ;;  %s1433_s2 = inlined_call_operand.vmem [shape: f32[1,16], index: 2, kind: input, shape index: {}]   ;;  %s1434_s3 = inlined_call_operand.vmem [shape: f32[1,16], index: 3, kind: input, shape index: {}]   ;;  %s1435_s4 = inlined_call_operand.vmem [shape: f32[2,8,8,16], index: 4, kind: output, shape index: {}]  }
   0x1 LB: > { %s901_s16 = sadd.s32 4294967295, %s1014_s15   ;;  %p905_p0 = scmp.ge.s32.totalorder %s1014_s15, 1  ;;  %s1014_s15 = sphi %s1050_s15, %s14_s15  }
   0x2   : > { %p162_p1 = scmp.lt.s32.totalorder %s1014_s15, 3 }
   0x4   : > { %p163_p2 = pnand %p905_p0, %p162_p1 }
   0x5   : > { %p188_p3 = scmp.lt.s32.totalorder (!%p163_p2), %s901_s16, 1  ;;  %s1017_s21 = smov (!%p163_p2), 16  }
   0x6   : > { %166 = sbr.rel (%p163_p2) target bundleno = 534 (0x216), region = 36  ;;  %s1018_s22 = smov (!%p163_p2), 8  }
   0x7   : > { %s1019_s23 = smov (!%p163_p2), 24   ;;  %s1020_s24 = smov (!%p163_p2), 32  }
   0x8   : > { %s1021_s27 = smov (!%p163_p2), 40   ;;  %s1022_s8 = smov (!%p163_p2), 48  }
   0x9   : > { %s1023_s18 = smov (!%p163_p2), 56  }
   0xb   : > { %vm233_vm0 = vcmask 1040384   ;;  %v1016_v0 = vmov 0.0   ;;  %vm317_vm1 = vcmask 1045504   ;;  %vm268_vm2 = vcmask 1046528   ;;  %s1437_s16 = smov (!%p188_p3, %s901_s16), 1  ;;  %v598_v50 = vld [vmem:[%s1432_s1 + $0x40] sm:$0xff] }
   0xc   : > { %v215_v1 = vrot.slane %v1016_v0, 7  ;;  %s922_s17 = sshll.u32 %s1437_s16, 6  ;;  %941 = vmatprep.subr.mxu0 %v598_v50  ;;  %971 = vmatprep.subr.mxu1 %v598_v50  ;;  %vm518_vm3 = vcmask 64512   ;;  %vm527_vm4 = vcmask 130048   ;;  %vm536_vm5 = vcmask 195584  }
   0xd   : > { %s1078_s20 = scalar_lea.vmem %s1431_s0, %s922_s17  ;;  %942 = vmatpush3.msra.mxu0 %v598_v50  ;;  %980 = vmatpush3.msra.mxu1 %v598_v50  ;;  %vm545_vm6 = vcmask 261120   ;;  %vm554_vm7 = vcmask 326656   ;;  %vm563_vm8 = vcmask 392192   ;;  %vm572_vm9 = vcmask 457728   ;;  %s197_s30 = scalar_lea.vmem %s1435_s4, %s922_s17 }
   0xe   : > { %v1059_v2 = vsel %vm233_vm0, 0.0, %v215_v1  ;;  %v243_v3 = vsel %vm233_vm0, %v215_v1, 0.0  ;;  %v199_v10 = vld [vmem:[%s1078_s20 + $0x8] sm:$0xff]  ;;  %v198_v11 = vld [vmem:[%s1078_s20] sm:$0xff]  ;;  %v200_v14 = vld [vmem:[%s1078_s20 + $0x10] sm:$0xff]  ;;  %vm581_vm10 = vcmask 523264  }
   0xf   : > { %v318_v4 = vrot.slane %v1059_v2, 2  ;;  %v319_v5 = vrot.slane %v243_v3, 2  ;;  %v269_v6 = vrot.slane %v1059_v2, 1  ;;  %v270_v7 = vrot.slane %v243_v3, 1  ;;  %v203_v33 = vld [vmem:[%s1078_s20 + $0x28] sm:$0xff]  ;;  %v204_v34 = vld [vmem:[%s1078_s20 + $0x30] sm:$0xff] }
  0x10   : > { %v217_v12 = vrot.slane %v199_v10, 7  ;;  %v216_v13 = vrot.slane %v198_v11, 7  ;;  %v218_v15 = vrot.slane %v200_v14, 7  ;;  %v205_v37 = vld [vmem:[%s1078_s20 + $0x38] sm:$0xff]  ;;  %v221_v38 = vrot.slane %v203_v33, 7  ;;  %v595_v11 = vld [vmem:[%s1432_s1 + $0x28] sm:$0xff] }
  0x11   : > { %v1068_v8 = vsel %vm317_vm1, %v318_v4, %v319_v5  ;;  %v1071_v9 = vsel %vm268_vm2, %v269_v6, %v270_v7  ;;  %v222_v39 = vrot.slane %v204_v34, 7  ;;  %v223_v41 = vrot.slane %v205_v37, 7  ;;  %v597_v3 = vld [vmem:[%s1432_s1 + $0x38] sm:$0xff]  ;;  %v596_v4 = vld [vmem:[%s1432_s1 + $0x30] sm:$0xff]  ;;  %v594_v14 = vld [vmem:[%s1432_s1 + $0x20] sm:$0xff] }
  0x12   : > { %342 = vrot.lane.b32.xlu1 %v1068_v8, %s1017_s21  ;;  %293 = vrot.lane.b32.xlu0 %v1071_v9, %s1018_s22  ;;  %v1088_v16 = vsel %vm233_vm0, 0.0, %v217_v12  ;;  %v1091_v17 = vsel %vm233_vm0, 0.0, %v216_v13  ;;  %v244_v18 = vsel %vm233_vm0, %v216_v13, 0.0  ;;  %v245_v19 = vsel %vm233_vm0, %v217_v12, 0.0  ;;  %v201_v13 = vld [vmem:[%s1078_s20 + $0x18] sm:$0xff] }
  0x13   : > { %v321_v20 = vrot.slane %v1091_v17, 2  ;;  %v322_v21 = vrot.slane %v244_v18, 2  ;;  %v272_v22 = vrot.slane %v1091_v17, 1  ;;  %v273_v23 = vrot.slane %v244_v18, 1  ;;  %943 = vmatprep.subr.mxu0 %v597_v3  ;;  %972 = vmatprep.subr.mxu1 %v597_v3 }
  0x14   : > { %v275_v24 = vrot.slane %v1088_v16, 1  ;;  %v276_v25 = vrot.slane %v245_v19, 1  ;;  %v1105_v28 = vsel %vm233_vm0, 0.0, %v218_v15  ;;  %v1108_v29 = vsel %vm233_vm0, %v218_v15, 0.0  ;;  %944 = vmatpush3.msra.mxu0 %v597_v3  ;;  %981 = vmatpush3.msra.mxu1 %v597_v3  ;;  %v593_v15 = vld [vmem:[%s1432_s1 + $0x18] sm:$0xff] }
  0x15   : > { %v323_v26 = vsel %vm317_vm1, %v321_v20, %v322_v21  ;;  %v274_v27 = vsel %vm268_vm2, %v272_v22, %v273_v23  ;;  %v324_v31 = vrot.slane %v1088_v16, 2  ;;  %v325_v32 = vrot.slane %v245_v19, 2  ;;  %945 = vmatprep.subr.mxu0 %v596_v4  ;;  %973 = vmatprep.subr.mxu1 %v596_v4  ;;  %v592_v19 = vld [vmem:[%s1432_s1 + $0x10] sm:$0xff]  ;;  %v591_v22 = vld [vmem:[%s1432_s1 + $0x8] sm:$0xff]  ;;  %v202_v23 = vld [vmem:[%s1078_s20 + $0x20] sm:$0xff]  ;;  %s1024_s20 = smov 64  }
  0x16   : > { %369 = vrot.lane.b32.xlu1 %v1088_v16, %s1019_s23  ;;  %367 = vrot.lane.b32.xlu0 %v1091_v17, %s1019_s23  ;;  %v1113_v30 = vsel %vm268_vm2, %v275_v24, %v276_v25  ;;  %v278_v35 = vrot.slane %v1105_v28, 1  ;;  %v279_v36 = vrot.slane %v1108_v29, 1  ;;  %v1131_v43 = vsel %vm233_vm0, 0.0, %v221_v38  ;;  %v590_v24 = vld [vmem:[%s1432_s1] sm:$0xff] }
  0x17   : > { %v1125_v40 = vsel %vm317_vm1, %v324_v31, %v325_v32  ;;  %v249_v44 = vsel %vm233_vm0, %v221_v38, 0.0  ;;  %v1135_v45 = vsel %vm233_vm0, 0.0, %v222_v39  ;;  %v287_v46 = vrot.slane %v1131_v43, 1  ;;  %946 = vmatpush3.msra.mxu0 %v596_v4  ;;  %982 = vmatpush3.msra.mxu1 %v596_v4 }
  0x18   : > { %v1128_v42 = vsel %vm268_vm2, %v278_v35, %v279_v36  ;;  %v288_v47 = vrot.slane %v249_v44, 1  ;;  %v336_v48 = vrot.slane %v1131_v43, 2  ;;  %v337_v49 = vrot.slane %v249_v44, 2  ;;  %947 = vmatprep.subr.mxu0 %v595_v11  ;;  %974 = vmatprep.subr.mxu1 %v595_v11 }
  0x19   : > { %v250_v51 = vsel %vm233_vm0, %v222_v39, 0.0  ;;  %v290_v52 = vrot.slane %v1135_v45, 1  ;;  %v339_v53 = vrot.slane %v1135_v45, 2  ;;  %v1149_v54 = vsel %vm233_vm0, 0.0, %v223_v41  ;;  %948 = vmatpush3.msra.mxu0 %v595_v11  ;;  %983 = vmatpush3.msra.mxu1 %v595_v11 }
  0x1a   : > { %344 = vrot.lane.b32.xlu1 %v323_v26, %s1017_s21  ;;  %295 = vrot.lane.b32.xlu0 %v274_v27, %s1018_s22  ;;  %v1152_v55 = vsel %vm268_vm2, %v287_v46, %v288_v47  ;;  %v1155_v56 = vsel %vm317_vm1, %v336_v48, %v337_v49  ;;  %v291_v57 = vrot.slane %v250_v51, 1  ;;  %v340_v58 = vrot.slane %v250_v51, 2 }
  0x1b   : > { %v251_v59 = vsel %vm233_vm0, %v223_v41, 0.0  ;;  %v392_v60 = vrot.slane %v1149_v54, 1  ;;  %v419_v61 = vrot.slane %v1149_v54, 2  ;;  %v327_v5 = vrot.slane %v1105_v28, 2  ;;  %949 = vmatprep.subr.mxu0 %v594_v14  ;;  %975 = vmatprep.subr.mxu1 %v594_v14 }
  0x1c   : > { %v1161_v62 = vsel %vm268_vm2, %v290_v52, %v291_v57  ;;  %v1164_v63 = vsel %vm317_vm1, %v339_v53, %v340_v58  ;;  %v393_v0 = vrot.slane %v251_v59, 1  ;;  %v420_v1 = vrot.slane %v251_v59, 2  ;;  %950 = vmatpush3.msra.mxu0 %v594_v14  ;;  %984 = vmatpush3.msra.mxu1 %v594_v14 }
  0x1d   : > { %v328_v6 = vrot.slane %v1108_v29, 2  ;;  %v219_v18 = vrot.slane %v201_v13, 7  ;;  %951 = vmatprep.subr.mxu0 %v593_v15  ;;  %976 = vmatprep.subr.mxu1 %v593_v15  ;;  %vm599_vm11 = vcmask 588800  }
  0x1e   : > { %297 = vrot.lane.b32.xlu1 %v1113_v30, %s1018_s22  ;;  %395 = vrot.lane.b32.xlu0 %v274_v27, %s1020_s24  ;;  %v1179_v7 = vsel %vm268_vm2, %v392_v60, %v393_v0  ;;  %v1182_v10 = vsel %vm317_vm1, %v419_v61, %v420_v1  ;;  %v220_v27 = vrot.slane %v202_v23, 7 }
  0x1f   : > { %v329_v12 = vsel %vm317_vm1, %v327_v5, %v328_v6  ;;  %v1210_v20 = vsel %vm233_vm0, 0.0, %v219_v18  ;;  %952 = vmatpush3.msra.mxu0 %v593_v15  ;;  %985 = vmatpush3.msra.mxu1 %v593_v15  ;;  %v247_v21 = vsel %vm233_vm0, %v219_v18, 0.0 }
  0x20   : > { %953 = vmatprep.subr.mxu0 %v592_v19  ;;  %977 = vmatprep.subr.mxu1 %v592_v19  ;;  %v281_v25 = vrot.slane %v1210_v20, 1  ;;  %v248_v31 = vsel %vm233_vm0, %v220_v27, 0.0  ;;  %v330_v32 = vrot.slane %v1210_v20, 2  ;;  %v331_v33 = vrot.slane %v247_v21, 2 }
  0x21   : > { %954 = vmatpush3.msra.mxu0 %v592_v19  ;;  %986 = vmatpush3.msra.mxu1 %v592_v19  ;;  %v285_v35 = vrot.slane %v248_v31, 1  ;;  %v334_v39 = vrot.slane %v248_v31, 2 }
  0x22   : > { %422 = vrot.lane.b32.xlu1 %v323_v26, %s1021_s27  ;;  %397 = vrot.lane.b32.xlu0 %v1113_v30, %s1020_s24  ;;  %v282_v26 = vrot.slane %v247_v21, 1  ;;  %v332_v36 = vsel %vm317_vm1, %v330_v32, %v331_v33 }
  0x23   : > { %955 = vmatprep.subr.mxu0 %v591_v22  ;;  %978 = vmatprep.subr.mxu1 %v591_v22 }
  0x24   : > { %956 = vmatpush3.msra.mxu0 %v591_v22  ;;  %987 = vmatpush3.msra.mxu1 %v591_v22  ;;  %v283_v29 = vsel %vm268_vm2, %v281_v25, %v282_v26 }
  0x25   : > { %957 = vmatprep.subr.mxu0 %v590_v24  ;;  %979 = vmatprep.subr.mxu1 %v590_v24 }
  0x26   : > { %346 = vrot.lane.b32.xlu1 %v1125_v40, %s1017_s21  ;;  %299 = vrot.lane.b32.xlu0 %v1128_v42, %s1018_s22 }
  0x27   : > { %958 = vmatpush3.msra.mxu0 %v590_v24  ;;  %988 = vmatpush3.msra.mxu1 %v590_v24 }
  0x2a   : > { %446 = vrot.lane.b32.xlu1 %v1088_v16, %s1022_s8  ;;  %424 = vrot.lane.b32.xlu0 %v1125_v40, %s1021_s27 }
  0x2e   : > { %371 = vrot.lane.b32.xlu1 %v1105_v28, %s1019_s23  ;;  %348 = vrot.lane.b32.xlu0 %v329_v12, %s1017_s21 }
  0x32   : > { %470 = vrot.lane.b32.xlu1 %v1113_v30, %s1023_s18  ;;  %448 = vrot.lane.b32.xlu0 %v1105_v28, %s1022_s8  ;;  %v1231_v30 = vsel %vm233_vm0, 0.0, %v220_v27 }
  0x33   : > { %v284_v34 = vrot.slane %v1231_v30, 1  ;;  %v333_v38 = vrot.slane %v1231_v30, 2 }
  0x35   : > { %v286_v37 = vsel %vm268_vm2, %v284_v34, %v285_v35 }
  0x36   : > { %399 = vrot.lane.b32.xlu1 %v1128_v42, %s1020_s24  ;;  %373 = vrot.lane.b32.xlu0 %v1210_v20, %s1019_s23 }
  0x3a   : > { %494 = vrot.lane.b32.xlu1 %v1125_v40, %s1024_s20  ;;  %472 = vrot.lane.b32.xlu0 %v1128_v42, %s1023_s18  ;;  %v335_v40 = vsel %vm317_vm1, %v333_v38, %v334_v39 }
  0x3e   : > { %401 = vrot.lane.b32.xlu1 %v283_v29, %s1020_s24  ;;  %301 = vrot.lane.b32.xlu0 %v283_v29, %s1018_s22 }
  0x42   : > { %496 = vrot.lane.b32.xlu1 %v329_v12, %s1024_s20  ;;  %426 = vrot.lane.b32.xlu0 %v329_v12, %s1021_s27 }
  0x46   : > { %350 = vrot.lane.b32.xlu1 %v332_v36, %s1017_s21  ;;  %303 = vrot.lane.b32.xlu0 %v286_v37, %s1018_s22 }
  0x4a   : > { %450 = vrot.lane.b32.xlu1 %v1210_v20, %s1022_s8  ;;  %428 = vrot.lane.b32.xlu0 %v332_v36, %s1021_s27 }
  0x4e   : > { %375 = vrot.lane.b32.xlu1 %v1231_v30, %s1019_s23  ;;  %352 = vrot.lane.b32.xlu0 %v335_v40, %s1017_s21 }
  0x52   : > { %474 = vrot.lane.b32.xlu1 %v283_v29, %s1023_s18  ;;  %452 = vrot.lane.b32.xlu0 %v1231_v30, %s1022_s8 }
  0x56   : > { %403 = vrot.lane.b32.xlu1 %v286_v37, %s1020_s24  ;;  %377 = vrot.lane.b32.xlu0 %v1131_v43, %s1019_s23 }
  0x5a   : > { %498 = vrot.lane.b32.xlu1 %v332_v36, %s1024_s20  ;;  %476 = vrot.lane.b32.xlu0 %v286_v37, %s1023_s18 }
  0x5e   : > { %405 = vrot.lane.b32.xlu1 %v1152_v55, %s1020_s24  ;;  %305 = vrot.lane.b32.xlu0 %v1152_v55, %s1018_s22 }
  0x62   : > { %500 = vrot.lane.b32.xlu1 %v335_v40, %s1024_s20  ;;  %430 = vrot.lane.b32.xlu0 %v335_v40, %s1021_s27 }
  0x66   : > { %354 = vrot.lane.b32.xlu1 %v1155_v56, %s1017_s21  ;;  %307 = vrot.lane.b32.xlu0 %v1161_v62, %s1018_s22 }
  0x6a   : > { %454 = vrot.lane.b32.xlu1 %v1131_v43, %s1022_s8  ;;  %432 = vrot.lane.b32.xlu0 %v1155_v56, %s1021_s27 }
  0x6e   : > { %379 = vrot.lane.b32.xlu1 %v1135_v45, %s1019_s23  ;;  %356 = vrot.lane.b32.xlu0 %v1164_v63, %s1017_s21 }
  0x72   : > { %478 = vrot.lane.b32.xlu1 %v1152_v55, %s1023_s18  ;;  %456 = vrot.lane.b32.xlu0 %v1135_v45, %s1022_s8 }
  0x76   : > { %407 = vrot.lane.b32.xlu1 %v1161_v62, %s1020_s24  ;;  %381 = vrot.lane.b32.xlu0 %v1149_v54, %s1019_s23 }
  0x7a   : > { %502 = vrot.lane.b32.xlu1 %v1155_v56, %s1024_s20  ;;  %480 = vrot.lane.b32.xlu0 %v1161_v62, %s1023_s18 }
  0x7e   : > { %434 = vrot.lane.b32.xlu1 %v1164_v63, %s1021_s27  ;;  %409 = vrot.lane.b32.xlu0 %v1179_v7, %s1020_s24 }
  0x82   : > { %436 = vrot.lane.b32.xlu1 %v1182_v10, %s1021_s27  ;;  %504 = vrot.lane.b32.xlu0 %v1164_v63, %s1024_s20 }
  0x84   : > { %v343_v41 = vpop.permute.xlu1 %342  ;;  %v294_v42 = vpop.permute.xlu0 %293 }
  0x85   : > { %v519_v58 = vsel %vm518_vm3, %v1059_v2, %v294_v42 }
  0x86   : > { %460 = vrot.lane.b32.xlu1 %v1059_v2, %s1022_s8  ;;  %458 = vrot.lane.b32.xlu0 %v1149_v54, %s1022_s8  ;;  %v528_v60 = vsel %vm527_vm4, %v519_v58, %v343_v41 }
  0x88   : > { %v370_v44 = vpop.permute.xlu1 %369  ;;  %v368_v46 = vpop.permute.xlu0 %367 }
  0x89   : > { %v537_v61 = vsel %vm536_vm5, %v528_v60, %v368_v46 }
  0x8a   : > { %484 = vrot.lane.b32.xlu1 %v1071_v9, %s1023_s18  ;;  %482 = vrot.lane.b32.xlu0 %v1179_v7, %s1023_s18 }
  0x8c   : > { %v345_v47 = vpop.permute.xlu1 %344  ;;  %v296_v48 = vpop.permute.xlu0 %295 }
  0x8d   : > { %v520_v1 = vsel %vm518_vm3, %v1091_v17, %v296_v48 }
  0x8e   : > { %508 = vrot.lane.b32.xlu1 %v1068_v8, %s1024_s20  ;;  %506 = vrot.lane.b32.xlu0 %v1182_v10, %s1024_s20  ;;  %v529_v7 = vsel %vm527_vm4, %v520_v1, %v345_v47 }
  0x8f   : > { %v538_v11 = vsel %vm536_vm5, %v529_v7, %v370_v44 }
  0x90   : > { %v298_v49 = vpop.permute.xlu1 %297  ;;  %v396_v50 = vpop.permute.xlu0 %395 }
  0x91   : > { %v546_v0 = vsel %vm545_vm6, %v537_v61, %v396_v50  ;;  %v521_v33 = vsel %vm518_vm3, %v1088_v16, %v298_v49 }
  0x94   : > { %v423_v51 = vpop.permute.xlu1 %422  ;;  %v398_v52 = vpop.permute.xlu0 %397 }
  0x95   : > { %v555_v2 = vsel %vm554_vm7, %v546_v0, %v423_v51  ;;  %v547_v13 = vsel %vm545_vm6, %v538_v11, %v398_v52 }
  0x98   : > { %v347_v53 = vpop.permute.xlu1 %346  ;;  %v1310_v54 = vpop.permute.xlu0 %299 }
  0x99   : > { %v530_v34 = vsel %vm527_vm4, %v521_v33, %v347_v53  ;;  %v522_v16 = vsel %vm518_vm3, %v1105_v28, %v1310_v54 }
  0x9c   : > { %v447_v55 = vpop.permute.xlu1 %446  ;;  %v425_v9 = vpop.permute.xlu0 %424 }
  0x9d   : > { %v564_v3 = vsel %vm563_vm8, %v555_v2, %v447_v55  ;;  %v556_v14 = vsel %vm554_vm7, %v547_v13, %v425_v9 }
  0xa0   : > { %v372_v56 = vpop.permute.xlu1 %371  ;;  %v349_v57 = vpop.permute.xlu0 %348 }
  0xa1   : > { %v539_v35 = vsel %vm536_vm5, %v530_v34, %v372_v56  ;;  %v531_v47 = vsel %vm527_vm4, %v522_v16, %v349_v57 }
  0xa4   : > { %v471_v8 = vpop.permute.xlu1 %470  ;;  %v449_v59 = vpop.permute.xlu0 %448 }
  0xa5   : > { %v573_v4 = vsel %vm572_vm9, %v564_v3, %v471_v8  ;;  %v565_v15 = vsel %vm563_vm8, %v556_v14, %v449_v59 }
  0xa8   : > { %v400_v62 = vpop.permute.xlu1 %399  ;;  %v374_v63 = vpop.permute.xlu0 %373 }
  0xa9   : > { %v548_v38 = vsel %vm545_vm6, %v539_v35, %v400_v62  ;;  %v540_v48 = vsel %vm536_vm5, %v531_v47, %v374_v63 }
  0xac   : > { %v495_v5 = vpop.permute.xlu1 %494  ;;  %v473_v6 = vpop.permute.xlu0 %472 }
  0xad   : > { %v582_v10 = vsel %vm581_vm10, %v573_v4, %v495_v5  ;;  %v574_v18 = vsel %vm572_vm9, %v565_v15, %v473_v6 }
  0xae   : > { %959 = vmatprep.mubr.msk.f32.mxu0 %vm599_vm11, %v582_v10 }
  0xb0   : > { %v402_v12 = vpop.permute.xlu1 %401  ;;  %v302_v17 = vpop.permute.xlu0 %301 }
  0xb1   : > { %v549_v51 = vsel %vm545_vm6, %v540_v48, %v402_v12  ;;  %v523_v63 = vsel %vm518_vm3, %v1210_v20, %v302_v17 }
  0xb4   : > { %v497_v19 = vpop.permute.xlu1 %496  ;;  %v427_v21 = vpop.permute.xlu0 %426 }
  0xb5   : > { %v583_v22 = vsel %vm581_vm10, %v574_v18, %v497_v19  ;;  %v557_v39 = vsel %vm554_vm7, %v548_v38, %v427_v21 }
  0xb6   : > { %960 = vmatmul.mubr.msk.f32.vlgmr.msra.gmra.mxu0 %vm599_vm11, %v583_v22 }
  0xb8   : > { %v351_v23 = vpop.permute.xlu1 %350  ;;  %v304_v24 = vpop.permute.xlu0 %303 }
  0xb9   : > { %v532_v0 = vsel %vm527_vm4, %v523_v63, %v351_v23  ;;  %v524_v20 = vsel %vm518_vm3, %v1231_v30, %v304_v24 }
  0xbc   : > { %v451_v25 = vpop.permute.xlu1 %450  ;;  %v429_v26 = vpop.permute.xlu0 %428 }
  0xbd   : > { %v566_v40 = vsel %vm563_vm8, %v557_v39, %v451_v25  ;;  %v558_v52 = vsel %vm554_vm7, %v549_v51, %v429_v26 }
  0xc0   : > { %v376_v27 = vpop.permute.xlu1 %375  ;;  %v353_v29 = vpop.permute.xlu0 %352 }
  0xc1   : > { %v541_v1 = vsel %vm536_vm5, %v532_v0, %v376_v27  ;;  %v533_v17 = vsel %vm527_vm4, %v524_v20, %v353_v29 }
  0xc4   : > { %v475_v31 = vpop.permute.xlu1 %474  ;;  %v453_v32 = vpop.permute.xlu0 %452 }
  0xc5   : > { %v575_v41 = vsel %vm572_vm9, %v566_v40, %v475_v31  ;;  %v567_v53 = vsel %vm563_vm8, %v558_v52, %v453_v32 }
  0xc8   : > { %v404_v36 = vpop.permute.xlu1 %403  ;;  %v378_v37 = vpop.permute.xlu0 %377 }
  0xc9   : > { %v550_v4 = vsel %vm545_vm6, %v541_v1, %v404_v36  ;;  %v542_v13 = vsel %vm536_vm5, %v533_v17, %v378_v37 }
  0xcc   : > { %v499_v42 = vpop.permute.xlu1 %498  ;;  %v477_v44 = vpop.permute.xlu0 %476 }
  0xcd   : > { %v584_v46 = vsel %vm581_vm10, %v575_v41, %v499_v42  ;;  %v576_v55 = vsel %vm572_vm9, %v567_v53, %v477_v44 }
  0xce   : > { %962 = vmatprep.mubr.msk.f32.mxu0 %vm599_vm11, %v584_v46 }
  0xd0   : > { %v406_v49 = vpop.permute.xlu1 %405  ;;  %v306_v50 = vpop.permute.xlu0 %305 }
  0xd1   : > { %v551_v18 = vsel %vm545_vm6, %v542_v13, %v406_v49  ;;  %v525_v27 = vsel %vm518_vm3, %v1131_v43, %v306_v50 }
  0xd4   : > { %v501_v9 = vpop.permute.xlu1 %500  ;;  %v431_v56 = vpop.permute.xlu0 %430 }
  0xd5   : > { %v585_v28 = vsel %vm581_vm10, %v576_v55, %v501_v9  ;;  %v559_v5 = vsel %vm554_vm7, %v550_v4, %v431_v56 }
  0xd6   : > { %963 = vmatmul.mubr.msk.f32.gmra.mxu0 %vm599_vm11, %v585_v28 }
  0xd8   : > { %v355_v54 = vpop.permute.xlu1 %354  ;;  %v308_v57 = vpop.permute.xlu0 %307 }
  0xd9   : > { %v526_v29 = vsel %vm518_vm3, %v1135_v45, %v308_v57  ;;  %v534_v31 = vsel %vm527_vm4, %v525_v27, %v355_v54 }
  0xdc   : > { %v455_v58 = vpop.permute.xlu1 %454  ;;  %v433_v8 = vpop.permute.xlu0 %432 }
  0xdd   : > { %v568_v6 = vsel %vm563_vm8, %v559_v5, %v455_v58  ;;  %v560_v19 = vsel %vm554_vm7, %v551_v18, %v433_v8 }
  0xe0   : > { %v380_v59 = vpop.permute.xlu1 %379  ;;  %v357_v60 = vpop.permute.xlu0 %356 }
  0xe1   : > { %v535_v32 = vsel %vm527_vm4, %v526_v29, %v357_v60  ;;  %v543_v33 = vsel %vm536_vm5, %v534_v31, %v380_v59 }
  0xe4   : > { %v479_v61 = vpop.permute.xlu1 %478  ;;  %v457_v62 = vpop.permute.xlu0 %456 }
  0xe5   : > { %v577_v7 = vsel %vm572_vm9, %v568_v6, %v479_v61  ;;  %v569_v21 = vsel %vm563_vm8, %v560_v19, %v457_v62 }
  0xe8   : > { %v408_v2 = vpop.permute.xlu1 %407  ;;  %v382_v3 = vpop.permute.xlu0 %381 }
  0xe9   : > { %v544_v34 = vsel %vm536_vm5, %v535_v32, %v382_v3  ;;  %v552_v37 = vsel %vm545_vm6, %v543_v33, %v408_v2 }
  0xec   : > { %v503_v10 = vpop.permute.xlu1 %502  ;;  %v481_v11 = vpop.permute.xlu0 %480 }
  0xed   : > { %v586_v12 = vsel %vm581_vm10, %v577_v7, %v503_v10  ;;  %v578_v22 = vsel %vm572_vm9, %v569_v21, %v481_v11 }
  0xee   : > { %965 = vmatprep.mubr.msk.f32.mxu1 %vm599_vm11, %v586_v12 }
  0xf0   : > { %v435_v14 = vpop.permute.xlu1 %434  ;;  %v410_v15 = vpop.permute.xlu0 %409 }
  0xf1   : > { %v553_v38 = vsel %vm545_vm6, %v544_v34, %v410_v15  ;;  %v561_v39 = vsel %vm554_vm7, %v552_v37, %v435_v14 }
  0xf4   : > { %v437_v23 = vpop.permute.xlu1 %436  ;;  %v505_v25 = vpop.permute.xlu0 %504 }
  0xf5   : > { %v587_v30 = vsel %vm581_vm10, %v578_v22, %v505_v25  ;;  %v562_v43 = vsel %vm554_vm7, %v553_v38, %v437_v23 }
  0xf6   : > { %966 = vmatmul.mubr.msk.f32.vlgmr.msra.gmra.mxu1 %vm599_vm11, %v587_v30 }
  0xf8   : > { %v461_v24 = vpop.permute.xlu1 %460  ;;  %v459_v26 = vpop.permute.xlu0 %458 }
  0xf9   : > { %v571_v45 = vsel %vm563_vm8, %v562_v43, %v461_v24  ;;  %v570_v40 = vsel %vm563_vm8, %v561_v39, %v459_v26 }
  0xfc   : > { %v485_v35 = vpop.permute.xlu1 %484  ;;  %v483_v36 = vpop.permute.xlu0 %482 }
  0xfd   : > { %v580_v41 = vsel %vm572_vm9, %v571_v45, %v485_v35  ;;  %v579_v42 = vsel %vm572_vm9, %v570_v40, %v483_v36 }
 0x100   : > { %v509_v44 = vpop.permute.xlu1 %508  ;;  %v507_v46 = vpop.permute.xlu0 %506 }
 0x101   : > { %v589_v16 = vsel %vm581_vm10, %v580_v41, %v509_v44  ;;  %v588_v47 = vsel %vm581_vm10, %v579_v42, %v507_v46 }
 0x102   : > { %968 = vmatprep.mubr.msk.f32.mxu1 %vm599_vm11, %v588_v47 }
 0x103   : > { %969 = vmatmul.mubr.msk.f32.gmra.mxu1 %vm599_vm11, %v589_v16 }
 0x176   : > { %v961_v48 = vpop.f32.mrf.mxu0 }
 0x177   : > { %v730_v55 = vsel %vm527_vm4, %v961_v48, 0.0 }
 0x178   : > { %v690_v49 = vpop.f32.mrf.mxu0 }
 0x179   : > { %v729_v52 = vsel %vm527_vm4, %v690_v49, 0.0 }
 0x17a   : > { %v731_v56 = vadd.f32 %v730_v55, %v729_v52  ;;  %v918_v55 = vld [vmem:[%s1433_s2] ss:$0 sm:$0xff] }
 0x196   : > { %v964_v50 = vpop.f32.mrf.mxu0 }
 0x197   : > { %v734_v57 = vsel %vm527_vm4, %v964_v50, 0.0 }
 0x198   : > { %v700_v51 = vpop.f32.mrf.mxu0 }
 0x199   : > { %v732_v9 = vsel %vm527_vm4, %v700_v51, 0.0 }
 0x19a   : > { %v733_v28 = vadd.f32 %v732_v9, %v731_v56 }
 0x19c   : > { %v735_v8 = vadd.f32 %v734_v57, %v733_v28 }
 0x1b6   : > { %v967_v53 = vpop.f32.mrf.mxu1 }
 0x1b7   : > { %v738_v61 = vsel %vm527_vm4, %v967_v53, 0.0 }
 0x1b8   : > { %v710_v54 = vpop.f32.mrf.mxu1 }
 0x1b9   : > { %v736_v58 = vsel %vm527_vm4, %v710_v54, 0.0 }
 0x1ba   : > { %v737_v59 = vadd.f32 %v736_v58, %v735_v8 }
 0x1bc   : > { %v739_v63 = vadd.f32 %v738_v61, %v737_v59 }
 0x1c3   : > { %v970_v60 = vpop.f32.mrf.mxu1 }
 0x1c4   : > { %v742_v2 = vsel %vm527_vm4, %v970_v60, 0.0 }
 0x1c5   : > { %v720_v62 = vpop.f32.mrf.mxu1 }
 0x1c6   : > { %v740_v0 = vsel %vm527_vm4, %v720_v62, 0.0 }
 0x1c7   : > { %v741_v1 = vadd.f32 %v740_v0, %v739_v63 }
 0x1c9   : > { %v743_v3 = vadd.f32 %v742_v2, %v741_v1 }
 0x1cb   : > { %v744_v4 = vrot.slane %v743_v3, 4 }
 0x1cd   : > { %v745_v5 = vadd.f32 %v744_v4, %v743_v3 }
 0x1cf   : > { %v746_v6 = vrot.slane %v745_v5, 2 }
 0x1d1   : > { %v747_v7 = vadd.f32 %v746_v6, %v745_v5 }
 0x1d3   : > { %v748_v10 = vrot.slane %v747_v7, 1 }
 0x1d5   : > { %v749_v11 = vadd.f32 %v748_v10, %v747_v7 }
 0x1d7   : > { %v751_v12 = vmul.f32 0.015625, %v749_v11 }
 0x1d9   : > { %v752_v20 = vsub.f32 %v690_v49, %v751_v12  ;;  %v753_v17 = vsub.f32 %v961_v48, %v751_v12  ;;  %v754_v13 = vsub.f32 %v700_v51, %v751_v12  ;;  %v755_v14 = vsub.f32 %v964_v50, %v751_v12 }
 0x1da   : > { %v756_v15 = vsub.f32 %v710_v54, %v751_v12  ;;  %v757_v22 = vsub.f32 %v967_v53, %v751_v12  ;;  %v758_v26 = vsub.f32 %v720_v62, %v751_v12  ;;  %v759_v32 = vsub.f32 %v970_v60, %v751_v12  ;;  %v919_v60 = vld [vmem:[%s1434_s3] ss:$0 sm:$0xff] }
 0x1db   : > { %v760_v18 = vmul.f32 %v752_v20, %v752_v20  ;;  %v761_v19 = vmul.f32 %v753_v17, %v753_v17  ;;  %v762_v21 = vmul.f32 %v754_v13, %v754_v13  ;;  %v763_v23 = vmul.f32 %v755_v14, %v755_v14 }
 0x1dc   : > { %v764_v27 = vmul.f32 %v756_v15, %v756_v15  ;;  %v765_v33 = vmul.f32 %v757_v22, %v757_v22  ;;  %v766_v36 = vmul.f32 %v758_v26, %v758_v26  ;;  %v767_v39 = vmul.f32 %v759_v32, %v759_v32 }
 0x1dd   : > { %v768_v25 = vsel %vm527_vm4, %v760_v18, 0.0  ;;  %v769_v30 = vsel %vm527_vm4, %v761_v19, 0.0  ;;  %v771_v29 = vsel %vm527_vm4, %v762_v21, 0.0  ;;  %v773_v34 = vsel %vm527_vm4, %v763_v23, 0.0 }
 0x1de   : > { %v770_v24 = vadd.f32 %v769_v30, %v768_v25  ;;  %v775_v37 = vsel %vm527_vm4, %v764_v27, 0.0  ;;  %v777_v43 = vsel %vm527_vm4, %v765_v33, 0.0  ;;  %v779_v40 = vsel %vm527_vm4, %v766_v36, 0.0 }
 0x1df   : > { %v781_v42 = vsel %vm527_vm4, %v767_v39, 0.0 }
 0x1e0   : > { %v772_v31 = vadd.f32 %v771_v29, %v770_v24 }
 0x1e2   : > { %v774_v35 = vadd.f32 %v773_v34, %v772_v31 }
 0x1e4   : > { %v776_v38 = vadd.f32 %v775_v37, %v774_v35 }
 0x1e6   : > { %v778_v45 = vadd.f32 %v777_v43, %v776_v38 }
 0x1e8   : > { %v780_v41 = vadd.f32 %v779_v40, %v778_v45 }
 0x1ea   : > { %v782_v44 = vadd.f32 %v781_v42, %v780_v41 }
 0x1ec   : > { %v783_v46 = vrot.slane %v782_v44, 4 }
 0x1ee   : > { %v784_v16 = vadd.f32 %v783_v46, %v782_v44 }
 0x1f0   : > { %v785_v47 = vrot.slane %v784_v16, 2 }
 0x1f2   : > { %v786_v48 = vadd.f32 %v785_v47, %v784_v16 }
 0x1f4   : > { %v787_v49 = vrot.slane %v786_v48, 1 }
 0x1f6   : > { %v788_v50 = vadd.f32 %v787_v49, %v786_v48 }
 0x1f8   : > { %v789_v51 = vmul.f32 0.015625, %v788_v50 }
 0x1fa   : > { %v790_v52 = vadd.f32 1e-05, %v789_v51 }
 0x1fc   : > { %1006 = vrsqrt.f32 %v790_v52 }
 0x209   : > { %v1007_v53 = vpop.eup %1006 }
 0x20a   : > { %v792_v9 = vmul.f32 %v1007_v53, %v752_v20  ;;  %v793_v56 = vmul.f32 %v1007_v53, %v753_v17  ;;  %v794_v28 = vmul.f32 %v1007_v53, %v754_v13  ;;  %v795_v54 = vmul.f32 %v1007_v53, %v755_v14 }
 0x20b   : > { %v796_v57 = vmul.f32 %v1007_v53, %v756_v15  ;;  %v797_v58 = vmul.f32 %v1007_v53, %v757_v22  ;;  %v798_v8 = vmul.f32 %v1007_v53, %v758_v26  ;;  %v799_v59 = vmul.f32 %v1007_v53, %v759_v32 }
 0x20c   : > { %v807_v61 = vmul.f32 %v918_v55, %v792_v9  ;;  %v808_v62 = vmul.f32 %v918_v55, %v793_v56  ;;  %v809_v63 = vmul.f32 %v918_v55, %v794_v28  ;;  %v810_v0 = vmul.f32 %v918_v55, %v795_v54 }
 0x20d   : > { %v811_v1 = vmul.f32 %v918_v55, %v796_v57  ;;  %v812_v2 = vmul.f32 %v918_v55, %v797_v58  ;;  %v813_v3 = vmul.f32 %v918_v55, %v798_v8  ;;  %v814_v4 = vmul.f32 %v918_v55, %v799_v59 }
 0x20e   : > { %v822_v5 = vadd.f32 %v919_v60, %v807_v61  ;;  %v823_v6 = vadd.f32 %v919_v60, %v808_v62  ;;  %v824_v7 = vadd.f32 %v919_v60, %v809_v63  ;;  %v825_v10 = vadd.f32 %v919_v60, %v810_v0 }
 0x20f   : > { %v826_v11 = vadd.f32 %v919_v60, %v811_v1  ;;  %v827_v12 = vadd.f32 %v919_v60, %v812_v2  ;;  %v828_v20 = vadd.f32 %v919_v60, %v813_v3  ;;  %v829_v17 = vadd.f32 %v919_v60, %v814_v4 }
 0x210   : > { %v830_v13 = vmax.f32 %v822_v5, 0.0  ;;  %v831_v14 = vmax.f32 %v823_v6, 0.0  ;;  %v832_v15 = vmax.f32 %v824_v7, 0.0  ;;  %v833_v18 = vmax.f32 %v825_v10, 0.0 }
 0x211   : > { %v834_v19 = vmax.f32 %v826_v11, 0.0  ;;  %v835_v21 = vmax.f32 %v827_v12, 0.0  ;;  %v836_v22 = vmax.f32 %v828_v20, 0.0  ;;  %v837_v23 = vmax.f32 %v829_v17, 0.0 }
 0x212   : > { %838 = vst.msk [vmem:[%s197_s30] sm:$0xff] %vm527_vm4, %v830_v13  ;;  %839 = vst.msk [vmem:[%s197_s30 + $0x8] sm:$0xff] %vm527_vm4, %v831_v14 }
 0x213   : > { %840 = vst.msk [vmem:[%s197_s30 + $0x10] sm:$0xff] %vm527_vm4, %v832_v15  ;;  %841 = vst.msk [vmem:[%s197_s30 + $0x18] sm:$0xff] %vm527_vm4, %v833_v18 }
 0x214   : > { %842 = vst.msk [vmem:[%s197_s30 + $0x20] sm:$0xff] %vm527_vm4, %v834_v19  ;;  %843 = vst.msk [vmem:[%s197_s30 + $0x28] sm:$0xff] %vm527_vm4, %v835_v21 }
 0x215   : > { %844 = vst.msk [vmem:[%s197_s30 + $0x30] sm:$0xff] %vm527_vm4, %v836_v22  ;;  %845 = vst.msk [vmem:[%s197_s30 + $0x38] sm:$0xff] %vm527_vm4, %v837_v23 }
 0x216 PF: > { %s14_s15 = sadd.s32 1, %s1014_s15  }
 0x217   : > { %p11_p4 = scmp.ge.s32.totalorder %s14_s15, 4  }
 0x219   :  { %13 = sbr.rel (!%p11_p4) target bundleno = 1 (0x1), region = 66 }

// kernel: net_recurse_forward.8
= control target key start
LH: loop header
LB: loop body
LE: loop exit
PB: predicated region body
PF: predicated region fallthrough
CT: control target
= control target key end

     0   :  { %s2641_s15 = smov 0   ;;  %s4518_s0 = inlined_call_operand.vmem [shape: f32[2,16,16,4], index: 0, kind: input, shape index: {}]   ;;  %s4519_s1 = inlined_call_operand.vmem [shape: f32[36,8], index: 1, kind: input, shape index: {}]   ;;  %s4520_s2 = inlined_call_operand.vmem [shape: f32[1,8], index: 2, kind: input, shape index: {}]   ;;  %s4521_s3 = inlined_call_operand.vmem [shape: f32[1,8], index: 3, kind: input, shape index: {}]   ;;  %s4522_s4 = inlined_call_operand.vmem [shape: f32[2,16,16,8], index: 4, kind: output, shape index: {}]  }
   0x1 LB: > { %s2402_s16 = sadd.s32 4294967295, %s2605_s15   ;;  %p2406_p0 = scmp.ge.s32.totalorder %s2605_s15, 1  ;;  %s2605_s15 = sphi %s2641_s15, %s14_s15  }
   0x2   : > { %p162_p1 = scmp.lt.s32.totalorder %s2605_s15, 3 }
   0x4   : > { %p163_p2 = pnand %p2406_p0, %p162_p1 }
   0x6   : > { %166 = sbr.rel (%p163_p2) target bundleno = 992 (0x3e0), region = 36 }
   0xb   : > { %vm263_vm0 = vcmask 1040384   ;;  %p188_p3 = scmp.lt.s32.totalorder %s2402_s16, 1  ;;  %v2607_v0 = vmov 0.0   ;;  %vm429_vm1 = vcmask 1046528   ;;  %s2608_s21 = smov 4   ;;  %vm606_vm2 = vcmask 1045504  }
   0xc   : > { %v2649_v1 = vrot.slane %v2607_v0, 7  ;;  %s2609_s22 = smov 8   ;;  %s2610_s23 = smov 12   ;;  %vm1737_vm3 = vcmask 1043456   ;;  %vm1371_vm4 = vcmask 31744   ;;  %vm1404_vm5 = vcmask 64512  }
   0xd   : > { %s4695_s16 = smov (!%p188_p3, %s2402_s16), 1  ;;  %s2611_s24 = smov 16   ;;  %vm1437_vm6 = vcmask 97280   ;;  %vm1470_vm7 = vcmask 130048   ;;  %vm1503_vm8 = vcmask 162816   ;;  %vm1536_vm9 = vcmask 195584  }
   0xe   : > { %4584 = vst [vmem:[#allocation2_spill] sm:$0xff] %v2649_v1  ;;  %v2655_v2 = vsel %vm263_vm0, 0.0, %v2649_v1  ;;  %v2659_v3 = vsel %vm263_vm0, %v2649_v1, 0.0  ;;  %v431_v4 = vrot.slane %v2649_v1, 1  ;;  %s2448_s17 = sshll.u32 %s4695_s16, 8  ;;  %s2612_s25 = smov 20  }
   0xf   : > { %4585 = vst [vmem:[#allocation3_spill] sm:$0xff] %v2655_v2  ;;  %v430_v5 = vrot.slane %v2655_v2, 1  ;;  %v433_v6 = vrot.slane %v2659_v3, 1  ;;  %s2670_s20 = scalar_lea.vmem %s4518_s0, %s2448_s17  ;;  %s2613_s30 = smov 24   ;;  %vm1569_vm10 = vcmask 228352   ;;  %vm1602_vm11 = vcmask 261120  }
  0x10   : > { %v198_v9 = vld [vmem:[%s2670_s20] sm:$0xff]  ;;  %v199_v10 = vld [vmem:[%s2670_s20 + $0x8] sm:$0xff]  ;;  %v200_v11 = vld [vmem:[%s2670_s20 + $0x10] sm:$0xff]  ;;  %s2614_s11 = smov 28   ;;  %s2615_s12 = smov 32   ;;  %vm1640_vm12 = vcmask 293888  }
  0x11   : > { %v432_v7 = vsel %vm429_vm1, %v430_v5, %v431_v4  ;;  %v434_v8 = vsel %vm429_vm1, %v431_v4, %v433_v6  ;;  %v266_v13 = vrot.slane %v198_v9, 7  ;;  %v267_v14 = vrot.slane %v199_v10, 7  ;;  %v201_v15 = vld [vmem:[%s2670_s20 + $0x18] sm:$0xff]  ;;  %v202_v16 = vld [vmem:[%s2670_s20 + $0x20] sm:$0xff]  ;;  %v203_v17 = vld [vmem:[%s2670_s20 + $0x28] sm:$0xff] }
  0x12   : > { %v2677_v12 = vpack.i.bf16 %v434_v8, %v432_v7  ;;  %v269_v18 = vrot.slane %v200_v11, 7  ;;  %v270_v19 = vrot.slane %v201_v15, 7  ;;  %v272_v20 = vrot.slane %v202_v16, 7  ;;  %v204_v22 = vld [vmem:[%s2670_s20 + $0x30] sm:$0xff]  ;;  %v205_v31 = vld [vmem:[%s2670_s20 + $0x38] sm:$0xff]  ;;  %v206_v40 = vld [vmem:[%s2670_s20 + $0x40] sm:$0xff] }
  0x13   : > { %v273_v21 = vrot.slane %v203_v17, 7  ;;  %v2686_v23 = vsel %vm263_vm0, %v266_v13, %v267_v14  ;;  %v2689_v24 = vsel %vm263_vm0, %v267_v14, 0.0  ;;  %v2692_v25 = vsel %vm263_vm0, 0.0, %v266_v13  ;;  %v207_v49 = vld [vmem:[%s2670_s20 + $0x48] sm:$0xff]  ;;  %v208_v50 = vld [vmem:[%s2670_s20 + $0x50] sm:$0xff]  ;;  %v209_v55 = vld [vmem:[%s2670_s20 + $0x58] sm:$0xff] }
  0x14   : > { %4586 = vst [vmem:[#allocation4_spill] sm:$0xff] %v2677_v12  ;;  %2573 = vrot.lane.b32.xlu0 %v2677_v12, %s2608_s21  ;;  %v275_v26 = vrot.slane %v204_v22, 7  ;;  %v436_v27 = vrot.slane %v2686_v23, 1  ;;  %v438_v28 = vrot.slane %v2689_v24, 1  ;;  %v435_v29 = vrot.slane %v2692_v25, 1  ;;  %v210_v4 = vld [vmem:[%s2670_s20 + $0x60] sm:$0xff] }
  0x15   : > { %v2698_v30 = vsel %vm263_vm0, %v269_v18, %v270_v19  ;;  %v2702_v32 = vsel %vm263_vm0, 0.0, %v269_v18  ;;  %v2706_v34 = vsel %vm263_vm0, %v270_v19, 0.0  ;;  %v2709_v35 = vsel %vm263_vm0, %v272_v20, %v273_v21  ;;  %v211_v5 = vld [vmem:[%s2670_s20 + $0x68] sm:$0xff]  ;;  %v212_v19 = vld [vmem:[%s2670_s20 + $0x70] sm:$0xff] }
  0x16   : > { %v441_v33 = vrot.slane %v2698_v30, 1  ;;  %v2712_v36 = vsel %vm429_vm1, %v436_v27, %v438_v28  ;;  %v2715_v37 = vsel %vm429_vm1, %v435_v29, %v436_v27  ;;  %v440_v38 = vrot.slane %v2702_v32, 1  ;;  %v220_v12 = vld [vmem:[%s2670_s20 + $0xb0] sm:$0xff] }
  0x17   : > { %v443_v39 = vrot.slane %v2706_v34, 1  ;;  %516 = vrot.lane.b32.xlu1 %v2712_v36, %s2608_s21  ;;  %v2725_v41 = vsel %vm263_vm0, 0.0, %v272_v20  ;;  %v446_v42 = vrot.slane %v2709_v35, 1  ;;  %v2729_v43 = vsel %vm263_vm0, %v273_v21, 0.0  ;;  %v213_v20 = vld [vmem:[%s2670_s20 + $0x78] sm:$0xff] }
  0x18   : > { %514 = vrot.lane.b32.xlu0 %v2715_v37, %s2608_s21  ;;  %v276_v44 = vrot.slane %v205_v31, 7  ;;  %v2732_v45 = vsel %vm429_vm1, %v440_v38, %v441_v33  ;;  %v445_v47 = vrot.slane %v2725_v41, 1  ;;  %v448_v48 = vrot.slane %v2729_v43, 1 }
  0x19   : > { %v2735_v46 = vsel %vm429_vm1, %v441_v33, %v443_v39  ;;  %v2745_v52 = vsel %vm263_vm0, 0.0, %v275_v26  ;;  %v278_v54 = vrot.slane %v206_v40, 7  ;;  %v279_v58 = vrot.slane %v207_v49, 7  ;;  %v214_v39 = vld [vmem:[%s2670_s20 + $0x80] sm:$0xff]  ;;  %v215_v40 = vld [vmem:[%s2670_s20 + $0x88] sm:$0xff] }
  0x1a   : > { %v2742_v51 = vsel %vm263_vm0, %v275_v26, %v276_v44  ;;  %v2748_v53 = vsel %vm263_vm0, %v276_v44, 0.0  ;;  %v2752_v56 = vsel %vm429_vm1, %v445_v47, %v446_v42  ;;  %v2759_v57 = vsel %vm429_vm1, %v446_v42, %v448_v48 }
  0x1b   : > { %518 = vrot.lane.b32.xlu1 %v2732_v45, %s2608_s21  ;;  %v2762_v59 = vsel %vm263_vm0, 0.0, %v278_v54  ;;  %v281_v60 = vrot.slane %v208_v50, 7  ;;  %v450_v61 = vrot.slane %v2745_v52, 1  ;;  %v451_v62 = vrot.slane %v2742_v51, 1 }
  0x1c   : > { %520 = vrot.lane.b32.xlu0 %v2735_v46, %s2608_s21  ;;  %v453_v63 = vrot.slane %v2748_v53, 1  ;;  %v282_v0 = vrot.slane %v209_v55, 7  ;;  %v2770_v6 = vsel %vm263_vm0, %v278_v54, %v279_v58  ;;  %v2773_v7 = vsel %vm263_vm0, %v279_v58, 0.0  ;;  %v216_v54 = vld [vmem:[%s2670_s20 + $0x90] sm:$0xff] }
  0x1d   : > { %v455_v8 = vrot.slane %v2762_v59, 1  ;;  %v456_v9 = vrot.slane %v2770_v6, 1  ;;  %v2782_v10 = vsel %vm263_vm0, 0.0, %v281_v60  ;;  %v284_v11 = vrot.slane %v210_v4, 7 }
  0x1e   : > { %v285_v13 = vrot.slane %v211_v5, 7  ;;  %v2785_v14 = vsel %vm429_vm1, %v450_v61, %v451_v62  ;;  %v2788_v15 = vsel %vm429_vm1, %v451_v62, %v453_v63  ;;  %v458_v16 = vrot.slane %v2773_v7, 1  ;;  %v217_v63 = vld [vmem:[%s2670_s20 + $0x98] sm:$0xff] }
  0x1f   : > { %522 = vrot.lane.b32.xlu1 %v2752_v56, %s2608_s21  ;;  %v2792_v17 = vsel %vm263_vm0, %v281_v60, %v282_v0  ;;  %v2795_v18 = vsel %vm263_vm0, %v282_v0, 0.0  ;;  %v460_v21 = vrot.slane %v2782_v10, 1  ;;  %v2805_v22 = vsel %vm429_vm1, %v455_v8, %v456_v9 }
  0x20   : > { %524 = vrot.lane.b32.xlu0 %v2759_v57, %s2608_s21  ;;  %v461_v26 = vrot.slane %v2792_v17, 1  ;;  %v2809_v27 = vsel %vm263_vm0, %v284_v11, %v285_v13  ;;  %v2812_v28 = vsel %vm263_vm0, 0.0, %v284_v11  ;;  %v2815_v29 = vsel %vm429_vm1, %v456_v9, %v458_v16 }
  0x21   : > { %v463_v31 = vrot.slane %v2795_v18, 1  ;;  %v287_v33 = vrot.slane %v212_v19, 7  ;;  %v288_v38 = vrot.slane %v213_v20, 7  ;;  %v2821_v42 = vsel %vm263_vm0, %v285_v13, 0.0 }
  0x22   : > { %v465_v44 = vrot.slane %v2812_v28, 1  ;;  %v466_v47 = vrot.slane %v2809_v27, 1  ;;  %v2830_v48 = vsel %vm429_vm1, %v460_v21, %v461_v26  ;;  %v290_v49 = vrot.slane %v214_v39, 7  ;;  %v218_v21 = vld [vmem:[%s2670_s20 + $0xa0] sm:$0xff] }
  0x23   : > { %526 = vrot.lane.b32.xlu1 %v2785_v14, %s2608_s21  ;;  %v291_v50 = vrot.slane %v215_v40, 7  ;;  %v2834_v55 = vsel %vm429_vm1, %v461_v26, %v463_v31  ;;  %v468_v58 = vrot.slane %v2821_v42, 1  ;;  %v2838_v60 = vsel %vm263_vm0, %v287_v33, %v288_v38  ;;  %v219_v26 = vld [vmem:[%s2670_s20 + $0xa8] sm:$0xff] }
  0x24   : > { %528 = vrot.lane.b32.xlu0 %v2788_v15, %s2608_s21  ;;  %v2841_v61 = vsel %vm263_vm0, 0.0, %v287_v33  ;;  %v2844_v62 = vsel %vm263_vm0, %v288_v38, 0.0  ;;  %v2848_v0 = vsel %vm429_vm1, %v465_v44, %v466_v47  ;;  %v293_v4 = vrot.slane %v216_v54, 7 }
  0x25   : > { %v470_v5 = vrot.slane %v2841_v61, 1  ;;  %v471_v8 = vrot.slane %v2838_v60, 1  ;;  %v2857_v9 = vsel %vm263_vm0, %v290_v49, %v291_v50  ;;  %v2860_v11 = vsel %vm263_vm0, 0.0, %v290_v49 }
  0x26   : > { %4587 = vst [vmem:[#allocation5_spill] sm:$0xff] %v2857_v9  ;;  %v2863_v13 = vsel %vm429_vm1, %v466_v47, %v468_v58  ;;  %v473_v16 = vrot.slane %v2844_v62, 1  ;;  %v2867_v19 = vsel %vm263_vm0, %v291_v50, 0.0  ;;  %v294_v20 = vrot.slane %v217_v63, 7 }
  0x27   : > { %530 = vrot.lane.b32.xlu1 %v2805_v22, %s2608_s21  ;;  %4588 = vst [vmem:[#allocation6_spill] sm:$0xff] %v2867_v19  ;;  %v608_v31 = vrot.slane %v2649_v1, 2  ;;  %v610_v33 = vrot.slane %v2659_v3, 2  ;;  %v475_v38 = vrot.slane %v2860_v11, 1  ;;  %v476_v39 = vrot.slane %v2857_v9, 1 }
  0x28   : > { %532 = vrot.lane.b32.xlu0 %v2815_v29, %s2608_s21  ;;  %v607_v40 = vrot.slane %v2655_v2, 2  ;;  %v2881_v44 = vsel %vm429_vm1, %v470_v5, %v471_v8  ;;  %v478_v47 = vrot.slane %v2867_v19, 1  ;;  %v2885_v49 = vsel %vm263_vm0, 0.0, %v293_v4  ;;  %v221_v5 = vld [vmem:[%s2670_s20 + $0xb8] sm:$0xff] }
  0x29   : > { %4589 = vst [vmem:[#allocation7_spill] sm:$0xff] %v2885_v49  ;;  %v296_v3 = vrot.slane %v218_v21, 7  ;;  %v2888_v50 = vsel %vm429_vm1, %v471_v8, %v473_v16  ;;  %v2891_v54 = vsel %vm263_vm0, %v293_v4, %v294_v20  ;;  %v2894_v58 = vsel %vm263_vm0, %v294_v20, 0.0 }
  0x2a   : > { %4590 = vst [vmem:[#allocation8_spill] sm:$0xff] %v2891_v54  ;;  %4591 = vst [vmem:[#allocation9_spill] sm:$0xff] %v2894_v58  ;;  %v297_v63 = vrot.slane %v219_v26, 7  ;;  %v2899_v9 = vsel %vm429_vm1, %v475_v38, %v476_v39  ;;  %v480_v19 = vrot.slane %v2885_v49, 1  ;;  %v609_v21 = vsel %vm606_vm2, %v607_v40, %v608_v31  ;;  %v222_v49 = vld [vmem:[%s2670_s20 + $0xc0] sm:$0xff] }
  0x2b   : > { %534 = vrot.lane.b32.xlu1 %v2830_v48, %s2608_s21  ;;  %4592 = vst [vmem:[#allocation10_spill] sm:$0xff] %v2899_v9  ;;  %v611_v8 = vsel %vm606_vm2, %v608_v31, %v610_v33  ;;  %v2909_v4 = vsel %vm429_vm1, %v476_v39, %v478_v47  ;;  %v481_v16 = vrot.slane %v2891_v54, 1  ;;  %v483_v20 = vrot.slane %v2894_v58, 1  ;;  %v223_v54 = vld [vmem:[%s2670_s20 + $0xc8] sm:$0xff] }
  0x2c   : > { %536 = vrot.lane.b32.xlu0 %v2834_v55, %s2608_s21  ;;  %4593 = vst [vmem:[#allocation11_spill] sm:$0xff] %v2909_v4  ;;  %v2914_v26 = vsel %vm263_vm0, 0.0, %v296_v3  ;;  %v2917_v38 = vsel %vm263_vm0, %v296_v3, %v297_v63  ;;  %v2920_v31 = vsel %vm263_vm0, %v297_v63, 0.0  ;;  %v299_v33 = vrot.slane %v220_v12, 7 }
  0x2d   : > { %4594 = vst [vmem:[#allocation12_spill] sm:$0xff] %v2914_v26  ;;  %4595 = vst [vmem:[#allocation13_spill] sm:$0xff] %v2917_v38  ;;  %v300_v40 = vrot.slane %v221_v5, 7  ;;  %v2923_v39 = vpack.i.bf16 %v611_v8, %v609_v21  ;;  %v485_v47 = vrot.slane %v2914_v26, 1  ;;  %v2932_v3 = vsel %vm429_vm1, %v480_v19, %v481_v16 }
  0x2e   : > { %4596 = vst [vmem:[#allocation14_spill] sm:$0xff] %v2920_v31  ;;  %4598 = vst [vmem:[#allocation16_spill] sm:$0xff] %v2932_v3  ;;  %v2935_v12 = vsel %vm429_vm1, %v481_v16, %v483_v20  ;;  %v486_v63 = vrot.slane %v2917_v38, 1  ;;  %v488_v5 = vrot.slane %v2920_v31, 1  ;;  %v2943_v8 = vsel %vm263_vm0, 0.0, %v299_v33  ;;  %v225_v16 = vld [vmem:[%s2670_s20 + $0xd8] sm:$0xff] }
  0x2f   : > { %538 = vrot.lane.b32.xlu1 %v2848_v0, %s2608_s21  ;;  %4597 = vst [vmem:[#allocation15_spill] sm:$0xff] %v2923_v39  ;;  %4599 = vst [vmem:[#allocation17_spill] sm:$0xff] %v2935_v12  ;;  %v2940_v21 = vsel %vm263_vm0, %v299_v33, %v300_v40  ;;  %v2946_v26 = vsel %vm263_vm0, %v300_v40, 0.0  ;;  %v302_v58 = vrot.slane %v222_v49, 7  ;;  %v303_v19 = vrot.slane %v223_v54, 7 }
  0x30   : > { %540 = vrot.lane.b32.xlu0 %v2863_v13, %s2608_s21  ;;  %4600 = vst [vmem:[#allocation18_spill] sm:$0xff] %v2940_v21  ;;  %4601 = vst [vmem:[#allocation19_spill] sm:$0xff] %v2943_v8  ;;  %v2955_v20 = vsel %vm429_vm1, %v485_v47, %v486_v63  ;;  %v490_v33 = vrot.slane %v2943_v8, 1  ;;  %v491_v31 = vrot.slane %v2940_v21, 1  ;;  %v493_v40 = vrot.slane %v2946_v26, 1  ;;  %v227_v8 = vld [vmem:[%s2670_s20 + $0xe8] sm:$0xff] }
  0x31   : > { %4602 = vst [vmem:[#allocation20_spill] sm:$0xff] %v2946_v26  ;;  %v2961_v49 = vsel %vm429_vm1, %v486_v63, %v488_v5  ;;  %v2964_v54 = vsel %vm263_vm0, 0.0, %v302_v58  ;;  %v2971_v47 = vsel %vm263_vm0, %v303_v19, 0.0 }
  0x32   : > { %4603 = vst [vmem:[#allocation21_spill] sm:$0xff] %v2961_v49  ;;  %4604 = vst [vmem:[#allocation22_spill] sm:$0xff] %v2964_v54  ;;  %v2979_v63 = vsel %vm429_vm1, %v490_v33, %v491_v31  ;;  %v495_v5 = vrot.slane %v2964_v54, 1  ;;  %v309_v33 = vrot.slane %v227_v8, 7 }
  0x33   : > { %542 = vrot.lane.b32.xlu1 %v2881_v44, %s2608_s21  ;;  %4606 = vst [vmem:[#allocation24_spill] sm:$0xff] %v2971_v47 }
  0x34   : > { %544 = vrot.lane.b32.xlu0 %v2888_v50, %s2608_s21 }
  0x37   : > { %546 = vrot.lane.b32.xlu1 %v2899_v9, %s2608_s21  ;;  %v226_v9 = vld [vmem:[%s2670_s20 + $0xe0] sm:$0xff] }
  0x38   : > { %548 = vrot.lane.b32.xlu0 %v2909_v4, %s2608_s21  ;;  %v224_v4 = vld [vmem:[%s2670_s20 + $0xd0] sm:$0xff] }
  0x39   : > { %v305_v38 = vrot.slane %v224_v4, 7  ;;  %v2982_v4 = vsel %vm429_vm1, %v491_v31, %v493_v40 }
  0x3a   : > { %4607 = vst [vmem:[#allocation25_spill] sm:$0xff] %v2982_v4 }
  0x3b   : > { %550 = vrot.lane.b32.xlu1 %v2932_v3, %s2608_s21  ;;  %v306_v3 = vrot.slane %v225_v16, 7  ;;  %v2991_v21 = vsel %vm263_vm0, 0.0, %v305_v38 }
  0x3c   : > { %552 = vrot.lane.b32.xlu0 %v2935_v12, %s2608_s21  ;;  %v2968_v12 = vsel %vm263_vm0, %v302_v58, %v303_v19  ;;  %v308_v58 = vrot.slane %v226_v9, 7  ;;  %v498_v19 = vrot.slane %v2971_v47, 1  ;;  %4609 = vst [vmem:[#allocation27_spill] sm:$0xff] %v2991_v21  ;;  %v500_v9 = vrot.slane %v2991_v21, 1 }
  0x3d   : > { %4605 = vst [vmem:[#allocation23_spill] sm:$0xff] %v2968_v12  ;;  %v496_v16 = vrot.slane %v2968_v12, 1  ;;  %v2988_v26 = vsel %vm263_vm0, %v305_v38, %v306_v3  ;;  %v3016_v12 = vsel %vm263_vm0, %v309_v33, 0.0 }
  0x3e   : > { %4608 = vst [vmem:[#allocation26_spill] sm:$0xff] %v2988_v26  ;;  %v501_v31 = vrot.slane %v2988_v26, 1  ;;  %v3010_v8 = vsel %vm263_vm0, 0.0, %v308_v58  ;;  %v3013_v47 = vsel %vm263_vm0, %v308_v58, %v309_v33  ;;  %4615 = vst [vmem:[#allocation33_spill] sm:$0xff] %v3016_v12 }
  0x3f   : > { %554 = vrot.lane.b32.xlu1 %v2955_v20, %s2608_s21  ;;  %v3003_v40 = vsel %vm429_vm1, %v495_v5, %v496_v16  ;;  %v3006_v38 = vsel %vm429_vm1, %v496_v16, %v498_v19  ;;  %4613 = vst [vmem:[#allocation31_spill] sm:$0xff] %v3010_v8  ;;  %4614 = vst [vmem:[#allocation32_spill] sm:$0xff] %v3013_v47  ;;  %v505_v5 = vrot.slane %v3010_v8, 1  ;;  %v506_v58 = vrot.slane %v3013_v47, 1 }
  0x40   : > { %556 = vrot.lane.b32.xlu0 %v2961_v49, %s2608_s21  ;;  %v2994_v49 = vsel %vm263_vm0, %v306_v3, 0.0  ;;  %4611 = vst [vmem:[#allocation29_spill] sm:$0xff] %v3003_v40  ;;  %4612 = vst [vmem:[#allocation30_spill] sm:$0xff] %v3006_v38  ;;  %v3024_v16 = vsel %vm429_vm1, %v500_v9, %v501_v31  ;;  %v612_v9 = vrot.slane %v2692_v25, 2 }
  0x41   : > { %4610 = vst [vmem:[#allocation28_spill] sm:$0xff] %v2994_v49  ;;  %v503_v3 = vrot.slane %v2994_v49, 1  ;;  %4616 = vst [vmem:[#allocation34_spill] sm:$0xff] %v3024_v16  ;;  %v508_v49 = vrot.slane %v3016_v12, 1  ;;  %v3036_v33 = vsel %vm429_vm1, %v505_v5, %v506_v58  ;;  %v628_v12 = vrot.slane %v2742_v51, 2 }
  0x42   : > { %4618 = vst [vmem:[#allocation36_spill] sm:$0xff] %v3036_v33 }
  0x43   : > { %558 = vrot.lane.b32.xlu1 %v2979_v63, %s2608_s21  ;;  %v3027_v19 = vsel %vm429_vm1, %v501_v31, %v503_v3  ;;  %v3039_v8 = vsel %vm429_vm1, %v506_v58, %v508_v49  ;;  %v613_v31 = vrot.slane %v2686_v23, 2  ;;  %v615_v3 = vrot.slane %v2689_v24, 2  ;;  %v1638_v24 = vld [vmem:[%s4519_s1 + $0x18] sm:$0xff]  ;;  %v1636_v58 = vld [vmem:[%s4519_s1 + $0x8] sm:$0xff] }
  0x44   : > { %560 = vrot.lane.b32.xlu0 %v2982_v4, %s2608_s21  ;;  %4617 = vst [vmem:[#allocation35_spill] sm:$0xff] %v3027_v19  ;;  %4619 = vst [vmem:[#allocation37_spill] sm:$0xff] %v3039_v8 }
  0x45   : > { %v614_v49 = vsel %vm606_vm2, %v612_v9, %v613_v31  ;;  %v616_v5 = vsel %vm606_vm2, %v613_v31, %v615_v3  ;;  %v1635_v9 = vld [vmem:[%s4519_s1] sm:$0xff]  ;;  %v617_v31 = vrot.slane %v2702_v32, 2 }
  0x47   : > { %562 = vrot.lane.b32.xlu1 %v3003_v40, %s2608_s21 }
  0x48   : > { %564 = vrot.lane.b32.xlu0 %v3006_v38, %s2608_s21  ;;  %v637_v38 = vrot.slane %v2782_v10, 2 }
  0x4b   : > { %566 = vrot.lane.b32.xlu1 %v3024_v16, %s2608_s21 }
  0x4c   : > { %568 = vrot.lane.b32.xlu0 %v3027_v19, %s2608_s21  ;;  %v630_v19 = vrot.slane %v2748_v53, 2 }
  0x4f   : > { %570 = vrot.lane.b32.xlu1 %v3036_v33, %s2608_s21 }
  0x50   : > { %572 = vrot.lane.b32.xlu0 %v3039_v8, %s2608_s21 }
  0x53   : > { %2578 = vrot.lane.b32.xlu1 %v2923_v39, %s2609_s22 }
  0x54   : > { %784 = vrot.lane.b32.xlu0 %v2692_v25, %s2610_s23 }
  0x57   : > { %786 = vrot.lane.b32.xlu1 %v2686_v23, %s2610_s23 }
  0x58   : > { %886 = vrot.lane.b32.xlu0 %v2715_v37, %s2611_s24  ;;  %v1639_v37 = vld [vmem:[%s4519_s1 + $0x20] sm:$0xf] }
  0x59   : > { %2487 = vmatprep.subr.msk.mxu0 %vm1737_vm3, %v1639_v37  ;;  %2545 = vmatprep.subr.msk.mxu1 %vm1737_vm3, %v1639_v37 }
  0x5a   : > { %2488 = vmatpush3.msk.msra.mxu0 %vm1737_vm3, %v1639_v37  ;;  %2550 = vmatpush3.msk.msra.mxu1 %vm1737_vm3, %v1639_v37 }
  0x5b   : > { %888 = vrot.lane.b32.xlu1 %v2712_v36, %s2611_s24  ;;  %v1637_v36 = vld [vmem:[%s4519_s1 + $0x10] sm:$0xff]  ;;  %2489 = vmatprep.subr.mxu0 %v1638_v24 }
  0x5c   : > { %987 = vrot.lane.b32.xlu0 %v614_v49, %s2612_s25  ;;  %2546 = vmatprep.subr.mxu1 %v1638_v24 }
  0x5d   : > { %2490 = vmatpush3.msra.mxu0 %v1638_v24  ;;  %2551 = vmatpush3.msra.mxu1 %v1638_v24 }
  0x5e   : > { %2491 = vmatprep.subr.mxu0 %v1637_v36  ;;  %2547 = vmatprep.subr.mxu1 %v1637_v36 }
  0x5f   : > { %691 = vrot.lane.b32.xlu1 %v614_v49, %s2609_s22  ;;  %2492 = vmatpush3.msra.mxu0 %v1637_v36  ;;  %v618_v49 = vrot.slane %v2698_v30, 2 }
  0x60   : > { %989 = vrot.lane.b32.xlu0 %v616_v5, %s2612_s25  ;;  %2552 = vmatpush3.msra.mxu1 %v1637_v36 }
  0x61   : > { %2493 = vmatprep.subr.mxu0 %v1636_v58  ;;  %2548 = vmatprep.subr.mxu1 %v1636_v58  ;;  %v619_v3 = vsel %vm606_vm2, %v617_v31, %v618_v49 }
  0x62   : > { %2494 = vmatpush3.msra.mxu0 %v1636_v58  ;;  %2553 = vmatpush3.msra.mxu1 %v1636_v58 }
  0x63   : > { %1083 = vrot.lane.b32.xlu1 %v2702_v32, %s2613_s30  ;;  %2495 = vmatprep.subr.mxu0 %v1635_v9 }
  0x64   : > { %693 = vrot.lane.b32.xlu0 %v616_v5, %s2609_s22  ;;  %2549 = vmatprep.subr.mxu1 %v1635_v9  ;;  %v620_v5 = vrot.slane %v2706_v34, 2 }
  0x65   : > { %2496 = vmatpush3.msra.mxu0 %v1635_v9  ;;  %2554 = vmatpush3.msra.mxu1 %v1635_v9  ;;  %v625_v9 = vrot.slane %v2729_v43, 2 }
  0x66   : > { %v621_v37 = vsel %vm606_vm2, %v618_v49, %v620_v5 }
  0x67   : > { %788 = vrot.lane.b32.xlu1 %v2702_v32, %s2610_s23 }
  0x68   : > { %1085 = vrot.lane.b32.xlu0 %v2698_v30, %s2613_s30 }
  0x6b   : > { %1179 = vrot.lane.b32.xlu1 %v2732_v45, %s2614_s11 }
  0x6c   : > { %790 = vrot.lane.b32.xlu0 %v2698_v30, %s2610_s23 }
  0x6f   : > { %890 = vrot.lane.b32.xlu1 %v2732_v45, %s2611_s24  ;;  %v622_v45 = vrot.slane %v2725_v41, 2 }
  0x70   : > { %1181 = vrot.lane.b32.xlu0 %v2735_v46, %s2614_s11 }
  0x73   : > { %1275 = vrot.lane.b32.xlu1 %v619_v3, %s2615_s12 }
  0x74   : > { %892 = vrot.lane.b32.xlu0 %v2735_v46, %s2611_s24  ;;  %v623_v46 = vrot.slane %v2709_v35, 2 }
  0x76   : > { %v624_v58 = vsel %vm606_vm2, %v622_v45, %v623_v46 }
  0x77   : > { %991 = vrot.lane.b32.xlu1 %v619_v3, %s2612_s25 }
  0x78   : > { %1277 = vrot.lane.b32.xlu0 %v621_v37, %s2615_s12 }
  0x7b   : > { %695 = vrot.lane.b32.xlu1 %v619_v3, %s2609_s22  ;;  %v626_v3 = vsel %vm606_vm2, %v623_v46, %v625_v9 }
  0x7c   : > { %993 = vrot.lane.b32.xlu0 %v621_v37, %s2612_s25 }
  0x7f   : > { %1087 = vrot.lane.b32.xlu1 %v2725_v41, %s2613_s30 }
  0x80   : > { %697 = vrot.lane.b32.xlu0 %v621_v37, %s2609_s22 }
  0x83   : > { %792 = vrot.lane.b32.xlu1 %v2725_v41, %s2610_s23 }
  0x84   : > { %1089 = vrot.lane.b32.xlu0 %v2709_v35, %s2613_s30 }
  0x86   : > { %v3112_v34 = vpop.permute.xlu0 %2573 }
  0x87   : > { %1183 = vrot.lane.b32.xlu1 %v2752_v56, %s2614_s11  ;;  %v2576_v40 = vunpack.i.h.bf16 %v3112_v34 }
  0x88   : > { %794 = vrot.lane.b32.xlu0 %v2709_v35, %s2610_s23 }
  0x89   : > { %v3120_v24 = vpop.permute.xlu1 %516 }
  0x8a   : > { %v3122_v36 = vpop.permute.xlu0 %514 }
  0x8b   : > { %894 = vrot.lane.b32.xlu1 %v2752_v56, %s2611_s24 }
  0x8c   : > { %1185 = vrot.lane.b32.xlu0 %v2759_v57, %s2614_s11 }
  0x8d   : > { %v3130_v31 = vpop.permute.xlu1 %518 }
  0x8e   : > { %v3132_v49 = vpop.permute.xlu0 %520 }
  0x8f   : > { %1279 = vrot.lane.b32.xlu1 %v624_v58, %s2615_s12 }
  0x90   : > { %896 = vrot.lane.b32.xlu0 %v2759_v57, %s2611_s24 }
  0x91   : > { %v3138_v5 = vpop.permute.xlu1 %522 }
  0x92   : > { %v3140_v56 = vpop.permute.xlu0 %524 }
  0x93   : > { %995 = vrot.lane.b32.xlu1 %v624_v58, %s2612_s25 }
  0x94   : > { %1281 = vrot.lane.b32.xlu0 %v626_v3, %s2615_s12 }
  0x95   : > { %v3144_v43 = vpop.permute.xlu1 %526 }
  0x96   : > { %v3146_v37 = vpop.permute.xlu0 %528 }
  0x97   : > { %699 = vrot.lane.b32.xlu1 %v624_v58, %s2609_s22 }
  0x98   : > { %997 = vrot.lane.b32.xlu0 %v626_v3, %s2612_s25 }
  0x99   : > { %v3150_v45 = vpop.permute.xlu1 %530 }
  0x9a   : > { %v3152_v57 = vpop.permute.xlu0 %532 }
  0x9b   : > { %1091 = vrot.lane.b32.xlu1 %v2745_v52, %s2613_s30 }
  0x9c   : > { %701 = vrot.lane.b32.xlu0 %v626_v3, %s2609_s22  ;;  %v627_v3 = vrot.slane %v2745_v52, 2 }
  0x9d   : > { %v3157_v46 = vpop.permute.xlu1 %534 }
  0x9e   : > { %v3159_v9 = vpop.permute.xlu0 %536  ;;  %v629_v47 = vsel %vm606_vm2, %v627_v3, %v628_v12 }
  0x9f   : > { %4620 = vst [vmem:[#allocation38_spill] sm:$0xff] %v3159_v9  ;;  %796 = vrot.lane.b32.xlu1 %v2745_v52, %s2610_s23 }
  0xa0   : > { %1093 = vrot.lane.b32.xlu0 %v2742_v51, %s2613_s30 }
  0xa1   : > { %v3165_v58 = vpop.permute.xlu1 %538 }
  0xa2   : > { %4621 = vst [vmem:[#allocation39_spill] sm:$0xff] %v3165_v58  ;;  %v3167_v39 = vpop.permute.xlu0 %540  ;;  %v638_v58 = vrot.slane %v2792_v17, 2 }
  0xa3   : > { %4622 = vst [vmem:[#allocation40_spill] sm:$0xff] %v3167_v39  ;;  %1187 = vrot.lane.b32.xlu1 %v2785_v14, %s2614_s11 }
  0xa4   : > { %798 = vrot.lane.b32.xlu0 %v2742_v51, %s2610_s23 }
  0xa5   : > { %v3175_v8 = vpop.permute.xlu1 %542 }
  0xa6   : > { %4623 = vst [vmem:[#allocation41_spill] sm:$0xff] %v3175_v8  ;;  %v3177_v33 = vpop.permute.xlu0 %544 }
  0xa7   : > { %4624 = vst [vmem:[#allocation42_spill] sm:$0xff] %v3177_v33  ;;  %898 = vrot.lane.b32.xlu1 %v2785_v14, %s2611_s24  ;;  %v631_v33 = vsel %vm606_vm2, %v628_v12, %v630_v19 }
  0xa8   : > { %1189 = vrot.lane.b32.xlu0 %v2788_v15, %s2614_s11 }
  0xa9   : > { %v3185_v16 = vpop.permute.xlu1 %546 }
  0xaa   : > { %4625 = vst [vmem:[#allocation43_spill] sm:$0xff] %v3185_v16  ;;  %v3187_v26 = vpop.permute.xlu0 %548 }
  0xab   : > { %4626 = vst [vmem:[#allocation44_spill] sm:$0xff] %v3187_v26  ;;  %1283 = vrot.lane.b32.xlu1 %v629_v47, %s2615_s12 }
  0xac   : > { %900 = vrot.lane.b32.xlu0 %v2788_v15, %s2611_s24 }
  0xad   : > { %v3193_v8 = vpop.permute.xlu1 %550 }
  0xae   : > { %4627 = vst [vmem:[#allocation45_spill] sm:$0xff] %v3193_v8  ;;  %v3195_v14 = vpop.permute.xlu0 %552 }
  0xaf   : > { %4628 = vst [vmem:[#allocation46_spill] sm:$0xff] %v3195_v14  ;;  %999 = vrot.lane.b32.xlu1 %v629_v47, %s2612_s25 }
  0xb0   : > { %1285 = vrot.lane.b32.xlu0 %v631_v33, %s2615_s12 }
  0xb1   : > { %v3199_v53 = vpop.permute.xlu1 %554 }
  0xb2   : > { %4629 = vst [vmem:[#allocation47_spill] sm:$0xff] %v3199_v53  ;;  %v3201_v3 = vpop.permute.xlu0 %556 }
  0xb3   : > { %4630 = vst [vmem:[#allocation48_spill] sm:$0xff] %v3201_v3  ;;  %703 = vrot.lane.b32.xlu1 %v629_v47, %s2609_s22 }
  0xb4   : > { %1001 = vrot.lane.b32.xlu0 %v631_v33, %s2612_s25 }
  0xb5   : > { %v3205_v26 = vpop.permute.xlu1 %558 }
  0xb6   : > { %4631 = vst [vmem:[#allocation49_spill] sm:$0xff] %v3205_v26  ;;  %v3207_v15 = vpop.permute.xlu0 %560 }
  0xb7   : > { %4632 = vst [vmem:[#allocation50_spill] sm:$0xff] %v3207_v15  ;;  %1095 = vrot.lane.b32.xlu1 %v2762_v59, %s2613_s30 }
  0xb8   : > { %705 = vrot.lane.b32.xlu0 %v631_v33, %s2609_s22  ;;  %v632_v33 = vrot.slane %v2762_v59, 2 }
  0xb9   : > { %v3212_v12 = vpop.permute.xlu1 %562 }
  0xba   : > { %4633 = vst [vmem:[#allocation51_spill] sm:$0xff] %v3212_v12  ;;  %v3214_v19 = vpop.permute.xlu0 %564 }
  0xbb   : > { %4634 = vst [vmem:[#allocation52_spill] sm:$0xff] %v3214_v19  ;;  %800 = vrot.lane.b32.xlu1 %v2762_v59, %s2610_s23  ;;  %v633_v19 = vrot.slane %v2770_v6, 2 }
  0xbc   : > { %1097 = vrot.lane.b32.xlu0 %v2770_v6, %s2613_s30 }
  0xbd   : > { %v3220_v47 = vpop.permute.xlu1 %566 }
  0xbe   : > { %4635 = vst [vmem:[#allocation53_spill] sm:$0xff] %v3220_v47  ;;  %v3222_v26 = vpop.permute.xlu0 %568  ;;  %v635_v47 = vrot.slane %v2773_v7, 2 }
  0xbf   : > { %4636 = vst [vmem:[#allocation54_spill] sm:$0xff] %v3222_v26  ;;  %1191 = vrot.lane.b32.xlu1 %v2805_v22, %s2614_s11  ;;  %v634_v26 = vsel %vm606_vm2, %v632_v33, %v633_v19 }
  0xc0   : > { %802 = vrot.lane.b32.xlu0 %v2770_v6, %s2610_s23 }
  0xc1   : > { %v3230_v12 = vpop.permute.xlu1 %570 }
  0xc2   : > { %4637 = vst [vmem:[#allocation55_spill] sm:$0xff] %v3230_v12  ;;  %v3232_v15 = vpop.permute.xlu0 %572  ;;  %v636_v12 = vsel %vm606_vm2, %v633_v19, %v635_v47  ;;  %v2575_v47 = vunpack.i.l.bf16 %v3112_v34  ;;  %v1373_v34 = vsel %vm1371_vm4, %v2649_v1, %v2576_v40 }
  0xc3   : > { %4638 = vst [vmem:[#allocation56_spill] sm:$0xff] %v3232_v15  ;;  %902 = vrot.lane.b32.xlu1 %v2805_v22, %s2611_s24 }
  0xc4   : > { %1193 = vrot.lane.b32.xlu0 %v2815_v29, %s2614_s11 }
  0xc5   : > { %v2579_v3 = vpop.permute.xlu1 %2578 }
  0xc6   : > { %v785_v53 = vpop.permute.xlu0 %784  ;;  %v2581_v4 = vunpack.i.h.bf16 %v2579_v3 }
  0xc7   : > { %1287 = vrot.lane.b32.xlu1 %v634_v26, %s2615_s12 }
  0xc8   : > { %904 = vrot.lane.b32.xlu0 %v2815_v29, %s2611_s24 }
  0xc9   : > { %v787_v15 = vpop.permute.xlu1 %786 }
  0xca   : > { %v887_v14 = vpop.permute.xlu0 %886 }
  0xcb   : > { %1003 = vrot.lane.b32.xlu1 %v634_v26, %s2612_s25 }
  0xcc   : > { %1289 = vrot.lane.b32.xlu0 %v636_v12, %s2615_s12 }
  0xcd   : > { %v889_v22 = vpop.permute.xlu1 %888 }
  0xce   : > { %v988_v8 = vpop.permute.xlu0 %987 }
  0xcf   : > { %707 = vrot.lane.b32.xlu1 %v634_v26, %s2609_s22  ;;  %v2580_v26 = vunpack.i.l.bf16 %v2579_v3 }
  0xd0   : > { %1005 = vrot.lane.b32.xlu0 %v636_v12, %s2612_s25 }
  0xd1   : > { %v3248_v7 = vpop.permute.xlu1 %691 }
  0xd2   : > { %v990_v33 = vpop.permute.xlu0 %989 }
  0xd3   : > { %1099 = vrot.lane.b32.xlu1 %v2782_v10, %s2613_s30 }
  0xd4   : > { %709 = vrot.lane.b32.xlu0 %v636_v12, %s2609_s22  ;;  %v1372_v12 = vsel %vm1371_vm4, %v2655_v2, %v2575_v47 }
  0xd5   : > { %v1084_v29 = vpop.permute.xlu1 %1083  ;;  %v1405_v39 = vsel %vm1404_vm5, %v1372_v12, %v2580_v26  ;;  %v639_v26 = vsel %vm606_vm2, %v637_v38, %v638_v58  ;;  %v640_v12 = vrot.slane %v2795_v18, 2 }
  0xd6   : > { %v3253_v19 = vpop.permute.xlu0 %693  ;;  %v1438_v47 = vsel %vm1437_vm6, %v1405_v39, %v785_v53  ;;  %v1406_v39 = vsel %vm1404_vm5, %v1373_v34, %v2581_v4 }
  0xd7   : > { %804 = vrot.lane.b32.xlu1 %v2782_v10, %s2610_s23  ;;  %v1471_v53 = vsel %vm1470_vm7, %v1438_v47, %v887_v14  ;;  %v641_v40 = vsel %vm606_vm2, %v638_v58, %v640_v12  ;;  %v1439_v38 = vsel %vm1437_vm6, %v1406_v39, %v787_v15  ;;  %v643_v39 = vrot.slane %v2809_v27, 2 }
  0xd8   : > { %1101 = vrot.lane.b32.xlu0 %v2792_v17, %s2613_s30  ;;  %v1472_v14 = vsel %vm1470_vm7, %v1439_v38, %v889_v22 }
  0xd9   : > { %v3260_v16 = vpop.permute.xlu1 %788  ;;  %v1505_v47 = vsel %vm1503_vm8, %v1472_v14, %v990_v33 }
  0xda   : > { %v1086_v21 = vpop.permute.xlu0 %1085 }
  0xdb   : > { %1195 = vrot.lane.b32.xlu1 %v2830_v48, %s2614_s11 }
  0xdc   : > { %806 = vrot.lane.b32.xlu0 %v2792_v17, %s2610_s23 }
  0xdd   : > { %v1180_v54 = vpop.permute.xlu1 %1179 }
  0xde   : > { %v3272_v9 = vpop.permute.xlu0 %790 }
  0xdf   : > { %906 = vrot.lane.b32.xlu1 %v2830_v48, %s2611_s24  ;;  %v1504_v48 = vsel %vm1503_vm8, %v1471_v53, %v988_v8 }
  0xe0   : > { %1197 = vrot.lane.b32.xlu0 %v2834_v55, %s2614_s11  ;;  %v1537_v18 = vsel %vm1536_vm9, %v1504_v48, %v1084_v29 }
  0xe1   : > { %v891_v2 = vpop.permute.xlu1 %890  ;;  %v1570_v1 = vsel %vm1569_vm10, %v1537_v18, %v1180_v54  ;;  %v1374_v18 = vsel %vm1371_vm4, %v2692_v25, %v3122_v36 }
  0xe2   : > { %v1182_v3 = vpop.permute.xlu0 %1181 }
  0xe3   : > { %1291 = vrot.lane.b32.xlu1 %v639_v26, %s2615_s12 }
  0xe4   : > { %908 = vrot.lane.b32.xlu0 %v2834_v55, %s2611_s24  ;;  %v1538_v55 = vsel %vm1536_vm9, %v1505_v47, %v1086_v21 }
  0xe5   : > { %v1276_v4 = vpop.permute.xlu1 %1275  ;;  %v1571_v58 = vsel %vm1569_vm10, %v1538_v55, %v1182_v3  ;;  %v642_v3 = vrot.slane %v2812_v28, 2 }
  0xe6   : > { %v893_v34 = vpop.permute.xlu0 %892  ;;  %v1603_v8 = vsel %vm1602_vm11, %v1570_v1, %v1276_v4  ;;  %v645_v4 = vrot.slane %v2821_v42, 2 }
  0xe7   : > { %1007 = vrot.lane.b32.xlu1 %v639_v26, %s2612_s25  ;;  %2497 = vmatprep.mubr.msk.f32.mxu0 %vm1640_vm12, %v1603_v8  ;;  %v644_v38 = vsel %vm606_vm2, %v642_v3, %v643_v39 }
  0xe8   : > { %1293 = vrot.lane.b32.xlu0 %v641_v40, %s2615_s12 }
  0xe9   : > { %v992_v54 = vpop.permute.xlu1 %991 }
  0xea   : > { %v1278_v15 = vpop.permute.xlu0 %1277 }
  0xeb   : > { %v1604_v29 = vsel %vm1602_vm11, %v1571_v58, %v1278_v15  ;;  %711 = vrot.lane.b32.xlu1 %v639_v26, %s2609_s22 }
  0xec   : > { %1009 = vrot.lane.b32.xlu0 %v641_v40, %s2612_s25  ;;  %2498 = vmatmul.mubr.msk.f32.vlgmr.msra.gmra.mxu0 %vm1640_vm12, %v1604_v29 }
  0xed   : > { %v3305_v1 = vpop.permute.xlu1 %695 }
  0xee   : > { %v994_v22 = vpop.permute.xlu0 %993 }
  0xef   : > { %1103 = vrot.lane.b32.xlu1 %v2812_v28, %s2613_s30 }
  0xf0   : > { %713 = vrot.lane.b32.xlu0 %v641_v40, %s2609_s22  ;;  %v1407_v40 = vsel %vm1404_vm5, %v1374_v18, %v3248_v7  ;;  %v646_v7 = vsel %vm606_vm2, %v643_v39, %v645_v4  ;;  %v647_v18 = vrot.slane %v2841_v61, 2 }
  0xf1   : > { %v1088_v21 = vpop.permute.xlu1 %1087  ;;  %v1440_v14 = vsel %vm1437_vm6, %v1407_v40, %v3260_v16  ;;  %v648_v40 = vrot.slane %v2838_v60, 2 }
  0xf2   : > { %v3310_v33 = vpop.permute.xlu0 %697  ;;  %v1473_v25 = vsel %vm1470_vm7, %v1440_v14, %v891_v2  ;;  %v1376_v14 = vsel %vm1371_vm4, %v2702_v32, %v3130_v31 }
  0xf3   : > { %808 = vrot.lane.b32.xlu1 %v2812_v28, %s2610_s23  ;;  %v1506_v36 = vsel %vm1503_vm8, %v1473_v25, %v992_v54  ;;  %v649_v25 = vsel %vm606_vm2, %v647_v18, %v648_v40 }
  0xf4   : > { %1105 = vrot.lane.b32.xlu0 %v2809_v27, %s2613_s30  ;;  %v1539_v16 = vsel %vm1536_vm9, %v1506_v36, %v1088_v21 }
  0xf5   : > { %v3316_v26 = vpop.permute.xlu1 %792 }
  0xf6   : > { %v1090_v12 = vpop.permute.xlu0 %1089 }
  0xf7   : > { %1199 = vrot.lane.b32.xlu1 %v2848_v0, %s2614_s11 }
  0xf8   : > { %810 = vrot.lane.b32.xlu0 %v2809_v27, %s2610_s23 }
  0xf9   : > { %v1184_v53 = vpop.permute.xlu1 %1183 }
  0xfa   : > { %v3324_v48 = vpop.permute.xlu0 %794  ;;  %v1572_v55 = vsel %vm1569_vm10, %v1539_v16, %v1184_v53 }
  0xfb   : > { %910 = vrot.lane.b32.xlu1 %v2848_v0, %s2611_s24  ;;  %v1375_v0 = vsel %vm1371_vm4, %v2686_v23, %v3120_v24 }
  0xfc   : > { %1201 = vrot.lane.b32.xlu0 %v2863_v13, %s2614_s11  ;;  %v1408_v42 = vsel %vm1404_vm5, %v1375_v0, %v3253_v19  ;;  %v650_v0 = vrot.slane %v2844_v62, 2 }
  0xfd   : > { %v895_v8 = vpop.permute.xlu1 %894  ;;  %v1441_v2 = vsel %vm1437_vm6, %v1408_v42, %v3272_v9 }
  0xfe   : > { %v1186_v47 = vpop.permute.xlu0 %1185  ;;  %v1474_v58 = vsel %vm1470_vm7, %v1441_v2, %v893_v34 }
  0xff   : > { %1295 = vrot.lane.b32.xlu1 %v644_v38, %s2615_s12 }
 0x100   : > { %912 = vrot.lane.b32.xlu0 %v2863_v13, %s2611_s24  ;;  %v1507_v13 = vsel %vm1503_vm8, %v1474_v58, %v994_v22 }
 0x101   : > { %v1280_v23 = vpop.permute.xlu1 %1279  ;;  %v1540_v19 = vsel %vm1536_vm9, %v1507_v13, %v1090_v12 }
 0x102   : > { %v897_v24 = vpop.permute.xlu0 %896  ;;  %v1605_v54 = vsel %vm1602_vm11, %v1572_v55, %v1280_v23  ;;  %v1573_v9 = vsel %vm1569_vm10, %v1540_v19, %v1186_v47  ;;  %v1409_v47 = vsel %vm1404_vm5, %v1376_v14, %v3305_v1  ;;  %v4641_v14 = vld [vmem:[#allocation11_spill] sm:$0xff] }
 0x103   : > { %1011 = vrot.lane.b32.xlu1 %v644_v38, %s2612_s25  ;;  %2500 = vmatprep.mubr.msk.f32.mxu0 %vm1640_vm12, %v1605_v54  ;;  %v1442_v36 = vsel %vm1437_vm6, %v1409_v47, %v3316_v26  ;;  %v651_v26 = vsel %vm606_vm2, %v648_v40, %v650_v0  ;;  %v4642_v0 = vld [vmem:[#allocation6_spill] sm:$0xff] }
 0x104   : > { %1297 = vrot.lane.b32.xlu0 %v646_v7, %s2615_s12  ;;  %v1475_v32 = vsel %vm1470_vm7, %v1442_v36, %v895_v8  ;;  %v655_v36 = vrot.slane %v4642_v0, 2 }
 0x105   : > { %v996_v15 = vpop.permute.xlu1 %995 }
 0x106   : > { %v1282_v29 = vpop.permute.xlu0 %1281  ;;  %v1508_v31 = vsel %vm1503_vm8, %v1475_v32, %v996_v15  ;;  %v4639_v15 = vld [vmem:[#allocation5_spill] sm:$0xff] }
 0x107   : > { %v1606_v21 = vsel %vm1602_vm11, %v1573_v9, %v1282_v29  ;;  %715 = vrot.lane.b32.xlu1 %v644_v38, %s2609_s22 }
 0x108   : > { %1013 = vrot.lane.b32.xlu0 %v646_v7, %s2612_s25  ;;  %2501 = vmatmul.mubr.msk.f32.gmra.mxu0 %vm1640_vm12, %v1606_v21 }
 0x109   : > { %v3366_v34 = vpop.permute.xlu1 %699 }
 0x10a   : > { %v998_v22 = vpop.permute.xlu0 %997 }
 0x10b   : > { %1107 = vrot.lane.b32.xlu1 %v2841_v61, %s2613_s30 }
 0x10c   : > { %717 = vrot.lane.b32.xlu0 %v646_v7, %s2609_s22 }
 0x10d   : > { %v1092_v12 = vpop.permute.xlu1 %1091 }
 0x10e   : > { %v3371_v3 = vpop.permute.xlu0 %701  ;;  %v1541_v1 = vsel %vm1536_vm9, %v1508_v31, %v1092_v12  ;;  %v652_v12 = vrot.slane %v2860_v11, 2 }
 0x10f   : > { %812 = vrot.lane.b32.xlu1 %v2841_v61, %s2610_s23 }
 0x110   : > { %1109 = vrot.lane.b32.xlu0 %v2838_v60, %s2613_s30 }
 0x111   : > { %v3377_v39 = vpop.permute.xlu1 %796 }
 0x112   : > { %v1094_v53 = vpop.permute.xlu0 %1093 }
 0x113   : > { %1203 = vrot.lane.b32.xlu1 %v2881_v44, %s2614_s11 }
 0x114   : > { %814 = vrot.lane.b32.xlu0 %v2838_v60, %s2610_s23 }
 0x115   : > { %v1188_v38 = vpop.permute.xlu1 %1187 }
 0x116   : > { %v3385_v4 = vpop.permute.xlu0 %798  ;;  %v1574_v7 = vsel %vm1569_vm10, %v1541_v1, %v1188_v38  ;;  %v1378_v38 = vsel %vm1371_vm4, %v2725_v41, %v3138_v5  ;;  %v1379_v5 = vsel %vm1371_vm4, %v2709_v35, %v3140_v56 }
 0x117   : > { %914 = vrot.lane.b32.xlu1 %v2881_v44, %s2611_s24  ;;  %v1377_v44 = vsel %vm1371_vm4, %v2698_v30, %v3132_v49  ;;  %v1411_v47 = vsel %vm1404_vm5, %v1378_v38, %v3366_v34  ;;  %v1412_v34 = vsel %vm1404_vm5, %v1379_v5, %v3371_v3  ;;  %v4646_v38 = vld [vmem:[#allocation17_spill] sm:$0xff] }
 0x118   : > { %1205 = vrot.lane.b32.xlu0 %v2888_v50, %s2614_s11  ;;  %v1410_v62 = vsel %vm1404_vm5, %v1377_v44, %v3310_v33 }
 0x119   : > { %v899_v42 = vpop.permute.xlu1 %898  ;;  %v1443_v8 = vsel %vm1437_vm6, %v1410_v62, %v3324_v48 }
 0x11a   : > { %v1190_v16 = vpop.permute.xlu0 %1189  ;;  %v1476_v2 = vsel %vm1470_vm7, %v1443_v8, %v897_v24 }
 0x11b   : > { %1299 = vrot.lane.b32.xlu1 %v649_v25, %s2615_s12 }
 0x11c   : > { %916 = vrot.lane.b32.xlu0 %v2888_v50, %s2611_s24  ;;  %v1509_v50 = vsel %vm1503_vm8, %v1476_v2, %v998_v22  ;;  %v4640_v22 = vld [vmem:[#allocation10_spill] sm:$0xff] }
 0x11d   : > { %v1284_v30 = vpop.permute.xlu1 %1283  ;;  %v1542_v33 = vsel %vm1536_vm9, %v1509_v50, %v1094_v53  ;;  %v653_v53 = vrot.slane %v4639_v15, 2 }
 0x11e   : > { %v901_v49 = vpop.permute.xlu0 %900  ;;  %v1607_v55 = vsel %vm1602_vm11, %v1574_v7, %v1284_v30  ;;  %v1575_v48 = vsel %vm1569_vm10, %v1542_v33, %v1190_v16  ;;  %v1444_v16 = vsel %vm1437_vm6, %v1411_v47, %v3377_v39  ;;  %v4643_v33 = vld [vmem:[#allocation7_spill] sm:$0xff] }
 0x11f   : > { %1015 = vrot.lane.b32.xlu1 %v649_v25, %s2612_s25  ;;  %2503 = vmatprep.mubr.msk.f32.mxu0 %vm1640_vm12, %v1607_v55  ;;  %v1477_v41 = vsel %vm1470_vm7, %v1444_v16, %v899_v42  ;;  %v656_v62 = vsel %vm606_vm2, %v653_v53, %v655_v36  ;;  %v1445_v42 = vsel %vm1437_vm6, %v1412_v34, %v3385_v4 }
 0x120   : > { %1301 = vrot.lane.b32.xlu0 %v651_v26, %s2615_s12 }
 0x121   : > { %v1000_v23 = vpop.permute.xlu1 %999 }
 0x122   : > { %v1286_v58 = vpop.permute.xlu0 %1285  ;;  %v1510_v31 = vsel %vm1503_vm8, %v1477_v41, %v1000_v23 }
 0x123   : > { %v1608_v54 = vsel %vm1602_vm11, %v1575_v48, %v1286_v58  ;;  %719 = vrot.lane.b32.xlu1 %v649_v25, %s2609_s22  ;;  %v654_v25 = vsel %vm606_vm2, %v652_v12, %v653_v53  ;;  %v4644_v58 = vld [vmem:[#allocation8_spill] sm:$0xff] }
 0x124   : > { %1017 = vrot.lane.b32.xlu0 %v651_v26, %s2612_s25  ;;  %2504 = vmatmul.mubr.msk.f32.gmra.mxu0 %vm1640_vm12, %v1608_v54 }
 0x125   : > { %v3427_v24 = vpop.permute.xlu1 %703 }
 0x126   : > { %v1002_v13 = vpop.permute.xlu0 %1001 }
 0x127   : > { %1111 = vrot.lane.b32.xlu1 %v2860_v11, %s2613_s30 }
 0x128   : > { %721 = vrot.lane.b32.xlu0 %v651_v26, %s2609_s22  ;;  %v1478_v26 = vsel %vm1470_vm7, %v1445_v42, %v901_v49 }
 0x129   : > { %v1096_v19 = vpop.permute.xlu1 %1095  ;;  %v1511_v7 = vsel %vm1503_vm8, %v1478_v26, %v1002_v13 }
 0x12a   : > { %v3432_v9 = vpop.permute.xlu0 %705  ;;  %v1543_v39 = vsel %vm1536_vm9, %v1510_v31, %v1096_v19  ;;  %v4645_v19 = vld [vmem:[#allocation16_spill] sm:$0xff] }
 0x12b   : > { %816 = vrot.lane.b32.xlu1 %v2860_v11, %s2610_s23 }
 0x12c   : > { %1113 = vrot.lane.b32.xlu0 %v4639_v15, %s2613_s30 }
 0x12d   : > { %v3438_v29 = vpop.permute.xlu1 %800 }
 0x12e   : > { %v1098_v21 = vpop.permute.xlu0 %1097 }
 0x12f   : > { %1207 = vrot.lane.b32.xlu1 %v4640_v22, %s2614_s11  ;;  %v1544_v3 = vsel %vm1536_vm9, %v1511_v7, %v1098_v21  ;;  %v657_v21 = vrot.slane %v4643_v33, 2 }
 0x130   : > { %818 = vrot.lane.b32.xlu0 %v4639_v15, %s2610_s23 }
 0x131   : > { %v1192_v18 = vpop.permute.xlu1 %1191 }
 0x132   : > { %v3446_v40 = vpop.permute.xlu0 %802  ;;  %v1576_v1 = vsel %vm1569_vm10, %v1543_v39, %v1192_v18  ;;  %v1380_v18 = vsel %vm1371_vm4, %v2745_v52, %v3144_v43  ;;  %v1381_v43 = vsel %vm1371_vm4, %v2742_v51, %v3146_v37 }
 0x133   : > { %918 = vrot.lane.b32.xlu1 %v4640_v22, %s2611_s24  ;;  %v658_v22 = vrot.slane %v4644_v58, 2 }
 0x134   : > { %1209 = vrot.lane.b32.xlu0 %v4641_v14, %s2614_s11 }
 0x135   : > { %v903_v32 = vpop.permute.xlu1 %902  ;;  %v659_v47 = vsel %vm606_vm2, %v657_v21, %v658_v22  ;;  %v4650_v21 = vld [vmem:[#allocation21_spill] sm:$0xff] }
 0x136   : > { %v1194_v44 = vpop.permute.xlu0 %1193 }
 0x137   : > { %1303 = vrot.lane.b32.xlu1 %v654_v25, %s2615_s12  ;;  %v1577_v4 = vsel %vm1569_vm10, %v1544_v3, %v1194_v44 }
 0x138   : > { %920 = vrot.lane.b32.xlu0 %v4641_v14, %s2611_s24  ;;  %v1413_v14 = vsel %vm1404_vm5, %v1380_v18, %v3427_v24  ;;  %v1414_v24 = vsel %vm1404_vm5, %v1381_v43, %v3432_v9  ;;  %v4651_v18 = vld [vmem:[#allocation14_spill] sm:$0xff] }
 0x139   : > { %v1288_v35 = vpop.permute.xlu1 %1287  ;;  %v1446_v36 = vsel %vm1437_vm6, %v1413_v14, %v3438_v29 }
 0x13a   : > { %v905_v56 = vpop.permute.xlu0 %904  ;;  %v1609_v8 = vsel %vm1602_vm11, %v1576_v1, %v1288_v35  ;;  %v1479_v52 = vsel %vm1470_vm7, %v1446_v36, %v903_v32  ;;  %v1447_v32 = vsel %vm1437_vm6, %v1414_v24, %v3446_v40 }
 0x13b   : > { %1019 = vrot.lane.b32.xlu1 %v654_v25, %s2612_s25  ;;  %2506 = vmatprep.mubr.msk.f32.mxu0 %vm1640_vm12, %v1609_v8  ;;  %v1480_v34 = vsel %vm1470_vm7, %v1447_v32, %v905_v56  ;;  %v4648_v8 = vld [vmem:[#allocation12_spill] sm:$0xff] }
 0x13c   : > { %1305 = vrot.lane.b32.xlu0 %v656_v62, %s2615_s12 }
 0x13d   : > { %v1004_v30 = vpop.permute.xlu1 %1003 }
 0x13e   : > { %v1290_v2 = vpop.permute.xlu0 %1289  ;;  %v1512_v41 = vsel %vm1503_vm8, %v1479_v52, %v1004_v30 }
 0x13f   : > { %v1610_v55 = vsel %vm1602_vm11, %v1577_v4, %v1290_v2  ;;  %723 = vrot.lane.b32.xlu1 %v654_v25, %s2609_s22  ;;  %v4647_v25 = vld [vmem:[#allocation9_spill] sm:$0xff] }
 0x140   : > { %1021 = vrot.lane.b32.xlu0 %v656_v62, %s2612_s25  ;;  %2507 = vmatmul.mubr.msk.f32.gmra.mxu0 %vm1640_vm12, %v1610_v55  ;;  %v660_v0 = vrot.slane %v4647_v25, 2  ;;  %v4649_v4 = vld [vmem:[#allocation13_spill] sm:$0xff]  ;;  %v662_v55 = vrot.slane %v4648_v8, 2 }
 0x141   : > { %v3488_v49 = vpop.permute.xlu1 %707 }
 0x142   : > { %v1006_v50 = vpop.permute.xlu0 %1005  ;;  %v661_v5 = vsel %vm606_vm2, %v658_v22, %v660_v0 }
 0x143   : > { %1115 = vrot.lane.b32.xlu1 %v4643_v33, %s2613_s30 }
 0x144   : > { %725 = vrot.lane.b32.xlu0 %v656_v62, %s2609_s22  ;;  %v1513_v62 = vsel %vm1503_vm8, %v1480_v34, %v1006_v50  ;;  %v663_v50 = vrot.slane %v4649_v4, 2  ;;  %v4653_v34 = vld [vmem:[#allocation18_spill] sm:$0xff] }
 0x145   : > { %v1100_v48 = vpop.permute.xlu1 %1099 }
 0x146   : > { %v3493_v23 = vpop.permute.xlu0 %709  ;;  %v1545_v29 = vsel %vm1536_vm9, %v1512_v41, %v1100_v48 }
 0x147   : > { %820 = vrot.lane.b32.xlu1 %v4643_v33, %s2610_s23 }
 0x148   : > { %1117 = vrot.lane.b32.xlu0 %v4644_v58, %s2613_s30 }
 0x149   : > { %v3499_v54 = vpop.permute.xlu1 %804 }
 0x14a   : > { %v1102_v13 = vpop.permute.xlu0 %1101 }
 0x14b   : > { %1211 = vrot.lane.b32.xlu1 %v4645_v19, %s2614_s11  ;;  %v1546_v9 = vsel %vm1536_vm9, %v1513_v62, %v1102_v13 }
 0x14c   : > { %822 = vrot.lane.b32.xlu0 %v4644_v58, %s2610_s23 }
 0x14d   : > { %v1196_v12 = vpop.permute.xlu1 %1195 }
 0x14e   : > { %v3507_v53 = vpop.permute.xlu0 %806  ;;  %v1578_v31 = vsel %vm1569_vm10, %v1545_v29, %v1196_v12  ;;  %v664_v12 = vsel %vm606_vm2, %v662_v55, %v663_v50  ;;  %v4655_v55 = vld [vmem:[#allocation20_spill] sm:$0xff] }
 0x14f   : > { %922 = vrot.lane.b32.xlu1 %v4645_v19, %s2611_s24  ;;  %v1382_v19 = vsel %vm1371_vm4, %v2762_v59, %v3150_v45 }
 0x150   : > { %1213 = vrot.lane.b32.xlu0 %v4646_v38, %s2614_s11  ;;  %v1415_v22 = vsel %vm1404_vm5, %v1382_v19, %v3488_v49 }
 0x151   : > { %v907_v16 = vpop.permute.xlu1 %906  ;;  %v1448_v14 = vsel %vm1437_vm6, %v1415_v22, %v3499_v54 }
 0x152   : > { %v1198_v44 = vpop.permute.xlu0 %1197  ;;  %v1481_v59 = vsel %vm1470_vm7, %v1448_v14, %v907_v16 }
 0x153   : > { %1307 = vrot.lane.b32.xlu1 %v659_v47, %s2615_s12  ;;  %v1579_v40 = vsel %vm1569_vm10, %v1546_v9, %v1198_v44 }
 0x154   : > { %924 = vrot.lane.b32.xlu0 %v4646_v38, %s2611_s24  ;;  %v665_v38 = vrot.slane %v4651_v18, 2 }
 0x155   : > { %v1292_v51 = vpop.permute.xlu1 %1291 }
 0x156   : > { %v909_v37 = vpop.permute.xlu0 %908  ;;  %v1611_v39 = vsel %vm1602_vm11, %v1578_v31, %v1292_v51  ;;  %v666_v0 = vsel %vm606_vm2, %v663_v50, %v665_v38  ;;  %v4652_v31 = vld [vmem:[#allocation19_spill] sm:$0xff]  ;;  %v670_v50 = vrot.slane %v4655_v55, 2 }
 0x157   : > { %1023 = vrot.lane.b32.xlu1 %v659_v47, %s2612_s25  ;;  %2509 = vmatprep.mubr.msk.f32.mxu0 %vm1640_vm12, %v1611_v39  ;;  %v667_v9 = vrot.slane %v4652_v31, 2 }
 0x158   : > { %1309 = vrot.lane.b32.xlu0 %v661_v5, %s2615_s12 }
 0x159   : > { %v1008_v42 = vpop.permute.xlu1 %1007 }
 0x15a   : > { %v1294_v1 = vpop.permute.xlu0 %1293  ;;  %v1514_v45 = vsel %vm1503_vm8, %v1481_v59, %v1008_v42 }
 0x15b   : > { %v1612_v35 = vsel %vm1602_vm11, %v1579_v40, %v1294_v1  ;;  %727 = vrot.lane.b32.xlu1 %v659_v47, %s2609_s22  ;;  %v668_v40 = vrot.slane %v4653_v34, 2 }
 0x15c   : > { %1025 = vrot.lane.b32.xlu0 %v661_v5, %s2612_s25  ;;  %2510 = vmatmul.mubr.msk.f32.gmra.mxu0 %vm1640_vm12, %v1612_v35  ;;  %v1384_v35 = vsel %vm1371_vm4, %v2782_v10, %v3157_v46  ;;  %v4656_v46 = vld [vmem:[#allocation38_spill] sm:$0xff] }
 0x15d   : > { %v3549_v56 = vpop.permute.xlu1 %711 }
 0x15e   : > { %v1010_v26 = vpop.permute.xlu0 %1009 }
 0x15f   : > { %1119 = vrot.lane.b32.xlu1 %v4648_v8, %s2613_s30 }
 0x160   : > { %729 = vrot.lane.b32.xlu0 %v661_v5, %s2609_s22 }
 0x161   : > { %v1104_v7 = vpop.permute.xlu1 %1103 }
 0x162   : > { %v3554_v3 = vpop.permute.xlu0 %713  ;;  %v1547_v54 = vsel %vm1536_vm9, %v1514_v45, %v1104_v7  ;;  %v1417_v7 = vsel %vm1404_vm5, %v1384_v35, %v3549_v56 }
 0x163   : > { %824 = vrot.lane.b32.xlu1 %v4648_v8, %s2610_s23 }
 0x164   : > { %1121 = vrot.lane.b32.xlu0 %v4649_v4, %s2613_s30 }
 0x165   : > { %v3560_v30 = vpop.permute.xlu1 %808 }
 0x166   : > { %v1106_v2 = vpop.permute.xlu0 %1105 }
 0x167   : > { %1215 = vrot.lane.b32.xlu1 %v2955_v20, %s2614_s11 }
 0x168   : > { %826 = vrot.lane.b32.xlu0 %v4649_v4, %s2610_s23 }
 0x169   : > { %v1200_v48 = vpop.permute.xlu1 %1199 }
 0x16a   : > { %v3568_v13 = vpop.permute.xlu0 %810  ;;  %v1580_v16 = vsel %vm1569_vm10, %v1547_v54, %v1200_v48  ;;  %v1450_v48 = vsel %vm1437_vm6, %v1417_v7, %v3560_v30 }
 0x16b   : > { %926 = vrot.lane.b32.xlu1 %v2955_v20, %s2611_s24  ;;  %v1383_v20 = vsel %vm1371_vm4, %v2770_v6, %v3152_v57 }
 0x16c   : > { %1217 = vrot.lane.b32.xlu0 %v4650_v21, %s2614_s11  ;;  %v1416_v49 = vsel %vm1404_vm5, %v1383_v20, %v3493_v23 }
 0x16d   : > { %v911_v47 = vpop.permute.xlu1 %910  ;;  %v1449_v36 = vsel %vm1437_vm6, %v1416_v49, %v3507_v53 }
 0x16e   : > { %v1202_v25 = vpop.permute.xlu0 %1201  ;;  %v1482_v44 = vsel %vm1470_vm7, %v1449_v36, %v909_v37  ;;  %v1483_v10 = vsel %vm1470_vm7, %v1450_v48, %v911_v47  ;;  %v4657_v36 = vld [vmem:[#allocation22_spill] sm:$0xff] }
 0x16f   : > { %1311 = vrot.lane.b32.xlu1 %v664_v12, %s2615_s12  ;;  %v1515_v43 = vsel %vm1503_vm8, %v1482_v44, %v1010_v26  ;;  %v4654_v26 = vld [vmem:[#allocation25_spill] sm:$0xff] }
 0x170   : > { %928 = vrot.lane.b32.xlu0 %v4650_v21, %s2611_s24  ;;  %v1548_v23 = vsel %vm1536_vm9, %v1515_v43, %v1106_v2  ;;  %v669_v2 = vsel %vm606_vm2, %v667_v9, %v668_v40  ;;  %v4659_v43 = vld [vmem:[#allocation29_spill] sm:$0xff] }
 0x171   : > { %v1296_v6 = vpop.permute.xlu1 %1295  ;;  %v1581_v53 = vsel %vm1569_vm10, %v1548_v23, %v1202_v25  ;;  %v672_v23 = vrot.slane %v4657_v36, 2 }
 0x172   : > { %v913_v57 = vpop.permute.xlu0 %912  ;;  %v1613_v52 = vsel %vm1602_vm11, %v1580_v16, %v1296_v6 }
 0x173   : > { %1027 = vrot.lane.b32.xlu1 %v664_v12, %s2612_s25  ;;  %2512 = vmatprep.mubr.msk.f32.mxu0 %vm1640_vm12, %v1613_v52 }
 0x174   : > { %1313 = vrot.lane.b32.xlu0 %v666_v0, %s2615_s12 }
 0x175   : > { %v1012_v41 = vpop.permute.xlu1 %1011 }
 0x176   : > { %v1298_v24 = vpop.permute.xlu0 %1297  ;;  %v1516_v22 = vsel %vm1503_vm8, %v1483_v10, %v1012_v41 }
 0x177   : > { %v1614_v29 = vsel %vm1602_vm11, %v1581_v53, %v1298_v24  ;;  %731 = vrot.lane.b32.xlu1 %v664_v12, %s2609_s22  ;;  %v671_v12 = vsel %vm606_vm2, %v668_v40, %v670_v50  ;;  %v4662_v40 = vld [vmem:[#allocation24_spill] sm:$0xff] }
 0x178   : > { %1029 = vrot.lane.b32.xlu0 %v666_v0, %s2612_s25  ;;  %2513 = vmatmul.mubr.msk.f32.gmra.mxu0 %vm1640_vm12, %v1614_v29  ;;  %v4660_v29 = vld [vmem:[#allocation39_spill] sm:$0xff] }
 0x179   : > { %v3610_v5 = vpop.permute.xlu1 %715 }
 0x17a   : > { %v1014_v32 = vpop.permute.xlu0 %1013 }
 0x17b   : > { %1123 = vrot.lane.b32.xlu1 %v4652_v31, %s2613_s30 }
 0x17c   : > { %733 = vrot.lane.b32.xlu0 %v666_v0, %s2609_s22 }
 0x17d   : > { %v1108_v51 = vpop.permute.xlu1 %1107 }
 0x17e   : > { %v3615_v37 = vpop.permute.xlu0 %717  ;;  %v1549_v30 = vsel %vm1536_vm9, %v1516_v22, %v1108_v51  ;;  %v4661_v51 = vld [vmem:[#allocation30_spill] sm:$0xff] }
 0x17f   : > { %828 = vrot.lane.b32.xlu1 %v4652_v31, %s2610_s23 }
 0x180   : > { %1125 = vrot.lane.b32.xlu0 %v4653_v34, %s2613_s30 }
 0x181   : > { %v3621_v39 = vpop.permute.xlu1 %812 }
 0x182   : > { %v1110_v62 = vpop.permute.xlu0 %1109 }
 0x183   : > { %1219 = vrot.lane.b32.xlu1 %v2979_v63, %s2614_s11 }
 0x184   : > { %830 = vrot.lane.b32.xlu0 %v4653_v34, %s2610_s23 }
 0x185   : > { %v1204_v42 = vpop.permute.xlu1 %1203 }
 0x186   : > { %v3629_v1 = vpop.permute.xlu0 %814  ;;  %v1582_v38 = vsel %vm1569_vm10, %v1549_v30, %v1204_v42  ;;  %v675_v42 = vrot.slane %v4662_v40, 2 }
 0x187   : > { %930 = vrot.lane.b32.xlu1 %v2979_v63, %s2611_s24  ;;  %v1385_v63 = vsel %vm1371_vm4, %v2792_v17, %v4656_v46 }
 0x188   : > { %1221 = vrot.lane.b32.xlu0 %v4654_v26, %s2614_s11  ;;  %v1418_v56 = vsel %vm1404_vm5, %v1385_v63, %v3554_v3 }
 0x189   : > { %v915_v19 = vpop.permute.xlu1 %914  ;;  %v1451_v18 = vsel %vm1437_vm6, %v1418_v56, %v3568_v13 }
 0x18a   : > { %v1206_v21 = vpop.permute.xlu0 %1205  ;;  %v1484_v47 = vsel %vm1470_vm7, %v1451_v18, %v913_v57  ;;  %v4658_v57 = vld [vmem:[#allocation23_spill] sm:$0xff] }
 0x18b   : > { %1315 = vrot.lane.b32.xlu1 %v669_v2, %s2615_s12  ;;  %v1517_v59 = vsel %vm1503_vm8, %v1484_v47, %v1014_v32  ;;  %v673_v53 = vrot.slane %v4658_v57, 2  ;;  %v1386_v32 = vsel %vm1371_vm4, %v2812_v28, %v4660_v29 }
 0x18c   : > { %932 = vrot.lane.b32.xlu0 %v4654_v26, %s2611_s24  ;;  %v1550_v3 = vsel %vm1536_vm9, %v1517_v59, %v1110_v62  ;;  %v1419_v62 = vsel %vm1404_vm5, %v1386_v32, %v3610_v5 }
 0x18d   : > { %v1300_v17 = vpop.permute.xlu1 %1299  ;;  %v1583_v13 = vsel %vm1569_vm10, %v1550_v3, %v1206_v21  ;;  %v674_v9 = vsel %vm606_vm2, %v672_v23, %v673_v53  ;;  %v1452_v35 = vsel %vm1437_vm6, %v1419_v62, %v3621_v39  ;;  %v676_v48 = vsel %vm606_vm2, %v673_v53, %v675_v42 }
 0x18e   : > { %v917_v14 = vpop.permute.xlu0 %916  ;;  %v1615_v25 = vsel %vm1602_vm11, %v1582_v38, %v1300_v17  ;;  %v1485_v28 = vsel %vm1470_vm7, %v1452_v35, %v915_v19  ;;  %v4664_v17 = vld [vmem:[#allocation27_spill] sm:$0xff] }
 0x18f   : > { %1031 = vrot.lane.b32.xlu1 %v669_v2, %s2612_s25  ;;  %2515 = vmatprep.mubr.msk.f32.mxu0 %vm1640_vm12, %v1615_v25  ;;  %v4665_v25 = vld [vmem:[#allocation26_spill] sm:$0xff] }
 0x190   : > { %1317 = vrot.lane.b32.xlu0 %v671_v12, %s2615_s12 }
 0x191   : > { %v1016_v20 = vpop.permute.xlu1 %1015 }
 0x192   : > { %v1302_v45 = vpop.permute.xlu0 %1301  ;;  %v1518_v50 = vsel %vm1503_vm8, %v1485_v28, %v1016_v20  ;;  %v677_v20 = vrot.slane %v4664_v17, 2 }
 0x193   : > { %v1616_v49 = vsel %vm1602_vm11, %v1583_v13, %v1302_v45  ;;  %735 = vrot.lane.b32.xlu1 %v669_v2, %s2609_s22  ;;  %v4663_v2 = vld [vmem:[#allocation40_spill] sm:$0xff]  ;;  %v4666_v13 = vld [vmem:[#allocation34_spill] sm:$0xff]  ;;  %v678_v45 = vrot.slane %v4665_v25, 2 }
 0x194   : > { %1033 = vrot.lane.b32.xlu0 %v671_v12, %s2612_s25  ;;  %2516 = vmatmul.mubr.msk.f32.gmra.mxu0 %vm1640_vm12, %v1616_v49  ;;  %v1387_v55 = vsel %vm1371_vm4, %v2809_v27, %v4663_v2 }
 0x195   : > { %v3671_v54 = vpop.permute.xlu1 %719  ;;  %v1420_v5 = vsel %vm1404_vm5, %v1387_v55, %v3615_v37  ;;  %v679_v53 = vsel %vm606_vm2, %v677_v20, %v678_v45  ;;  %v4675_v20 = vld [vmem:[#allocation37_spill] sm:$0xff] }
 0x196   : > { %v1018_v0 = vpop.permute.xlu0 %1017  ;;  %v1453_v19 = vsel %vm1437_vm6, %v1420_v5, %v3629_v1 }
 0x197   : > { %1127 = vrot.lane.b32.xlu1 %v4657_v36, %s2613_s30  ;;  %v1486_v46 = vsel %vm1470_vm7, %v1453_v19, %v917_v14 }
 0x198   : > { %737 = vrot.lane.b32.xlu0 %v671_v12, %s2609_s22  ;;  %v1519_v22 = vsel %vm1503_vm8, %v1486_v46, %v1018_v0 }
 0x199   : > { %v1112_v16 = vpop.permute.xlu1 %1111 }
 0x19a   : > { %v3676_v6 = vpop.permute.xlu0 %721  ;;  %v1551_v39 = vsel %vm1536_vm9, %v1518_v50, %v1112_v16  ;;  %v4667_v16 = vld [vmem:[#allocation41_spill] sm:$0xff] }
 0x19b   : > { %832 = vrot.lane.b32.xlu1 %v4657_v36, %s2610_s23 }
 0x19c   : > { %1129 = vrot.lane.b32.xlu0 %v4658_v57, %s2613_s30 }
 0x19d   : > { %v3682_v44 = vpop.permute.xlu1 %816 }
 0x19e   : > { %v1114_v52 = vpop.permute.xlu0 %1113 }
 0x19f   : > { %1223 = vrot.lane.b32.xlu1 %v4659_v43, %s2614_s11  ;;  %v1552_v37 = vsel %vm1536_vm9, %v1519_v22, %v1114_v52  ;;  %v1388_v52 = vsel %vm1371_vm4, %v2841_v61, %v4667_v16 }
 0x1a0   : > { %834 = vrot.lane.b32.xlu0 %v4658_v57, %s2610_s23  ;;  %v1421_v23 = vsel %vm1404_vm5, %v1388_v52, %v3671_v54 }
 0x1a1   : > { %v1208_v41 = vpop.permute.xlu1 %1207 }
 0x1a2   : > { %v3690_v24 = vpop.permute.xlu0 %818  ;;  %v1584_v21 = vsel %vm1569_vm10, %v1551_v39, %v1208_v41  ;;  %v1454_v41 = vsel %vm1437_vm6, %v1421_v23, %v3682_v44 }
 0x1a3   : > { %934 = vrot.lane.b32.xlu1 %v4659_v43, %s2611_s24  ;;  %v4668_v43 = vld [vmem:[#allocation35_spill] sm:$0xff] }
 0x1a4   : > { %1225 = vrot.lane.b32.xlu0 %v4661_v51, %s2614_s11 }
 0x1a5   : > { %v919_v26 = vpop.permute.xlu1 %918 }
 0x1a6   : > { %v1210_v7 = vpop.permute.xlu0 %1209  ;;  %v1487_v61 = vsel %vm1470_vm7, %v1454_v41, %v919_v26 }
 0x1a7   : > { %1319 = vrot.lane.b32.xlu1 %v674_v9, %s2615_s12  ;;  %v1585_v1 = vsel %vm1569_vm10, %v1552_v37, %v1210_v7 }
 0x1a8   : > { %936 = vrot.lane.b32.xlu0 %v4661_v51, %s2611_s24  ;;  %v4669_v51 = vld [vmem:[#allocation28_spill] sm:$0xff] }
 0x1a9   : > { %v1304_v27 = vpop.permute.xlu1 %1303  ;;  %v680_v62 = vrot.slane %v4669_v51, 2 }
 0x1aa   : > { %v921_v10 = vpop.permute.xlu0 %920  ;;  %v1617_v63 = vsel %vm1602_vm11, %v1584_v21, %v1304_v27  ;;  %v4671_v27 = vld [vmem:[#allocation31_spill] sm:$0xff] }
 0x1ab   : > { %1035 = vrot.lane.b32.xlu1 %v674_v9, %s2612_s25  ;;  %2518 = vmatprep.mubr.msk.f32.mxu0 %vm1640_vm12, %v1617_v63  ;;  %v4672_v63 = vld [vmem:[#allocation32_spill] sm:$0xff] }
 0x1ac   : > { %1321 = vrot.lane.b32.xlu0 %v676_v48, %s2615_s12 }
 0x1ad   : > { %v1020_v56 = vpop.permute.xlu1 %1019 }
 0x1ae   : > { %v1306_v30 = vpop.permute.xlu0 %1305  ;;  %v1520_v42 = vsel %vm1503_vm8, %v1487_v61, %v1020_v56  ;;  %v682_v56 = vrot.slane %v4671_v27, 2 }
 0x1af   : > { %v1618_v12 = vsel %vm1602_vm11, %v1585_v1, %v1306_v30  ;;  %739 = vrot.lane.b32.xlu1 %v674_v9, %s2609_s22  ;;  %v4670_v9 = vld [vmem:[#allocation42_spill] sm:$0xff]  ;;  %v4673_v1 = vld [vmem:[#allocation36_spill] sm:$0xff]  ;;  %v683_v30 = vrot.slane %v4672_v63, 2 }
 0x1b0   : > { %1037 = vrot.lane.b32.xlu0 %v676_v48, %s2612_s25  ;;  %2519 = vmatmul.mubr.msk.f32.gmra.mxu0 %vm1640_vm12, %v1618_v12  ;;  %v1389_v40 = vsel %vm1371_vm4, %v2838_v60, %v4670_v9  ;;  %v681_v60 = vsel %vm606_vm2, %v678_v45, %v680_v62  ;;  %v228_v9 = vld [vmem:[%s2670_s20 + $0xf0] sm:$0xff] }
 0x1b1   : > { %v3732_v18 = vpop.permute.xlu1 %723  ;;  %v1422_v54 = vsel %vm1404_vm5, %v1389_v40, %v3676_v6  ;;  %v684_v45 = vsel %vm606_vm2, %v682_v56, %v683_v30 }
 0x1b2   : > { %v1022_v38 = vpop.permute.xlu0 %1021  ;;  %v1455_v35 = vsel %vm1437_vm6, %v1422_v54, %v3690_v24 }
 0x1b3   : > { %1131 = vrot.lane.b32.xlu1 %v4664_v17, %s2613_s30  ;;  %v1488_v2 = vsel %vm1470_vm7, %v1455_v35, %v921_v10 }
 0x1b4   : > { %741 = vrot.lane.b32.xlu0 %v676_v48, %s2609_s22  ;;  %v1521_v50 = vsel %vm1503_vm8, %v1488_v2, %v1022_v38 }
 0x1b5   : > { %v1116_v14 = vpop.permute.xlu1 %1115 }
 0x1b6   : > { %v3737_v47 = vpop.permute.xlu0 %725  ;;  %v1553_v44 = vsel %vm1536_vm9, %v1520_v42, %v1116_v14  ;;  %v4674_v14 = vld [vmem:[#allocation43_spill] sm:$0xff]  ;;  %v229_v42 = vld [vmem:[%s2670_s20 + $0xf8] sm:$0xff] }
 0x1b7   : > { %836 = vrot.lane.b32.xlu1 %v4664_v17, %s2610_s23 }
 0x1b8   : > { %1133 = vrot.lane.b32.xlu0 %v4665_v25, %s2613_s30 }
 0x1b9   : > { %v3743_v59 = vpop.permute.xlu1 %820 }
 0x1ba   : > { %v1118_v3 = vpop.permute.xlu0 %1117 }
 0x1bb   : > { %1227 = vrot.lane.b32.xlu1 %v4666_v13, %s2614_s11  ;;  %v1554_v6 = vsel %vm1536_vm9, %v1521_v50, %v1118_v3  ;;  %v1390_v3 = vsel %vm1371_vm4, %v2860_v11, %v4674_v14 }
 0x1bc   : > { %838 = vrot.lane.b32.xlu0 %v4665_v25, %s2610_s23 }
 0x1bd   : > { %v1212_v49 = vpop.permute.xlu1 %1211 }
 0x1be   : > { %v3751_v0 = vpop.permute.xlu0 %822  ;;  %v1586_v26 = vsel %vm1569_vm10, %v1553_v44, %v1212_v49  ;;  %v311_v44 = vrot.slane %v228_v9, 7 }
 0x1bf   : > { %938 = vrot.lane.b32.xlu1 %v4666_v13, %s2611_s24  ;;  %v1423_v13 = vsel %vm1404_vm5, %v1390_v3, %v3732_v18 }
 0x1c0   : > { %1229 = vrot.lane.b32.xlu0 %v4668_v43, %s2614_s11  ;;  %v1456_v49 = vsel %vm1437_vm6, %v1423_v13, %v3743_v59  ;;  %v379_v2 = vsel %vm263_vm0, 0.0, %v311_v44 }
 0x1c1   : > { %v923_v29 = vpop.permute.xlu1 %922 }
 0x1c2   : > { %v1214_v32 = vpop.permute.xlu0 %1213  ;;  %v1489_v23 = vsel %vm1470_vm7, %v1456_v49, %v923_v29 }
 0x1c3   : > { %1323 = vrot.lane.b32.xlu1 %v679_v53, %s2615_s12  ;;  %v1587_v24 = vsel %vm1569_vm10, %v1554_v6, %v1214_v32 }
 0x1c4   : > { %940 = vrot.lane.b32.xlu0 %v4668_v43, %s2611_s24  ;;  %v4676_v43 = vld [vmem:[#allocation33_spill] sm:$0xff] }
 0x1c5   : > { %v1308_v7 = vpop.permute.xlu1 %1307  ;;  %v685_v11 = vrot.slane %v4676_v43, 2 }
 0x1c6   : > { %v925_v28 = vpop.permute.xlu0 %924  ;;  %v1619_v55 = vsel %vm1602_vm11, %v1586_v26, %v1308_v7 }
 0x1c7   : > { %1039 = vrot.lane.b32.xlu1 %v679_v53, %s2612_s25  ;;  %2521 = vmatprep.mubr.msk.f32.mxu1 %vm1640_vm12, %v1619_v55 }
 0x1c8   : > { %1325 = vrot.lane.b32.xlu0 %v681_v60, %s2615_s12 }
 0x1c9   : > { %v1024_v5 = vpop.permute.xlu1 %1023 }
 0x1ca   : > { %v1310_v39 = vpop.permute.xlu0 %1309  ;;  %v1522_v41 = vsel %vm1503_vm8, %v1489_v23, %v1024_v5 }
 0x1cb   : > { %v1620_v48 = vsel %vm1602_vm11, %v1587_v24, %v1310_v39  ;;  %743 = vrot.lane.b32.xlu1 %v679_v53, %s2609_s22  ;;  %v4677_v53 = vld [vmem:[#allocation44_spill] sm:$0xff]  ;;  %v881_v24 = vrot.slane %v379_v2, 1 }
 0x1cc   : > { %2522 = vmatmul.mubr.msk.f32.vlgmr.msra.gmra.mxu1 %vm1640_vm12, %v1620_v48  ;;  %1041 = vrot.lane.b32.xlu0 %v681_v60, %s2612_s25  ;;  %v1391_v18 = vsel %vm1371_vm4, %v4639_v15, %v4677_v53  ;;  %v686_v15 = vsel %vm606_vm2, %v683_v30, %v685_v11  ;;  %v982_v30 = vrot.slane %v379_v2, 2 }
 0x1cd   : > { %v3793_v19 = vpop.permute.xlu1 %727  ;;  %v1424_v59 = vsel %vm1404_vm5, %v1391_v18, %v3737_v47 }
 0x1ce   : > { %v1026_v21 = vpop.permute.xlu0 %1025  ;;  %v1457_v51 = vsel %vm1437_vm6, %v1424_v59, %v3751_v0 }
 0x1cf   : > { %1135 = vrot.lane.b32.xlu1 %v4671_v27, %s2613_s30  ;;  %v1490_v40 = vsel %vm1470_vm7, %v1457_v51, %v925_v28 }
 0x1d0   : > { %745 = vrot.lane.b32.xlu0 %v681_v60, %s2609_s22  ;;  %v1523_v54 = vsel %vm1503_vm8, %v1490_v40, %v1026_v21  ;;  %v312_v60 = vrot.slane %v229_v42, 7  ;;  %v4681_v40 = vld [vmem:[#allocation2_spill] sm:$0xff] }
 0x1d1   : > { %v1120_v10 = vpop.permute.xlu1 %1119 }
 0x1d2   : > { %v3798_v46 = vpop.permute.xlu0 %729  ;;  %v1555_v32 = vsel %vm1536_vm9, %v1522_v41, %v1120_v10  ;;  %v313_v6 = vsel %vm263_vm0, %v311_v44, %v312_v60  ;;  %v396_v21 = vsel %vm263_vm0, %v312_v60, 0.0  ;;  %v4679_v41 = vld [vmem:[#allocation46_spill] sm:$0xff] }
 0x1d3   : > { %840 = vrot.lane.b32.xlu1 %v4671_v27, %s2610_s23  ;;  %v882_v5 = vrot.slane %v313_v6, 1  ;;  %v884_v56 = vrot.slane %v396_v21, 1  ;;  %v985_v53 = vrot.slane %v396_v21, 2 }
 0x1d4   : > { %1137 = vrot.lane.b32.xlu0 %v4672_v63, %s2613_s30 }
 0x1d5   : > { %v3804_v22 = vpop.permute.xlu1 %824  ;;  %v883_v10 = vsel %vm429_vm1, %v881_v24, %v882_v5  ;;  %v885_v13 = vsel %vm429_vm1, %v882_v5, %v884_v56  ;;  %v4684_v5 = vld [vmem:[#allocation47_spill] sm:$0xff] }
 0x1d6   : > { %v1122_v37 = vpop.permute.xlu0 %1121 }
 0x1d7   : > { %1231 = vrot.lane.b32.xlu1 %v4673_v1, %s2614_s11  ;;  %v1556_v0 = vsel %vm1536_vm9, %v1523_v54, %v1122_v37 }
 0x1d8   : > { %842 = vrot.lane.b32.xlu0 %v4672_v63, %s2610_s23 }
 0x1d9   : > { %v1216_v12 = vpop.permute.xlu1 %1215 }
 0x1da   : > { %v3812_v38 = vpop.permute.xlu0 %826  ;;  %v1588_v29 = vsel %vm1569_vm10, %v1555_v32, %v1216_v12  ;;  %v983_v12 = vrot.slane %v313_v6, 2 }
 0x1db   : > { %942 = vrot.lane.b32.xlu1 %v4673_v1, %s2611_s24 }
 0x1dc   : > { %1233 = vrot.lane.b32.xlu0 %v4675_v20, %s2614_s11 }
 0x1dd   : > { %v3826_v16 = vpop.permute.xlu1 %926 }
 0x1de   : > { %v1218_v52 = vpop.permute.xlu0 %1217 }
 0x1df   : > { %1327 = vrot.lane.b32.xlu1 %v684_v45, %s2615_s12  ;;  %v1589_v35 = vsel %vm1569_vm10, %v1556_v0, %v1218_v52  ;;  %v984_v52 = vsel %vm606_vm2, %v982_v30, %v983_v12 }
 0x1e0   : > { %944 = vrot.lane.b32.xlu0 %v4675_v20, %s2611_s24  ;;  %v4678_v20 = vld [vmem:[#allocation45_spill] sm:$0xff] }
 0x1e1   : > { %v1312_v62 = vpop.permute.xlu1 %1311 }
 0x1e2   : > { %v3843_v61 = vpop.permute.xlu0 %928  ;;  %v1621_v47 = vsel %vm1602_vm11, %v1588_v29, %v1312_v62 }
 0x1e3   : > { %1043 = vrot.lane.b32.xlu1 %v684_v45, %s2612_s25  ;;  %2524 = vmatprep.mubr.msk.f32.mxu1 %vm1640_vm12, %v1621_v47 }
 0x1e4   : > { %1329 = vrot.lane.b32.xlu0 %v686_v15, %s2615_s12 }
 0x1e5   : > { %v1028_v26 = vpop.permute.xlu1 %1027 }
 0x1e6   : > { %v1314_v7 = vpop.permute.xlu0 %1313 }
 0x1e7   : > { %v1622_v28 = vsel %vm1602_vm11, %v1589_v35, %v1314_v7  ;;  %747 = vrot.lane.b32.xlu1 %v684_v45, %s2609_s22  ;;  %v1392_v45 = vsel %vm1371_vm4, %v4643_v33, %v4678_v20  ;;  %v1393_v33 = vsel %vm1371_vm4, %v4644_v58, %v4679_v41  ;;  %v986_v58 = vsel %vm606_vm2, %v983_v12, %v985_v53  ;;  %v4683_v7 = vld [vmem:[#allocation15_spill] sm:$0xff]  ;;  %v4685_v12 = vld [vmem:[#allocation48_spill] sm:$0xff] }
 0x1e8   : > { %2525 = vmatmul.mubr.msk.f32.gmra.mxu1 %vm1640_vm12, %v1622_v28  ;;  %1045 = vrot.lane.b32.xlu0 %v686_v15, %s2612_s25  ;;  %v1425_v49 = vsel %vm1404_vm5, %v1392_v45, %v3793_v19  ;;  %v1426_v19 = vsel %vm1404_vm5, %v1393_v33, %v3798_v46 }
 0x1e9   : > { %v3861_v55 = vpop.permute.xlu1 %731  ;;  %v1458_v43 = vsel %vm1437_vm6, %v1425_v49, %v3804_v22  ;;  %v1459_v22 = vsel %vm1437_vm6, %v1426_v19, %v3812_v38  ;;  %v4680_v38 = vld [vmem:[#allocation3_spill] sm:$0xff] }
 0x1ea   : > { %v1030_v50 = vpop.permute.xlu0 %1029  ;;  %v1491_v18 = vsel %vm1470_vm7, %v1458_v43, %v3826_v16  ;;  %v1492_v62 = vsel %vm1470_vm7, %v1459_v22, %v3843_v61  ;;  %v2582_v47 = vpack.i.bf16 %v4681_v40, %v4680_v38  ;;  %v4687_v40 = vld [vmem:[#allocation50_spill] sm:$0xff] }
 0x1eb   : > { %1139 = vrot.lane.b32.xlu1 %v379_v2, %s2613_s30  ;;  %v1524_v59 = vsel %vm1503_vm8, %v1491_v18, %v1028_v26  ;;  %v1525_v46 = vsel %vm1503_vm8, %v1492_v62, %v1030_v50  ;;  %v4682_v26 = vld [vmem:[#allocation4_spill] sm:$0xff] }
 0x1ec   : > { %749 = vrot.lane.b32.xlu0 %v686_v15, %s2609_s22  ;;  %s4429_s22 = scalar_lea.vmem %s4522_s4, %s2448_s17 }
 0x1ed   : > { %v1124_v39 = vpop.permute.xlu1 %1123 }
 0x1ee   : > { %v3866_v48 = vpop.permute.xlu0 %733  ;;  %v1557_v32 = vsel %vm1536_vm9, %v1524_v59, %v1124_v39  ;;  %v1394_v39 = vsel %vm1371_vm4, %v4648_v8, %v4684_v5 }
 0x1ef   : > { %844 = vrot.lane.b32.xlu1 %v379_v2, %s2610_s23  ;;  %v1427_v21 = vsel %vm1404_vm5, %v1394_v39, %v3861_v55 }
 0x1f0   : > { %1141 = vrot.lane.b32.xlu0 %v313_v6, %s2613_s30 }
 0x1f1   : > { %v829_v37 = vpop.permute.xlu1 %828 }
 0x1f2   : > { %v1126_v1 = vpop.permute.xlu0 %1125 }
 0x1f3   : > { %1235 = vrot.lane.b32.xlu1 %v883_v10, %s2614_s11  ;;  %v1558_v9 = vsel %vm1536_vm9, %v1525_v46, %v1126_v1 }
 0x1f4   : > { %846 = vrot.lane.b32.xlu0 %v313_v6, %s2610_s23 }
 0x1f5   : > { %v1220_v14 = vpop.permute.xlu1 %1219 }
 0x1f6   : > { %v831_v3 = vpop.permute.xlu0 %830  ;;  %v1590_v16 = vsel %vm1569_vm10, %v1557_v32, %v1220_v14  ;;  %v1395_v14 = vsel %vm1371_vm4, %v4649_v4, %v4685_v12 }
 0x1f7   : > { %946 = vrot.lane.b32.xlu1 %v883_v10, %s2611_s24  ;;  %v1460_v10 = vsel %vm1437_vm6, %v1427_v21, %v829_v37  ;;  %v1428_v20 = vsel %vm1404_vm5, %v1395_v14, %v3866_v48 }
 0x1f8   : > { %1237 = vrot.lane.b32.xlu0 %v885_v13, %s2614_s11  ;;  %v1461_v45 = vsel %vm1437_vm6, %v1428_v20, %v831_v3 }
 0x1f9   : > { %v931_v11 = vpop.permute.xlu1 %930 }
 0x1fa   : > { %v1222_v23 = vpop.permute.xlu0 %1221  ;;  %v1493_v30 = vsel %vm1470_vm7, %v1460_v10, %v931_v11 }
 0x1fb   : > { %1331 = vrot.lane.b32.xlu1 %v984_v52, %s2615_s12  ;;  %v1591_v42 = vsel %vm1569_vm10, %v1558_v9, %v1222_v23 }
 0x1fc   : > { %948 = vrot.lane.b32.xlu0 %v885_v13, %s2611_s24 }
 0x1fd   : > { %v1316_v51 = vpop.permute.xlu1 %1315 }
 0x1fe   : > { %v933_v29 = vpop.permute.xlu0 %932  ;;  %v1623_v15 = vsel %vm1602_vm11, %v1590_v16, %v1316_v51  ;;  %v4686_v51 = vld [vmem:[#allocation49_spill] sm:$0xff] }
 0x1ff   : > { %1047 = vrot.lane.b32.xlu1 %v984_v52, %s2612_s25  ;;  %2527 = vmatprep.mubr.msk.f32.mxu1 %vm1640_vm12, %v1623_v15  ;;  %v1494_v52 = vsel %vm1470_vm7, %v1461_v45, %v933_v29  ;;  %v1396_v29 = vsel %vm1371_vm4, %v4652_v31, %v4686_v51 }
 0x200   : > { %1333 = vrot.lane.b32.xlu0 %v986_v58, %s2615_s12 }
 0x201   : > { %v1032_v54 = vpop.permute.xlu1 %1031 }
 0x202   : > { %v1318_v0 = vpop.permute.xlu0 %1317  ;;  %v1526_v13 = vsel %vm1503_vm8, %v1493_v30, %v1032_v54  ;;  %v4688_v30 = vld [vmem:[#allocation51_spill] sm:$0xff] }
 0x203   : > { %v1624_v61 = vsel %vm1602_vm11, %v1591_v42, %v1318_v0  ;;  %1049 = vrot.lane.b32.xlu1 %v986_v58, %s2612_s25  ;;  %v1398_v12 = vsel %vm1371_vm4, %v4657_v36, %v4688_v30 }
 0x204   : > { %2528 = vmatmul.mubr.msk.f32.gmra.mxu1 %vm1640_vm12, %v1624_v61  ;;  %2583 = vrot.lane.b32.xlu0 %v2582_v47, %s2613_s30  ;;  %v1397_v47 = vsel %vm1371_vm4, %v4653_v34, %v4687_v40 }
 0x205   : > { %v736_v44 = vpop.permute.xlu1 %735 }
 0x206   : > { %v1034_v35 = vpop.permute.xlu0 %1033  ;;  %v1429_v58 = vsel %vm1404_vm5, %v1396_v29, %v736_v44 }
 0x207   : > { %2588 = vrot.lane.b32.xlu1 %v4682_v26, %s2614_s11  ;;  %v1527_v11 = vsel %vm1503_vm8, %v1494_v52, %v1034_v35 }
 0x208   : > { %2593 = vrot.lane.b32.xlu0 %v4683_v7, %s2615_s12 }
 0x209   : > { %v1128_v60 = vpop.permute.xlu1 %1127 }
 0x20a   : > { %v738_v28 = vpop.permute.xlu0 %737  ;;  %v1559_v8 = vsel %vm1536_vm9, %v1526_v13, %v1128_v60 }
 0x20b   : > { %v1430_v54 = vsel %vm1404_vm5, %v1397_v47, %v738_v28 }
 0x20d   : > { %v833_v2 = vpop.permute.xlu1 %832 }
 0x20e   : > { %v1130_v50 = vpop.permute.xlu0 %1129  ;;  %v1462_v62 = vsel %vm1437_vm6, %v1429_v58, %v833_v2 }
 0x20f   : > { %v1560_v4 = vsel %vm1536_vm9, %v1527_v11, %v1130_v50 }
 0x211   : > { %v1224_v6 = vpop.permute.xlu1 %1223 }
 0x212   : > { %v835_v24 = vpop.permute.xlu0 %834  ;;  %v1592_v55 = vsel %vm1569_vm10, %v1559_v8, %v1224_v6 }
 0x213   : > { %v1463_v44 = vsel %vm1437_vm6, %v1430_v54, %v835_v24 }
 0x215   : > { %v935_v1 = vpop.permute.xlu1 %934 }
 0x216   : > { %v1226_v56 = vpop.permute.xlu0 %1225  ;;  %v1495_v9 = vsel %vm1470_vm7, %v1462_v62, %v935_v1 }
 0x217   : > { %v1593_v48 = vsel %vm1569_vm10, %v1560_v4, %v1226_v56 }
 0x219   : > { %v1320_v37 = vpop.permute.xlu1 %1319 }
 0x21a   : > { %v937_v49 = vpop.permute.xlu0 %936  ;;  %v1625_v43 = vsel %vm1602_vm11, %v1592_v55, %v1320_v37  ;;  %v4689_v37 = vld [vmem:[#allocation52_spill] sm:$0xff] }
 0x21b   : > { %2530 = vmatprep.mubr.msk.f32.mxu1 %vm1640_vm12, %v1625_v43  ;;  %v1496_v26 = vsel %vm1470_vm7, %v1463_v44, %v937_v49  ;;  %v1399_v49 = vsel %vm1371_vm4, %v4658_v57, %v4689_v37 }
 0x21d   : > { %v1036_v23 = vpop.permute.xlu1 %1035 }
 0x21e   : > { %v1322_v53 = vpop.permute.xlu0 %1321  ;;  %v1528_v38 = vsel %vm1503_vm8, %v1495_v9, %v1036_v23 }
 0x21f   : > { %v1626_v3 = vsel %vm1602_vm11, %v1593_v48, %v1322_v53 }
 0x220   : > { %2531 = vmatmul.mubr.msk.f32.gmra.mxu1 %vm1640_vm12, %v1626_v3 }
 0x221   : > { %v740_v18 = vpop.permute.xlu1 %739 }
 0x222   : > { %v1038_v41 = vpop.permute.xlu0 %1037  ;;  %v1431_v14 = vsel %vm1404_vm5, %v1398_v12, %v740_v18 }
 0x223   : > { %v1529_v7 = vsel %vm1503_vm8, %v1496_v26, %v1038_v41 }
 0x225   : > { %v1132_v33 = vpop.permute.xlu1 %1131 }
 0x226   : > { %v742_v59 = vpop.permute.xlu0 %741  ;;  %v1561_v42 = vsel %vm1536_vm9, %v1528_v38, %v1132_v33 }
 0x227   : > { %v1432_v43 = vsel %vm1404_vm5, %v1399_v49, %v742_v59 }
 0x229   : > { %v837_v19 = vpop.permute.xlu1 %836 }
 0x22a   : > { %v1134_v32 = vpop.permute.xlu0 %1133  ;;  %v1464_v13 = vsel %vm1437_vm6, %v1431_v14, %v837_v19 }
 0x22b   : > { %v1562_v34 = vsel %vm1536_vm9, %v1529_v7, %v1134_v32 }
 0x22d   : > { %v1228_v22 = vpop.permute.xlu1 %1227 }
 0x22e   : > { %v839_v16 = vpop.permute.xlu0 %838  ;;  %v1594_v31 = vsel %vm1569_vm10, %v1561_v42, %v1228_v22 }
 0x22f   : > { %v1465_v4 = vsel %vm1437_vm6, %v1432_v43, %v839_v16 }
 0x231   : > { %v939_v15 = vpop.permute.xlu1 %938 }
 0x232   : > { %v1230_v46 = vpop.permute.xlu0 %1229  ;;  %v1497_v8 = vsel %vm1470_vm7, %v1464_v13, %v939_v15  ;;  %v4690_v15 = vld [vmem:[#allocation53_spill] sm:$0xff] }
 0x233   : > { %v1595_v2 = vsel %vm1569_vm10, %v1562_v34, %v1230_v46  ;;  %v1400_v46 = vsel %vm1371_vm4, %v4664_v17, %v4690_v15 }
 0x235   : > { %v1324_v0 = vpop.permute.xlu1 %1323 }
 0x236   : > { %v941_v61 = vpop.permute.xlu0 %940  ;;  %v1627_v35 = vsel %vm1602_vm11, %v1594_v31, %v1324_v0  ;;  %v4691_v31 = vld [vmem:[#allocation54_spill] sm:$0xff] }
 0x237   : > { %2533 = vmatprep.mubr.msk.f32.mxu1 %vm1640_vm12, %v1627_v35  ;;  %v1498_v53 = vsel %vm1470_vm7, %v1465_v4, %v941_v61  ;;  %v1401_v0 = vsel %vm1371_vm4, %v4665_v25, %v4691_v31 }
 0x239   : > { %v1040_v60 = vpop.permute.xlu1 %1039 }
 0x23a   : > { %v1326_v28 = vpop.permute.xlu0 %1325  ;;  %v1530_v55 = vsel %vm1503_vm8, %v1497_v8, %v1040_v60 }
 0x23b   : > { %v1628_v50 = vsel %vm1602_vm11, %v1595_v2, %v1326_v28 }
 0x23c   : > { %2534 = vmatmul.mubr.msk.f32.gmra.mxu1 %vm1640_vm12, %v1628_v50 }
 0x23d   : > { %v744_v6 = vpop.permute.xlu1 %743 }
 0x23e   : > { %v1042_v24 = vpop.permute.xlu0 %1041  ;;  %v1433_v9 = vsel %vm1404_vm5, %v1400_v46, %v744_v6 }
 0x23f   : > { %v1531_v3 = vsel %vm1503_vm8, %v1498_v53, %v1042_v24 }
 0x241   : > { %v1136_v5 = vpop.permute.xlu1 %1135 }
 0x242   : > { %v746_v39 = vpop.permute.xlu0 %745  ;;  %v1563_v52 = vsel %vm1536_vm9, %v1530_v55, %v1136_v5  ;;  %v4692_v5 = vld [vmem:[#allocation56_spill] sm:$0xff] }
 0x243   : > { %v1434_v44 = vsel %vm1404_vm5, %v1401_v0, %v746_v39  ;;  %v1403_v39 = vsel %vm1371_vm4, %v4672_v63, %v4692_v5 }
 0x245   : > { %v841_v21 = vpop.permute.xlu1 %840 }
 0x246   : > { %v1138_v10 = vpop.permute.xlu0 %1137  ;;  %v1466_v38 = vsel %vm1437_vm6, %v1433_v9, %v841_v21 }
 0x247   : > { %v1564_v57 = vsel %vm1536_vm9, %v1531_v3, %v1138_v10 }
 0x249   : > { %v1232_v1 = vpop.permute.xlu1 %1231 }
 0x24a   : > { %v843_v56 = vpop.permute.xlu0 %842  ;;  %v1596_v36 = vsel %vm1569_vm10, %v1563_v52, %v1232_v1  ;;  %v4693_v1 = vld [vmem:[#allocation55_spill] sm:$0xff] }
 0x24b   : > { %v1467_v26 = vsel %vm1437_vm6, %v1434_v44, %v843_v56  ;;  %v1402_v56 = vsel %vm1371_vm4, %v4671_v27, %v4693_v1 }
 0x24d   : > { %v943_v20 = vpop.permute.xlu1 %942 }
 0x24e   : > { %v1234_v45 = vpop.permute.xlu0 %1233  ;;  %v1499_v47 = vsel %vm1470_vm7, %v1466_v38, %v943_v20 }
 0x24f   : > { %v1597_v41 = vsel %vm1569_vm10, %v1564_v57, %v1234_v45 }
 0x251   : > { %v1328_v11 = vpop.permute.xlu1 %1327 }
 0x252   : > { %v1629_v48 = vsel %vm1602_vm11, %v1596_v36, %v1328_v11  ;;  %v945_v23 = vpop.permute.xlu0 %944 }
 0x253   : > { %2536 = vmatprep.mubr.msk.f32.mxu1 %vm1640_vm12, %v1629_v48  ;;  %v1500_v60 = vsel %vm1470_vm7, %v1467_v26, %v945_v23 }
 0x255   : > { %v1044_v18 = vpop.permute.xlu1 %1043 }
 0x256   : > { %v1330_v33 = vpop.permute.xlu0 %1329  ;;  %v1532_v54 = vsel %vm1503_vm8, %v1499_v47, %v1044_v18  ;;  %v4031_v18 = vpop.f32.mrf.mxu0 }
 0x257   : > { %v1630_v59 = vsel %vm1602_vm11, %v1597_v41, %v1330_v33 }
 0x258   : > { %2537 = vmatmul.mubr.msk.f32.gmra.mxu1 %vm1640_vm12, %v1630_v59  ;;  %v4033_v41 = vpop.f32.mrf.mxu0 }
 0x259   : > { %v748_v19 = vpop.permute.xlu1 %747 }
 0x25a   : > { %v1046_v32 = vpop.permute.xlu0 %1045  ;;  %v1435_v14 = vsel %vm1404_vm5, %v1402_v56, %v748_v19  ;;  %v4035_v33 = vpop.f32.mrf.mxu0  ;;  %v1966_v19 = vsel %vm1404_vm5, %v4033_v41, 0.0 }
 0x25b   : > { %v1533_v2 = vsel %vm1503_vm8, %v1500_v60, %v1046_v32  ;;  %v1971_v15 = vsel %vm1404_vm5, %v4035_v33, 0.0 }
 0x25c   : > { %v4037_v59 = vpop.f32.mrf.mxu0 }
 0x25d   : > { %v1140_v22 = vpop.permute.xlu1 %1139 }
 0x25e   : > { %v750_v16 = vpop.permute.xlu0 %749  ;;  %v1565_v61 = vsel %vm1536_vm9, %v1532_v54, %v1140_v22  ;;  %v4041_v32 = vpop.f32.mrf.mxu0  ;;  %v1967_v22 = vsel %vm1404_vm5, %v4031_v18, 0.0 }
 0x25f   : > { %v1436_v21 = vsel %vm1404_vm5, %v1403_v39, %v750_v16  ;;  %v1969_v16 = vsel %vm1404_vm5, %v4037_v59, 0.0 }
 0x261   : > { %v845_v51 = vpop.permute.xlu1 %844 }
 0x262   : > { %v1142_v29 = vpop.permute.xlu0 %1141  ;;  %v1468_v63 = vsel %vm1437_vm6, %v1435_v14, %v845_v51  ;;  %v1968_v51 = vadd.f32 %v1967_v22, %v1966_v19 }
 0x263   : > { %v1566_v25 = vsel %vm1536_vm9, %v1533_v2, %v1142_v29 }
 0x264   : > { %v1970_v29 = vadd.f32 %v1969_v16, %v1968_v51 }
 0x265   : > { %v1236_v58 = vpop.permute.xlu1 %1235 }
 0x266   : > { %v847_v62 = vpop.permute.xlu0 %846  ;;  %v1598_v17 = vsel %vm1569_vm10, %v1565_v61, %v1236_v58  ;;  %v4047_v58 = vpop.f32.mrf.mxu0  ;;  %v1972_v9 = vadd.f32 %v1971_v15, %v1970_v29 }
 0x267   : > { %v1469_v30 = vsel %vm1437_vm6, %v1436_v21, %v847_v62  ;;  %v1973_v46 = vsel %vm1404_vm5, %v4047_v58, 0.0 }
 0x268   : > { %v4049_v62 = vpop.f32.mrf.mxu0  ;;  %v1974_v38 = vadd.f32 %v1973_v46, %v1972_v9 }
 0x269   : > { %v947_v40 = vpop.permute.xlu1 %946 }
 0x26a   : > { %v1238_v42 = vpop.permute.xlu0 %1237  ;;  %v1501_v55 = vsel %vm1470_vm7, %v1468_v63, %v947_v40  ;;  %v4055_v40 = vpop.f32.mrf.mxu0 }
 0x26b   : > { %v1599_v50 = vsel %vm1569_vm10, %v1566_v25, %v1238_v42  ;;  %v1975_v42 = vsel %vm1404_vm5, %v4041_v32, 0.0  ;;  %v1977_v54 = vsel %vm1404_vm5, %v4055_v40, 0.0 }
 0x26c   : > { %v4057_v47 = vpop.f32.mrf.mxu0  ;;  %v1976_v31 = vadd.f32 %v1975_v42, %v1974_v38 }
 0x26d   : > { %v1332_v35 = vpop.permute.xlu1 %1331  ;;  %v1983_v2 = vsel %vm1404_vm5, %v4057_v47, 0.0 }
 0x26e   : > { %v1631_v7 = vsel %vm1602_vm11, %v1598_v17, %v1332_v35  ;;  %v949_v34 = vpop.permute.xlu0 %948  ;;  %v1978_v0 = vadd.f32 %v1977_v54, %v1976_v31  ;;  %v4063_v61 = vpop.f32.mrf.mxu0  ;;  %v1979_v17 = vsel %vm1404_vm5, %v4049_v62, 0.0 }
 0x26f   : > { %2539 = vmatprep.mubr.msk.f32.mxu1 %vm1640_vm12, %v1631_v7  ;;  %v1502_v13 = vsel %vm1470_vm7, %v1469_v30, %v949_v34  ;;  %v1981_v35 = vsel %vm1404_vm5, %v4063_v61, 0.0 }
 0x270   : > { %v4065_v44 = vpop.f32.mrf.mxu0  ;;  %v1980_v26 = vadd.f32 %v1979_v17, %v1978_v0 }
 0x271   : > { %v1048_v28 = vpop.permute.xlu1 %1047  ;;  %v1987_v5 = vsel %vm1404_vm5, %v4065_v44, 0.0 }
 0x272   : > { %v1334_v6 = vpop.permute.xlu0 %1333  ;;  %v1534_v49 = vsel %vm1503_vm8, %v1501_v55, %v1048_v28  ;;  %v1982_v7 = vadd.f32 %v1981_v35, %v1980_v26  ;;  %v4071_v34 = vpop.f32.mrf.mxu0 }
 0x273   : > { %v1632_v24 = vsel %vm1602_vm11, %v1599_v50, %v1334_v6  ;;  %v1985_v25 = vsel %vm1404_vm5, %v4071_v34, 0.0 }
 0x274   : > { %2540 = vmatmul.mubr.msk.f32.gmra.mxu1 %vm1640_vm12, %v1632_v24  ;;  %v4073_v60 = vpop.f32.mrf.mxu0  ;;  %v1984_v28 = vadd.f32 %v1983_v2, %v1982_v7 }
 0x275   : > { %v1050_v10 = vpop.permute.xlu1 %1049  ;;  %v1991_v30 = vsel %vm1404_vm5, %v4073_v60, 0.0 }
 0x276   : > { %v2584_v12 = vpop.permute.xlu0 %2583  ;;  %v1535_v45 = vsel %vm1503_vm8, %v1502_v13, %v1050_v10  ;;  %v1986_v50 = vadd.f32 %v1985_v25, %v1984_v28  ;;  %v4079_v6 = vpop.f32.mrf.mxu0 }
 0x277   : > { %v2586_v20 = vunpack.i.h.bf16 %v2584_v12  ;;  %v2585_v8 = vunpack.i.l.bf16 %v2584_v12  ;;  %v1989_v39 = vsel %vm1404_vm5, %v4079_v6, 0.0 }
 0x278   : > { %v4081_v24 = vpop.f32.mrf.mxu0  ;;  %v1988_v21 = vadd.f32 %v1987_v5, %v1986_v50 }
 0x279   : > { %v2589_v37 = vpop.permute.xlu1 %2588  ;;  %v1568_v36 = vsel %vm1536_vm9, %v1535_v45, %v2586_v20  ;;  %v1567_v11 = vsel %vm1536_vm9, %v1534_v49, %v2585_v8  ;;  %v1995_v63 = vsel %vm1404_vm5, %v4081_v24, 0.0 }
 0x27a   : > { %v2591_v52 = vunpack.i.h.bf16 %v2589_v37  ;;  %v2590_v27 = vunpack.i.l.bf16 %v2589_v37  ;;  %v2594_v43 = vpop.permute.xlu0 %2593  ;;  %v1990_v10 = vadd.f32 %v1989_v39, %v1988_v21  ;;  %v4087_v1 = vpop.f32.mrf.mxu0 }
 0x27b   : > { %v2596_v4 = vunpack.i.h.bf16 %v2594_v43  ;;  %v2595_v48 = vunpack.i.l.bf16 %v2594_v43  ;;  %v1993_v12 = vsel %vm1404_vm5, %v4087_v1, 0.0 }
 0x27c   : > { %v1600_v23 = vsel %vm1569_vm10, %v1567_v11, %v2590_v27  ;;  %v1601_v53 = vsel %vm1569_vm10, %v1568_v36, %v2591_v52  ;;  %v1992_v14 = vadd.f32 %v1991_v30, %v1990_v10 }
 0x27d   : > { %v1633_v3 = vsel %vm1602_vm11, %v1600_v23, %v2595_v48  ;;  %v1634_v57 = vsel %vm1602_vm11, %v1601_v53, %v2596_v4 }
 0x27e   : > { %2542 = vmatprep.mubr.msk.f32.mxu1 %vm1640_vm12, %v1633_v3  ;;  %v1994_v13 = vadd.f32 %v1993_v12, %v1992_v14 }
 0x27f   : > { %2543 = vmatmul.mubr.msk.f32.gmra.mxu1 %vm1640_vm12, %v1634_v57 }
 0x280   : > { %v1996_v55 = vadd.f32 %v1995_v63, %v1994_v13 }
 0x28c   : > { %v4089_v56 = vpop.f32.mrf.mxu1 }
 0x28d   : > { %v1999_v27 = vsel %vm1404_vm5, %v4089_v56, 0.0 }
 0x28e   : > { %v4095_v20 = vpop.f32.mrf.mxu1 }
 0x28f   : > { %v1997_v45 = vsel %vm1404_vm5, %v4095_v20, 0.0 }
 0x290   : > { %v1998_v37 = vadd.f32 %v1997_v45, %v1996_v55 }
 0x292   : > { %v2000_v36 = vadd.f32 %v1999_v27, %v1998_v37 }
 0x2a8   : > { %v4097_v8 = vpop.f32.mrf.mxu1 }
 0x2a9   : > { %v2003_v23 = vsel %vm1404_vm5, %v4097_v8, 0.0 }
 0x2aa   : > { %v4103_v49 = vpop.f32.mrf.mxu1 }
 0x2ab   : > { %v2001_v43 = vsel %vm1404_vm5, %v4103_v49, 0.0 }
 0x2ac   : > { %v2002_v11 = vadd.f32 %v2001_v43, %v2000_v36 }
 0x2ae   : > { %v2004_v3 = vadd.f32 %v2003_v23, %v2002_v11 }
 0x2c4   : > { %v4105_v52 = vpop.f32.mrf.mxu1 }
 0x2c5   : > { %v2007_v16 = vsel %vm1404_vm5, %v4105_v52, 0.0 }
 0x2c6   : > { %v4111_v4 = vpop.f32.mrf.mxu1 }
 0x2c7   : > { %v2005_v53 = vsel %vm1404_vm5, %v4111_v4, 0.0 }
 0x2c8   : > { %v2006_v57 = vadd.f32 %v2005_v53, %v2004_v3 }
 0x2ca   : > { %v2008_v29 = vadd.f32 %v2007_v16, %v2006_v57 }
 0x2e0   : > { %v4113_v48 = vpop.f32.mrf.mxu1 }
 0x2e1   : > { %v2011_v38 = vsel %vm1404_vm5, %v4113_v48, 0.0 }
 0x2e2   : > { %v4119_v19 = vpop.f32.mrf.mxu1 }
 0x2e3   : > { %v2009_v51 = vsel %vm1404_vm5, %v4119_v19, 0.0 }
 0x2e4   : > { %v2010_v15 = vadd.f32 %v2009_v51, %v2008_v29 }
 0x2e6   : > { %v2012_v54 = vadd.f32 %v2011_v38, %v2010_v15 }
 0x2fc   : > { %v4121_v22 = vpop.f32.mrf.mxu1 }
 0x2fd   : > { %v2015_v17 = vsel %vm1404_vm5, %v4121_v22, 0.0 }
 0x2fe   : > { %v4127_v46 = vpop.f32.mrf.mxu1 }
 0x2ff   : > { %v2013_v42 = vsel %vm1404_vm5, %v4127_v46, 0.0 }
 0x300   : > { %v2014_v31 = vadd.f32 %v2013_v42, %v2012_v54 }
 0x302   : > { %v2016_v7 = vadd.f32 %v2015_v17, %v2014_v31 }
 0x318   : > { %v4129_v9 = vpop.f32.mrf.mxu1 }
 0x319   : > { %v2019_v28 = vsel %vm1404_vm5, %v4129_v9, 0.0 }
 0x31a   : > { %v4135_v0 = vpop.f32.mrf.mxu1 }
 0x31b   : > { %v2017_v35 = vsel %vm1404_vm5, %v4135_v0, 0.0 }
 0x31c   : > { %v2018_v2 = vadd.f32 %v2017_v35, %v2016_v7 }
 0x31e   : > { %v2020_v5 = vadd.f32 %v2019_v28, %v2018_v2 }
 0x334   : > { %v4141_v26 = vpop.f32.mrf.mxu1 }
 0x335   : > { %v2023_v10 = vsel %vm1404_vm5, %v4141_v26, 0.0 }
 0x336   : > { %v4143_v25 = vpop.f32.mrf.mxu1 }
 0x337   : > { %v2021_v50 = vsel %vm1404_vm5, %v4143_v25, 0.0 }
 0x338   : > { %v2022_v39 = vadd.f32 %v2021_v50, %v2020_v5 }
 0x33a   : > { %v2024_v12 = vadd.f32 %v2023_v10, %v2022_v39 }
 0x33f   : > { %v4149_v21 = vpop.f32.mrf.mxu1 }
 0x340   : > { %v2027_v63 = vsel %vm1404_vm5, %v4149_v21, 0.0 }
 0x341   : > { %v4153_v30 = vpop.f32.mrf.mxu1 }
 0x342   : > { %v2025_v14 = vsel %vm1404_vm5, %v4153_v30, 0.0 }
 0x343   : > { %v2026_v13 = vadd.f32 %v2025_v14, %v2024_v12 }
 0x345   : > { %v2028_v45 = vadd.f32 %v2027_v63, %v2026_v13 }
 0x347   : > { %v2029_v55 = vrot.slane %v2028_v45, 4 }
 0x349   : > { %v2030_v37 = vadd.f32 %v2029_v55, %v2028_v45 }
 0x34b   : > { %v2031_v27 = vrot.slane %v2030_v37, 2 }
 0x34d   : > { %v2032_v43 = vadd.f32 %v2031_v27, %v2030_v37 }
 0x34f   : > { %v2033_v36 = vrot.slane %v2032_v43, 1 }
 0x351   : > { %v2034_v11 = vadd.f32 %v2033_v36, %v2032_v43 }
 0x353   : > { %v4159_v23 = vmul.f32 0.00390625, %v2034_v11 }
 0x355   : > { %v4163_v53 = vsub.f32 %v4033_v41, %v4159_v23  ;;  %v4167_v3 = vsub.f32 %v4031_v18, %v4159_v23  ;;  %v4171_v57 = vsub.f32 %v4037_v59, %v4159_v23  ;;  %v4175_v16 = vsub.f32 %v4035_v33, %v4159_v23 }
 0x356   : > { %v4183_v41 = vsub.f32 %v4047_v58, %v4159_v23  ;;  %v4189_v59 = vsub.f32 %v4041_v32, %v4159_v23  ;;  %v4197_v54 = vsub.f32 %v4055_v40, %v4159_v23  ;;  %v4204_v32 = vsub.f32 %v4049_v62, %v4159_v23 }
 0x357   : > { %v2069_v51 = vmul.f32 %v4163_v53, %v4163_v53  ;;  %v2070_v29 = vmul.f32 %v4167_v3, %v4167_v3  ;;  %v2071_v18 = vmul.f32 %v4171_v57, %v4171_v57  ;;  %v2072_v33 = vmul.f32 %v4175_v16, %v4175_v16 }
 0x358   : > { %v2073_v58 = vmul.f32 %v4183_v41, %v4183_v41  ;;  %v2074_v35 = vmul.f32 %v4189_v59, %v4189_v59  ;;  %v4211_v40 = vsub.f32 %v4063_v61, %v4159_v23  ;;  %v2075_v28 = vmul.f32 %v4197_v54, %v4197_v54 }
 0x359   : > { %v2101_v15 = vsel %vm1404_vm5, %v2069_v51, 0.0  ;;  %v2102_v38 = vsel %vm1404_vm5, %v2070_v29, 0.0  ;;  %v2104_v31 = vsel %vm1404_vm5, %v2071_v18, 0.0  ;;  %v2106_v7 = vsel %vm1404_vm5, %v2072_v33, 0.0 }
 0x35a   : > { %v2103_v42 = vadd.f32 %v2102_v38, %v2101_v15  ;;  %v2108_v50 = vsel %vm1404_vm5, %v2073_v58, 0.0  ;;  %v4218_v62 = vsub.f32 %v4057_v47, %v4159_v23  ;;  %v2076_v39 = vmul.f32 %v4204_v32, %v4204_v32 }
 0x35b   : > { %v2110_v10 = vsel %vm1404_vm5, %v2074_v35, 0.0  ;;  %v4225_v61 = vsub.f32 %v4071_v34, %v4159_v23  ;;  %v2077_v14 = vmul.f32 %v4211_v40, %v4211_v40  ;;  %v2112_v13 = vsel %vm1404_vm5, %v2075_v28, 0.0 }
 0x35c   : > { %v2105_v17 = vadd.f32 %v2104_v31, %v2103_v42  ;;  %v4232_v47 = vsub.f32 %v4065_v44, %v4159_v23  ;;  %v2078_v45 = vmul.f32 %v4218_v62, %v4218_v62  ;;  %v2114_v55 = vsel %vm1404_vm5, %v2076_v39, 0.0 }
 0x35d   : > { %v4239_v34 = vsub.f32 %v4079_v6, %v4159_v23  ;;  %v2079_v27 = vmul.f32 %v4225_v61, %v4225_v61  ;;  %v2116_v43 = vsel %vm1404_vm5, %v2077_v14, 0.0  ;;  %v4246_v44 = vsub.f32 %v4073_v60, %v4159_v23 }
 0x35e   : > { %v2107_v2 = vadd.f32 %v2106_v7, %v2105_v17  ;;  %v2080_v11 = vmul.f32 %v4232_v47, %v4232_v47  ;;  %v2118_v51 = vsel %vm1404_vm5, %v2078_v45, 0.0  ;;  %v4253_v6 = vsub.f32 %v4087_v1, %v4159_v23 }
 0x35f   : > { %v2081_v18 = vmul.f32 %v4239_v34, %v4239_v34  ;;  %v2120_v33 = vsel %vm1404_vm5, %v2079_v27, 0.0  ;;  %v4260_v60 = vsub.f32 %v4081_v24, %v4159_v23  ;;  %v2082_v38 = vmul.f32 %v4246_v44, %v4246_v44 }
 0x360   : > { %v2109_v5 = vadd.f32 %v2108_v50, %v2107_v2  ;;  %v2122_v42 = vsel %vm1404_vm5, %v2080_v11, 0.0  ;;  %v4267_v1 = vsub.f32 %v4095_v20, %v4159_v23  ;;  %v2083_v31 = vmul.f32 %v4253_v6, %v4253_v6 }
 0x361   : > { %v2124_v17 = vsel %vm1404_vm5, %v2081_v18, 0.0  ;;  %v4274_v24 = vsub.f32 %v4089_v56, %v4159_v23  ;;  %v2084_v7 = vmul.f32 %v4260_v60, %v4260_v60  ;;  %v2126_v2 = vsel %vm1404_vm5, %v2082_v38, 0.0 }
 0x362   : > { %v2111_v12 = vadd.f32 %v2110_v10, %v2109_v5  ;;  %v4281_v20 = vsub.f32 %v4103_v49, %v4159_v23  ;;  %v2085_v50 = vmul.f32 %v4267_v1, %v4267_v1  ;;  %v2128_v5 = vsel %vm1404_vm5, %v2083_v31, 0.0 }
 0x363   : > { %v4288_v56 = vsub.f32 %v4097_v8, %v4159_v23  ;;  %v2086_v10 = vmul.f32 %v4274_v24, %v4274_v24  ;;  %v4295_v49 = vsub.f32 %v4111_v4, %v4159_v23  ;;  %v4302_v8 = vsub.f32 %v4105_v52, %v4159_v23 }
 0x364   : > { %v2113_v63 = vadd.f32 %v2112_v13, %v2111_v12  ;;  %v2130_v12 = vsel %vm1404_vm5, %v2084_v7, 0.0  ;;  %v2087_v13 = vmul.f32 %v4281_v20, %v4281_v20  ;;  %v4309_v4 = vsub.f32 %v4119_v19, %v4159_v23 }
 0x365   : > { %v4316_v52 = vsub.f32 %v4113_v48, %v4159_v23  ;;  %v4323_v19 = vsub.f32 %v4127_v46, %v4159_v23  ;;  %v4330_v48 = vsub.f32 %v4121_v22, %v4159_v23  ;;  %v4337_v46 = vsub.f32 %v4135_v0, %v4159_v23 }
 0x366   : > { %v2115_v37 = vadd.f32 %v2114_v55, %v2113_v63  ;;  %v2132_v63 = vsel %vm1404_vm5, %v2085_v50, 0.0  ;;  %v2088_v55 = vmul.f32 %v4288_v56, %v4288_v56  ;;  %v4344_v22 = vsub.f32 %v4129_v9, %v4159_v23 }
 0x367   : > { %v4351_v0 = vsub.f32 %v4143_v25, %v4159_v23  ;;  %v2066_v9 = vsub.f32 %v4141_v26, %v4159_v23 }
 0x368   : > { %v2117_v36 = vadd.f32 %v2116_v43, %v2115_v37  ;;  %v2134_v37 = vsel %vm1404_vm5, %v2086_v10, 0.0  ;;  %v2089_v43 = vmul.f32 %v4295_v49, %v4295_v49 }
 0x369   : > { %v2097_v25 = vmul.f32 %v4351_v0, %v4351_v0 }
 0x36a   : > { %v2119_v29 = vadd.f32 %v2118_v51, %v2117_v36  ;;  %v2136_v36 = vsel %vm1404_vm5, %v2087_v13, 0.0  ;;  %v2090_v51 = vmul.f32 %v4302_v8, %v4302_v8 }
 0x36c   : > { %v2121_v15 = vadd.f32 %v2120_v33, %v2119_v29  ;;  %v2138_v29 = vsel %vm1404_vm5, %v2088_v55, 0.0  ;;  %v2091_v33 = vmul.f32 %v4309_v4, %v4309_v4 }
 0x36e   : > { %v2123_v58 = vadd.f32 %v2122_v42, %v2121_v15  ;;  %v2140_v15 = vsel %vm1404_vm5, %v2089_v43, 0.0  ;;  %v2092_v42 = vmul.f32 %v4316_v52, %v4316_v52 }
 0x370   : > { %v2125_v35 = vadd.f32 %v2124_v17, %v2123_v58  ;;  %v2142_v58 = vsel %vm1404_vm5, %v2090_v51, 0.0  ;;  %v2093_v17 = vmul.f32 %v4323_v19, %v4323_v19 }
 0x372   : > { %v2127_v28 = vadd.f32 %v2126_v2, %v2125_v35  ;;  %v2144_v35 = vsel %vm1404_vm5, %v2091_v33, 0.0  ;;  %v2094_v2 = vmul.f32 %v4330_v48, %v4330_v48 }
 0x374   : > { %v2129_v39 = vadd.f32 %v2128_v5, %v2127_v28  ;;  %v2146_v28 = vsel %vm1404_vm5, %v2092_v42, 0.0  ;;  %v2095_v5 = vmul.f32 %v4337_v46, %v4337_v46 }
 0x376   : > { %v2131_v14 = vadd.f32 %v2130_v12, %v2129_v39  ;;  %v2148_v39 = vsel %vm1404_vm5, %v2093_v17, 0.0  ;;  %v2096_v12 = vmul.f32 %v4344_v22, %v4344_v22 }
 0x378   : > { %v2133_v45 = vadd.f32 %v2132_v63, %v2131_v14  ;;  %v2150_v14 = vsel %vm1404_vm5, %v2094_v2, 0.0  ;;  %v2067_v63 = vsub.f32 %v4153_v30, %v4159_v23  ;;  %v2154_v26 = vsel %vm1404_vm5, %v2096_v12, 0.0 }
 0x37a   : > { %v2135_v27 = vadd.f32 %v2134_v37, %v2133_v45  ;;  %v2152_v45 = vsel %vm1404_vm5, %v2095_v5, 0.0  ;;  %v2068_v37 = vsub.f32 %v4149_v21, %v4159_v23 }
 0x37c   : > { %v2137_v11 = vadd.f32 %v2136_v36, %v2135_v27  ;;  %v2098_v27 = vmul.f32 %v2066_v9, %v2066_v9  ;;  %v2099_v36 = vmul.f32 %v2067_v63, %v2067_v63 }
 0x37e   : > { %v2139_v18 = vadd.f32 %v2138_v29, %v2137_v11  ;;  %v2156_v11 = vsel %vm1404_vm5, %v2097_v25, 0.0  ;;  %v2100_v29 = vmul.f32 %v2068_v37, %v2068_v37  ;;  %v2158_v30 = vsel %vm1404_vm5, %v2098_v27, 0.0 }
 0x37f   : > { %v2160_v33 = vsel %vm1404_vm5, %v2099_v36, 0.0 }
 0x380   : > { %v2141_v38 = vadd.f32 %v2140_v15, %v2139_v18 }
 0x382   : > { %v2143_v31 = vadd.f32 %v2142_v58, %v2141_v38  ;;  %v2162_v38 = vsel %vm1404_vm5, %v2100_v29, 0.0 }
 0x384   : > { %v2145_v7 = vadd.f32 %v2144_v35, %v2143_v31 }
 0x386   : > { %v2147_v50 = vadd.f32 %v2146_v28, %v2145_v7 }
 0x388   : > { %v2149_v10 = vadd.f32 %v2148_v39, %v2147_v50 }
 0x38a   : > { %v2151_v13 = vadd.f32 %v2150_v14, %v2149_v10 }
 0x38c   : > { %v2153_v55 = vadd.f32 %v2152_v45, %v2151_v13 }
 0x38e   : > { %v2155_v43 = vadd.f32 %v2154_v26, %v2153_v55 }
 0x390   : > { %v2157_v51 = vadd.f32 %v2156_v11, %v2155_v43 }
 0x392   : > { %v2159_v18 = vadd.f32 %v2158_v30, %v2157_v51 }
 0x394   : > { %v2161_v15 = vadd.f32 %v2160_v33, %v2159_v18 }
 0x396   : > { %v2163_v42 = vadd.f32 %v2162_v38, %v2161_v15 }
 0x398   : > { %v2164_v58 = vrot.slane %v2163_v42, 4 }
 0x39a   : > { %v2165_v21 = vadd.f32 %v2164_v58, %v2163_v42 }
 0x39c   : > { %v2166_v23 = vrot.slane %v2165_v21, 2 }
 0x39e   : > { %v2167_v31 = vadd.f32 %v2166_v23, %v2165_v21  ;;  %v2445_v23 = vld [vmem:[%s4521_s3] ss:$0 sm:$0xff] }
 0x3a0   : > { %v2168_v17 = vrot.slane %v2167_v31, 1 }
 0x3a2   : > { %v2169_v35 = vadd.f32 %v2168_v17, %v2167_v31 }
 0x3a4   : > { %v2170_v7 = vmul.f32 0.00390625, %v2169_v35 }
 0x3a6   : > { %v2171_v2 = vadd.f32 1e-05, %v2170_v7 }
 0x3a8   : > { %2597 = vrsqrt.f32 %v2171_v2 }
 0x3b5   : > { %v2598_v28 = vpop.eup %2597 }
 0x3b6   : > { %v2173_v50 = vmul.f32 %v2598_v28, %v4163_v53  ;;  %v2174_v5 = vmul.f32 %v2598_v28, %v4167_v3  ;;  %v2175_v39 = vmul.f32 %v2598_v28, %v4171_v57  ;;  %v2176_v10 = vmul.f32 %v2598_v28, %v4175_v16 }
 0x3b7   : > { %v2177_v12 = vmul.f32 %v2598_v28, %v4183_v41  ;;  %v2178_v14 = vmul.f32 %v2598_v28, %v4189_v59  ;;  %v2179_v13 = vmul.f32 %v2598_v28, %v4197_v54  ;;  %v2180_v25 = vmul.f32 %v2598_v28, %v4204_v32 }
 0x3b8   : > { %v2181_v45 = vmul.f32 %v2598_v28, %v4211_v40  ;;  %v2182_v55 = vmul.f32 %v2598_v28, %v4218_v62  ;;  %v2183_v53 = vmul.f32 %v2598_v28, %v4225_v61  ;;  %v2184_v3 = vmul.f32 %v2598_v28, %v4232_v47 }
 0x3b9   : > { %v2185_v57 = vmul.f32 %v2598_v28, %v4239_v34  ;;  %v2186_v16 = vmul.f32 %v2598_v28, %v4246_v44  ;;  %v2187_v41 = vmul.f32 %v2598_v28, %v4253_v6  ;;  %v2188_v59 = vmul.f32 %v2598_v28, %v4260_v60  ;;  %v2444_v6 = vld [vmem:[%s4520_s2] ss:$0 sm:$0xff] }
 0x3ba   : > { %v2189_v54 = vmul.f32 %v2598_v28, %v4267_v1  ;;  %v2190_v32 = vmul.f32 %v2598_v28, %v4274_v24  ;;  %v2191_v40 = vmul.f32 %v2598_v28, %v4281_v20  ;;  %v2192_v62 = vmul.f32 %v2598_v28, %v4288_v56 }
 0x3bb   : > { %v2193_v61 = vmul.f32 %v2598_v28, %v4295_v49  ;;  %v2194_v47 = vmul.f32 %v2598_v28, %v4302_v8  ;;  %v2195_v34 = vmul.f32 %v2598_v28, %v4309_v4  ;;  %v2196_v44 = vmul.f32 %v2598_v28, %v4316_v52 }
 0x3bc   : > { %v2197_v60 = vmul.f32 %v2598_v28, %v4323_v19  ;;  %v2198_v1 = vmul.f32 %v2598_v28, %v4330_v48  ;;  %v2199_v24 = vmul.f32 %v2598_v28, %v4337_v46  ;;  %v2200_v20 = vmul.f32 %v2598_v28, %v4344_v22 }
 0x3bd   : > { %v2201_v56 = vmul.f32 %v2598_v28, %v4351_v0  ;;  %v2202_v49 = vmul.f32 %v2598_v28, %v2066_v9  ;;  %v2203_v8 = vmul.f32 %v2598_v28, %v2067_v63  ;;  %v2204_v27 = vmul.f32 %v2598_v28, %v2068_v37 }
 0x3be   : > { %v2212_v4 = vmul.f32 %v2444_v6, %v2173_v50  ;;  %v2213_v26 = vmul.f32 %v2444_v6, %v2174_v5  ;;  %v2214_v52 = vmul.f32 %v2444_v6, %v2175_v39  ;;  %v2215_v43 = vmul.f32 %v2444_v6, %v2176_v10 }
 0x3bf   : > { %v2216_v36 = vmul.f32 %v2444_v6, %v2177_v12  ;;  %v2217_v11 = vmul.f32 %v2444_v6, %v2178_v14  ;;  %v2218_v51 = vmul.f32 %v2444_v6, %v2179_v13  ;;  %v2219_v29 = vmul.f32 %v2444_v6, %v2180_v25 }
 0x3c0   : > { %v2220_v19 = vmul.f32 %v2444_v6, %v2181_v45  ;;  %v2221_v30 = vmul.f32 %v2444_v6, %v2182_v55  ;;  %v2222_v48 = vmul.f32 %v2444_v6, %v2183_v53  ;;  %v2223_v18 = vmul.f32 %v2444_v6, %v2184_v3 }
 0x3c1   : > { %v2224_v46 = vmul.f32 %v2444_v6, %v2185_v57  ;;  %v2225_v33 = vmul.f32 %v2444_v6, %v2186_v16  ;;  %v2226_v22 = vmul.f32 %v2444_v6, %v2187_v41  ;;  %v2227_v15 = vmul.f32 %v2444_v6, %v2188_v59 }
 0x3c2   : > { %v2228_v0 = vmul.f32 %v2444_v6, %v2189_v54  ;;  %v2229_v9 = vmul.f32 %v2444_v6, %v2190_v32  ;;  %v2230_v63 = vmul.f32 %v2444_v6, %v2191_v40  ;;  %v2231_v37 = vmul.f32 %v2444_v6, %v2192_v62 }
 0x3c3   : > { %v2232_v38 = vmul.f32 %v2444_v6, %v2193_v61  ;;  %v2233_v42 = vmul.f32 %v2444_v6, %v2194_v47  ;;  %v2234_v58 = vmul.f32 %v2444_v6, %v2195_v34  ;;  %v2235_v21 = vmul.f32 %v2444_v6, %v2196_v44 }
 0x3c4   : > { %v2236_v31 = vmul.f32 %v2444_v6, %v2197_v60  ;;  %v2237_v17 = vmul.f32 %v2444_v6, %v2198_v1  ;;  %v2238_v35 = vmul.f32 %v2444_v6, %v2199_v24  ;;  %v2239_v7 = vmul.f32 %v2444_v6, %v2200_v20 }
 0x3c5   : > { %v2240_v2 = vmul.f32 %v2444_v6, %v2201_v56  ;;  %v2241_v28 = vmul.f32 %v2444_v6, %v2202_v49  ;;  %v2242_v50 = vmul.f32 %v2444_v6, %v2203_v8  ;;  %v2243_v5 = vmul.f32 %v2444_v6, %v2204_v27 }
 0x3c6   : > { %v2251_v39 = vadd.f32 %v2445_v23, %v2212_v4  ;;  %v2252_v10 = vadd.f32 %v2445_v23, %v2213_v26  ;;  %v2253_v12 = vadd.f32 %v2445_v23, %v2214_v52  ;;  %v2254_v14 = vadd.f32 %v2445_v23, %v2215_v43 }
 0x3c7   : > { %v2255_v13 = vadd.f32 %v2445_v23, %v2216_v36  ;;  %v2256_v25 = vadd.f32 %v2445_v23, %v2217_v11  ;;  %v2257_v45 = vadd.f32 %v2445_v23, %v2218_v51  ;;  %v2258_v55 = vadd.f32 %v2445_v23, %v2219_v29 }
 0x3c8   : > { %v2259_v53 = vadd.f32 %v2445_v23, %v2220_v19  ;;  %v2260_v3 = vadd.f32 %v2445_v23, %v2221_v30  ;;  %v2261_v57 = vadd.f32 %v2445_v23, %v2222_v48  ;;  %v2262_v16 = vadd.f32 %v2445_v23, %v2223_v18 }
 0x3c9   : > { %v2263_v41 = vadd.f32 %v2445_v23, %v2224_v46  ;;  %v2264_v59 = vadd.f32 %v2445_v23, %v2225_v33  ;;  %v2265_v54 = vadd.f32 %v2445_v23, %v2226_v22  ;;  %v2266_v32 = vadd.f32 %v2445_v23, %v2227_v15 }
 0x3ca   : > { %v2267_v40 = vadd.f32 %v2445_v23, %v2228_v0  ;;  %v2268_v62 = vadd.f32 %v2445_v23, %v2229_v9  ;;  %v2269_v61 = vadd.f32 %v2445_v23, %v2230_v63  ;;  %v2270_v47 = vadd.f32 %v2445_v23, %v2231_v37 }
 0x3cb   : > { %v4408_v34 = vadd.f32 %v2445_v23, %v2232_v38  ;;  %v4410_v44 = vadd.f32 %v2445_v23, %v2233_v42  ;;  %v4412_v6 = vadd.f32 %v2445_v23, %v2234_v58  ;;  %v4414_v60 = vadd.f32 %v2445_v23, %v2235_v21 }
 0x3cc   : > { %v4416_v1 = vadd.f32 %v2445_v23, %v2236_v31  ;;  %v4418_v24 = vadd.f32 %v2445_v23, %v2237_v17  ;;  %v4420_v20 = vadd.f32 %v2445_v23, %v2238_v35  ;;  %v4422_v56 = vadd.f32 %v2445_v23, %v2239_v7 }
 0x3cd   : > { %v4431_v49 = vadd.f32 %v2445_v23, %v2240_v2  ;;  %v4433_v8 = vadd.f32 %v2445_v23, %v2241_v28  ;;  %v4435_v27 = vadd.f32 %v2445_v23, %v2242_v50  ;;  %v4437_v4 = vadd.f32 %v2445_v23, %v2243_v5 }
 0x3ce   : > { %v2283_v26 = vmax.f32 %v2251_v39, 0.0  ;;  %v2284_v52 = vmax.f32 %v2252_v10, 0.0  ;;  %v2285_v43 = vmax.f32 %v2253_v12, 0.0  ;;  %v2286_v36 = vmax.f32 %v2254_v14, 0.0 }
 0x3cf   : > { %v2287_v11 = vmax.f32 %v2255_v13, 0.0  ;;  %v2288_v51 = vmax.f32 %v2256_v25, 0.0  ;;  %v2289_v29 = vmax.f32 %v2257_v45, 0.0  ;;  %v2290_v19 = vmax.f32 %v2258_v55, 0.0 }
 0x3d0   : > { %v2291_v30 = vmax.f32 %v2259_v53, 0.0  ;;  %v2292_v48 = vmax.f32 %v2260_v3, 0.0  ;;  %v2293_v18 = vmax.f32 %v2261_v57, 0.0  ;;  %v2294_v46 = vmax.f32 %v2262_v16, 0.0  ;;  %2315 = vst.msk [vmem:[%s4429_s22] sm:$0xff] %vm1404_vm5, %v2283_v26  ;;  %2316 = vst.msk [vmem:[%s4429_s22 + $0x8] sm:$0xff] %vm1404_vm5, %v2284_v52 }
 0x3d1   : > { %2317 = vst.msk [vmem:[%s4429_s22 + $0x10] sm:$0xff] %vm1404_vm5, %v2285_v43  ;;  %2318 = vst.msk [vmem:[%s4429_s22 + $0x18] sm:$0xff] %vm1404_vm5, %v2286_v36  ;;  %v2295_v33 = vmax.f32 %v2263_v41, 0.0  ;;  %v2296_v22 = vmax.f32 %v2264_v59, 0.0  ;;  %v2297_v15 = vmax.f32 %v2265_v54, 0.0  ;;  %v2298_v0 = vmax.f32 %v2266_v32, 0.0 }
 0x3d2   : > { %2319 = vst.msk [vmem:[%s4429_s22 + $0x20] sm:$0xff] %vm1404_vm5, %v2287_v11  ;;  %2320 = vst.msk [vmem:[%s4429_s22 + $0x28] sm:$0xff] %vm1404_vm5, %v2288_v51  ;;  %v2299_v9 = vmax.f32 %v2267_v40, 0.0  ;;  %v2300_v63 = vmax.f32 %v2268_v62, 0.0  ;;  %v2301_v37 = vmax.f32 %v2269_v61, 0.0  ;;  %v2302_v38 = vmax.f32 %v2270_v47, 0.0 }
 0x3d3   : > { %2321 = vst.msk [vmem:[%s4429_s22 + $0x30] sm:$0xff] %vm1404_vm5, %v2289_v29  ;;  %2322 = vst.msk [vmem:[%s4429_s22 + $0x38] sm:$0xff] %vm1404_vm5, %v2290_v19  ;;  %v2303_v42 = vmax.f32 %v4408_v34, 0.0  ;;  %v2304_v58 = vmax.f32 %v4410_v44, 0.0  ;;  %v2305_v21 = vmax.f32 %v4412_v6, 0.0  ;;  %v2306_v23 = vmax.f32 %v4414_v60, 0.0 }
 0x3d4   : > { %2323 = vst.msk [vmem:[%s4429_s22 + $0x40] sm:$0xff] %vm1404_vm5, %v2291_v30  ;;  %2324 = vst.msk [vmem:[%s4429_s22 + $0x48] sm:$0xff] %vm1404_vm5, %v2292_v48  ;;  %v2307_v31 = vmax.f32 %v4416_v1, 0.0  ;;  %v2308_v17 = vmax.f32 %v4418_v24, 0.0  ;;  %v2309_v35 = vmax.f32 %v4420_v20, 0.0  ;;  %v2310_v7 = vmax.f32 %v4422_v56, 0.0 }
 0x3d5   : > { %2325 = vst.msk [vmem:[%s4429_s22 + $0x50] sm:$0xff] %vm1404_vm5, %v2293_v18  ;;  %2326 = vst.msk [vmem:[%s4429_s22 + $0x58] sm:$0xff] %vm1404_vm5, %v2294_v46  ;;  %v2311_v2 = vmax.f32 %v4431_v49, 0.0  ;;  %v2312_v28 = vmax.f32 %v4433_v8, 0.0  ;;  %v2313_v50 = vmax.f32 %v4435_v27, 0.0  ;;  %v2314_v5 = vmax.f32 %v4437_v4, 0.0 }
 0x3d6   : > { %2327 = vst.msk [vmem:[%s4429_s22 + $0x60] sm:$0xff] %vm1404_vm5, %v2295_v33  ;;  %2328 = vst.msk [vmem:[%s4429_s22 + $0x68] sm:$0xff] %vm1404_vm5, %v2296_v22 }
 0x3d7   : > { %2329 = vst.msk [vmem:[%s4429_s22 + $0x70] sm:$0xff] %vm1404_vm5, %v2297_v15  ;;  %2330 = vst.msk [vmem:[%s4429_s22 + $0x78] sm:$0xff] %vm1404_vm5, %v2298_v0 }
 0x3d8   : > { %2331 = vst.msk [vmem:[%s4429_s22 + $0x80] sm:$0xff] %vm1404_vm5, %v2299_v9  ;;  %2332 = vst.msk [vmem:[%s4429_s22 + $0x88] sm:$0xff] %vm1404_vm5, %v2300_v63 }
 0x3d9   : > { %2333 = vst.msk [vmem:[%s4429_s22 + $0x90] sm:$0xff] %vm1404_vm5, %v2301_v37  ;;  %2334 = vst.msk [vmem:[%s4429_s22 + $0x98] sm:$0xff] %vm1404_vm5, %v2302_v38 }
 0x3da   : > { %2335 = vst.msk [vmem:[%s4429_s22 + $0xa0] sm:$0xff] %vm1404_vm5, %v2303_v42  ;;  %2336 = vst.msk [vmem:[%s4429_s22 + $0xa8] sm:$0xff] %vm1404_vm5, %v2304_v58 }
 0x3db   : > { %2337 = vst.msk [vmem:[%s4429_s22 + $0xb0] sm:$0xff] %vm1404_vm5, %v2305_v21  ;;  %2338 = vst.msk [vmem:[%s4429_s22 + $0xb8] sm:$0xff] %vm1404_vm5, %v2306_v23 }
 0x3dc   : > { %2339 = vst.msk [vmem:[%s4429_s22 + $0xc0] sm:$0xff] %vm1404_vm5, %v2307_v31  ;;  %2340 = vst.msk [vmem:[%s4429_s22 + $0xc8] sm:$0xff] %vm1404_vm5, %v2308_v17 }
 0x3dd   : > { %2341 = vst.msk [vmem:[%s4429_s22 + $0xd0] sm:$0xff] %vm1404_vm5, %v2309_v35  ;;  %2342 = vst.msk [vmem:[%s4429_s22 + $0xd8] sm:$0xff] %vm1404_vm5, %v2310_v7 }
 0x3de   : > { %2343 = vst.msk [vmem:[%s4429_s22 + $0xe0] sm:$0xff] %vm1404_vm5, %v2311_v2  ;;  %2344 = vst.msk [vmem:[%s4429_s22 + $0xe8] sm:$0xff] %vm1404_vm5, %v2312_v28 }
 0x3df   : > { %2345 = vst.msk [vmem:[%s4429_s22 + $0xf0] sm:$0xff] %vm1404_vm5, %v2313_v50  ;;  %2346 = vst.msk [vmem:[%s4429_s22 + $0xf8] sm:$0xff] %vm1404_vm5, %v2314_v5 }
 0x3e0 PF: > { %s14_s15 = sadd.s32 1, %s2605_s15  }
 0x3e1   : > { %p11_p4 = scmp.ge.s32.totalorder %s14_s15, 4  }
 0x3e3   :  { %13 = sbr.rel (!%p11_p4) target bundleno = 1 (0x1), region = 66 }

// kernel: net_recurse_forward.9
= control target key start
LH: loop header
LB: loop body
LE: loop exit
PB: predicated region body
PF: predicated region fallthrough
CT: control target
= control target key end

     0   :  { %s2660_s15 = smov 0   ;;  %s4549_s0 = inlined_call_operand.vmem [shape: f32[2,16,16,8], index: 0, kind: input, shape index: {}]   ;;  %s4550_s1 = inlined_call_operand.vmem [shape: f32[72,8], index: 1, kind: input, shape index: {}]   ;;  %s4551_s2 = inlined_call_operand.vmem [shape: f32[1,8], index: 2, kind: input, shape index: {}]   ;;  %s4552_s3 = inlined_call_operand.vmem [shape: f32[1,8], index: 3, kind: input, shape index: {}]   ;;  %s4553_s4 = inlined_call_operand.vmem [shape: f32[2,16,16,8], index: 4, kind: output, shape index: {}]  }
   0x1 LB: > { %s2402_s16 = sadd.s32 4294967295, %s2624_s15   ;;  %p2406_p0 = scmp.ge.s32.totalorder %s2624_s15, 1  ;;  %s2624_s15 = sphi %s2660_s15, %s14_s15  }
   0x2   : > { %p162_p1 = scmp.lt.s32.totalorder %s2624_s15, 3 }
   0x4   : > { %p163_p2 = pnand %p2406_p0, %p162_p1 }
   0x6   : > { %166 = sbr.rel (%p163_p2) target bundleno = 992 (0x3e0), region = 36 }
   0xb   : > { %vm263_vm0 = vcmask 1040384   ;;  %p188_p3 = scmp.lt.s32.totalorder %s2402_s16, 1  ;;  %v2626_v0 = vmov 0.0   ;;  %vm429_vm1 = vcmask 1046528   ;;  %s2627_s21 = smov 8   ;;  %vm606_vm2 = vcmask 1045504  }
   0xc   : > { %v2668_v1 = vrot.slane %v2626_v0, 7  ;;  %s2628_s22 = smov 16   ;;  %s2629_s23 = smov 24   ;;  %vm1371_vm3 = vcmask 64512   ;;  %vm1404_vm4 = vcmask 130048   ;;  %vm1437_vm5 = vcmask 195584  }
   0xd   : > { %s4726_s16 = smov (!%p188_p3, %s2402_s16), 1  ;;  %s2630_s24 = smov 32   ;;  %vm1470_vm6 = vcmask 261120   ;;  %vm1503_vm7 = vcmask 326656   ;;  %vm1536_vm8 = vcmask 392192   ;;  %vm1569_vm9 = vcmask 457728  }
   0xe   : > { %4615 = vst [vmem:[#allocation2_spill] sm:$0xff] %v2668_v1  ;;  %v2674_v2 = vsel %vm263_vm0, 0.0, %v2668_v1  ;;  %v2678_v3 = vsel %vm263_vm0, %v2668_v1, 0.0  ;;  %v431_v4 = vrot.slane %v2668_v1, 1  ;;  %s2447_s17 = sshll.u32 %s4726_s16, 8  ;;  %s2631_s29 = smov 40  }
   0xf   : > { %4616 = vst [vmem:[#allocation3_spill] sm:$0xff] %v2674_v2  ;;  %v430_v5 = vrot.slane %v2674_v2, 1  ;;  %v433_v6 = vrot.slane %v2678_v3, 1  ;;  %s2689_s20 = scalar_lea.vmem %s4549_s0, %s2447_s17  ;;  %s2632_s10 = smov 48   ;;  %vm1602_vm10 = vcmask 523264   ;;  %vm1644_vm11 = vcmask 588800  }
  0x10   : > { %v198_v9 = vld [vmem:[%s2689_s20] sm:$0xff]  ;;  %v199_v10 = vld [vmem:[%s2689_s20 + $0x8] sm:$0xff]  ;;  %v200_v11 = vld [vmem:[%s2689_s20 + $0x10] sm:$0xff]  ;;  %s2634_s27 = smov 64   ;;  %s4460_s30 = scalar_lea.vmem %s4553_s4, %s2447_s17 }
  0x11   : > { %v432_v7 = vsel %vm429_vm1, %v430_v5, %v431_v4  ;;  %v434_v8 = vsel %vm429_vm1, %v431_v4, %v433_v6  ;;  %v266_v13 = vrot.slane %v198_v9, 7  ;;  %v267_v14 = vrot.slane %v199_v10, 7  ;;  %v201_v15 = vld [vmem:[%s2689_s20 + $0x18] sm:$0xff]  ;;  %v202_v16 = vld [vmem:[%s2689_s20 + $0x20] sm:$0xff]  ;;  %v203_v17 = vld [vmem:[%s2689_s20 + $0x28] sm:$0xff] }
  0x12   : > { %v2696_v12 = vpack.i.bf16 %v434_v8, %v432_v7  ;;  %v269_v18 = vrot.slane %v200_v11, 7  ;;  %v270_v19 = vrot.slane %v201_v15, 7  ;;  %v272_v20 = vrot.slane %v202_v16, 7  ;;  %v204_v22 = vld [vmem:[%s2689_s20 + $0x30] sm:$0xff]  ;;  %v205_v31 = vld [vmem:[%s2689_s20 + $0x38] sm:$0xff]  ;;  %v206_v40 = vld [vmem:[%s2689_s20 + $0x40] sm:$0xff] }
  0x13   : > { %v273_v21 = vrot.slane %v203_v17, 7  ;;  %v2705_v23 = vsel %vm263_vm0, %v266_v13, %v267_v14  ;;  %v2708_v24 = vsel %vm263_vm0, %v267_v14, 0.0  ;;  %v2711_v25 = vsel %vm263_vm0, 0.0, %v266_v13  ;;  %v207_v49 = vld [vmem:[%s2689_s20 + $0x48] sm:$0xff]  ;;  %v208_v50 = vld [vmem:[%s2689_s20 + $0x50] sm:$0xff]  ;;  %v209_v55 = vld [vmem:[%s2689_s20 + $0x58] sm:$0xff] }
  0x14   : > { %4617 = vst [vmem:[#allocation4_spill] sm:$0xff] %v2696_v12  ;;  %2592 = vrot.lane.b32.xlu0 %v2696_v12, %s2627_s21  ;;  %v275_v26 = vrot.slane %v204_v22, 7  ;;  %v436_v27 = vrot.slane %v2705_v23, 1  ;;  %v438_v28 = vrot.slane %v2708_v24, 1  ;;  %v435_v29 = vrot.slane %v2711_v25, 1  ;;  %v210_v4 = vld [vmem:[%s2689_s20 + $0x60] sm:$0xff] }
  0x15   : > { %v2717_v30 = vsel %vm263_vm0, %v269_v18, %v270_v19  ;;  %v2721_v32 = vsel %vm263_vm0, 0.0, %v269_v18  ;;  %v2725_v34 = vsel %vm263_vm0, %v270_v19, 0.0  ;;  %v2728_v35 = vsel %vm263_vm0, %v272_v20, %v273_v21  ;;  %v211_v5 = vld [vmem:[%s2689_s20 + $0x68] sm:$0xff]  ;;  %v212_v19 = vld [vmem:[%s2689_s20 + $0x70] sm:$0xff] }
  0x16   : > { %v441_v33 = vrot.slane %v2717_v30, 1  ;;  %v2731_v36 = vsel %vm429_vm1, %v436_v27, %v438_v28  ;;  %v2734_v37 = vsel %vm429_vm1, %v435_v29, %v436_v27  ;;  %v440_v38 = vrot.slane %v2721_v32, 1  ;;  %v220_v12 = vld [vmem:[%s2689_s20 + $0xb0] sm:$0xff] }
  0x17   : > { %v443_v39 = vrot.slane %v2725_v34, 1  ;;  %516 = vrot.lane.b32.xlu1 %v2731_v36, %s2627_s21  ;;  %v2744_v41 = vsel %vm263_vm0, 0.0, %v272_v20  ;;  %v446_v42 = vrot.slane %v2728_v35, 1  ;;  %v2748_v43 = vsel %vm263_vm0, %v273_v21, 0.0  ;;  %v213_v20 = vld [vmem:[%s2689_s20 + $0x78] sm:$0xff] }
  0x18   : > { %514 = vrot.lane.b32.xlu0 %v2734_v37, %s2627_s21  ;;  %v276_v44 = vrot.slane %v205_v31, 7  ;;  %v2751_v45 = vsel %vm429_vm1, %v440_v38, %v441_v33  ;;  %v445_v47 = vrot.slane %v2744_v41, 1  ;;  %v448_v48 = vrot.slane %v2748_v43, 1 }
  0x19   : > { %v2754_v46 = vsel %vm429_vm1, %v441_v33, %v443_v39  ;;  %v2764_v52 = vsel %vm263_vm0, 0.0, %v275_v26  ;;  %v278_v54 = vrot.slane %v206_v40, 7  ;;  %v279_v58 = vrot.slane %v207_v49, 7  ;;  %v214_v39 = vld [vmem:[%s2689_s20 + $0x80] sm:$0xff]  ;;  %v215_v40 = vld [vmem:[%s2689_s20 + $0x88] sm:$0xff] }
  0x1a   : > { %v2761_v51 = vsel %vm263_vm0, %v275_v26, %v276_v44  ;;  %v2767_v53 = vsel %vm263_vm0, %v276_v44, 0.0  ;;  %v2771_v56 = vsel %vm429_vm1, %v445_v47, %v446_v42  ;;  %v2778_v57 = vsel %vm429_vm1, %v446_v42, %v448_v48 }
  0x1b   : > { %518 = vrot.lane.b32.xlu1 %v2751_v45, %s2627_s21  ;;  %v2781_v59 = vsel %vm263_vm0, 0.0, %v278_v54  ;;  %v281_v60 = vrot.slane %v208_v50, 7  ;;  %v450_v61 = vrot.slane %v2764_v52, 1  ;;  %v451_v62 = vrot.slane %v2761_v51, 1 }
  0x1c   : > { %520 = vrot.lane.b32.xlu0 %v2754_v46, %s2627_s21  ;;  %v453_v63 = vrot.slane %v2767_v53, 1  ;;  %v282_v0 = vrot.slane %v209_v55, 7  ;;  %v2789_v6 = vsel %vm263_vm0, %v278_v54, %v279_v58  ;;  %v2792_v7 = vsel %vm263_vm0, %v279_v58, 0.0  ;;  %v216_v54 = vld [vmem:[%s2689_s20 + $0x90] sm:$0xff] }
  0x1d   : > { %v455_v8 = vrot.slane %v2781_v59, 1  ;;  %v456_v9 = vrot.slane %v2789_v6, 1  ;;  %v2801_v10 = vsel %vm263_vm0, 0.0, %v281_v60  ;;  %v284_v11 = vrot.slane %v210_v4, 7 }
  0x1e   : > { %v285_v13 = vrot.slane %v211_v5, 7  ;;  %v2804_v14 = vsel %vm429_vm1, %v450_v61, %v451_v62  ;;  %v2807_v15 = vsel %vm429_vm1, %v451_v62, %v453_v63  ;;  %v458_v16 = vrot.slane %v2792_v7, 1  ;;  %v217_v63 = vld [vmem:[%s2689_s20 + $0x98] sm:$0xff] }
  0x1f   : > { %522 = vrot.lane.b32.xlu1 %v2771_v56, %s2627_s21  ;;  %v2811_v17 = vsel %vm263_vm0, %v281_v60, %v282_v0  ;;  %v2814_v18 = vsel %vm263_vm0, %v282_v0, 0.0  ;;  %v460_v21 = vrot.slane %v2801_v10, 1  ;;  %v2824_v22 = vsel %vm429_vm1, %v455_v8, %v456_v9 }
  0x20   : > { %524 = vrot.lane.b32.xlu0 %v2778_v57, %s2627_s21  ;;  %v461_v26 = vrot.slane %v2811_v17, 1  ;;  %v2828_v27 = vsel %vm263_vm0, %v284_v11, %v285_v13  ;;  %v2831_v28 = vsel %vm263_vm0, 0.0, %v284_v11  ;;  %v2834_v29 = vsel %vm429_vm1, %v456_v9, %v458_v16 }
  0x21   : > { %v463_v31 = vrot.slane %v2814_v18, 1  ;;  %v287_v33 = vrot.slane %v212_v19, 7  ;;  %v288_v38 = vrot.slane %v213_v20, 7  ;;  %v2840_v42 = vsel %vm263_vm0, %v285_v13, 0.0 }
  0x22   : > { %v465_v44 = vrot.slane %v2831_v28, 1  ;;  %v466_v47 = vrot.slane %v2828_v27, 1  ;;  %v2849_v48 = vsel %vm429_vm1, %v460_v21, %v461_v26  ;;  %v290_v49 = vrot.slane %v214_v39, 7  ;;  %v218_v21 = vld [vmem:[%s2689_s20 + $0xa0] sm:$0xff] }
  0x23   : > { %526 = vrot.lane.b32.xlu1 %v2804_v14, %s2627_s21  ;;  %v291_v50 = vrot.slane %v215_v40, 7  ;;  %v2853_v55 = vsel %vm429_vm1, %v461_v26, %v463_v31  ;;  %v468_v58 = vrot.slane %v2840_v42, 1  ;;  %v2857_v60 = vsel %vm263_vm0, %v287_v33, %v288_v38  ;;  %v219_v26 = vld [vmem:[%s2689_s20 + $0xa8] sm:$0xff] }
  0x24   : > { %528 = vrot.lane.b32.xlu0 %v2807_v15, %s2627_s21  ;;  %v2860_v61 = vsel %vm263_vm0, 0.0, %v287_v33  ;;  %v2863_v62 = vsel %vm263_vm0, %v288_v38, 0.0  ;;  %v2867_v0 = vsel %vm429_vm1, %v465_v44, %v466_v47  ;;  %v293_v4 = vrot.slane %v216_v54, 7 }
  0x25   : > { %v470_v5 = vrot.slane %v2860_v61, 1  ;;  %v471_v8 = vrot.slane %v2857_v60, 1  ;;  %v2876_v9 = vsel %vm263_vm0, %v290_v49, %v291_v50  ;;  %v2879_v11 = vsel %vm263_vm0, 0.0, %v290_v49 }
  0x26   : > { %4618 = vst [vmem:[#allocation5_spill] sm:$0xff] %v2876_v9  ;;  %v2882_v13 = vsel %vm429_vm1, %v466_v47, %v468_v58  ;;  %v473_v16 = vrot.slane %v2863_v62, 1  ;;  %v2886_v19 = vsel %vm263_vm0, %v291_v50, 0.0  ;;  %v294_v20 = vrot.slane %v217_v63, 7 }
  0x27   : > { %530 = vrot.lane.b32.xlu1 %v2824_v22, %s2627_s21  ;;  %4619 = vst [vmem:[#allocation6_spill] sm:$0xff] %v2886_v19  ;;  %v608_v31 = vrot.slane %v2668_v1, 2  ;;  %v610_v33 = vrot.slane %v2678_v3, 2  ;;  %v475_v38 = vrot.slane %v2879_v11, 1  ;;  %v476_v39 = vrot.slane %v2876_v9, 1 }
  0x28   : > { %532 = vrot.lane.b32.xlu0 %v2834_v29, %s2627_s21  ;;  %v607_v40 = vrot.slane %v2674_v2, 2  ;;  %v2900_v44 = vsel %vm429_vm1, %v470_v5, %v471_v8  ;;  %v478_v47 = vrot.slane %v2886_v19, 1  ;;  %v2904_v49 = vsel %vm263_vm0, 0.0, %v293_v4  ;;  %v221_v5 = vld [vmem:[%s2689_s20 + $0xb8] sm:$0xff] }
  0x29   : > { %4620 = vst [vmem:[#allocation7_spill] sm:$0xff] %v2904_v49  ;;  %v296_v3 = vrot.slane %v218_v21, 7  ;;  %v2907_v50 = vsel %vm429_vm1, %v471_v8, %v473_v16  ;;  %v2910_v54 = vsel %vm263_vm0, %v293_v4, %v294_v20  ;;  %v2913_v58 = vsel %vm263_vm0, %v294_v20, 0.0 }
  0x2a   : > { %4621 = vst [vmem:[#allocation8_spill] sm:$0xff] %v2910_v54  ;;  %4622 = vst [vmem:[#allocation9_spill] sm:$0xff] %v2913_v58  ;;  %v297_v63 = vrot.slane %v219_v26, 7  ;;  %v2918_v9 = vsel %vm429_vm1, %v475_v38, %v476_v39  ;;  %v480_v19 = vrot.slane %v2904_v49, 1  ;;  %v609_v21 = vsel %vm606_vm2, %v607_v40, %v608_v31  ;;  %v222_v49 = vld [vmem:[%s2689_s20 + $0xc0] sm:$0xff] }
  0x2b   : > { %534 = vrot.lane.b32.xlu1 %v2849_v48, %s2627_s21  ;;  %4623 = vst [vmem:[#allocation10_spill] sm:$0xff] %v2918_v9  ;;  %v611_v8 = vsel %vm606_vm2, %v608_v31, %v610_v33  ;;  %v2928_v4 = vsel %vm429_vm1, %v476_v39, %v478_v47  ;;  %v481_v16 = vrot.slane %v2910_v54, 1  ;;  %v483_v20 = vrot.slane %v2913_v58, 1  ;;  %v223_v54 = vld [vmem:[%s2689_s20 + $0xc8] sm:$0xff] }
  0x2c   : > { %536 = vrot.lane.b32.xlu0 %v2853_v55, %s2627_s21  ;;  %4624 = vst [vmem:[#allocation11_spill] sm:$0xff] %v2928_v4  ;;  %v2933_v26 = vsel %vm263_vm0, 0.0, %v296_v3  ;;  %v2936_v38 = vsel %vm263_vm0, %v296_v3, %v297_v63  ;;  %v2939_v31 = vsel %vm263_vm0, %v297_v63, 0.0  ;;  %v299_v33 = vrot.slane %v220_v12, 7 }
  0x2d   : > { %4625 = vst [vmem:[#allocation12_spill] sm:$0xff] %v2933_v26  ;;  %4626 = vst [vmem:[#allocation13_spill] sm:$0xff] %v2936_v38  ;;  %v300_v40 = vrot.slane %v221_v5, 7  ;;  %v2942_v39 = vpack.i.bf16 %v611_v8, %v609_v21  ;;  %v485_v47 = vrot.slane %v2933_v26, 1  ;;  %v2951_v3 = vsel %vm429_vm1, %v480_v19, %v481_v16 }
  0x2e   : > { %4627 = vst [vmem:[#allocation14_spill] sm:$0xff] %v2939_v31  ;;  %4629 = vst [vmem:[#allocation16_spill] sm:$0xff] %v2951_v3  ;;  %v2954_v12 = vsel %vm429_vm1, %v481_v16, %v483_v20  ;;  %v486_v63 = vrot.slane %v2936_v38, 1  ;;  %v488_v5 = vrot.slane %v2939_v31, 1  ;;  %v2962_v8 = vsel %vm263_vm0, 0.0, %v299_v33  ;;  %v225_v16 = vld [vmem:[%s2689_s20 + $0xd8] sm:$0xff] }
  0x2f   : > { %538 = vrot.lane.b32.xlu1 %v2867_v0, %s2627_s21  ;;  %4628 = vst [vmem:[#allocation15_spill] sm:$0xff] %v2942_v39  ;;  %4630 = vst [vmem:[#allocation17_spill] sm:$0xff] %v2954_v12  ;;  %v2959_v21 = vsel %vm263_vm0, %v299_v33, %v300_v40  ;;  %v2965_v26 = vsel %vm263_vm0, %v300_v40, 0.0  ;;  %v302_v58 = vrot.slane %v222_v49, 7  ;;  %v303_v19 = vrot.slane %v223_v54, 7 }
  0x30   : > { %540 = vrot.lane.b32.xlu0 %v2882_v13, %s2627_s21  ;;  %4631 = vst [vmem:[#allocation18_spill] sm:$0xff] %v2959_v21  ;;  %4632 = vst [vmem:[#allocation19_spill] sm:$0xff] %v2962_v8  ;;  %v2974_v20 = vsel %vm429_vm1, %v485_v47, %v486_v63  ;;  %v490_v33 = vrot.slane %v2962_v8, 1  ;;  %v491_v31 = vrot.slane %v2959_v21, 1  ;;  %v493_v40 = vrot.slane %v2965_v26, 1  ;;  %v227_v8 = vld [vmem:[%s2689_s20 + $0xe8] sm:$0xff] }
  0x31   : > { %4633 = vst [vmem:[#allocation20_spill] sm:$0xff] %v2965_v26  ;;  %v2980_v49 = vsel %vm429_vm1, %v486_v63, %v488_v5  ;;  %v2983_v54 = vsel %vm263_vm0, 0.0, %v302_v58  ;;  %v2990_v47 = vsel %vm263_vm0, %v303_v19, 0.0 }
  0x32   : > { %4634 = vst [vmem:[#allocation21_spill] sm:$0xff] %v2980_v49  ;;  %4635 = vst [vmem:[#allocation22_spill] sm:$0xff] %v2983_v54  ;;  %v2998_v63 = vsel %vm429_vm1, %v490_v33, %v491_v31  ;;  %v495_v5 = vrot.slane %v2983_v54, 1  ;;  %v309_v33 = vrot.slane %v227_v8, 7 }
  0x33   : > { %542 = vrot.lane.b32.xlu1 %v2900_v44, %s2627_s21  ;;  %4637 = vst [vmem:[#allocation24_spill] sm:$0xff] %v2990_v47 }
  0x34   : > { %544 = vrot.lane.b32.xlu0 %v2907_v50, %s2627_s21 }
  0x37   : > { %546 = vrot.lane.b32.xlu1 %v2918_v9, %s2627_s21  ;;  %v226_v9 = vld [vmem:[%s2689_s20 + $0xe0] sm:$0xff] }
  0x38   : > { %548 = vrot.lane.b32.xlu0 %v2928_v4, %s2627_s21  ;;  %v224_v4 = vld [vmem:[%s2689_s20 + $0xd0] sm:$0xff] }
  0x39   : > { %v305_v38 = vrot.slane %v224_v4, 7  ;;  %v3001_v4 = vsel %vm429_vm1, %v491_v31, %v493_v40 }
  0x3a   : > { %4638 = vst [vmem:[#allocation25_spill] sm:$0xff] %v3001_v4 }
  0x3b   : > { %550 = vrot.lane.b32.xlu1 %v2951_v3, %s2627_s21  ;;  %v306_v3 = vrot.slane %v225_v16, 7  ;;  %v3010_v21 = vsel %vm263_vm0, 0.0, %v305_v38 }
  0x3c   : > { %552 = vrot.lane.b32.xlu0 %v2954_v12, %s2627_s21  ;;  %v2987_v12 = vsel %vm263_vm0, %v302_v58, %v303_v19  ;;  %v308_v58 = vrot.slane %v226_v9, 7  ;;  %v498_v19 = vrot.slane %v2990_v47, 1  ;;  %4640 = vst [vmem:[#allocation27_spill] sm:$0xff] %v3010_v21  ;;  %v500_v9 = vrot.slane %v3010_v21, 1 }
  0x3d   : > { %4636 = vst [vmem:[#allocation23_spill] sm:$0xff] %v2987_v12  ;;  %v496_v16 = vrot.slane %v2987_v12, 1  ;;  %v3007_v26 = vsel %vm263_vm0, %v305_v38, %v306_v3  ;;  %v3035_v12 = vsel %vm263_vm0, %v309_v33, 0.0 }
  0x3e   : > { %4639 = vst [vmem:[#allocation26_spill] sm:$0xff] %v3007_v26  ;;  %v501_v31 = vrot.slane %v3007_v26, 1  ;;  %v3029_v8 = vsel %vm263_vm0, 0.0, %v308_v58  ;;  %v3032_v47 = vsel %vm263_vm0, %v308_v58, %v309_v33  ;;  %4646 = vst [vmem:[#allocation33_spill] sm:$0xff] %v3035_v12 }
  0x3f   : > { %554 = vrot.lane.b32.xlu1 %v2974_v20, %s2627_s21  ;;  %v3022_v40 = vsel %vm429_vm1, %v495_v5, %v496_v16  ;;  %v3025_v38 = vsel %vm429_vm1, %v496_v16, %v498_v19  ;;  %4644 = vst [vmem:[#allocation31_spill] sm:$0xff] %v3029_v8  ;;  %4645 = vst [vmem:[#allocation32_spill] sm:$0xff] %v3032_v47  ;;  %v505_v5 = vrot.slane %v3029_v8, 1  ;;  %v506_v58 = vrot.slane %v3032_v47, 1 }
  0x40   : > { %556 = vrot.lane.b32.xlu0 %v2980_v49, %s2627_s21  ;;  %v3013_v49 = vsel %vm263_vm0, %v306_v3, 0.0  ;;  %4642 = vst [vmem:[#allocation29_spill] sm:$0xff] %v3022_v40  ;;  %4643 = vst [vmem:[#allocation30_spill] sm:$0xff] %v3025_v38  ;;  %v3043_v16 = vsel %vm429_vm1, %v500_v9, %v501_v31  ;;  %v612_v9 = vrot.slane %v2711_v25, 2 }
  0x41   : > { %4641 = vst [vmem:[#allocation28_spill] sm:$0xff] %v3013_v49  ;;  %v503_v3 = vrot.slane %v3013_v49, 1  ;;  %4647 = vst [vmem:[#allocation34_spill] sm:$0xff] %v3043_v16  ;;  %v508_v49 = vrot.slane %v3035_v12, 1  ;;  %v3055_v33 = vsel %vm429_vm1, %v505_v5, %v506_v58  ;;  %v615_v5 = vrot.slane %v2708_v24, 2 }
  0x42   : > { %4649 = vst [vmem:[#allocation36_spill] sm:$0xff] %v3055_v33  ;;  %v628_v12 = vrot.slane %v2761_v51, 2 }
  0x43   : > { %558 = vrot.lane.b32.xlu1 %v2998_v63, %s2627_s21  ;;  %v3046_v19 = vsel %vm429_vm1, %v501_v31, %v503_v3  ;;  %v3058_v8 = vsel %vm429_vm1, %v506_v58, %v508_v49  ;;  %v613_v31 = vrot.slane %v2705_v23, 2  ;;  %v1643_v49 = vld [vmem:[%s4550_s1 + $0x40] sm:$0xff]  ;;  %v1642_v58 = vld [vmem:[%s4550_s1 + $0x38] sm:$0xff] }
  0x44   : > { %560 = vrot.lane.b32.xlu0 %v3001_v4, %s2627_s21  ;;  %4648 = vst [vmem:[#allocation35_spill] sm:$0xff] %v3046_v19  ;;  %4650 = vst [vmem:[#allocation37_spill] sm:$0xff] %v3058_v8  ;;  %2490 = vmatprep.subr.mxu0 %v1643_v49 }
  0x45   : > { %v614_v3 = vsel %vm606_vm2, %v612_v9, %v613_v31  ;;  %2556 = vmatprep.subr.mxu1 %v1643_v49  ;;  %2491 = vmatpush3.msra.mxu0 %v1643_v49  ;;  %v616_v24 = vsel %vm606_vm2, %v613_v31, %v615_v5  ;;  %v1640_v9 = vld [vmem:[%s4550_s1 + $0x28] sm:$0xff]  ;;  %v1638_v31 = vld [vmem:[%s4550_s1 + $0x18] sm:$0xff]  ;;  %v1635_v5 = vld [vmem:[%s4550_s1] sm:$0xff] }
  0x46   : > { %2565 = vmatpush3.msra.mxu1 %v1643_v49  ;;  %2492 = vmatprep.subr.mxu0 %v1642_v58  ;;  %v1637_v49 = vld [vmem:[%s4550_s1 + $0x10] sm:$0xff] }
  0x47   : > { %562 = vrot.lane.b32.xlu1 %v3022_v40, %s2627_s21  ;;  %2557 = vmatprep.subr.mxu1 %v1642_v58 }
  0x48   : > { %564 = vrot.lane.b32.xlu0 %v3025_v38, %s2627_s21  ;;  %2493 = vmatpush3.msra.mxu0 %v1642_v58  ;;  %v637_v38 = vrot.slane %v2801_v10, 2 }
  0x49   : > { %2566 = vmatpush3.msra.mxu1 %v1642_v58  ;;  %v617_v58 = vrot.slane %v2721_v32, 2 }
  0x4b   : > { %566 = vrot.lane.b32.xlu1 %v3043_v16, %s2627_s21 }
  0x4c   : > { %568 = vrot.lane.b32.xlu0 %v3046_v19, %s2627_s21  ;;  %v630_v19 = vrot.slane %v2767_v53, 2 }
  0x4f   : > { %570 = vrot.lane.b32.xlu1 %v3055_v33, %s2627_s21 }
  0x50   : > { %572 = vrot.lane.b32.xlu0 %v3058_v8, %s2627_s21  ;;  %s2633_s21 = smov 56  }
  0x53   : > { %2597 = vrot.lane.b32.xlu1 %v2942_v39, %s2628_s22 }
  0x54   : > { %784 = vrot.lane.b32.xlu0 %v2711_v25, %s2629_s23 }
  0x57   : > { %786 = vrot.lane.b32.xlu1 %v2705_v23, %s2629_s23 }
  0x58   : > { %886 = vrot.lane.b32.xlu0 %v2734_v37, %s2630_s24  ;;  %v1641_v37 = vld [vmem:[%s4550_s1 + $0x30] sm:$0xff] }
  0x59   : > { %2494 = vmatprep.subr.mxu0 %v1641_v37  ;;  %2558 = vmatprep.subr.mxu1 %v1641_v37 }
  0x5a   : > { %2495 = vmatpush3.msra.mxu0 %v1641_v37  ;;  %2567 = vmatpush3.msra.mxu1 %v1641_v37  ;;  %v618_v37 = vrot.slane %v2717_v30, 2 }
  0x5b   : > { %888 = vrot.lane.b32.xlu1 %v2731_v36, %s2630_s24  ;;  %2496 = vmatprep.subr.mxu0 %v1640_v9  ;;  %v1639_v36 = vld [vmem:[%s4550_s1 + $0x20] sm:$0xff] }
  0x5c   : > { %987 = vrot.lane.b32.xlu0 %v614_v3, %s2631_s29  ;;  %2559 = vmatprep.subr.mxu1 %v1640_v9 }
  0x5d   : > { %2497 = vmatpush3.msra.mxu0 %v1640_v9  ;;  %2568 = vmatpush3.msra.mxu1 %v1640_v9  ;;  %v620_v9 = vrot.slane %v2725_v34, 2 }
  0x5e   : > { %2498 = vmatprep.subr.mxu0 %v1639_v36  ;;  %2560 = vmatprep.subr.mxu1 %v1639_v36 }
  0x5f   : > { %691 = vrot.lane.b32.xlu1 %v614_v3, %s2628_s22  ;;  %2499 = vmatpush3.msra.mxu0 %v1639_v36  ;;  %v1636_v3 = vld [vmem:[%s4550_s1 + $0x8] sm:$0xff] }
  0x60   : > { %989 = vrot.lane.b32.xlu0 %v616_v24, %s2631_s29  ;;  %2569 = vmatpush3.msra.mxu1 %v1639_v36  ;;  %v621_v36 = vsel %vm606_vm2, %v618_v37, %v620_v9 }
  0x61   : > { %2500 = vmatprep.subr.mxu0 %v1638_v31  ;;  %2561 = vmatprep.subr.mxu1 %v1638_v31 }
  0x62   : > { %2501 = vmatpush3.msra.mxu0 %v1638_v31  ;;  %2570 = vmatpush3.msra.mxu1 %v1638_v31 }
  0x63   : > { %1083 = vrot.lane.b32.xlu1 %v2721_v32, %s2632_s10  ;;  %2502 = vmatprep.subr.mxu0 %v1637_v49 }
  0x64   : > { %693 = vrot.lane.b32.xlu0 %v616_v24, %s2628_s22  ;;  %2562 = vmatprep.subr.mxu1 %v1637_v49  ;;  %v619_v24 = vsel %vm606_vm2, %v617_v58, %v618_v37 }
  0x65   : > { %2503 = vmatpush3.msra.mxu0 %v1637_v49  ;;  %2571 = vmatpush3.msra.mxu1 %v1637_v49 }
  0x66   : > { %2504 = vmatprep.subr.mxu0 %v1636_v3  ;;  %2563 = vmatprep.subr.mxu1 %v1636_v3 }
  0x67   : > { %788 = vrot.lane.b32.xlu1 %v2721_v32, %s2629_s23  ;;  %2505 = vmatpush3.msra.mxu0 %v1636_v3 }
  0x68   : > { %1085 = vrot.lane.b32.xlu0 %v2717_v30, %s2632_s10  ;;  %2572 = vmatpush3.msra.mxu1 %v1636_v3 }
  0x69   : > { %2506 = vmatprep.subr.mxu0 %v1635_v5  ;;  %2564 = vmatprep.subr.mxu1 %v1635_v5 }
  0x6a   : > { %2507 = vmatpush3.msra.mxu0 %v1635_v5  ;;  %2573 = vmatpush3.msra.mxu1 %v1635_v5  ;;  %v625_v5 = vrot.slane %v2748_v43, 2 }
  0x6b   : > { %1179 = vrot.lane.b32.xlu1 %v2751_v45, %s2633_s21 }
  0x6c   : > { %790 = vrot.lane.b32.xlu0 %v2717_v30, %s2629_s23 }
  0x6f   : > { %890 = vrot.lane.b32.xlu1 %v2751_v45, %s2630_s24  ;;  %v622_v45 = vrot.slane %v2744_v41, 2 }
  0x70   : > { %1181 = vrot.lane.b32.xlu0 %v2754_v46, %s2633_s21 }
  0x73   : > { %1275 = vrot.lane.b32.xlu1 %v619_v24, %s2634_s27 }
  0x74   : > { %892 = vrot.lane.b32.xlu0 %v2754_v46, %s2630_s24  ;;  %v623_v46 = vrot.slane %v2728_v35, 2 }
  0x76   : > { %v624_v3 = vsel %vm606_vm2, %v622_v45, %v623_v46 }
  0x77   : > { %991 = vrot.lane.b32.xlu1 %v619_v24, %s2631_s29 }
  0x78   : > { %1277 = vrot.lane.b32.xlu0 %v621_v36, %s2634_s27 }
  0x7b   : > { %695 = vrot.lane.b32.xlu1 %v619_v24, %s2628_s22  ;;  %v626_v24 = vsel %vm606_vm2, %v623_v46, %v625_v5 }
  0x7c   : > { %993 = vrot.lane.b32.xlu0 %v621_v36, %s2631_s29 }
  0x7f   : > { %1087 = vrot.lane.b32.xlu1 %v2744_v41, %s2632_s10 }
  0x80   : > { %697 = vrot.lane.b32.xlu0 %v621_v36, %s2628_s22 }
  0x83   : > { %792 = vrot.lane.b32.xlu1 %v2744_v41, %s2629_s23 }
  0x84   : > { %1089 = vrot.lane.b32.xlu0 %v2728_v35, %s2632_s10 }
  0x86   : > { %v3143_v34 = vpop.permute.xlu0 %2592 }
  0x87   : > { %1183 = vrot.lane.b32.xlu1 %v2771_v56, %s2633_s21  ;;  %v2595_v40 = vunpack.i.h.bf16 %v3143_v34 }
  0x88   : > { %794 = vrot.lane.b32.xlu0 %v2728_v35, %s2629_s23 }
  0x89   : > { %v3151_v31 = vpop.permute.xlu1 %516 }
  0x8a   : > { %v3153_v49 = vpop.permute.xlu0 %514 }
  0x8b   : > { %894 = vrot.lane.b32.xlu1 %v2771_v56, %s2630_s24 }
  0x8c   : > { %1185 = vrot.lane.b32.xlu0 %v2778_v57, %s2633_s21 }
  0x8d   : > { %v3161_v58 = vpop.permute.xlu1 %518 }
  0x8e   : > { %v3163_v37 = vpop.permute.xlu0 %520 }
  0x8f   : > { %1279 = vrot.lane.b32.xlu1 %v624_v3, %s2634_s27 }
  0x90   : > { %896 = vrot.lane.b32.xlu0 %v2778_v57, %s2630_s24 }
  0x91   : > { %v3169_v9 = vpop.permute.xlu1 %522 }
  0x92   : > { %v3171_v56 = vpop.permute.xlu0 %524 }
  0x93   : > { %995 = vrot.lane.b32.xlu1 %v624_v3, %s2631_s29 }
  0x94   : > { %1281 = vrot.lane.b32.xlu0 %v626_v24, %s2634_s27 }
  0x95   : > { %v3175_v43 = vpop.permute.xlu1 %526 }
  0x96   : > { %v3177_v36 = vpop.permute.xlu0 %528 }
  0x97   : > { %699 = vrot.lane.b32.xlu1 %v624_v3, %s2628_s22 }
  0x98   : > { %997 = vrot.lane.b32.xlu0 %v626_v24, %s2631_s29 }
  0x99   : > { %v3181_v45 = vpop.permute.xlu1 %530 }
  0x9a   : > { %v3183_v57 = vpop.permute.xlu0 %532 }
  0x9b   : > { %1091 = vrot.lane.b32.xlu1 %v2764_v52, %s2632_s10 }
  0x9c   : > { %701 = vrot.lane.b32.xlu0 %v626_v24, %s2628_s22  ;;  %v627_v24 = vrot.slane %v2764_v52, 2 }
  0x9d   : > { %v3188_v46 = vpop.permute.xlu1 %534 }
  0x9e   : > { %v3190_v5 = vpop.permute.xlu0 %536  ;;  %v629_v47 = vsel %vm606_vm2, %v627_v24, %v628_v12 }
  0x9f   : > { %4651 = vst [vmem:[#allocation38_spill] sm:$0xff] %v3190_v5  ;;  %796 = vrot.lane.b32.xlu1 %v2764_v52, %s2629_s23 }
  0xa0   : > { %1093 = vrot.lane.b32.xlu0 %v2761_v51, %s2632_s10 }
  0xa1   : > { %v3196_v3 = vpop.permute.xlu1 %538 }
  0xa2   : > { %4652 = vst [vmem:[#allocation39_spill] sm:$0xff] %v3196_v3  ;;  %v3198_v39 = vpop.permute.xlu0 %540  ;;  %v638_v3 = vrot.slane %v2811_v17, 2 }
  0xa3   : > { %4653 = vst [vmem:[#allocation40_spill] sm:$0xff] %v3198_v39  ;;  %1187 = vrot.lane.b32.xlu1 %v2804_v14, %s2633_s21 }
  0xa4   : > { %798 = vrot.lane.b32.xlu0 %v2761_v51, %s2629_s23 }
  0xa5   : > { %v3206_v8 = vpop.permute.xlu1 %542 }
  0xa6   : > { %4654 = vst [vmem:[#allocation41_spill] sm:$0xff] %v3206_v8  ;;  %v3208_v33 = vpop.permute.xlu0 %544 }
  0xa7   : > { %4655 = vst [vmem:[#allocation42_spill] sm:$0xff] %v3208_v33  ;;  %898 = vrot.lane.b32.xlu1 %v2804_v14, %s2630_s24  ;;  %v631_v33 = vsel %vm606_vm2, %v628_v12, %v630_v19 }
  0xa8   : > { %1189 = vrot.lane.b32.xlu0 %v2807_v15, %s2633_s21 }
  0xa9   : > { %v3216_v16 = vpop.permute.xlu1 %546 }
  0xaa   : > { %4656 = vst [vmem:[#allocation43_spill] sm:$0xff] %v3216_v16  ;;  %v3218_v26 = vpop.permute.xlu0 %548 }
  0xab   : > { %4657 = vst [vmem:[#allocation44_spill] sm:$0xff] %v3218_v26  ;;  %1283 = vrot.lane.b32.xlu1 %v629_v47, %s2634_s27 }
  0xac   : > { %900 = vrot.lane.b32.xlu0 %v2807_v15, %s2630_s24 }
  0xad   : > { %v3224_v8 = vpop.permute.xlu1 %550 }
  0xae   : > { %4658 = vst [vmem:[#allocation45_spill] sm:$0xff] %v3224_v8  ;;  %v3226_v14 = vpop.permute.xlu0 %552 }
  0xaf   : > { %4659 = vst [vmem:[#allocation46_spill] sm:$0xff] %v3226_v14  ;;  %999 = vrot.lane.b32.xlu1 %v629_v47, %s2631_s29 }
  0xb0   : > { %1285 = vrot.lane.b32.xlu0 %v631_v33, %s2634_s27 }
  0xb1   : > { %v3230_v53 = vpop.permute.xlu1 %554 }
  0xb2   : > { %4660 = vst [vmem:[#allocation47_spill] sm:$0xff] %v3230_v53  ;;  %v3232_v24 = vpop.permute.xlu0 %556 }
  0xb3   : > { %4661 = vst [vmem:[#allocation48_spill] sm:$0xff] %v3232_v24  ;;  %703 = vrot.lane.b32.xlu1 %v629_v47, %s2628_s22 }
  0xb4   : > { %1001 = vrot.lane.b32.xlu0 %v631_v33, %s2631_s29 }
  0xb5   : > { %v3236_v26 = vpop.permute.xlu1 %558 }
  0xb6   : > { %4662 = vst [vmem:[#allocation49_spill] sm:$0xff] %v3236_v26  ;;  %v3238_v15 = vpop.permute.xlu0 %560 }
  0xb7   : > { %4663 = vst [vmem:[#allocation50_spill] sm:$0xff] %v3238_v15  ;;  %1095 = vrot.lane.b32.xlu1 %v2781_v59, %s2632_s10 }
  0xb8   : > { %705 = vrot.lane.b32.xlu0 %v631_v33, %s2628_s22  ;;  %v632_v33 = vrot.slane %v2781_v59, 2 }
  0xb9   : > { %v3243_v12 = vpop.permute.xlu1 %562 }
  0xba   : > { %4664 = vst [vmem:[#allocation51_spill] sm:$0xff] %v3243_v12  ;;  %v3245_v19 = vpop.permute.xlu0 %564 }
  0xbb   : > { %4665 = vst [vmem:[#allocation52_spill] sm:$0xff] %v3245_v19  ;;  %800 = vrot.lane.b32.xlu1 %v2781_v59, %s2629_s23  ;;  %v633_v19 = vrot.slane %v2789_v6, 2 }
  0xbc   : > { %1097 = vrot.lane.b32.xlu0 %v2789_v6, %s2632_s10 }
  0xbd   : > { %v3251_v47 = vpop.permute.xlu1 %566 }
  0xbe   : > { %4666 = vst [vmem:[#allocation53_spill] sm:$0xff] %v3251_v47  ;;  %v3253_v26 = vpop.permute.xlu0 %568  ;;  %v635_v47 = vrot.slane %v2792_v7, 2 }
  0xbf   : > { %4667 = vst [vmem:[#allocation54_spill] sm:$0xff] %v3253_v26  ;;  %1191 = vrot.lane.b32.xlu1 %v2824_v22, %s2633_s21  ;;  %v634_v26 = vsel %vm606_vm2, %v632_v33, %v633_v19 }
  0xc0   : > { %802 = vrot.lane.b32.xlu0 %v2789_v6, %s2629_s23 }
  0xc1   : > { %v3261_v12 = vpop.permute.xlu1 %570 }
  0xc2   : > { %4668 = vst [vmem:[#allocation55_spill] sm:$0xff] %v3261_v12  ;;  %v3263_v15 = vpop.permute.xlu0 %572  ;;  %v636_v12 = vsel %vm606_vm2, %v633_v19, %v635_v47  ;;  %v2594_v47 = vunpack.i.l.bf16 %v3143_v34  ;;  %v1373_v34 = vsel %vm1371_vm3, %v2668_v1, %v2595_v40 }
  0xc3   : > { %4669 = vst [vmem:[#allocation56_spill] sm:$0xff] %v3263_v15  ;;  %902 = vrot.lane.b32.xlu1 %v2824_v22, %s2630_s24 }
  0xc4   : > { %1193 = vrot.lane.b32.xlu0 %v2834_v29, %s2633_s21 }
  0xc5   : > { %v2598_v24 = vpop.permute.xlu1 %2597 }
  0xc6   : > { %v785_v53 = vpop.permute.xlu0 %784  ;;  %v2600_v4 = vunpack.i.h.bf16 %v2598_v24 }
  0xc7   : > { %1287 = vrot.lane.b32.xlu1 %v634_v26, %s2634_s27 }
  0xc8   : > { %904 = vrot.lane.b32.xlu0 %v2834_v29, %s2630_s24 }
  0xc9   : > { %v787_v15 = vpop.permute.xlu1 %786 }
  0xca   : > { %v887_v14 = vpop.permute.xlu0 %886 }
  0xcb   : > { %1003 = vrot.lane.b32.xlu1 %v634_v26, %s2631_s29 }
  0xcc   : > { %1289 = vrot.lane.b32.xlu0 %v636_v12, %s2634_s27 }
  0xcd   : > { %v889_v22 = vpop.permute.xlu1 %888 }
  0xce   : > { %v988_v8 = vpop.permute.xlu0 %987 }
  0xcf   : > { %707 = vrot.lane.b32.xlu1 %v634_v26, %s2628_s22  ;;  %v2599_v26 = vunpack.i.l.bf16 %v2598_v24 }
  0xd0   : > { %1005 = vrot.lane.b32.xlu0 %v636_v12, %s2631_s29 }
  0xd1   : > { %v3279_v7 = vpop.permute.xlu1 %691 }
  0xd2   : > { %v990_v33 = vpop.permute.xlu0 %989 }
  0xd3   : > { %1099 = vrot.lane.b32.xlu1 %v2801_v10, %s2632_s10 }
  0xd4   : > { %709 = vrot.lane.b32.xlu0 %v636_v12, %s2628_s22  ;;  %v1372_v12 = vsel %vm1371_vm3, %v2674_v2, %v2594_v47 }
  0xd5   : > { %v1084_v29 = vpop.permute.xlu1 %1083  ;;  %v1405_v39 = vsel %vm1404_vm4, %v1372_v12, %v2599_v26  ;;  %v639_v26 = vsel %vm606_vm2, %v637_v38, %v638_v3  ;;  %v640_v12 = vrot.slane %v2814_v18, 2 }
  0xd6   : > { %v3284_v19 = vpop.permute.xlu0 %693  ;;  %v1438_v47 = vsel %vm1437_vm5, %v1405_v39, %v785_v53  ;;  %v1406_v39 = vsel %vm1404_vm4, %v1373_v34, %v2600_v4 }
  0xd7   : > { %804 = vrot.lane.b32.xlu1 %v2801_v10, %s2629_s23  ;;  %v1471_v53 = vsel %vm1470_vm6, %v1438_v47, %v887_v14  ;;  %v641_v40 = vsel %vm606_vm2, %v638_v3, %v640_v12  ;;  %v1439_v38 = vsel %vm1437_vm5, %v1406_v39, %v787_v15  ;;  %v643_v39 = vrot.slane %v2828_v27, 2 }
  0xd8   : > { %1101 = vrot.lane.b32.xlu0 %v2811_v17, %s2632_s10  ;;  %v1472_v14 = vsel %vm1470_vm6, %v1439_v38, %v889_v22 }
  0xd9   : > { %v3291_v16 = vpop.permute.xlu1 %788  ;;  %v1505_v47 = vsel %vm1503_vm7, %v1472_v14, %v990_v33 }
  0xda   : > { %v1086_v21 = vpop.permute.xlu0 %1085 }
  0xdb   : > { %1195 = vrot.lane.b32.xlu1 %v2849_v48, %s2633_s21 }
  0xdc   : > { %806 = vrot.lane.b32.xlu0 %v2811_v17, %s2629_s23 }
  0xdd   : > { %v1180_v54 = vpop.permute.xlu1 %1179 }
  0xde   : > { %v3303_v5 = vpop.permute.xlu0 %790 }
  0xdf   : > { %906 = vrot.lane.b32.xlu1 %v2849_v48, %s2630_s24  ;;  %v1504_v48 = vsel %vm1503_vm7, %v1471_v53, %v988_v8 }
  0xe0   : > { %1197 = vrot.lane.b32.xlu0 %v2853_v55, %s2633_s21  ;;  %v1537_v18 = vsel %vm1536_vm8, %v1504_v48, %v1084_v29 }
  0xe1   : > { %v891_v2 = vpop.permute.xlu1 %890  ;;  %v1570_v1 = vsel %vm1569_vm9, %v1537_v18, %v1180_v54  ;;  %v1374_v18 = vsel %vm1371_vm3, %v2711_v25, %v3153_v49 }
  0xe2   : > { %v1182_v24 = vpop.permute.xlu0 %1181 }
  0xe3   : > { %1291 = vrot.lane.b32.xlu1 %v639_v26, %s2634_s27 }
  0xe4   : > { %908 = vrot.lane.b32.xlu0 %v2853_v55, %s2630_s24  ;;  %v1538_v55 = vsel %vm1536_vm8, %v1505_v47, %v1086_v21 }
  0xe5   : > { %v1276_v4 = vpop.permute.xlu1 %1275  ;;  %v1571_v3 = vsel %vm1569_vm9, %v1538_v55, %v1182_v24  ;;  %v642_v24 = vrot.slane %v2831_v28, 2 }
  0xe6   : > { %v893_v34 = vpop.permute.xlu0 %892  ;;  %v1603_v8 = vsel %vm1602_vm10, %v1570_v1, %v1276_v4  ;;  %v645_v4 = vrot.slane %v2840_v42, 2 }
  0xe7   : > { %1007 = vrot.lane.b32.xlu1 %v639_v26, %s2631_s29  ;;  %2508 = vmatprep.mubr.msk.f32.mxu0 %vm1644_vm11, %v1603_v8  ;;  %v644_v38 = vsel %vm606_vm2, %v642_v24, %v643_v39 }
  0xe8   : > { %1293 = vrot.lane.b32.xlu0 %v641_v40, %s2634_s27 }
  0xe9   : > { %v992_v54 = vpop.permute.xlu1 %991 }
  0xea   : > { %v1278_v15 = vpop.permute.xlu0 %1277 }
  0xeb   : > { %v1604_v29 = vsel %vm1602_vm10, %v1571_v3, %v1278_v15  ;;  %711 = vrot.lane.b32.xlu1 %v639_v26, %s2628_s22 }
  0xec   : > { %1009 = vrot.lane.b32.xlu0 %v641_v40, %s2631_s29  ;;  %2509 = vmatmul.mubr.msk.f32.vlgmr.msra.gmra.mxu0 %vm1644_vm11, %v1604_v29 }
  0xed   : > { %v3336_v1 = vpop.permute.xlu1 %695 }
  0xee   : > { %v994_v22 = vpop.permute.xlu0 %993 }
  0xef   : > { %1103 = vrot.lane.b32.xlu1 %v2831_v28, %s2632_s10 }
  0xf0   : > { %713 = vrot.lane.b32.xlu0 %v641_v40, %s2628_s22  ;;  %v1407_v40 = vsel %vm1404_vm4, %v1374_v18, %v3279_v7  ;;  %v646_v7 = vsel %vm606_vm2, %v643_v39, %v645_v4  ;;  %v647_v18 = vrot.slane %v2860_v61, 2 }
  0xf1   : > { %v1088_v21 = vpop.permute.xlu1 %1087  ;;  %v1440_v14 = vsel %vm1437_vm5, %v1407_v40, %v3291_v16  ;;  %v648_v40 = vrot.slane %v2857_v60, 2 }
  0xf2   : > { %v3341_v33 = vpop.permute.xlu0 %697  ;;  %v1473_v25 = vsel %vm1470_vm6, %v1440_v14, %v891_v2  ;;  %v1376_v14 = vsel %vm1371_vm3, %v2721_v32, %v3161_v58 }
  0xf3   : > { %808 = vrot.lane.b32.xlu1 %v2831_v28, %s2629_s23  ;;  %v1506_v49 = vsel %vm1503_vm7, %v1473_v25, %v992_v54  ;;  %v649_v25 = vsel %vm606_vm2, %v647_v18, %v648_v40 }
  0xf4   : > { %1105 = vrot.lane.b32.xlu0 %v2828_v27, %s2632_s10  ;;  %v1539_v16 = vsel %vm1536_vm8, %v1506_v49, %v1088_v21 }
  0xf5   : > { %v3347_v26 = vpop.permute.xlu1 %792 }
  0xf6   : > { %v1090_v12 = vpop.permute.xlu0 %1089 }
  0xf7   : > { %1199 = vrot.lane.b32.xlu1 %v2867_v0, %s2633_s21 }
  0xf8   : > { %810 = vrot.lane.b32.xlu0 %v2828_v27, %s2629_s23 }
  0xf9   : > { %v1184_v53 = vpop.permute.xlu1 %1183 }
  0xfa   : > { %v3355_v48 = vpop.permute.xlu0 %794  ;;  %v1572_v55 = vsel %vm1569_vm9, %v1539_v16, %v1184_v53 }
  0xfb   : > { %910 = vrot.lane.b32.xlu1 %v2867_v0, %s2630_s24  ;;  %v1375_v0 = vsel %vm1371_vm3, %v2705_v23, %v3151_v31 }
  0xfc   : > { %1201 = vrot.lane.b32.xlu0 %v2882_v13, %s2633_s21  ;;  %v1408_v42 = vsel %vm1404_vm4, %v1375_v0, %v3284_v19  ;;  %v650_v0 = vrot.slane %v2863_v62, 2 }
  0xfd   : > { %v895_v8 = vpop.permute.xlu1 %894  ;;  %v1441_v2 = vsel %vm1437_vm5, %v1408_v42, %v3303_v5 }
  0xfe   : > { %v1186_v47 = vpop.permute.xlu0 %1185  ;;  %v1474_v3 = vsel %vm1470_vm6, %v1441_v2, %v893_v34 }
  0xff   : > { %1295 = vrot.lane.b32.xlu1 %v644_v38, %s2634_s27 }
 0x100   : > { %912 = vrot.lane.b32.xlu0 %v2882_v13, %s2630_s24  ;;  %v1507_v13 = vsel %vm1503_vm7, %v1474_v3, %v994_v22 }
 0x101   : > { %v1280_v23 = vpop.permute.xlu1 %1279  ;;  %v1540_v19 = vsel %vm1536_vm8, %v1507_v13, %v1090_v12 }
 0x102   : > { %v897_v31 = vpop.permute.xlu0 %896  ;;  %v1605_v54 = vsel %vm1602_vm10, %v1572_v55, %v1280_v23  ;;  %v1573_v5 = vsel %vm1569_vm9, %v1540_v19, %v1186_v47  ;;  %v1409_v47 = vsel %vm1404_vm4, %v1376_v14, %v3336_v1  ;;  %v4672_v14 = vld [vmem:[#allocation11_spill] sm:$0xff] }
 0x103   : > { %1011 = vrot.lane.b32.xlu1 %v644_v38, %s2631_s29  ;;  %2511 = vmatprep.mubr.msk.f32.mxu0 %vm1644_vm11, %v1605_v54  ;;  %v1442_v49 = vsel %vm1437_vm5, %v1409_v47, %v3347_v26  ;;  %v651_v26 = vsel %vm606_vm2, %v648_v40, %v650_v0  ;;  %v4673_v0 = vld [vmem:[#allocation6_spill] sm:$0xff] }
 0x104   : > { %1297 = vrot.lane.b32.xlu0 %v646_v7, %s2634_s27  ;;  %v1475_v32 = vsel %vm1470_vm6, %v1442_v49, %v895_v8  ;;  %v655_v49 = vrot.slane %v4673_v0, 2 }
 0x105   : > { %v996_v15 = vpop.permute.xlu1 %995 }
 0x106   : > { %v1282_v29 = vpop.permute.xlu0 %1281  ;;  %v1508_v58 = vsel %vm1503_vm7, %v1475_v32, %v996_v15  ;;  %v4670_v15 = vld [vmem:[#allocation5_spill] sm:$0xff] }
 0x107   : > { %v1606_v21 = vsel %vm1602_vm10, %v1573_v5, %v1282_v29  ;;  %715 = vrot.lane.b32.xlu1 %v644_v38, %s2628_s22 }
 0x108   : > { %1013 = vrot.lane.b32.xlu0 %v646_v7, %s2631_s29  ;;  %2512 = vmatmul.mubr.msk.f32.gmra.mxu0 %vm1644_vm11, %v1606_v21 }
 0x109   : > { %v3397_v34 = vpop.permute.xlu1 %699 }
 0x10a   : > { %v998_v22 = vpop.permute.xlu0 %997 }
 0x10b   : > { %1107 = vrot.lane.b32.xlu1 %v2860_v61, %s2632_s10 }
 0x10c   : > { %717 = vrot.lane.b32.xlu0 %v646_v7, %s2628_s22 }
 0x10d   : > { %v1092_v12 = vpop.permute.xlu1 %1091 }
 0x10e   : > { %v3402_v24 = vpop.permute.xlu0 %701  ;;  %v1541_v1 = vsel %vm1536_vm8, %v1508_v58, %v1092_v12  ;;  %v652_v12 = vrot.slane %v2879_v11, 2 }
 0x10f   : > { %812 = vrot.lane.b32.xlu1 %v2860_v61, %s2629_s23 }
 0x110   : > { %1109 = vrot.lane.b32.xlu0 %v2857_v60, %s2632_s10 }
 0x111   : > { %v3408_v39 = vpop.permute.xlu1 %796 }
 0x112   : > { %v1094_v53 = vpop.permute.xlu0 %1093 }
 0x113   : > { %1203 = vrot.lane.b32.xlu1 %v2900_v44, %s2633_s21 }
 0x114   : > { %814 = vrot.lane.b32.xlu0 %v2857_v60, %s2629_s23 }
 0x115   : > { %v1188_v38 = vpop.permute.xlu1 %1187 }
 0x116   : > { %v3416_v4 = vpop.permute.xlu0 %798  ;;  %v1574_v7 = vsel %vm1569_vm9, %v1541_v1, %v1188_v38  ;;  %v1378_v38 = vsel %vm1371_vm3, %v2744_v41, %v3169_v9  ;;  %v1379_v9 = vsel %vm1371_vm3, %v2728_v35, %v3171_v56 }
 0x117   : > { %914 = vrot.lane.b32.xlu1 %v2900_v44, %s2630_s24  ;;  %v1377_v44 = vsel %vm1371_vm3, %v2717_v30, %v3163_v37  ;;  %v1411_v47 = vsel %vm1404_vm4, %v1378_v38, %v3397_v34  ;;  %v1412_v34 = vsel %vm1404_vm4, %v1379_v9, %v3402_v24  ;;  %v4677_v38 = vld [vmem:[#allocation17_spill] sm:$0xff] }
 0x118   : > { %1205 = vrot.lane.b32.xlu0 %v2907_v50, %s2633_s21  ;;  %v1410_v62 = vsel %vm1404_vm4, %v1377_v44, %v3341_v33 }
 0x119   : > { %v899_v42 = vpop.permute.xlu1 %898  ;;  %v1443_v8 = vsel %vm1437_vm5, %v1410_v62, %v3355_v48 }
 0x11a   : > { %v1190_v16 = vpop.permute.xlu0 %1189  ;;  %v1476_v2 = vsel %vm1470_vm6, %v1443_v8, %v897_v31 }
 0x11b   : > { %1299 = vrot.lane.b32.xlu1 %v649_v25, %s2634_s27 }
 0x11c   : > { %916 = vrot.lane.b32.xlu0 %v2907_v50, %s2630_s24  ;;  %v1509_v50 = vsel %vm1503_vm7, %v1476_v2, %v998_v22  ;;  %v4671_v22 = vld [vmem:[#allocation10_spill] sm:$0xff] }
 0x11d   : > { %v1284_v30 = vpop.permute.xlu1 %1283  ;;  %v1542_v33 = vsel %vm1536_vm8, %v1509_v50, %v1094_v53  ;;  %v653_v53 = vrot.slane %v4670_v15, 2 }
 0x11e   : > { %v901_v37 = vpop.permute.xlu0 %900  ;;  %v1607_v55 = vsel %vm1602_vm10, %v1574_v7, %v1284_v30  ;;  %v1575_v48 = vsel %vm1569_vm9, %v1542_v33, %v1190_v16  ;;  %v1444_v16 = vsel %vm1437_vm5, %v1411_v47, %v3408_v39  ;;  %v4674_v33 = vld [vmem:[#allocation7_spill] sm:$0xff] }
 0x11f   : > { %1015 = vrot.lane.b32.xlu1 %v649_v25, %s2631_s29  ;;  %2514 = vmatprep.mubr.msk.f32.mxu0 %vm1644_vm11, %v1607_v55  ;;  %v1477_v41 = vsel %vm1470_vm6, %v1444_v16, %v899_v42  ;;  %v656_v62 = vsel %vm606_vm2, %v653_v53, %v655_v49  ;;  %v1445_v42 = vsel %vm1437_vm5, %v1412_v34, %v3416_v4 }
 0x120   : > { %1301 = vrot.lane.b32.xlu0 %v651_v26, %s2634_s27 }
 0x121   : > { %v1000_v23 = vpop.permute.xlu1 %999 }
 0x122   : > { %v1286_v3 = vpop.permute.xlu0 %1285  ;;  %v1510_v58 = vsel %vm1503_vm7, %v1477_v41, %v1000_v23 }
 0x123   : > { %v1608_v54 = vsel %vm1602_vm10, %v1575_v48, %v1286_v3  ;;  %719 = vrot.lane.b32.xlu1 %v649_v25, %s2628_s22  ;;  %v654_v25 = vsel %vm606_vm2, %v652_v12, %v653_v53  ;;  %v4675_v3 = vld [vmem:[#allocation8_spill] sm:$0xff] }
 0x124   : > { %1017 = vrot.lane.b32.xlu0 %v651_v26, %s2631_s29  ;;  %2515 = vmatmul.mubr.msk.f32.gmra.mxu0 %vm1644_vm11, %v1608_v54 }
 0x125   : > { %v3458_v31 = vpop.permute.xlu1 %703 }
 0x126   : > { %v1002_v13 = vpop.permute.xlu0 %1001 }
 0x127   : > { %1111 = vrot.lane.b32.xlu1 %v2879_v11, %s2632_s10 }
 0x128   : > { %721 = vrot.lane.b32.xlu0 %v651_v26, %s2628_s22  ;;  %v1478_v26 = vsel %vm1470_vm6, %v1445_v42, %v901_v37 }
 0x129   : > { %v1096_v19 = vpop.permute.xlu1 %1095  ;;  %v1511_v7 = vsel %vm1503_vm7, %v1478_v26, %v1002_v13 }
 0x12a   : > { %v3463_v5 = vpop.permute.xlu0 %705  ;;  %v1543_v39 = vsel %vm1536_vm8, %v1510_v58, %v1096_v19  ;;  %v4676_v19 = vld [vmem:[#allocation16_spill] sm:$0xff] }
 0x12b   : > { %816 = vrot.lane.b32.xlu1 %v2879_v11, %s2629_s23 }
 0x12c   : > { %1113 = vrot.lane.b32.xlu0 %v4670_v15, %s2632_s10 }
 0x12d   : > { %v3469_v29 = vpop.permute.xlu1 %800 }
 0x12e   : > { %v1098_v21 = vpop.permute.xlu0 %1097 }
 0x12f   : > { %1207 = vrot.lane.b32.xlu1 %v4671_v22, %s2633_s21  ;;  %v1544_v24 = vsel %vm1536_vm8, %v1511_v7, %v1098_v21  ;;  %v657_v21 = vrot.slane %v4674_v33, 2 }
 0x130   : > { %818 = vrot.lane.b32.xlu0 %v4670_v15, %s2629_s23 }
 0x131   : > { %v1192_v18 = vpop.permute.xlu1 %1191 }
 0x132   : > { %v3477_v40 = vpop.permute.xlu0 %802  ;;  %v1576_v1 = vsel %vm1569_vm9, %v1543_v39, %v1192_v18  ;;  %v1380_v18 = vsel %vm1371_vm3, %v2764_v52, %v3175_v43  ;;  %v1381_v43 = vsel %vm1371_vm3, %v2761_v51, %v3177_v36 }
 0x133   : > { %918 = vrot.lane.b32.xlu1 %v4671_v22, %s2630_s24  ;;  %v658_v22 = vrot.slane %v4675_v3, 2 }
 0x134   : > { %1209 = vrot.lane.b32.xlu0 %v4672_v14, %s2633_s21 }
 0x135   : > { %v903_v32 = vpop.permute.xlu1 %902  ;;  %v659_v47 = vsel %vm606_vm2, %v657_v21, %v658_v22  ;;  %v4681_v21 = vld [vmem:[#allocation21_spill] sm:$0xff] }
 0x136   : > { %v1194_v44 = vpop.permute.xlu0 %1193 }
 0x137   : > { %1303 = vrot.lane.b32.xlu1 %v654_v25, %s2634_s27  ;;  %v1577_v4 = vsel %vm1569_vm9, %v1544_v24, %v1194_v44 }
 0x138   : > { %920 = vrot.lane.b32.xlu0 %v4672_v14, %s2630_s24  ;;  %v1413_v14 = vsel %vm1404_vm4, %v1380_v18, %v3458_v31  ;;  %v1414_v31 = vsel %vm1404_vm4, %v1381_v43, %v3463_v5  ;;  %v4682_v18 = vld [vmem:[#allocation14_spill] sm:$0xff] }
 0x139   : > { %v1288_v35 = vpop.permute.xlu1 %1287  ;;  %v1446_v49 = vsel %vm1437_vm5, %v1413_v14, %v3469_v29 }
 0x13a   : > { %v905_v56 = vpop.permute.xlu0 %904  ;;  %v1609_v8 = vsel %vm1602_vm10, %v1576_v1, %v1288_v35  ;;  %v1479_v52 = vsel %vm1470_vm6, %v1446_v49, %v903_v32  ;;  %v1447_v32 = vsel %vm1437_vm5, %v1414_v31, %v3477_v40 }
 0x13b   : > { %1019 = vrot.lane.b32.xlu1 %v654_v25, %s2631_s29  ;;  %2517 = vmatprep.mubr.msk.f32.mxu0 %vm1644_vm11, %v1609_v8  ;;  %v1480_v34 = vsel %vm1470_vm6, %v1447_v32, %v905_v56  ;;  %v4679_v8 = vld [vmem:[#allocation12_spill] sm:$0xff] }
 0x13c   : > { %1305 = vrot.lane.b32.xlu0 %v656_v62, %s2634_s27 }
 0x13d   : > { %v1004_v30 = vpop.permute.xlu1 %1003 }
 0x13e   : > { %v1290_v2 = vpop.permute.xlu0 %1289  ;;  %v1512_v41 = vsel %vm1503_vm7, %v1479_v52, %v1004_v30 }
 0x13f   : > { %v1610_v55 = vsel %vm1602_vm10, %v1577_v4, %v1290_v2  ;;  %723 = vrot.lane.b32.xlu1 %v654_v25, %s2628_s22  ;;  %v4678_v25 = vld [vmem:[#allocation9_spill] sm:$0xff] }
 0x140   : > { %1021 = vrot.lane.b32.xlu0 %v656_v62, %s2631_s29  ;;  %2518 = vmatmul.mubr.msk.f32.gmra.mxu0 %vm1644_vm11, %v1610_v55  ;;  %v660_v0 = vrot.slane %v4678_v25, 2  ;;  %v4680_v4 = vld [vmem:[#allocation13_spill] sm:$0xff]  ;;  %v662_v55 = vrot.slane %v4679_v8, 2 }
 0x141   : > { %v3519_v37 = vpop.permute.xlu1 %707 }
 0x142   : > { %v1006_v50 = vpop.permute.xlu0 %1005  ;;  %v661_v9 = vsel %vm606_vm2, %v658_v22, %v660_v0 }
 0x143   : > { %1115 = vrot.lane.b32.xlu1 %v4674_v33, %s2632_s10 }
 0x144   : > { %725 = vrot.lane.b32.xlu0 %v656_v62, %s2628_s22  ;;  %v1513_v62 = vsel %vm1503_vm7, %v1480_v34, %v1006_v50  ;;  %v663_v50 = vrot.slane %v4680_v4, 2  ;;  %v4684_v34 = vld [vmem:[#allocation18_spill] sm:$0xff] }
 0x145   : > { %v1100_v48 = vpop.permute.xlu1 %1099 }
 0x146   : > { %v3524_v23 = vpop.permute.xlu0 %709  ;;  %v1545_v29 = vsel %vm1536_vm8, %v1512_v41, %v1100_v48 }
 0x147   : > { %820 = vrot.lane.b32.xlu1 %v4674_v33, %s2629_s23 }
 0x148   : > { %1117 = vrot.lane.b32.xlu0 %v4675_v3, %s2632_s10 }
 0x149   : > { %v3530_v54 = vpop.permute.xlu1 %804 }
 0x14a   : > { %v1102_v13 = vpop.permute.xlu0 %1101 }
 0x14b   : > { %1211 = vrot.lane.b32.xlu1 %v4676_v19, %s2633_s21  ;;  %v1546_v5 = vsel %vm1536_vm8, %v1513_v62, %v1102_v13 }
 0x14c   : > { %822 = vrot.lane.b32.xlu0 %v4675_v3, %s2629_s23 }
 0x14d   : > { %v1196_v12 = vpop.permute.xlu1 %1195 }
 0x14e   : > { %v3538_v53 = vpop.permute.xlu0 %806  ;;  %v1578_v58 = vsel %vm1569_vm9, %v1545_v29, %v1196_v12  ;;  %v664_v12 = vsel %vm606_vm2, %v662_v55, %v663_v50  ;;  %v4686_v55 = vld [vmem:[#allocation20_spill] sm:$0xff] }
 0x14f   : > { %922 = vrot.lane.b32.xlu1 %v4676_v19, %s2630_s24  ;;  %v1382_v19 = vsel %vm1371_vm3, %v2781_v59, %v3181_v45 }
 0x150   : > { %1213 = vrot.lane.b32.xlu0 %v4677_v38, %s2633_s21  ;;  %v1415_v22 = vsel %vm1404_vm4, %v1382_v19, %v3519_v37 }
 0x151   : > { %v907_v16 = vpop.permute.xlu1 %906  ;;  %v1448_v14 = vsel %vm1437_vm5, %v1415_v22, %v3530_v54 }
 0x152   : > { %v1198_v44 = vpop.permute.xlu0 %1197  ;;  %v1481_v59 = vsel %vm1470_vm6, %v1448_v14, %v907_v16 }
 0x153   : > { %1307 = vrot.lane.b32.xlu1 %v659_v47, %s2634_s27  ;;  %v1579_v40 = vsel %vm1569_vm9, %v1546_v5, %v1198_v44 }
 0x154   : > { %924 = vrot.lane.b32.xlu0 %v4677_v38, %s2630_s24  ;;  %v665_v38 = vrot.slane %v4682_v18, 2 }
 0x155   : > { %v1292_v51 = vpop.permute.xlu1 %1291 }
 0x156   : > { %v909_v36 = vpop.permute.xlu0 %908  ;;  %v1611_v39 = vsel %vm1602_vm10, %v1578_v58, %v1292_v51  ;;  %v666_v0 = vsel %vm606_vm2, %v663_v50, %v665_v38  ;;  %v4683_v58 = vld [vmem:[#allocation19_spill] sm:$0xff]  ;;  %v670_v50 = vrot.slane %v4686_v55, 2 }
 0x157   : > { %1023 = vrot.lane.b32.xlu1 %v659_v47, %s2631_s29  ;;  %2520 = vmatprep.mubr.msk.f32.mxu0 %vm1644_vm11, %v1611_v39  ;;  %v667_v5 = vrot.slane %v4683_v58, 2 }
 0x158   : > { %1309 = vrot.lane.b32.xlu0 %v661_v9, %s2634_s27 }
 0x159   : > { %v1008_v42 = vpop.permute.xlu1 %1007 }
 0x15a   : > { %v1294_v1 = vpop.permute.xlu0 %1293  ;;  %v1514_v45 = vsel %vm1503_vm7, %v1481_v59, %v1008_v42 }
 0x15b   : > { %v1612_v35 = vsel %vm1602_vm10, %v1579_v40, %v1294_v1  ;;  %727 = vrot.lane.b32.xlu1 %v659_v47, %s2628_s22  ;;  %v668_v40 = vrot.slane %v4684_v34, 2 }
 0x15c   : > { %1025 = vrot.lane.b32.xlu0 %v661_v9, %s2631_s29  ;;  %2521 = vmatmul.mubr.msk.f32.gmra.mxu0 %vm1644_vm11, %v1612_v35  ;;  %v1384_v35 = vsel %vm1371_vm3, %v2801_v10, %v3188_v46  ;;  %v4687_v46 = vld [vmem:[#allocation38_spill] sm:$0xff] }
 0x15d   : > { %v3580_v56 = vpop.permute.xlu1 %711 }
 0x15e   : > { %v1010_v26 = vpop.permute.xlu0 %1009 }
 0x15f   : > { %1119 = vrot.lane.b32.xlu1 %v4679_v8, %s2632_s10 }
 0x160   : > { %729 = vrot.lane.b32.xlu0 %v661_v9, %s2628_s22 }
 0x161   : > { %v1104_v7 = vpop.permute.xlu1 %1103 }
 0x162   : > { %v3585_v24 = vpop.permute.xlu0 %713  ;;  %v1547_v54 = vsel %vm1536_vm8, %v1514_v45, %v1104_v7  ;;  %v1417_v7 = vsel %vm1404_vm4, %v1384_v35, %v3580_v56 }
 0x163   : > { %824 = vrot.lane.b32.xlu1 %v4679_v8, %s2629_s23 }
 0x164   : > { %1121 = vrot.lane.b32.xlu0 %v4680_v4, %s2632_s10 }
 0x165   : > { %v3591_v30 = vpop.permute.xlu1 %808 }
 0x166   : > { %v1106_v2 = vpop.permute.xlu0 %1105 }
 0x167   : > { %1215 = vrot.lane.b32.xlu1 %v2974_v20, %s2633_s21 }
 0x168   : > { %826 = vrot.lane.b32.xlu0 %v4680_v4, %s2629_s23 }
 0x169   : > { %v1200_v48 = vpop.permute.xlu1 %1199 }
 0x16a   : > { %v3599_v13 = vpop.permute.xlu0 %810  ;;  %v1580_v16 = vsel %vm1569_vm9, %v1547_v54, %v1200_v48  ;;  %v1450_v48 = vsel %vm1437_vm5, %v1417_v7, %v3591_v30 }
 0x16b   : > { %926 = vrot.lane.b32.xlu1 %v2974_v20, %s2630_s24  ;;  %v1383_v20 = vsel %vm1371_vm3, %v2789_v6, %v3183_v57 }
 0x16c   : > { %1217 = vrot.lane.b32.xlu0 %v4681_v21, %s2633_s21  ;;  %v1416_v37 = vsel %vm1404_vm4, %v1383_v20, %v3524_v23 }
 0x16d   : > { %v911_v47 = vpop.permute.xlu1 %910  ;;  %v1449_v49 = vsel %vm1437_vm5, %v1416_v37, %v3538_v53 }
 0x16e   : > { %v1202_v25 = vpop.permute.xlu0 %1201  ;;  %v1482_v44 = vsel %vm1470_vm6, %v1449_v49, %v909_v36  ;;  %v1483_v10 = vsel %vm1470_vm6, %v1450_v48, %v911_v47  ;;  %v4688_v49 = vld [vmem:[#allocation22_spill] sm:$0xff] }
 0x16f   : > { %1311 = vrot.lane.b32.xlu1 %v664_v12, %s2634_s27  ;;  %v1515_v43 = vsel %vm1503_vm7, %v1482_v44, %v1010_v26  ;;  %v4685_v26 = vld [vmem:[#allocation25_spill] sm:$0xff] }
 0x170   : > { %928 = vrot.lane.b32.xlu0 %v4681_v21, %s2630_s24  ;;  %v1548_v23 = vsel %vm1536_vm8, %v1515_v43, %v1106_v2  ;;  %v669_v2 = vsel %vm606_vm2, %v667_v5, %v668_v40  ;;  %v4690_v43 = vld [vmem:[#allocation29_spill] sm:$0xff] }
 0x171   : > { %v1296_v6 = vpop.permute.xlu1 %1295  ;;  %v1581_v53 = vsel %vm1569_vm9, %v1548_v23, %v1202_v25  ;;  %v672_v23 = vrot.slane %v4688_v49, 2 }
 0x172   : > { %v913_v57 = vpop.permute.xlu0 %912  ;;  %v1613_v52 = vsel %vm1602_vm10, %v1580_v16, %v1296_v6 }
 0x173   : > { %1027 = vrot.lane.b32.xlu1 %v664_v12, %s2631_s29  ;;  %2523 = vmatprep.mubr.msk.f32.mxu0 %vm1644_vm11, %v1613_v52 }
 0x174   : > { %1313 = vrot.lane.b32.xlu0 %v666_v0, %s2634_s27 }
 0x175   : > { %v1012_v41 = vpop.permute.xlu1 %1011 }
 0x176   : > { %v1298_v31 = vpop.permute.xlu0 %1297  ;;  %v1516_v22 = vsel %vm1503_vm7, %v1483_v10, %v1012_v41 }
 0x177   : > { %v1614_v29 = vsel %vm1602_vm10, %v1581_v53, %v1298_v31  ;;  %731 = vrot.lane.b32.xlu1 %v664_v12, %s2628_s22  ;;  %v671_v12 = vsel %vm606_vm2, %v668_v40, %v670_v50  ;;  %v4693_v40 = vld [vmem:[#allocation24_spill] sm:$0xff] }
 0x178   : > { %1029 = vrot.lane.b32.xlu0 %v666_v0, %s2631_s29  ;;  %2524 = vmatmul.mubr.msk.f32.gmra.mxu0 %vm1644_vm11, %v1614_v29  ;;  %v4691_v29 = vld [vmem:[#allocation39_spill] sm:$0xff] }
 0x179   : > { %v3641_v9 = vpop.permute.xlu1 %715 }
 0x17a   : > { %v1014_v32 = vpop.permute.xlu0 %1013 }
 0x17b   : > { %1123 = vrot.lane.b32.xlu1 %v4683_v58, %s2632_s10 }
 0x17c   : > { %733 = vrot.lane.b32.xlu0 %v666_v0, %s2628_s22 }
 0x17d   : > { %v1108_v51 = vpop.permute.xlu1 %1107 }
 0x17e   : > { %v3646_v36 = vpop.permute.xlu0 %717  ;;  %v1549_v30 = vsel %vm1536_vm8, %v1516_v22, %v1108_v51  ;;  %v4692_v51 = vld [vmem:[#allocation30_spill] sm:$0xff] }
 0x17f   : > { %828 = vrot.lane.b32.xlu1 %v4683_v58, %s2629_s23 }
 0x180   : > { %1125 = vrot.lane.b32.xlu0 %v4684_v34, %s2632_s10 }
 0x181   : > { %v3652_v39 = vpop.permute.xlu1 %812 }
 0x182   : > { %v1110_v62 = vpop.permute.xlu0 %1109 }
 0x183   : > { %1219 = vrot.lane.b32.xlu1 %v2998_v63, %s2633_s21 }
 0x184   : > { %830 = vrot.lane.b32.xlu0 %v4684_v34, %s2629_s23 }
 0x185   : > { %v1204_v42 = vpop.permute.xlu1 %1203 }
 0x186   : > { %v3660_v1 = vpop.permute.xlu0 %814  ;;  %v1582_v38 = vsel %vm1569_vm9, %v1549_v30, %v1204_v42  ;;  %v675_v42 = vrot.slane %v4693_v40, 2 }
 0x187   : > { %930 = vrot.lane.b32.xlu1 %v2998_v63, %s2630_s24  ;;  %v1385_v63 = vsel %vm1371_vm3, %v2811_v17, %v4687_v46 }
 0x188   : > { %1221 = vrot.lane.b32.xlu0 %v4685_v26, %s2633_s21  ;;  %v1418_v56 = vsel %vm1404_vm4, %v1385_v63, %v3585_v24 }
 0x189   : > { %v915_v19 = vpop.permute.xlu1 %914  ;;  %v1451_v18 = vsel %vm1437_vm5, %v1418_v56, %v3599_v13 }
 0x18a   : > { %v1206_v21 = vpop.permute.xlu0 %1205  ;;  %v1484_v47 = vsel %vm1470_vm6, %v1451_v18, %v913_v57  ;;  %v4689_v57 = vld [vmem:[#allocation23_spill] sm:$0xff] }
 0x18b   : > { %1315 = vrot.lane.b32.xlu1 %v669_v2, %s2634_s27  ;;  %v1517_v59 = vsel %vm1503_vm7, %v1484_v47, %v1014_v32  ;;  %v673_v53 = vrot.slane %v4689_v57, 2  ;;  %v1386_v32 = vsel %vm1371_vm3, %v2831_v28, %v4691_v29 }
 0x18c   : > { %932 = vrot.lane.b32.xlu0 %v4685_v26, %s2630_s24  ;;  %v1550_v24 = vsel %vm1536_vm8, %v1517_v59, %v1110_v62  ;;  %v1419_v62 = vsel %vm1404_vm4, %v1386_v32, %v3641_v9 }
 0x18d   : > { %v1300_v17 = vpop.permute.xlu1 %1299  ;;  %v1583_v13 = vsel %vm1569_vm9, %v1550_v24, %v1206_v21  ;;  %v674_v5 = vsel %vm606_vm2, %v672_v23, %v673_v53  ;;  %v1452_v35 = vsel %vm1437_vm5, %v1419_v62, %v3652_v39  ;;  %v676_v48 = vsel %vm606_vm2, %v673_v53, %v675_v42 }
 0x18e   : > { %v917_v14 = vpop.permute.xlu0 %916  ;;  %v1615_v25 = vsel %vm1602_vm10, %v1582_v38, %v1300_v17  ;;  %v1485_v28 = vsel %vm1470_vm6, %v1452_v35, %v915_v19  ;;  %v4695_v17 = vld [vmem:[#allocation27_spill] sm:$0xff] }
 0x18f   : > { %1031 = vrot.lane.b32.xlu1 %v669_v2, %s2631_s29  ;;  %2526 = vmatprep.mubr.msk.f32.mxu0 %vm1644_vm11, %v1615_v25  ;;  %v4696_v25 = vld [vmem:[#allocation26_spill] sm:$0xff] }
 0x190   : > { %1317 = vrot.lane.b32.xlu0 %v671_v12, %s2634_s27 }
 0x191   : > { %v1016_v20 = vpop.permute.xlu1 %1015 }
 0x192   : > { %v1302_v45 = vpop.permute.xlu0 %1301  ;;  %v1518_v50 = vsel %vm1503_vm7, %v1485_v28, %v1016_v20  ;;  %v677_v20 = vrot.slane %v4695_v17, 2 }
 0x193   : > { %v1616_v37 = vsel %vm1602_vm10, %v1583_v13, %v1302_v45  ;;  %735 = vrot.lane.b32.xlu1 %v669_v2, %s2628_s22  ;;  %v4694_v2 = vld [vmem:[#allocation40_spill] sm:$0xff]  ;;  %v4697_v13 = vld [vmem:[#allocation34_spill] sm:$0xff]  ;;  %v678_v45 = vrot.slane %v4696_v25, 2 }
 0x194   : > { %1033 = vrot.lane.b32.xlu0 %v671_v12, %s2631_s29  ;;  %2527 = vmatmul.mubr.msk.f32.gmra.mxu0 %vm1644_vm11, %v1616_v37  ;;  %v1387_v55 = vsel %vm1371_vm3, %v2828_v27, %v4694_v2 }
 0x195   : > { %v3702_v54 = vpop.permute.xlu1 %719  ;;  %v1420_v9 = vsel %vm1404_vm4, %v1387_v55, %v3646_v36  ;;  %v679_v53 = vsel %vm606_vm2, %v677_v20, %v678_v45  ;;  %v4706_v20 = vld [vmem:[#allocation37_spill] sm:$0xff] }
 0x196   : > { %v1018_v0 = vpop.permute.xlu0 %1017  ;;  %v1453_v19 = vsel %vm1437_vm5, %v1420_v9, %v3660_v1 }
 0x197   : > { %1127 = vrot.lane.b32.xlu1 %v4688_v49, %s2632_s10  ;;  %v1486_v46 = vsel %vm1470_vm6, %v1453_v19, %v917_v14 }
 0x198   : > { %737 = vrot.lane.b32.xlu0 %v671_v12, %s2628_s22  ;;  %v1519_v22 = vsel %vm1503_vm7, %v1486_v46, %v1018_v0 }
 0x199   : > { %v1112_v16 = vpop.permute.xlu1 %1111 }
 0x19a   : > { %v3707_v6 = vpop.permute.xlu0 %721  ;;  %v1551_v39 = vsel %vm1536_vm8, %v1518_v50, %v1112_v16  ;;  %v4698_v16 = vld [vmem:[#allocation41_spill] sm:$0xff] }
 0x19b   : > { %832 = vrot.lane.b32.xlu1 %v4688_v49, %s2629_s23 }
 0x19c   : > { %1129 = vrot.lane.b32.xlu0 %v4689_v57, %s2632_s10 }
 0x19d   : > { %v3713_v44 = vpop.permute.xlu1 %816 }
 0x19e   : > { %v1114_v52 = vpop.permute.xlu0 %1113 }
 0x19f   : > { %1223 = vrot.lane.b32.xlu1 %v4690_v43, %s2633_s21  ;;  %v1552_v36 = vsel %vm1536_vm8, %v1519_v22, %v1114_v52  ;;  %v1388_v52 = vsel %vm1371_vm3, %v2860_v61, %v4698_v16 }
 0x1a0   : > { %834 = vrot.lane.b32.xlu0 %v4689_v57, %s2629_s23  ;;  %v1421_v23 = vsel %vm1404_vm4, %v1388_v52, %v3702_v54 }
 0x1a1   : > { %v1208_v41 = vpop.permute.xlu1 %1207 }
 0x1a2   : > { %v3721_v31 = vpop.permute.xlu0 %818  ;;  %v1584_v21 = vsel %vm1569_vm9, %v1551_v39, %v1208_v41  ;;  %v1454_v41 = vsel %vm1437_vm5, %v1421_v23, %v3713_v44 }
 0x1a3   : > { %934 = vrot.lane.b32.xlu1 %v4690_v43, %s2630_s24  ;;  %v4699_v43 = vld [vmem:[#allocation35_spill] sm:$0xff] }
 0x1a4   : > { %1225 = vrot.lane.b32.xlu0 %v4692_v51, %s2633_s21 }
 0x1a5   : > { %v919_v26 = vpop.permute.xlu1 %918 }
 0x1a6   : > { %v1210_v7 = vpop.permute.xlu0 %1209  ;;  %v1487_v61 = vsel %vm1470_vm6, %v1454_v41, %v919_v26 }
 0x1a7   : > { %1319 = vrot.lane.b32.xlu1 %v674_v5, %s2634_s27  ;;  %v1585_v1 = vsel %vm1569_vm9, %v1552_v36, %v1210_v7 }
 0x1a8   : > { %936 = vrot.lane.b32.xlu0 %v4692_v51, %s2630_s24  ;;  %v4700_v51 = vld [vmem:[#allocation28_spill] sm:$0xff] }
 0x1a9   : > { %v1304_v27 = vpop.permute.xlu1 %1303  ;;  %v680_v62 = vrot.slane %v4700_v51, 2 }
 0x1aa   : > { %v921_v10 = vpop.permute.xlu0 %920  ;;  %v1617_v63 = vsel %vm1602_vm10, %v1584_v21, %v1304_v27  ;;  %v4702_v27 = vld [vmem:[#allocation31_spill] sm:$0xff] }
 0x1ab   : > { %1035 = vrot.lane.b32.xlu1 %v674_v5, %s2631_s29  ;;  %2529 = vmatprep.mubr.msk.f32.mxu0 %vm1644_vm11, %v1617_v63  ;;  %v4703_v63 = vld [vmem:[#allocation32_spill] sm:$0xff] }
 0x1ac   : > { %1321 = vrot.lane.b32.xlu0 %v676_v48, %s2634_s27 }
 0x1ad   : > { %v1020_v56 = vpop.permute.xlu1 %1019 }
 0x1ae   : > { %v1306_v30 = vpop.permute.xlu0 %1305  ;;  %v1520_v42 = vsel %vm1503_vm7, %v1487_v61, %v1020_v56  ;;  %v682_v56 = vrot.slane %v4702_v27, 2 }
 0x1af   : > { %v1618_v12 = vsel %vm1602_vm10, %v1585_v1, %v1306_v30  ;;  %739 = vrot.lane.b32.xlu1 %v674_v5, %s2628_s22  ;;  %v4701_v5 = vld [vmem:[#allocation42_spill] sm:$0xff]  ;;  %v4704_v1 = vld [vmem:[#allocation36_spill] sm:$0xff]  ;;  %v683_v30 = vrot.slane %v4703_v63, 2 }
 0x1b0   : > { %1037 = vrot.lane.b32.xlu0 %v676_v48, %s2631_s29  ;;  %2530 = vmatmul.mubr.msk.f32.gmra.mxu0 %vm1644_vm11, %v1618_v12  ;;  %v1389_v40 = vsel %vm1371_vm3, %v2857_v60, %v4701_v5  ;;  %v681_v60 = vsel %vm606_vm2, %v678_v45, %v680_v62  ;;  %v228_v5 = vld [vmem:[%s2689_s20 + $0xf0] sm:$0xff] }
 0x1b1   : > { %v3763_v18 = vpop.permute.xlu1 %723  ;;  %v1422_v54 = vsel %vm1404_vm4, %v1389_v40, %v3707_v6  ;;  %v684_v45 = vsel %vm606_vm2, %v682_v56, %v683_v30 }
 0x1b2   : > { %v1022_v38 = vpop.permute.xlu0 %1021  ;;  %v1455_v35 = vsel %vm1437_vm5, %v1422_v54, %v3721_v31 }
 0x1b3   : > { %1131 = vrot.lane.b32.xlu1 %v4695_v17, %s2632_s10  ;;  %v1488_v2 = vsel %vm1470_vm6, %v1455_v35, %v921_v10 }
 0x1b4   : > { %741 = vrot.lane.b32.xlu0 %v676_v48, %s2628_s22  ;;  %v1521_v50 = vsel %vm1503_vm7, %v1488_v2, %v1022_v38 }
 0x1b5   : > { %v1116_v14 = vpop.permute.xlu1 %1115 }
 0x1b6   : > { %v3768_v47 = vpop.permute.xlu0 %725  ;;  %v1553_v44 = vsel %vm1536_vm8, %v1520_v42, %v1116_v14  ;;  %v4705_v14 = vld [vmem:[#allocation43_spill] sm:$0xff]  ;;  %v229_v42 = vld [vmem:[%s2689_s20 + $0xf8] sm:$0xff] }
 0x1b7   : > { %836 = vrot.lane.b32.xlu1 %v4695_v17, %s2629_s23 }
 0x1b8   : > { %1133 = vrot.lane.b32.xlu0 %v4696_v25, %s2632_s10 }
 0x1b9   : > { %v3774_v59 = vpop.permute.xlu1 %820 }
 0x1ba   : > { %v1118_v24 = vpop.permute.xlu0 %1117 }
 0x1bb   : > { %1227 = vrot.lane.b32.xlu1 %v4697_v13, %s2633_s21  ;;  %v1554_v6 = vsel %vm1536_vm8, %v1521_v50, %v1118_v24  ;;  %v1390_v24 = vsel %vm1371_vm3, %v2879_v11, %v4705_v14 }
 0x1bc   : > { %838 = vrot.lane.b32.xlu0 %v4696_v25, %s2629_s23 }
 0x1bd   : > { %v1212_v37 = vpop.permute.xlu1 %1211 }
 0x1be   : > { %v3782_v0 = vpop.permute.xlu0 %822  ;;  %v1586_v26 = vsel %vm1569_vm9, %v1553_v44, %v1212_v37  ;;  %v311_v44 = vrot.slane %v228_v5, 7 }
 0x1bf   : > { %938 = vrot.lane.b32.xlu1 %v4697_v13, %s2630_s24  ;;  %v1423_v13 = vsel %vm1404_vm4, %v1390_v24, %v3763_v18 }
 0x1c0   : > { %1229 = vrot.lane.b32.xlu0 %v4699_v43, %s2633_s21  ;;  %v1456_v37 = vsel %vm1437_vm5, %v1423_v13, %v3774_v59  ;;  %v379_v2 = vsel %vm263_vm0, 0.0, %v311_v44 }
 0x1c1   : > { %v923_v29 = vpop.permute.xlu1 %922 }
 0x1c2   : > { %v1214_v32 = vpop.permute.xlu0 %1213  ;;  %v1489_v23 = vsel %vm1470_vm6, %v1456_v37, %v923_v29 }
 0x1c3   : > { %1323 = vrot.lane.b32.xlu1 %v679_v53, %s2634_s27  ;;  %v1587_v31 = vsel %vm1569_vm9, %v1554_v6, %v1214_v32 }
 0x1c4   : > { %940 = vrot.lane.b32.xlu0 %v4699_v43, %s2630_s24  ;;  %v4707_v43 = vld [vmem:[#allocation33_spill] sm:$0xff] }
 0x1c5   : > { %v1308_v7 = vpop.permute.xlu1 %1307  ;;  %v685_v11 = vrot.slane %v4707_v43, 2 }
 0x1c6   : > { %v925_v28 = vpop.permute.xlu0 %924  ;;  %v1619_v55 = vsel %vm1602_vm10, %v1586_v26, %v1308_v7 }
 0x1c7   : > { %1039 = vrot.lane.b32.xlu1 %v679_v53, %s2631_s29  ;;  %2532 = vmatprep.mubr.msk.f32.mxu1 %vm1644_vm11, %v1619_v55 }
 0x1c8   : > { %1325 = vrot.lane.b32.xlu0 %v681_v60, %s2634_s27 }
 0x1c9   : > { %v1024_v9 = vpop.permute.xlu1 %1023 }
 0x1ca   : > { %v1310_v39 = vpop.permute.xlu0 %1309  ;;  %v1522_v41 = vsel %vm1503_vm7, %v1489_v23, %v1024_v9 }
 0x1cb   : > { %v1620_v48 = vsel %vm1602_vm10, %v1587_v31, %v1310_v39  ;;  %743 = vrot.lane.b32.xlu1 %v679_v53, %s2628_s22  ;;  %v4708_v53 = vld [vmem:[#allocation44_spill] sm:$0xff]  ;;  %v881_v31 = vrot.slane %v379_v2, 1 }
 0x1cc   : > { %2533 = vmatmul.mubr.msk.f32.vlgmr.msra.gmra.mxu1 %vm1644_vm11, %v1620_v48  ;;  %1041 = vrot.lane.b32.xlu0 %v681_v60, %s2631_s29  ;;  %v1391_v18 = vsel %vm1371_vm3, %v4670_v15, %v4708_v53  ;;  %v686_v15 = vsel %vm606_vm2, %v683_v30, %v685_v11  ;;  %v982_v30 = vrot.slane %v379_v2, 2 }
 0x1cd   : > { %v3824_v19 = vpop.permute.xlu1 %727  ;;  %v1424_v59 = vsel %vm1404_vm4, %v1391_v18, %v3768_v47 }
 0x1ce   : > { %v1026_v21 = vpop.permute.xlu0 %1025  ;;  %v1457_v51 = vsel %vm1437_vm5, %v1424_v59, %v3782_v0 }
 0x1cf   : > { %1135 = vrot.lane.b32.xlu1 %v4702_v27, %s2632_s10  ;;  %v1490_v40 = vsel %vm1470_vm6, %v1457_v51, %v925_v28 }
 0x1d0   : > { %745 = vrot.lane.b32.xlu0 %v681_v60, %s2628_s22  ;;  %v1523_v54 = vsel %vm1503_vm7, %v1490_v40, %v1026_v21  ;;  %v312_v60 = vrot.slane %v229_v42, 7  ;;  %v4712_v40 = vld [vmem:[#allocation2_spill] sm:$0xff] }
 0x1d1   : > { %v1120_v10 = vpop.permute.xlu1 %1119 }
 0x1d2   : > { %v3829_v46 = vpop.permute.xlu0 %729  ;;  %v1555_v32 = vsel %vm1536_vm8, %v1522_v41, %v1120_v10  ;;  %v313_v6 = vsel %vm263_vm0, %v311_v44, %v312_v60  ;;  %v396_v21 = vsel %vm263_vm0, %v312_v60, 0.0  ;;  %v4710_v41 = vld [vmem:[#allocation46_spill] sm:$0xff] }
 0x1d3   : > { %840 = vrot.lane.b32.xlu1 %v4702_v27, %s2629_s23  ;;  %v882_v9 = vrot.slane %v313_v6, 1  ;;  %v884_v56 = vrot.slane %v396_v21, 1  ;;  %v985_v53 = vrot.slane %v396_v21, 2 }
 0x1d4   : > { %1137 = vrot.lane.b32.xlu0 %v4703_v63, %s2632_s10 }
 0x1d5   : > { %v3835_v22 = vpop.permute.xlu1 %824  ;;  %v883_v10 = vsel %vm429_vm1, %v881_v31, %v882_v9  ;;  %v885_v13 = vsel %vm429_vm1, %v882_v9, %v884_v56  ;;  %v4715_v9 = vld [vmem:[#allocation47_spill] sm:$0xff] }
 0x1d6   : > { %v1122_v36 = vpop.permute.xlu0 %1121 }
 0x1d7   : > { %1231 = vrot.lane.b32.xlu1 %v4704_v1, %s2633_s21  ;;  %v1556_v0 = vsel %vm1536_vm8, %v1523_v54, %v1122_v36 }
 0x1d8   : > { %842 = vrot.lane.b32.xlu0 %v4703_v63, %s2629_s23 }
 0x1d9   : > { %v1216_v12 = vpop.permute.xlu1 %1215 }
 0x1da   : > { %v3843_v38 = vpop.permute.xlu0 %826  ;;  %v1588_v29 = vsel %vm1569_vm9, %v1555_v32, %v1216_v12  ;;  %v983_v12 = vrot.slane %v313_v6, 2 }
 0x1db   : > { %942 = vrot.lane.b32.xlu1 %v4704_v1, %s2630_s24 }
 0x1dc   : > { %1233 = vrot.lane.b32.xlu0 %v4706_v20, %s2633_s21 }
 0x1dd   : > { %v3857_v16 = vpop.permute.xlu1 %926 }
 0x1de   : > { %v1218_v52 = vpop.permute.xlu0 %1217 }
 0x1df   : > { %1327 = vrot.lane.b32.xlu1 %v684_v45, %s2634_s27  ;;  %v1589_v35 = vsel %vm1569_vm9, %v1556_v0, %v1218_v52  ;;  %v984_v52 = vsel %vm606_vm2, %v982_v30, %v983_v12 }
 0x1e0   : > { %944 = vrot.lane.b32.xlu0 %v4706_v20, %s2630_s24  ;;  %v4709_v20 = vld [vmem:[#allocation45_spill] sm:$0xff] }
 0x1e1   : > { %v1312_v62 = vpop.permute.xlu1 %1311 }
 0x1e2   : > { %v3874_v61 = vpop.permute.xlu0 %928  ;;  %v1621_v47 = vsel %vm1602_vm10, %v1588_v29, %v1312_v62 }
 0x1e3   : > { %1043 = vrot.lane.b32.xlu1 %v684_v45, %s2631_s29  ;;  %2535 = vmatprep.mubr.msk.f32.mxu1 %vm1644_vm11, %v1621_v47 }
 0x1e4   : > { %1329 = vrot.lane.b32.xlu0 %v686_v15, %s2634_s27 }
 0x1e5   : > { %v1028_v26 = vpop.permute.xlu1 %1027 }
 0x1e6   : > { %v1314_v7 = vpop.permute.xlu0 %1313 }
 0x1e7   : > { %v1622_v28 = vsel %vm1602_vm10, %v1589_v35, %v1314_v7  ;;  %747 = vrot.lane.b32.xlu1 %v684_v45, %s2628_s22  ;;  %v1392_v45 = vsel %vm1371_vm3, %v4674_v33, %v4709_v20  ;;  %v1393_v33 = vsel %vm1371_vm3, %v4675_v3, %v4710_v41  ;;  %v986_v3 = vsel %vm606_vm2, %v983_v12, %v985_v53  ;;  %v4714_v7 = vld [vmem:[#allocation15_spill] sm:$0xff]  ;;  %v4716_v12 = vld [vmem:[#allocation48_spill] sm:$0xff] }
 0x1e8   : > { %2536 = vmatmul.mubr.msk.f32.gmra.mxu1 %vm1644_vm11, %v1622_v28  ;;  %1045 = vrot.lane.b32.xlu0 %v686_v15, %s2631_s29  ;;  %v1425_v37 = vsel %vm1404_vm4, %v1392_v45, %v3824_v19  ;;  %v1426_v19 = vsel %vm1404_vm4, %v1393_v33, %v3829_v46 }
 0x1e9   : > { %v3892_v55 = vpop.permute.xlu1 %731  ;;  %v1458_v43 = vsel %vm1437_vm5, %v1425_v37, %v3835_v22  ;;  %v1459_v22 = vsel %vm1437_vm5, %v1426_v19, %v3843_v38  ;;  %v4711_v38 = vld [vmem:[#allocation3_spill] sm:$0xff] }
 0x1ea   : > { %v1030_v50 = vpop.permute.xlu0 %1029  ;;  %v1491_v18 = vsel %vm1470_vm6, %v1458_v43, %v3857_v16  ;;  %v1492_v62 = vsel %vm1470_vm6, %v1459_v22, %v3874_v61  ;;  %v2601_v47 = vpack.i.bf16 %v4712_v40, %v4711_v38  ;;  %v4718_v40 = vld [vmem:[#allocation50_spill] sm:$0xff] }
 0x1eb   : > { %1139 = vrot.lane.b32.xlu1 %v379_v2, %s2632_s10  ;;  %v1524_v59 = vsel %vm1503_vm7, %v1491_v18, %v1028_v26  ;;  %v1525_v46 = vsel %vm1503_vm7, %v1492_v62, %v1030_v50  ;;  %v4713_v26 = vld [vmem:[#allocation4_spill] sm:$0xff] }
 0x1ec   : > { %749 = vrot.lane.b32.xlu0 %v686_v15, %s2628_s22 }
 0x1ed   : > { %v1124_v39 = vpop.permute.xlu1 %1123 }
 0x1ee   : > { %v3897_v48 = vpop.permute.xlu0 %733  ;;  %v1557_v32 = vsel %vm1536_vm8, %v1524_v59, %v1124_v39  ;;  %v1394_v39 = vsel %vm1371_vm3, %v4679_v8, %v4715_v9 }
 0x1ef   : > { %844 = vrot.lane.b32.xlu1 %v379_v2, %s2629_s23  ;;  %v1427_v21 = vsel %vm1404_vm4, %v1394_v39, %v3892_v55 }
 0x1f0   : > { %1141 = vrot.lane.b32.xlu0 %v313_v6, %s2632_s10 }
 0x1f1   : > { %v829_v36 = vpop.permute.xlu1 %828 }
 0x1f2   : > { %v1126_v1 = vpop.permute.xlu0 %1125 }
 0x1f3   : > { %1235 = vrot.lane.b32.xlu1 %v883_v10, %s2633_s21  ;;  %v1558_v5 = vsel %vm1536_vm8, %v1525_v46, %v1126_v1 }
 0x1f4   : > { %846 = vrot.lane.b32.xlu0 %v313_v6, %s2629_s23 }
 0x1f5   : > { %v1220_v14 = vpop.permute.xlu1 %1219 }
 0x1f6   : > { %v831_v24 = vpop.permute.xlu0 %830  ;;  %v1590_v16 = vsel %vm1569_vm9, %v1557_v32, %v1220_v14  ;;  %v1395_v14 = vsel %vm1371_vm3, %v4680_v4, %v4716_v12 }
 0x1f7   : > { %946 = vrot.lane.b32.xlu1 %v883_v10, %s2630_s24  ;;  %v1460_v10 = vsel %vm1437_vm5, %v1427_v21, %v829_v36  ;;  %v1428_v20 = vsel %vm1404_vm4, %v1395_v14, %v3897_v48 }
 0x1f8   : > { %1237 = vrot.lane.b32.xlu0 %v885_v13, %s2633_s21  ;;  %v1461_v45 = vsel %vm1437_vm5, %v1428_v20, %v831_v24 }
 0x1f9   : > { %v931_v11 = vpop.permute.xlu1 %930 }
 0x1fa   : > { %v1222_v23 = vpop.permute.xlu0 %1221  ;;  %v1493_v30 = vsel %vm1470_vm6, %v1460_v10, %v931_v11 }
 0x1fb   : > { %1331 = vrot.lane.b32.xlu1 %v984_v52, %s2634_s27  ;;  %v1591_v42 = vsel %vm1569_vm9, %v1558_v5, %v1222_v23 }
 0x1fc   : > { %948 = vrot.lane.b32.xlu0 %v885_v13, %s2630_s24 }
 0x1fd   : > { %v1316_v51 = vpop.permute.xlu1 %1315 }
 0x1fe   : > { %v933_v29 = vpop.permute.xlu0 %932  ;;  %v1623_v15 = vsel %vm1602_vm10, %v1590_v16, %v1316_v51  ;;  %v4717_v51 = vld [vmem:[#allocation49_spill] sm:$0xff] }
 0x1ff   : > { %1047 = vrot.lane.b32.xlu1 %v984_v52, %s2631_s29  ;;  %2538 = vmatprep.mubr.msk.f32.mxu1 %vm1644_vm11, %v1623_v15  ;;  %v1494_v52 = vsel %vm1470_vm6, %v1461_v45, %v933_v29  ;;  %v1396_v29 = vsel %vm1371_vm3, %v4683_v58, %v4717_v51 }
 0x200   : > { %1333 = vrot.lane.b32.xlu0 %v986_v3, %s2634_s27 }
 0x201   : > { %v1032_v54 = vpop.permute.xlu1 %1031 }
 0x202   : > { %v1318_v0 = vpop.permute.xlu0 %1317  ;;  %v1526_v13 = vsel %vm1503_vm7, %v1493_v30, %v1032_v54  ;;  %v4719_v30 = vld [vmem:[#allocation51_spill] sm:$0xff] }
 0x203   : > { %v1624_v61 = vsel %vm1602_vm10, %v1591_v42, %v1318_v0  ;;  %1049 = vrot.lane.b32.xlu1 %v986_v3, %s2631_s29  ;;  %v1398_v12 = vsel %vm1371_vm3, %v4688_v49, %v4719_v30 }
 0x204   : > { %2539 = vmatmul.mubr.msk.f32.gmra.mxu1 %vm1644_vm11, %v1624_v61  ;;  %2602 = vrot.lane.b32.xlu0 %v2601_v47, %s2632_s10  ;;  %v1397_v47 = vsel %vm1371_vm3, %v4684_v34, %v4718_v40 }
 0x205   : > { %v736_v44 = vpop.permute.xlu1 %735 }
 0x206   : > { %v1034_v35 = vpop.permute.xlu0 %1033  ;;  %v1429_v3 = vsel %vm1404_vm4, %v1396_v29, %v736_v44 }
 0x207   : > { %2607 = vrot.lane.b32.xlu1 %v4713_v26, %s2633_s21  ;;  %v1527_v11 = vsel %vm1503_vm7, %v1494_v52, %v1034_v35 }
 0x208   : > { %2612 = vrot.lane.b32.xlu0 %v4714_v7, %s2634_s27 }
 0x209   : > { %v1128_v60 = vpop.permute.xlu1 %1127 }
 0x20a   : > { %v738_v28 = vpop.permute.xlu0 %737  ;;  %v1559_v8 = vsel %vm1536_vm8, %v1526_v13, %v1128_v60 }
 0x20b   : > { %v1430_v54 = vsel %vm1404_vm4, %v1397_v47, %v738_v28 }
 0x20d   : > { %v833_v2 = vpop.permute.xlu1 %832 }
 0x20e   : > { %v1130_v50 = vpop.permute.xlu0 %1129  ;;  %v1462_v62 = vsel %vm1437_vm5, %v1429_v3, %v833_v2 }
 0x20f   : > { %v1560_v4 = vsel %vm1536_vm8, %v1527_v11, %v1130_v50 }
 0x211   : > { %v1224_v6 = vpop.permute.xlu1 %1223 }
 0x212   : > { %v835_v31 = vpop.permute.xlu0 %834  ;;  %v1592_v55 = vsel %vm1569_vm9, %v1559_v8, %v1224_v6 }
 0x213   : > { %v1463_v44 = vsel %vm1437_vm5, %v1430_v54, %v835_v31 }
 0x215   : > { %v935_v1 = vpop.permute.xlu1 %934 }
 0x216   : > { %v1226_v56 = vpop.permute.xlu0 %1225  ;;  %v1495_v5 = vsel %vm1470_vm6, %v1462_v62, %v935_v1 }
 0x217   : > { %v1593_v48 = vsel %vm1569_vm9, %v1560_v4, %v1226_v56 }
 0x219   : > { %v1320_v36 = vpop.permute.xlu1 %1319 }
 0x21a   : > { %v937_v37 = vpop.permute.xlu0 %936  ;;  %v1625_v43 = vsel %vm1602_vm10, %v1592_v55, %v1320_v36  ;;  %v4720_v36 = vld [vmem:[#allocation52_spill] sm:$0xff] }
 0x21b   : > { %2541 = vmatprep.mubr.msk.f32.mxu1 %vm1644_vm11, %v1625_v43  ;;  %v1496_v26 = vsel %vm1470_vm6, %v1463_v44, %v937_v37  ;;  %v1399_v37 = vsel %vm1371_vm3, %v4689_v57, %v4720_v36 }
 0x21d   : > { %v1036_v23 = vpop.permute.xlu1 %1035 }
 0x21e   : > { %v1322_v53 = vpop.permute.xlu0 %1321  ;;  %v1528_v38 = vsel %vm1503_vm7, %v1495_v5, %v1036_v23 }
 0x21f   : > { %v1626_v24 = vsel %vm1602_vm10, %v1593_v48, %v1322_v53 }
 0x220   : > { %2542 = vmatmul.mubr.msk.f32.gmra.mxu1 %vm1644_vm11, %v1626_v24 }
 0x221   : > { %v740_v18 = vpop.permute.xlu1 %739 }
 0x222   : > { %v1038_v41 = vpop.permute.xlu0 %1037  ;;  %v1431_v14 = vsel %vm1404_vm4, %v1398_v12, %v740_v18 }
 0x223   : > { %v1529_v7 = vsel %vm1503_vm7, %v1496_v26, %v1038_v41 }
 0x225   : > { %v1132_v33 = vpop.permute.xlu1 %1131 }
 0x226   : > { %v742_v59 = vpop.permute.xlu0 %741  ;;  %v1561_v42 = vsel %vm1536_vm8, %v1528_v38, %v1132_v33 }
 0x227   : > { %v1432_v43 = vsel %vm1404_vm4, %v1399_v37, %v742_v59 }
 0x229   : > { %v837_v19 = vpop.permute.xlu1 %836 }
 0x22a   : > { %v1134_v32 = vpop.permute.xlu0 %1133  ;;  %v1464_v13 = vsel %vm1437_vm5, %v1431_v14, %v837_v19 }
 0x22b   : > { %v1562_v34 = vsel %vm1536_vm8, %v1529_v7, %v1134_v32 }
 0x22d   : > { %v1228_v22 = vpop.permute.xlu1 %1227 }
 0x22e   : > { %v839_v16 = vpop.permute.xlu0 %838  ;;  %v1594_v58 = vsel %vm1569_vm9, %v1561_v42, %v1228_v22 }
 0x22f   : > { %v1465_v4 = vsel %vm1437_vm5, %v1432_v43, %v839_v16 }
 0x231   : > { %v939_v15 = vpop.permute.xlu1 %938 }
 0x232   : > { %v1230_v46 = vpop.permute.xlu0 %1229  ;;  %v1497_v8 = vsel %vm1470_vm6, %v1464_v13, %v939_v15  ;;  %v4721_v15 = vld [vmem:[#allocation53_spill] sm:$0xff] }
 0x233   : > { %v1595_v2 = vsel %vm1569_vm9, %v1562_v34, %v1230_v46  ;;  %v1400_v46 = vsel %vm1371_vm3, %v4695_v17, %v4721_v15 }
 0x235   : > { %v1324_v0 = vpop.permute.xlu1 %1323 }
 0x236   : > { %v941_v61 = vpop.permute.xlu0 %940  ;;  %v1627_v35 = vsel %vm1602_vm10, %v1594_v58, %v1324_v0  ;;  %v4722_v58 = vld [vmem:[#allocation54_spill] sm:$0xff] }
 0x237   : > { %2544 = vmatprep.mubr.msk.f32.mxu1 %vm1644_vm11, %v1627_v35  ;;  %v1498_v53 = vsel %vm1470_vm6, %v1465_v4, %v941_v61  ;;  %v1401_v0 = vsel %vm1371_vm3, %v4696_v25, %v4722_v58 }
 0x239   : > { %v1040_v60 = vpop.permute.xlu1 %1039 }
 0x23a   : > { %v1326_v28 = vpop.permute.xlu0 %1325  ;;  %v1530_v55 = vsel %vm1503_vm7, %v1497_v8, %v1040_v60 }
 0x23b   : > { %v1628_v50 = vsel %vm1602_vm10, %v1595_v2, %v1326_v28 }
 0x23c   : > { %2545 = vmatmul.mubr.msk.f32.gmra.mxu1 %vm1644_vm11, %v1628_v50 }
 0x23d   : > { %v744_v6 = vpop.permute.xlu1 %743 }
 0x23e   : > { %v1042_v31 = vpop.permute.xlu0 %1041  ;;  %v1433_v5 = vsel %vm1404_vm4, %v1400_v46, %v744_v6 }
 0x23f   : > { %v1531_v24 = vsel %vm1503_vm7, %v1498_v53, %v1042_v31 }
 0x241   : > { %v1136_v9 = vpop.permute.xlu1 %1135 }
 0x242   : > { %v746_v39 = vpop.permute.xlu0 %745  ;;  %v1563_v52 = vsel %vm1536_vm8, %v1530_v55, %v1136_v9  ;;  %v4723_v9 = vld [vmem:[#allocation56_spill] sm:$0xff] }
 0x243   : > { %v1434_v44 = vsel %vm1404_vm4, %v1401_v0, %v746_v39  ;;  %v1403_v39 = vsel %vm1371_vm3, %v4703_v63, %v4723_v9 }
 0x245   : > { %v841_v21 = vpop.permute.xlu1 %840 }
 0x246   : > { %v1138_v10 = vpop.permute.xlu0 %1137  ;;  %v1466_v38 = vsel %vm1437_vm5, %v1433_v5, %v841_v21 }
 0x247   : > { %v1564_v57 = vsel %vm1536_vm8, %v1531_v24, %v1138_v10 }
 0x249   : > { %v1232_v1 = vpop.permute.xlu1 %1231 }
 0x24a   : > { %v843_v56 = vpop.permute.xlu0 %842  ;;  %v1596_v49 = vsel %vm1569_vm9, %v1563_v52, %v1232_v1  ;;  %v4724_v1 = vld [vmem:[#allocation55_spill] sm:$0xff] }
 0x24b   : > { %v1467_v26 = vsel %vm1437_vm5, %v1434_v44, %v843_v56  ;;  %v1402_v56 = vsel %vm1371_vm3, %v4702_v27, %v4724_v1 }
 0x24d   : > { %v943_v20 = vpop.permute.xlu1 %942 }
 0x24e   : > { %v1234_v45 = vpop.permute.xlu0 %1233  ;;  %v1499_v47 = vsel %vm1470_vm6, %v1466_v38, %v943_v20 }
 0x24f   : > { %v1597_v41 = vsel %vm1569_vm9, %v1564_v57, %v1234_v45 }
 0x251   : > { %v1328_v11 = vpop.permute.xlu1 %1327 }
 0x252   : > { %v1629_v48 = vsel %vm1602_vm10, %v1596_v49, %v1328_v11  ;;  %v945_v23 = vpop.permute.xlu0 %944 }
 0x253   : > { %2547 = vmatprep.mubr.msk.f32.mxu1 %vm1644_vm11, %v1629_v48  ;;  %v1500_v60 = vsel %vm1470_vm6, %v1467_v26, %v945_v23 }
 0x255   : > { %v1044_v18 = vpop.permute.xlu1 %1043 }
 0x256   : > { %v1330_v33 = vpop.permute.xlu0 %1329  ;;  %v1532_v54 = vsel %vm1503_vm7, %v1499_v47, %v1044_v18  ;;  %v4062_v18 = vpop.f32.mrf.mxu0 }
 0x257   : > { %v1630_v59 = vsel %vm1602_vm10, %v1597_v41, %v1330_v33 }
 0x258   : > { %2548 = vmatmul.mubr.msk.f32.gmra.mxu1 %vm1644_vm11, %v1630_v59  ;;  %v4064_v41 = vpop.f32.mrf.mxu0 }
 0x259   : > { %v748_v19 = vpop.permute.xlu1 %747 }
 0x25a   : > { %v1046_v32 = vpop.permute.xlu0 %1045  ;;  %v1435_v14 = vsel %vm1404_vm4, %v1402_v56, %v748_v19  ;;  %v4066_v33 = vpop.f32.mrf.mxu0  ;;  %v1966_v19 = vsel %vm1371_vm3, %v4064_v41, 0.0 }
 0x25b   : > { %v1533_v2 = vsel %vm1503_vm7, %v1500_v60, %v1046_v32  ;;  %v1971_v15 = vsel %vm1371_vm3, %v4066_v33, 0.0 }
 0x25c   : > { %v4068_v59 = vpop.f32.mrf.mxu0 }
 0x25d   : > { %v1140_v22 = vpop.permute.xlu1 %1139 }
 0x25e   : > { %v750_v16 = vpop.permute.xlu0 %749  ;;  %v1565_v61 = vsel %vm1536_vm8, %v1532_v54, %v1140_v22  ;;  %v4072_v32 = vpop.f32.mrf.mxu0  ;;  %v1967_v22 = vsel %vm1371_vm3, %v4062_v18, 0.0 }
 0x25f   : > { %v1436_v21 = vsel %vm1404_vm4, %v1403_v39, %v750_v16  ;;  %v1969_v16 = vsel %vm1371_vm3, %v4068_v59, 0.0 }
 0x261   : > { %v845_v51 = vpop.permute.xlu1 %844 }
 0x262   : > { %v1142_v29 = vpop.permute.xlu0 %1141  ;;  %v1468_v63 = vsel %vm1437_vm5, %v1435_v14, %v845_v51  ;;  %v1968_v51 = vadd.f32 %v1967_v22, %v1966_v19 }
 0x263   : > { %v1566_v25 = vsel %vm1536_vm8, %v1533_v2, %v1142_v29 }
 0x264   : > { %v1970_v29 = vadd.f32 %v1969_v16, %v1968_v51 }
 0x265   : > { %v1236_v3 = vpop.permute.xlu1 %1235 }
 0x266   : > { %v847_v62 = vpop.permute.xlu0 %846  ;;  %v1598_v17 = vsel %vm1569_vm9, %v1565_v61, %v1236_v3  ;;  %v4078_v3 = vpop.f32.mrf.mxu0  ;;  %v1972_v5 = vadd.f32 %v1971_v15, %v1970_v29 }
 0x267   : > { %v1469_v30 = vsel %vm1437_vm5, %v1436_v21, %v847_v62  ;;  %v1973_v46 = vsel %vm1371_vm3, %v4078_v3, 0.0 }
 0x268   : > { %v4080_v62 = vpop.f32.mrf.mxu0  ;;  %v1974_v38 = vadd.f32 %v1973_v46, %v1972_v5 }
 0x269   : > { %v947_v40 = vpop.permute.xlu1 %946 }
 0x26a   : > { %v1238_v42 = vpop.permute.xlu0 %1237  ;;  %v1501_v55 = vsel %vm1470_vm6, %v1468_v63, %v947_v40  ;;  %v4086_v40 = vpop.f32.mrf.mxu0 }
 0x26b   : > { %v1599_v50 = vsel %vm1569_vm9, %v1566_v25, %v1238_v42  ;;  %v1975_v42 = vsel %vm1371_vm3, %v4072_v32, 0.0  ;;  %v1977_v54 = vsel %vm1371_vm3, %v4086_v40, 0.0 }
 0x26c   : > { %v4088_v47 = vpop.f32.mrf.mxu0  ;;  %v1976_v58 = vadd.f32 %v1975_v42, %v1974_v38 }
 0x26d   : > { %v1332_v35 = vpop.permute.xlu1 %1331  ;;  %v1983_v2 = vsel %vm1371_vm3, %v4088_v47, 0.0 }
 0x26e   : > { %v1631_v7 = vsel %vm1602_vm10, %v1598_v17, %v1332_v35  ;;  %v949_v34 = vpop.permute.xlu0 %948  ;;  %v1978_v0 = vadd.f32 %v1977_v54, %v1976_v58  ;;  %v4094_v61 = vpop.f32.mrf.mxu0  ;;  %v1979_v17 = vsel %vm1371_vm3, %v4080_v62, 0.0 }
 0x26f   : > { %2550 = vmatprep.mubr.msk.f32.mxu1 %vm1644_vm11, %v1631_v7  ;;  %v1502_v13 = vsel %vm1470_vm6, %v1469_v30, %v949_v34  ;;  %v1981_v35 = vsel %vm1371_vm3, %v4094_v61, 0.0 }
 0x270   : > { %v4096_v44 = vpop.f32.mrf.mxu0  ;;  %v1980_v26 = vadd.f32 %v1979_v17, %v1978_v0 }
 0x271   : > { %v1048_v28 = vpop.permute.xlu1 %1047  ;;  %v1987_v9 = vsel %vm1371_vm3, %v4096_v44, 0.0 }
 0x272   : > { %v1334_v6 = vpop.permute.xlu0 %1333  ;;  %v1534_v37 = vsel %vm1503_vm7, %v1501_v55, %v1048_v28  ;;  %v1982_v7 = vadd.f32 %v1981_v35, %v1980_v26  ;;  %v4102_v34 = vpop.f32.mrf.mxu0 }
 0x273   : > { %v1632_v31 = vsel %vm1602_vm10, %v1599_v50, %v1334_v6  ;;  %v1985_v25 = vsel %vm1371_vm3, %v4102_v34, 0.0 }
 0x274   : > { %2551 = vmatmul.mubr.msk.f32.gmra.mxu1 %vm1644_vm11, %v1632_v31  ;;  %v4104_v60 = vpop.f32.mrf.mxu0  ;;  %v1984_v28 = vadd.f32 %v1983_v2, %v1982_v7 }
 0x275   : > { %v1050_v10 = vpop.permute.xlu1 %1049  ;;  %v1991_v30 = vsel %vm1371_vm3, %v4104_v60, 0.0 }
 0x276   : > { %v2603_v12 = vpop.permute.xlu0 %2602  ;;  %v1535_v45 = vsel %vm1503_vm7, %v1502_v13, %v1050_v10  ;;  %v1986_v50 = vadd.f32 %v1985_v25, %v1984_v28  ;;  %v4110_v6 = vpop.f32.mrf.mxu0 }
 0x277   : > { %v2605_v20 = vunpack.i.h.bf16 %v2603_v12  ;;  %v2604_v8 = vunpack.i.l.bf16 %v2603_v12  ;;  %v1989_v39 = vsel %vm1371_vm3, %v4110_v6, 0.0 }
 0x278   : > { %v4112_v31 = vpop.f32.mrf.mxu0  ;;  %v1988_v21 = vadd.f32 %v1987_v9, %v1986_v50 }
 0x279   : > { %v2608_v36 = vpop.permute.xlu1 %2607  ;;  %v1568_v49 = vsel %vm1536_vm8, %v1535_v45, %v2605_v20  ;;  %v1567_v11 = vsel %vm1536_vm8, %v1534_v37, %v2604_v8  ;;  %v1995_v63 = vsel %vm1371_vm3, %v4112_v31, 0.0 }
 0x27a   : > { %v2610_v52 = vunpack.i.h.bf16 %v2608_v36  ;;  %v2609_v27 = vunpack.i.l.bf16 %v2608_v36  ;;  %v2613_v43 = vpop.permute.xlu0 %2612  ;;  %v1990_v10 = vadd.f32 %v1989_v39, %v1988_v21  ;;  %v4118_v1 = vpop.f32.mrf.mxu0 }
 0x27b   : > { %v2615_v4 = vunpack.i.h.bf16 %v2613_v43  ;;  %v2614_v48 = vunpack.i.l.bf16 %v2613_v43  ;;  %v1993_v12 = vsel %vm1371_vm3, %v4118_v1, 0.0 }
 0x27c   : > { %v1600_v23 = vsel %vm1569_vm9, %v1567_v11, %v2609_v27  ;;  %v1601_v53 = vsel %vm1569_vm9, %v1568_v49, %v2610_v52  ;;  %v1992_v14 = vadd.f32 %v1991_v30, %v1990_v10 }
 0x27d   : > { %v1633_v24 = vsel %vm1602_vm10, %v1600_v23, %v2614_v48  ;;  %v1634_v57 = vsel %vm1602_vm10, %v1601_v53, %v2615_v4 }
 0x27e   : > { %2553 = vmatprep.mubr.msk.f32.mxu1 %vm1644_vm11, %v1633_v24  ;;  %v1994_v13 = vadd.f32 %v1993_v12, %v1992_v14 }
 0x27f   : > { %2554 = vmatmul.mubr.msk.f32.gmra.mxu1 %vm1644_vm11, %v1634_v57 }
 0x280   : > { %v1996_v55 = vadd.f32 %v1995_v63, %v1994_v13 }
 0x28c   : > { %v4120_v56 = vpop.f32.mrf.mxu1 }
 0x28d   : > { %v1999_v27 = vsel %vm1371_vm3, %v4120_v56, 0.0 }
 0x28e   : > { %v4126_v20 = vpop.f32.mrf.mxu1 }
 0x28f   : > { %v1997_v45 = vsel %vm1371_vm3, %v4126_v20, 0.0 }
 0x290   : > { %v1998_v36 = vadd.f32 %v1997_v45, %v1996_v55 }
 0x292   : > { %v2000_v49 = vadd.f32 %v1999_v27, %v1998_v36 }
 0x2a8   : > { %v4128_v8 = vpop.f32.mrf.mxu1 }
 0x2a9   : > { %v2003_v23 = vsel %vm1371_vm3, %v4128_v8, 0.0 }
 0x2aa   : > { %v4134_v37 = vpop.f32.mrf.mxu1 }
 0x2ab   : > { %v2001_v43 = vsel %vm1371_vm3, %v4134_v37, 0.0 }
 0x2ac   : > { %v2002_v11 = vadd.f32 %v2001_v43, %v2000_v49 }
 0x2ae   : > { %v2004_v24 = vadd.f32 %v2003_v23, %v2002_v11 }
 0x2c4   : > { %v4136_v52 = vpop.f32.mrf.mxu1 }
 0x2c5   : > { %v2007_v16 = vsel %vm1371_vm3, %v4136_v52, 0.0 }
 0x2c6   : > { %v4142_v4 = vpop.f32.mrf.mxu1 }
 0x2c7   : > { %v2005_v53 = vsel %vm1371_vm3, %v4142_v4, 0.0 }
 0x2c8   : > { %v2006_v57 = vadd.f32 %v2005_v53, %v2004_v24 }
 0x2ca   : > { %v2008_v29 = vadd.f32 %v2007_v16, %v2006_v57 }
 0x2e0   : > { %v4144_v48 = vpop.f32.mrf.mxu1 }
 0x2e1   : > { %v2011_v38 = vsel %vm1371_vm3, %v4144_v48, 0.0 }
 0x2e2   : > { %v4150_v19 = vpop.f32.mrf.mxu1 }
 0x2e3   : > { %v2009_v51 = vsel %vm1371_vm3, %v4150_v19, 0.0 }
 0x2e4   : > { %v2010_v15 = vadd.f32 %v2009_v51, %v2008_v29 }
 0x2e6   : > { %v2012_v54 = vadd.f32 %v2011_v38, %v2010_v15 }
 0x2fc   : > { %v4152_v22 = vpop.f32.mrf.mxu1 }
 0x2fd   : > { %v2015_v17 = vsel %vm1371_vm3, %v4152_v22, 0.0 }
 0x2fe   : > { %v4158_v46 = vpop.f32.mrf.mxu1 }
 0x2ff   : > { %v2013_v42 = vsel %vm1371_vm3, %v4158_v46, 0.0 }
 0x300   : > { %v2014_v58 = vadd.f32 %v2013_v42, %v2012_v54 }
 0x302   : > { %v2016_v7 = vadd.f32 %v2015_v17, %v2014_v58 }
 0x318   : > { %v4160_v5 = vpop.f32.mrf.mxu1 }
 0x319   : > { %v2019_v28 = vsel %vm1371_vm3, %v4160_v5, 0.0 }
 0x31a   : > { %v4166_v0 = vpop.f32.mrf.mxu1 }
 0x31b   : > { %v2017_v35 = vsel %vm1371_vm3, %v4166_v0, 0.0 }
 0x31c   : > { %v2018_v2 = vadd.f32 %v2017_v35, %v2016_v7 }
 0x31e   : > { %v2020_v9 = vadd.f32 %v2019_v28, %v2018_v2 }
 0x334   : > { %v4172_v26 = vpop.f32.mrf.mxu1 }
 0x335   : > { %v2023_v10 = vsel %vm1371_vm3, %v4172_v26, 0.0 }
 0x336   : > { %v4174_v25 = vpop.f32.mrf.mxu1 }
 0x337   : > { %v2021_v50 = vsel %vm1371_vm3, %v4174_v25, 0.0 }
 0x338   : > { %v2022_v39 = vadd.f32 %v2021_v50, %v2020_v9 }
 0x33a   : > { %v2024_v12 = vadd.f32 %v2023_v10, %v2022_v39 }
 0x33f   : > { %v4180_v21 = vpop.f32.mrf.mxu1 }
 0x340   : > { %v2027_v63 = vsel %vm1371_vm3, %v4180_v21, 0.0 }
 0x341   : > { %v4184_v30 = vpop.f32.mrf.mxu1 }
 0x342   : > { %v2025_v14 = vsel %vm1371_vm3, %v4184_v30, 0.0 }
 0x343   : > { %v2026_v13 = vadd.f32 %v2025_v14, %v2024_v12 }
 0x345   : > { %v2028_v45 = vadd.f32 %v2027_v63, %v2026_v13 }
 0x347   : > { %v2029_v55 = vrot.slane %v2028_v45, 4 }
 0x349   : > { %v2030_v36 = vadd.f32 %v2029_v55, %v2028_v45 }
 0x34b   : > { %v2031_v27 = vrot.slane %v2030_v36, 2 }
 0x34d   : > { %v2032_v43 = vadd.f32 %v2031_v27, %v2030_v36 }
 0x34f   : > { %v2033_v49 = vrot.slane %v2032_v43, 1 }
 0x351   : > { %v2034_v11 = vadd.f32 %v2033_v49, %v2032_v43 }
 0x353   : > { %v4190_v23 = vmul.f32 0.00390625, %v2034_v11 }
 0x355   : > { %v4194_v53 = vsub.f32 %v4064_v41, %v4190_v23  ;;  %v4198_v24 = vsub.f32 %v4062_v18, %v4190_v23  ;;  %v4202_v57 = vsub.f32 %v4068_v59, %v4190_v23  ;;  %v4206_v16 = vsub.f32 %v4066_v33, %v4190_v23 }
 0x356   : > { %v4214_v41 = vsub.f32 %v4078_v3, %v4190_v23  ;;  %v4220_v59 = vsub.f32 %v4072_v32, %v4190_v23  ;;  %v4228_v54 = vsub.f32 %v4086_v40, %v4190_v23  ;;  %v4235_v32 = vsub.f32 %v4080_v62, %v4190_v23 }
 0x357   : > { %v2069_v51 = vmul.f32 %v4194_v53, %v4194_v53  ;;  %v2070_v29 = vmul.f32 %v4198_v24, %v4198_v24  ;;  %v2071_v18 = vmul.f32 %v4202_v57, %v4202_v57  ;;  %v2072_v33 = vmul.f32 %v4206_v16, %v4206_v16 }
 0x358   : > { %v2073_v3 = vmul.f32 %v4214_v41, %v4214_v41  ;;  %v2074_v35 = vmul.f32 %v4220_v59, %v4220_v59  ;;  %v4242_v40 = vsub.f32 %v4094_v61, %v4190_v23  ;;  %v2075_v28 = vmul.f32 %v4228_v54, %v4228_v54 }
 0x359   : > { %v2101_v15 = vsel %vm1371_vm3, %v2069_v51, 0.0  ;;  %v2102_v38 = vsel %vm1371_vm3, %v2070_v29, 0.0  ;;  %v2104_v58 = vsel %vm1371_vm3, %v2071_v18, 0.0  ;;  %v2106_v7 = vsel %vm1371_vm3, %v2072_v33, 0.0 }
 0x35a   : > { %v2103_v42 = vadd.f32 %v2102_v38, %v2101_v15  ;;  %v2108_v50 = vsel %vm1371_vm3, %v2073_v3, 0.0  ;;  %v4249_v62 = vsub.f32 %v4088_v47, %v4190_v23  ;;  %v2076_v39 = vmul.f32 %v4235_v32, %v4235_v32 }
 0x35b   : > { %v2110_v10 = vsel %vm1371_vm3, %v2074_v35, 0.0  ;;  %v4256_v61 = vsub.f32 %v4102_v34, %v4190_v23  ;;  %v2077_v14 = vmul.f32 %v4242_v40, %v4242_v40  ;;  %v2112_v13 = vsel %vm1371_vm3, %v2075_v28, 0.0 }
 0x35c   : > { %v2105_v17 = vadd.f32 %v2104_v58, %v2103_v42  ;;  %v4263_v47 = vsub.f32 %v4096_v44, %v4190_v23  ;;  %v2078_v45 = vmul.f32 %v4249_v62, %v4249_v62  ;;  %v2114_v55 = vsel %vm1371_vm3, %v2076_v39, 0.0 }
 0x35d   : > { %v4270_v34 = vsub.f32 %v4110_v6, %v4190_v23  ;;  %v2079_v27 = vmul.f32 %v4256_v61, %v4256_v61  ;;  %v2116_v43 = vsel %vm1371_vm3, %v2077_v14, 0.0  ;;  %v4277_v44 = vsub.f32 %v4104_v60, %v4190_v23 }
 0x35e   : > { %v2107_v2 = vadd.f32 %v2106_v7, %v2105_v17  ;;  %v2080_v11 = vmul.f32 %v4263_v47, %v4263_v47  ;;  %v2118_v51 = vsel %vm1371_vm3, %v2078_v45, 0.0  ;;  %v4284_v6 = vsub.f32 %v4118_v1, %v4190_v23 }
 0x35f   : > { %v2081_v18 = vmul.f32 %v4270_v34, %v4270_v34  ;;  %v2120_v33 = vsel %vm1371_vm3, %v2079_v27, 0.0  ;;  %v4291_v60 = vsub.f32 %v4112_v31, %v4190_v23  ;;  %v2082_v38 = vmul.f32 %v4277_v44, %v4277_v44 }
 0x360   : > { %v2109_v9 = vadd.f32 %v2108_v50, %v2107_v2  ;;  %v2122_v42 = vsel %vm1371_vm3, %v2080_v11, 0.0  ;;  %v4298_v1 = vsub.f32 %v4126_v20, %v4190_v23  ;;  %v2083_v58 = vmul.f32 %v4284_v6, %v4284_v6 }
 0x361   : > { %v2124_v17 = vsel %vm1371_vm3, %v2081_v18, 0.0  ;;  %v4305_v31 = vsub.f32 %v4120_v56, %v4190_v23  ;;  %v2084_v7 = vmul.f32 %v4291_v60, %v4291_v60  ;;  %v2126_v2 = vsel %vm1371_vm3, %v2082_v38, 0.0 }
 0x362   : > { %v2111_v12 = vadd.f32 %v2110_v10, %v2109_v9  ;;  %v4312_v20 = vsub.f32 %v4134_v37, %v4190_v23  ;;  %v2085_v50 = vmul.f32 %v4298_v1, %v4298_v1  ;;  %v2128_v9 = vsel %vm1371_vm3, %v2083_v58, 0.0 }
 0x363   : > { %v4319_v56 = vsub.f32 %v4128_v8, %v4190_v23  ;;  %v2086_v10 = vmul.f32 %v4305_v31, %v4305_v31  ;;  %v4326_v37 = vsub.f32 %v4142_v4, %v4190_v23  ;;  %v4333_v8 = vsub.f32 %v4136_v52, %v4190_v23 }
 0x364   : > { %v2113_v63 = vadd.f32 %v2112_v13, %v2111_v12  ;;  %v2130_v12 = vsel %vm1371_vm3, %v2084_v7, 0.0  ;;  %v2087_v13 = vmul.f32 %v4312_v20, %v4312_v20  ;;  %v4340_v4 = vsub.f32 %v4150_v19, %v4190_v23 }
 0x365   : > { %v4347_v52 = vsub.f32 %v4144_v48, %v4190_v23  ;;  %v4354_v19 = vsub.f32 %v4158_v46, %v4190_v23  ;;  %v4361_v48 = vsub.f32 %v4152_v22, %v4190_v23  ;;  %v4368_v46 = vsub.f32 %v4166_v0, %v4190_v23 }
 0x366   : > { %v2115_v36 = vadd.f32 %v2114_v55, %v2113_v63  ;;  %v2132_v63 = vsel %vm1371_vm3, %v2085_v50, 0.0  ;;  %v2088_v55 = vmul.f32 %v4319_v56, %v4319_v56  ;;  %v4375_v22 = vsub.f32 %v4160_v5, %v4190_v23 }
 0x367   : > { %v4382_v0 = vsub.f32 %v4174_v25, %v4190_v23  ;;  %v2066_v5 = vsub.f32 %v4172_v26, %v4190_v23 }
 0x368   : > { %v2117_v49 = vadd.f32 %v2116_v43, %v2115_v36  ;;  %v2134_v36 = vsel %vm1371_vm3, %v2086_v10, 0.0  ;;  %v2089_v43 = vmul.f32 %v4326_v37, %v4326_v37 }
 0x369   : > { %v2097_v25 = vmul.f32 %v4382_v0, %v4382_v0 }
 0x36a   : > { %v2119_v29 = vadd.f32 %v2118_v51, %v2117_v49  ;;  %v2136_v49 = vsel %vm1371_vm3, %v2087_v13, 0.0  ;;  %v2090_v51 = vmul.f32 %v4333_v8, %v4333_v8 }
 0x36c   : > { %v2121_v15 = vadd.f32 %v2120_v33, %v2119_v29  ;;  %v2138_v29 = vsel %vm1371_vm3, %v2088_v55, 0.0  ;;  %v2091_v33 = vmul.f32 %v4340_v4, %v4340_v4 }
 0x36e   : > { %v2123_v3 = vadd.f32 %v2122_v42, %v2121_v15  ;;  %v2140_v15 = vsel %vm1371_vm3, %v2089_v43, 0.0  ;;  %v2092_v42 = vmul.f32 %v4347_v52, %v4347_v52 }
 0x370   : > { %v2125_v35 = vadd.f32 %v2124_v17, %v2123_v3  ;;  %v2142_v3 = vsel %vm1371_vm3, %v2090_v51, 0.0  ;;  %v2093_v17 = vmul.f32 %v4354_v19, %v4354_v19 }
 0x372   : > { %v2127_v28 = vadd.f32 %v2126_v2, %v2125_v35  ;;  %v2144_v35 = vsel %vm1371_vm3, %v2091_v33, 0.0  ;;  %v2094_v2 = vmul.f32 %v4361_v48, %v4361_v48 }
 0x374   : > { %v2129_v39 = vadd.f32 %v2128_v9, %v2127_v28  ;;  %v2146_v28 = vsel %vm1371_vm3, %v2092_v42, 0.0  ;;  %v2095_v9 = vmul.f32 %v4368_v46, %v4368_v46 }
 0x376   : > { %v2131_v14 = vadd.f32 %v2130_v12, %v2129_v39  ;;  %v2148_v39 = vsel %vm1371_vm3, %v2093_v17, 0.0  ;;  %v2096_v12 = vmul.f32 %v4375_v22, %v4375_v22 }
 0x378   : > { %v2133_v45 = vadd.f32 %v2132_v63, %v2131_v14  ;;  %v2150_v14 = vsel %vm1371_vm3, %v2094_v2, 0.0  ;;  %v2067_v63 = vsub.f32 %v4184_v30, %v4190_v23  ;;  %v2154_v26 = vsel %vm1371_vm3, %v2096_v12, 0.0 }
 0x37a   : > { %v2135_v27 = vadd.f32 %v2134_v36, %v2133_v45  ;;  %v2152_v45 = vsel %vm1371_vm3, %v2095_v9, 0.0  ;;  %v2068_v36 = vsub.f32 %v4180_v21, %v4190_v23 }
 0x37c   : > { %v2137_v11 = vadd.f32 %v2136_v49, %v2135_v27  ;;  %v2098_v27 = vmul.f32 %v2066_v5, %v2066_v5  ;;  %v2099_v49 = vmul.f32 %v2067_v63, %v2067_v63 }
 0x37e   : > { %v2139_v18 = vadd.f32 %v2138_v29, %v2137_v11  ;;  %v2156_v11 = vsel %vm1371_vm3, %v2097_v25, 0.0  ;;  %v2100_v29 = vmul.f32 %v2068_v36, %v2068_v36  ;;  %v2158_v30 = vsel %vm1371_vm3, %v2098_v27, 0.0 }
 0x37f   : > { %v2160_v33 = vsel %vm1371_vm3, %v2099_v49, 0.0 }
 0x380   : > { %v2141_v38 = vadd.f32 %v2140_v15, %v2139_v18 }
 0x382   : > { %v2143_v58 = vadd.f32 %v2142_v3, %v2141_v38  ;;  %v2162_v38 = vsel %vm1371_vm3, %v2100_v29, 0.0 }
 0x384   : > { %v2145_v7 = vadd.f32 %v2144_v35, %v2143_v58 }
 0x386   : > { %v2147_v50 = vadd.f32 %v2146_v28, %v2145_v7 }
 0x388   : > { %v2149_v10 = vadd.f32 %v2148_v39, %v2147_v50 }
 0x38a   : > { %v2151_v13 = vadd.f32 %v2150_v14, %v2149_v10 }
 0x38c   : > { %v2153_v55 = vadd.f32 %v2152_v45, %v2151_v13 }
 0x38e   : > { %v2155_v43 = vadd.f32 %v2154_v26, %v2153_v55 }
 0x390   : > { %v2157_v51 = vadd.f32 %v2156_v11, %v2155_v43 }
 0x392   : > { %v2159_v18 = vadd.f32 %v2158_v30, %v2157_v51 }
 0x394   : > { %v2161_v15 = vadd.f32 %v2160_v33, %v2159_v18 }
 0x396   : > { %v2163_v42 = vadd.f32 %v2162_v38, %v2161_v15 }
 0x398   : > { %v2164_v3 = vrot.slane %v2163_v42, 4 }
 0x39a   : > { %v2165_v21 = vadd.f32 %v2164_v3, %v2163_v42 }
 0x39c   : > { %v2166_v23 = vrot.slane %v2165_v21, 2 }
 0x39e   : > { %v2167_v58 = vadd.f32 %v2166_v23, %v2165_v21  ;;  %v2444_v23 = vld [vmem:[%s4552_s3] ss:$0 sm:$0xff] }
 0x3a0   : > { %v2168_v17 = vrot.slane %v2167_v58, 1 }
 0x3a2   : > { %v2169_v35 = vadd.f32 %v2168_v17, %v2167_v58 }
 0x3a4   : > { %v2170_v7 = vmul.f32 0.00390625, %v2169_v35 }
 0x3a6   : > { %v2171_v2 = vadd.f32 1e-05, %v2170_v7 }
 0x3a8   : > { %2616 = vrsqrt.f32 %v2171_v2 }
 0x3b5   : > { %v2617_v28 = vpop.eup %2616 }
 0x3b6   : > { %v2173_v50 = vmul.f32 %v2617_v28, %v4194_v53  ;;  %v2174_v9 = vmul.f32 %v2617_v28, %v4198_v24  ;;  %v2175_v39 = vmul.f32 %v2617_v28, %v4202_v57  ;;  %v2176_v10 = vmul.f32 %v2617_v28, %v4206_v16 }
 0x3b7   : > { %v2177_v12 = vmul.f32 %v2617_v28, %v4214_v41  ;;  %v2178_v14 = vmul.f32 %v2617_v28, %v4220_v59  ;;  %v2179_v13 = vmul.f32 %v2617_v28, %v4228_v54  ;;  %v2180_v25 = vmul.f32 %v2617_v28, %v4235_v32 }
 0x3b8   : > { %v2181_v45 = vmul.f32 %v2617_v28, %v4242_v40  ;;  %v2182_v55 = vmul.f32 %v2617_v28, %v4249_v62  ;;  %v2183_v53 = vmul.f32 %v2617_v28, %v4256_v61  ;;  %v2184_v24 = vmul.f32 %v2617_v28, %v4263_v47 }
 0x3b9   : > { %v2185_v57 = vmul.f32 %v2617_v28, %v4270_v34  ;;  %v2186_v16 = vmul.f32 %v2617_v28, %v4277_v44  ;;  %v2187_v41 = vmul.f32 %v2617_v28, %v4284_v6  ;;  %v2188_v59 = vmul.f32 %v2617_v28, %v4291_v60  ;;  %v2443_v6 = vld [vmem:[%s4551_s2] ss:$0 sm:$0xff] }
 0x3ba   : > { %v2189_v54 = vmul.f32 %v2617_v28, %v4298_v1  ;;  %v2190_v32 = vmul.f32 %v2617_v28, %v4305_v31  ;;  %v2191_v40 = vmul.f32 %v2617_v28, %v4312_v20  ;;  %v2192_v62 = vmul.f32 %v2617_v28, %v4319_v56 }
 0x3bb   : > { %v2193_v61 = vmul.f32 %v2617_v28, %v4326_v37  ;;  %v2194_v47 = vmul.f32 %v2617_v28, %v4333_v8  ;;  %v2195_v34 = vmul.f32 %v2617_v28, %v4340_v4  ;;  %v2196_v44 = vmul.f32 %v2617_v28, %v4347_v52 }
 0x3bc   : > { %v2197_v60 = vmul.f32 %v2617_v28, %v4354_v19  ;;  %v2198_v1 = vmul.f32 %v2617_v28, %v4361_v48  ;;  %v2199_v31 = vmul.f32 %v2617_v28, %v4368_v46  ;;  %v2200_v20 = vmul.f32 %v2617_v28, %v4375_v22 }
 0x3bd   : > { %v2201_v56 = vmul.f32 %v2617_v28, %v4382_v0  ;;  %v2202_v37 = vmul.f32 %v2617_v28, %v2066_v5  ;;  %v2203_v8 = vmul.f32 %v2617_v28, %v2067_v63  ;;  %v2204_v27 = vmul.f32 %v2617_v28, %v2068_v36 }
 0x3be   : > { %v2212_v4 = vmul.f32 %v2443_v6, %v2173_v50  ;;  %v2213_v26 = vmul.f32 %v2443_v6, %v2174_v9  ;;  %v2214_v52 = vmul.f32 %v2443_v6, %v2175_v39  ;;  %v2215_v43 = vmul.f32 %v2443_v6, %v2176_v10 }
 0x3bf   : > { %v2216_v49 = vmul.f32 %v2443_v6, %v2177_v12  ;;  %v2217_v11 = vmul.f32 %v2443_v6, %v2178_v14  ;;  %v2218_v51 = vmul.f32 %v2443_v6, %v2179_v13  ;;  %v2219_v29 = vmul.f32 %v2443_v6, %v2180_v25 }
 0x3c0   : > { %v2220_v19 = vmul.f32 %v2443_v6, %v2181_v45  ;;  %v2221_v30 = vmul.f32 %v2443_v6, %v2182_v55  ;;  %v2222_v48 = vmul.f32 %v2443_v6, %v2183_v53  ;;  %v2223_v18 = vmul.f32 %v2443_v6, %v2184_v24 }
 0x3c1   : > { %v2224_v46 = vmul.f32 %v2443_v6, %v2185_v57  ;;  %v2225_v33 = vmul.f32 %v2443_v6, %v2186_v16  ;;  %v2226_v22 = vmul.f32 %v2443_v6, %v2187_v41  ;;  %v2227_v15 = vmul.f32 %v2443_v6, %v2188_v59 }
 0x3c2   : > { %v2228_v0 = vmul.f32 %v2443_v6, %v2189_v54  ;;  %v2229_v5 = vmul.f32 %v2443_v6, %v2190_v32  ;;  %v2230_v63 = vmul.f32 %v2443_v6, %v2191_v40  ;;  %v2231_v36 = vmul.f32 %v2443_v6, %v2192_v62 }
 0x3c3   : > { %v2232_v38 = vmul.f32 %v2443_v6, %v2193_v61  ;;  %v2233_v42 = vmul.f32 %v2443_v6, %v2194_v47  ;;  %v2234_v3 = vmul.f32 %v2443_v6, %v2195_v34  ;;  %v2235_v21 = vmul.f32 %v2443_v6, %v2196_v44 }
 0x3c4   : > { %v2236_v58 = vmul.f32 %v2443_v6, %v2197_v60  ;;  %v2237_v17 = vmul.f32 %v2443_v6, %v2198_v1  ;;  %v2238_v35 = vmul.f32 %v2443_v6, %v2199_v31  ;;  %v2239_v7 = vmul.f32 %v2443_v6, %v2200_v20 }
 0x3c5   : > { %v2240_v2 = vmul.f32 %v2443_v6, %v2201_v56  ;;  %v2241_v28 = vmul.f32 %v2443_v6, %v2202_v37  ;;  %v2242_v50 = vmul.f32 %v2443_v6, %v2203_v8  ;;  %v2243_v9 = vmul.f32 %v2443_v6, %v2204_v27 }
 0x3c6   : > { %v2251_v39 = vadd.f32 %v2444_v23, %v2212_v4  ;;  %v2252_v10 = vadd.f32 %v2444_v23, %v2213_v26  ;;  %v2253_v12 = vadd.f32 %v2444_v23, %v2214_v52  ;;  %v2254_v14 = vadd.f32 %v2444_v23, %v2215_v43 }
 0x3c7   : > { %v2255_v13 = vadd.f32 %v2444_v23, %v2216_v49  ;;  %v2256_v25 = vadd.f32 %v2444_v23, %v2217_v11  ;;  %v2257_v45 = vadd.f32 %v2444_v23, %v2218_v51  ;;  %v2258_v55 = vadd.f32 %v2444_v23, %v2219_v29 }
 0x3c8   : > { %v2259_v53 = vadd.f32 %v2444_v23, %v2220_v19  ;;  %v2260_v24 = vadd.f32 %v2444_v23, %v2221_v30  ;;  %v2261_v57 = vadd.f32 %v2444_v23, %v2222_v48  ;;  %v2262_v16 = vadd.f32 %v2444_v23, %v2223_v18 }
 0x3c9   : > { %v2263_v41 = vadd.f32 %v2444_v23, %v2224_v46  ;;  %v2264_v59 = vadd.f32 %v2444_v23, %v2225_v33  ;;  %v2265_v54 = vadd.f32 %v2444_v23, %v2226_v22  ;;  %v2266_v32 = vadd.f32 %v2444_v23, %v2227_v15 }
 0x3ca   : > { %v2267_v40 = vadd.f32 %v2444_v23, %v2228_v0  ;;  %v2268_v62 = vadd.f32 %v2444_v23, %v2229_v5  ;;  %v2269_v61 = vadd.f32 %v2444_v23, %v2230_v63  ;;  %v2270_v47 = vadd.f32 %v2444_v23, %v2231_v36 }
 0x3cb   : > { %v4439_v34 = vadd.f32 %v2444_v23, %v2232_v38  ;;  %v4441_v44 = vadd.f32 %v2444_v23, %v2233_v42  ;;  %v4443_v6 = vadd.f32 %v2444_v23, %v2234_v3  ;;  %v4445_v60 = vadd.f32 %v2444_v23, %v2235_v21 }
 0x3cc   : > { %v4447_v1 = vadd.f32 %v2444_v23, %v2236_v58  ;;  %v4449_v31 = vadd.f32 %v2444_v23, %v2237_v17  ;;  %v4451_v20 = vadd.f32 %v2444_v23, %v2238_v35  ;;  %v4453_v56 = vadd.f32 %v2444_v23, %v2239_v7 }
 0x3cd   : > { %v4462_v37 = vadd.f32 %v2444_v23, %v2240_v2  ;;  %v4464_v8 = vadd.f32 %v2444_v23, %v2241_v28  ;;  %v4466_v27 = vadd.f32 %v2444_v23, %v2242_v50  ;;  %v4468_v4 = vadd.f32 %v2444_v23, %v2243_v9 }
 0x3ce   : > { %v2283_v26 = vmax.f32 %v2251_v39, 0.0  ;;  %v2284_v52 = vmax.f32 %v2252_v10, 0.0  ;;  %v2285_v43 = vmax.f32 %v2253_v12, 0.0  ;;  %v2286_v49 = vmax.f32 %v2254_v14, 0.0 }
 0x3cf   : > { %v2287_v11 = vmax.f32 %v2255_v13, 0.0  ;;  %v2288_v51 = vmax.f32 %v2256_v25, 0.0  ;;  %v2289_v29 = vmax.f32 %v2257_v45, 0.0  ;;  %v2290_v19 = vmax.f32 %v2258_v55, 0.0 }
 0x3d0   : > { %v2291_v30 = vmax.f32 %v2259_v53, 0.0  ;;  %v2292_v48 = vmax.f32 %v2260_v24, 0.0  ;;  %v2293_v18 = vmax.f32 %v2261_v57, 0.0  ;;  %v2294_v46 = vmax.f32 %v2262_v16, 0.0  ;;  %2315 = vst.msk [vmem:[%s4460_s30] sm:$0xff] %vm1371_vm3, %v2283_v26  ;;  %2316 = vst.msk [vmem:[%s4460_s30 + $0x8] sm:$0xff] %vm1371_vm3, %v2284_v52 }
 0x3d1   : > { %2317 = vst.msk [vmem:[%s4460_s30 + $0x10] sm:$0xff] %vm1371_vm3, %v2285_v43  ;;  %2318 = vst.msk [vmem:[%s4460_s30 + $0x18] sm:$0xff] %vm1371_vm3, %v2286_v49  ;;  %v2295_v33 = vmax.f32 %v2263_v41, 0.0  ;;  %v2296_v22 = vmax.f32 %v2264_v59, 0.0  ;;  %v2297_v15 = vmax.f32 %v2265_v54, 0.0  ;;  %v2298_v0 = vmax.f32 %v2266_v32, 0.0 }
 0x3d2   : > { %2319 = vst.msk [vmem:[%s4460_s30 + $0x20] sm:$0xff] %vm1371_vm3, %v2287_v11  ;;  %2320 = vst.msk [vmem:[%s4460_s30 + $0x28] sm:$0xff] %vm1371_vm3, %v2288_v51  ;;  %v2299_v5 = vmax.f32 %v2267_v40, 0.0  ;;  %v2300_v63 = vmax.f32 %v2268_v62, 0.0  ;;  %v2301_v36 = vmax.f32 %v2269_v61, 0.0  ;;  %v2302_v38 = vmax.f32 %v2270_v47, 0.0 }
 0x3d3   : > { %2321 = vst.msk [vmem:[%s4460_s30 + $0x30] sm:$0xff] %vm1371_vm3, %v2289_v29  ;;  %2322 = vst.msk [vmem:[%s4460_s30 + $0x38] sm:$0xff] %vm1371_vm3, %v2290_v19  ;;  %v2303_v42 = vmax.f32 %v4439_v34, 0.0  ;;  %v2304_v3 = vmax.f32 %v4441_v44, 0.0  ;;  %v2305_v21 = vmax.f32 %v4443_v6, 0.0  ;;  %v2306_v23 = vmax.f32 %v4445_v60, 0.0 }
 0x3d4   : > { %2323 = vst.msk [vmem:[%s4460_s30 + $0x40] sm:$0xff] %vm1371_vm3, %v2291_v30  ;;  %2324 = vst.msk [vmem:[%s4460_s30 + $0x48] sm:$0xff] %vm1371_vm3, %v2292_v48  ;;  %v2307_v58 = vmax.f32 %v4447_v1, 0.0  ;;  %v2308_v17 = vmax.f32 %v4449_v31, 0.0  ;;  %v2309_v35 = vmax.f32 %v4451_v20, 0.0  ;;  %v2310_v7 = vmax.f32 %v4453_v56, 0.0 }
 0x3d5   : > { %2325 = vst.msk [vmem:[%s4460_s30 + $0x50] sm:$0xff] %vm1371_vm3, %v2293_v18  ;;  %2326 = vst.msk [vmem:[%s4460_s30 + $0x58] sm:$0xff] %vm1371_vm3, %v2294_v46  ;;  %v2311_v2 = vmax.f32 %v4462_v37, 0.0  ;;  %v2312_v28 = vmax.f32 %v4464_v8, 0.0  ;;  %v2313_v50 = vmax.f32 %v4466_v27, 0.0  ;;  %v2314_v9 = vmax.f32 %v4468_v4, 0.0 }
 0x3d6   : > { %2327 = vst.msk [vmem:[%s4460_s30 + $0x60] sm:$0xff] %vm1371_vm3, %v2295_v33  ;;  %2328 = vst.msk [vmem:[%s4460_s30 + $0x68] sm:$0xff] %vm1371_vm3, %v2296_v22 }
 0x3d7   : > { %2329 = vst.msk [vmem:[%s4460_s30 + $0x70] sm:$0xff] %vm1371_vm3, %v2297_v15  ;;  %2330 = vst.msk [vmem:[%s4460_s30 + $0x78] sm:$0xff] %vm1371_vm3, %v2298_v0 }
 0x3d8   : > { %2331 = vst.msk [vmem:[%s4460_s30 + $0x80] sm:$0xff] %vm1371_vm3, %v2299_v5  ;;  %2332 = vst.msk [vmem:[%s4460_s30 + $0x88] sm:$0xff] %vm1371_vm3, %v2300_v63 }
 0x3d9   : > { %2333 = vst.msk [vmem:[%s4460_s30 + $0x90] sm:$0xff] %vm1371_vm3, %v2301_v36  ;;  %2334 = vst.msk [vmem:[%s4460_s30 + $0x98] sm:$0xff] %vm1371_vm3, %v2302_v38 }
 0x3da   : > { %2335 = vst.msk [vmem:[%s4460_s30 + $0xa0] sm:$0xff] %vm1371_vm3, %v2303_v42  ;;  %2336 = vst.msk [vmem:[%s4460_s30 + $0xa8] sm:$0xff] %vm1371_vm3, %v2304_v3 }
 0x3db   : > { %2337 = vst.msk [vmem:[%s4460_s30 + $0xb0] sm:$0xff] %vm1371_vm3, %v2305_v21  ;;  %2338 = vst.msk [vmem:[%s4460_s30 + $0xb8] sm:$0xff] %vm1371_vm3, %v2306_v23 }
 0x3dc   : > { %2339 = vst.msk [vmem:[%s4460_s30 + $0xc0] sm:$0xff] %vm1371_vm3, %v2307_v58  ;;  %2340 = vst.msk [vmem:[%s4460_s30 + $0xc8] sm:$0xff] %vm1371_vm3, %v2308_v17 }
 0x3dd   : > { %2341 = vst.msk [vmem:[%s4460_s30 + $0xd0] sm:$0xff] %vm1371_vm3, %v2309_v35  ;;  %2342 = vst.msk [vmem:[%s4460_s30 + $0xd8] sm:$0xff] %vm1371_vm3, %v2310_v7 }
 0x3de   : > { %2343 = vst.msk [vmem:[%s4460_s30 + $0xe0] sm:$0xff] %vm1371_vm3, %v2311_v2  ;;  %2344 = vst.msk [vmem:[%s4460_s30 + $0xe8] sm:$0xff] %vm1371_vm3, %v2312_v28 }
 0x3df   : > { %2345 = vst.msk [vmem:[%s4460_s30 + $0xf0] sm:$0xff] %vm1371_vm3, %v2313_v50  ;;  %2346 = vst.msk [vmem:[%s4460_s30 + $0xf8] sm:$0xff] %vm1371_vm3, %v2314_v9 }
 0x3e0 PF: > { %s14_s15 = sadd.s32 1, %s2624_s15  }
 0x3e1   : > { %p11_p4 = scmp.ge.s32.totalorder %s14_s15, 4  }
 0x3e3   :  { %13 = sbr.rel (!%p11_p4) target bundleno = 1 (0x1), region = 66 }

// kernel: net_recurse_forward.12
= control target key start
LH: loop header
LB: loop body
LE: loop exit
PB: predicated region body
PF: predicated region fallthrough
CT: control target
= control target key end

     0   :  { %s1111_s15 = smov 0   ;;  %s1517_s0 = inlined_call_operand.vmem [shape: f32[2,8,8,16], index: 0, kind: input, shape index: {}]   ;;  %s1518_s1 = inlined_call_operand.vmem [shape: f32[144,16], index: 1, kind: input, shape index: {}]   ;;  %s1519_s2 = inlined_call_operand.vmem [shape: f32[1,16], index: 2, kind: input, shape index: {}]   ;;  %s1520_s3 = inlined_call_operand.vmem [shape: f32[1,16], index: 3, kind: input, shape index: {}]   ;;  %s1521_s4 = inlined_call_operand.vmem [shape: f32[2,8,8,16], index: 4, kind: output, shape index: {}]  }
   0x1 LB: > { %s868_s16 = sadd.s32 4294967295, %s1076_s15   ;;  %p872_p0 = scmp.ge.s32.totalorder %s1076_s15, 1  ;;  %s1076_s15 = sphi %s1111_s15, %s14_s15  }
   0x2   : > { %p162_p1 = scmp.lt.s32.totalorder %s1076_s15, 3 }
   0x4   : > { %p163_p2 = pnand %p872_p0, %p162_p1 }
   0x5   : > { %p188_p3 = scmp.lt.s32.totalorder (!%p163_p2), %s868_s16, 1  ;;  %s1079_s9 = smov (!%p163_p2), 48  }
   0x6   : > { %166 = sbr.rel (%p163_p2) target bundleno = 473 (0x1d9), region = 36  ;;  %s1080_s12 = smov (!%p163_p2), 16  }
   0x7   : > { %s1081_s17 = smov (!%p163_p2), 96   ;;  %s1082_s20 = smov (!%p163_p2), 32  }
   0x8   : > { %s1083_s24 = smov (!%p163_p2), 64   ;;  %s1084_s28 = smov (!%p163_p2), 80  }
   0x9   : > { %s1085_s7 = smov (!%p163_p2), 112  }
   0xb   : > { %vm233_vm0 = vcmask 1040384   ;;  %v1078_v0 = vmov 0.0   ;;  %v572_v2 = vld [vmem:[%s1518_s1 + $0x78] sm:$0xff]  ;;  %v571_v3 = vld [vmem:[%s1518_s1 + $0x70] sm:$0xff]  ;;  %s1523_s16 = smov (!%p188_p3, %s868_s16), 1  ;;  %v570_v6 = vld [vmem:[%s1518_s1 + $0x68] sm:$0xff] }
   0xc   : > { %v215_v1 = vrot.slane %v1078_v0, 7  ;;  %591 = vmatprep.subr.mxu0 %v1078_v0  ;;  %891 = vmatprep.subr.mxu1 %v1078_v0  ;;  %s889_s23 = sshll.u32 %s1523_s16, 6  ;;  %vm268_vm1 = vcmask 1046528   ;;  %vm317_vm2 = vcmask 1045504   ;;  %v569_v11 = vld [vmem:[%s1518_s1 + $0x60] sm:$0xff]  ;;  %v568_v19 = vld [vmem:[%s1518_s1 + $0x58] sm:$0xff] }
   0xd   : > { %592 = vmatpush1.msra.mxu0 %v572_v2  ;;  %909 = vmatpush1.msra.mxu1 %v572_v2  ;;  %s1147_s26 = scalar_lea.vmem %s1517_s0, %s889_s23  ;;  %v567_v27 = vld [vmem:[%s1518_s1 + $0x50] sm:$0xff]  ;;  %v566_v37 = vld [vmem:[%s1518_s1 + $0x48] sm:$0xff]  ;;  %v565_v46 = vld [vmem:[%s1518_s1 + $0x40] sm:$0xff]  ;;  %vm494_vm3 = vcmask 130048   ;;  %vm503_vm4 = vcmask 261120   ;;  %vm512_vm5 = vcmask 392192  }
   0xe   : > { %v1131_v4 = vsel %vm233_vm0, 0.0, %v215_v1  ;;  %v243_v5 = vsel %vm233_vm0, %v215_v1, 0.0  ;;  %593 = vmatprep.subr.mxu0 %v1078_v0  ;;  %892 = vmatprep.subr.mxu1 %v1078_v0  ;;  %v198_v12 = vld [vmem:[%s1147_s26] sm:$0xff]  ;;  %v199_v13 = vld [vmem:[%s1147_s26 + $0x8] sm:$0xff]  ;;  %v200_v14 = vld [vmem:[%s1147_s26 + $0x10] sm:$0xff]  ;;  %vm521_vm6 = vcmask 523264  }
   0xf   : > { %v269_v7 = vrot.slane %v1131_v4, 1  ;;  %v270_v8 = vrot.slane %v243_v5, 1  ;;  %v319_v9 = vrot.slane %v243_v5, 2  ;;  %v318_v10 = vrot.slane %v1131_v4, 2  ;;  %594 = vmatpush1.msra.mxu0 %v571_v3  ;;  %910 = vmatpush1.msra.mxu1 %v571_v3  ;;  %v201_v18 = vld [vmem:[%s1147_s26 + $0x18] sm:$0xff]  ;;  %v202_v36 = vld [vmem:[%s1147_s26 + $0x20] sm:$0xff] }
  0x10   : > { %595 = vmatprep.subr.mxu0 %v1078_v0  ;;  %893 = vmatprep.subr.mxu1 %v1078_v0  ;;  %v216_v15 = vrot.slane %v198_v12, 7  ;;  %v217_v16 = vrot.slane %v199_v13, 7  ;;  %v218_v17 = vrot.slane %v200_v14, 7  ;;  %v219_v22 = vrot.slane %v201_v18, 7  ;;  %v564_v53 = vld [vmem:[%s1518_s1 + $0x38] sm:$0xff]  ;;  %v1239_v59 = vld [vmem:[%s1518_s1 + $0x30] sm:$0xff] }
  0x11   : > { %596 = vmatpush1.msra.mxu0 %v570_v6  ;;  %911 = vmatpush1.msra.mxu1 %v570_v6  ;;  %v1164_v20 = vsel %vm268_vm1, %v269_v7, %v270_v8  ;;  %v1167_v21 = vsel %vm317_vm2, %v318_v10, %v319_v9  ;;  %v220_v48 = vrot.slane %v202_v36, 7  ;;  %v1252_v63 = vld [vmem:[%s1518_s1 + $0x28] sm:$0xff]  ;;  %v1265_v8 = vld [vmem:[%s1518_s1 + $0x20] sm:$0xff]  ;;  %vm530_vm7 = vcmask 654336  }
  0x12   : > { %597 = vmatprep.subr.mxu0 %v1078_v0  ;;  %894 = vmatprep.subr.mxu1 %v1078_v0  ;;  %v1170_v23 = vsel %vm233_vm0, 0.0, %v216_v15  ;;  %v1173_v24 = vsel %vm233_vm0, 0.0, %v217_v16  ;;  %v244_v25 = vsel %vm233_vm0, %v216_v15, 0.0  ;;  %v245_v26 = vsel %vm233_vm0, %v217_v16, 0.0  ;;  %v203_v10 = vld [vmem:[%s1147_s26 + $0x28] sm:$0xff] }
  0x13   : > { %598 = vmatpush1.msra.mxu0 %v569_v11  ;;  %912 = vmatpush1.msra.mxu1 %v569_v11  ;;  %v943_v28 = vpack.i.bf16 %v1173_v24, %v1170_v23  ;;  %v272_v29 = vrot.slane %v1170_v23, 1  ;;  %v273_v30 = vrot.slane %v244_v25, 1  ;;  %v275_v31 = vrot.slane %v1173_v24, 1  ;;  %v1277_v11 = vld [vmem:[%s1518_s1 + $0x18] sm:$0xff] }
  0x14   : > { %599 = vmatprep.subr.mxu0 %v1078_v0  ;;  %895 = vmatprep.subr.mxu1 %v1078_v0  ;;  %v276_v32 = vrot.slane %v245_v26, 1  ;;  %v322_v33 = vrot.slane %v244_v25, 2  ;;  %v1187_v34 = vsel %vm233_vm0, 0.0, %v218_v17  ;;  %v321_v35 = vrot.slane %v1170_v23, 2 }
  0x15   : > { %600 = vmatpush1.msra.mxu0 %v568_v19  ;;  %913 = vmatpush1.msra.mxu1 %v568_v19  ;;  %v274_v38 = vsel %vm268_vm1, %v272_v29, %v273_v30  ;;  %v948_v39 = vpack.i.bf16 %v1187_v34, %v1173_v24  ;;  %v324_v40 = vrot.slane %v1173_v24, 2  ;;  %v325_v41 = vrot.slane %v245_v26, 2  ;;  %v559_v19 = vld [vmem:[%s1518_s1 + $0x10] sm:$0xff]  ;;  %v558_v26 = vld [vmem:[%s1518_s1 + $0x8] sm:$0xff]  ;;  %v557_v30 = vld [vmem:[%s1518_s1] sm:$0xff] }
  0x16   : > { %601 = vmatprep.subr.mxu0 %v1078_v0  ;;  %896 = vmatprep.subr.mxu1 %v1078_v0  ;;  %v1202_v42 = vsel %vm268_vm1, %v275_v31, %v276_v32  ;;  %v953_v43 = vpack.i.bf16 %v274_v38, %v1164_v20  ;;  %v323_v44 = vsel %vm317_vm2, %v321_v35, %v322_v33  ;;  %v1207_v45 = vsel %vm233_vm0, 0.0, %v219_v22  ;;  %v204_v33 = vld [vmem:[%s1147_s26 + $0x30] sm:$0xff]  ;;  %v574_v35 = vld [vmem:[%s1518_s1 + $0x88] sm:$0xff] }
  0x17   : > { %944 = vrot.lane.b32.xlu1 %v943_v28, %s1079_s9  ;;  %602 = vmatpush1.msra.mxu0 %v567_v27  ;;  %v247_v47 = vsel %vm233_vm0, %v219_v22, 0.0  ;;  %v958_v49 = vpack.i.bf16 %v323_v44, %v1167_v21  ;;  %v281_v50 = vrot.slane %v1207_v45, 1  ;;  %v1219_v52 = vsel %vm233_vm0, %v218_v17, 0.0 }
  0x18   : > { %603 = vmatprep.subr.mxu0 %v1078_v0  ;;  %914 = vmatpush1.msra.mxu1 %v567_v27  ;;  %v282_v51 = vrot.slane %v247_v47, 1  ;;  %v963_v54 = vpack.i.bf16 %v1202_v42, %v274_v38  ;;  %v1228_v55 = vsel %vm317_vm2, %v324_v40, %v325_v41  ;;  %v278_v56 = vrot.slane %v1187_v34, 1 }
  0x19   : > { %604 = vmatpush1.msra.mxu0 %v566_v37  ;;  %897 = vmatprep.subr.mxu1 %v1078_v0  ;;  %v279_v57 = vrot.slane %v1219_v52, 1  ;;  %v1242_v60 = vsel %vm233_vm0, 0.0, %v220_v48  ;;  %v248_v61 = vsel %vm233_vm0, %v220_v48, 0.0  ;;  %v968_v62 = vpack.i.bf16 %v1228_v55, %v323_v44 }
  0x1a   : > { %954 = vrot.lane.b32.xlu0 %v953_v43, %s1080_s12  ;;  %605 = vmatprep.subr.mxu0 %v1078_v0  ;;  %v1233_v58 = vsel %vm268_vm1, %v281_v50, %v282_v51  ;;  %v330_v3 = vrot.slane %v1207_v45, 2  ;;  %v331_v5 = vrot.slane %v247_v47, 2  ;;  %v284_v6 = vrot.slane %v1242_v60, 1 }
  0x1b   : > { %949 = vrot.lane.b32.xlu1 %v948_v39, %s1081_s17  ;;  %606 = vmatpush1.msra.mxu0 %v565_v46  ;;  %v978_v1 = vpack.i.bf16 %v1233_v58, %v1202_v42  ;;  %v280_v2 = vsel %vm268_vm1, %v278_v56, %v279_v57  ;;  %v285_v7 = vrot.slane %v248_v61, 1  ;;  %v988_v12 = vpack.i.bf16 %v1242_v60, %v1187_v34 }
  0x1c   : > { %607 = vmatprep.subr.mxu0 %v1078_v0  ;;  %915 = vmatpush1.msra.mxu1 %v566_v37  ;;  %v973_v9 = vpack.i.bf16 %v280_v2, %v1202_v42  ;;  %v1283_v13 = vsel %vm317_vm2, %v330_v3, %v331_v5  ;;  %v327_v14 = vrot.slane %v1187_v34, 2  ;;  %v328_v16 = vrot.slane %v1219_v52, 2  ;;  %v573_v42 = vld [vmem:[%s1518_s1 + $0x80] sm:$0xff]  ;;  %v205_v52 = vld [vmem:[%s1147_s26 + $0x38] sm:$0xff] }
  0x1d   : > { %608 = vmatpush1.msra.mxu0 %v564_v53  ;;  %898 = vmatprep.subr.mxu1 %v1078_v0  ;;  %v1288_v15 = vsel %vm268_vm1, %v284_v6, %v285_v7  ;;  %v333_v17 = vrot.slane %v1242_v60, 2  ;;  %v334_v18 = vrot.slane %v248_v61, 2  ;;  %v221_v22 = vrot.slane %v203_v10, 7 }
  0x1e   : > { %959 = vrot.lane.b32.xlu0 %v958_v49, %s1082_s20  ;;  %609 = vmatprep.subr.mxu0 %v1078_v0  ;;  %v983_v25 = vpack.i.bf16 %v1283_v13, %v1228_v55  ;;  %v998_v27 = vpack.i.bf16 %v1288_v15, %v280_v2  ;;  %v1308_v28 = vsel %vm317_vm2, %v327_v14, %v328_v16  ;;  %v222_v41 = vrot.slane %v204_v33, 7 }
  0x1f   : > { %964 = vrot.lane.b32.xlu1 %v963_v54, %s1083_s24  ;;  %610 = vmatpush1.msra.mxu0 %v1239_v59  ;;  %v1311_v29 = vsel %vm317_vm2, %v333_v17, %v334_v18  ;;  %v1319_v31 = vsel %vm233_vm0, 0.0, %v221_v22  ;;  %v249_v32 = vsel %vm233_vm0, %v221_v22, 0.0  ;;  %v223_v57 = vrot.slane %v205_v52, 7 }
  0x20   : > { %611 = vmatprep.subr.mxu0 %v1078_v0  ;;  %916 = vmatpush1.msra.mxu1 %v565_v46  ;;  %v1008_v36 = vpack.i.bf16 %v1311_v29, %v1308_v28  ;;  %v336_v37 = vrot.slane %v1319_v31, 2  ;;  %v337_v38 = vrot.slane %v249_v32, 2  ;;  %v287_v39 = vrot.slane %v1319_v31, 1 }
  0x21   : > { %612 = vmatpush1.msra.mxu0 %v1252_v63  ;;  %877 = vmatprep.mubr.msk.f32.mxu0 %vm494_vm3, %v1228_v55  ;;  %v288_v40 = vrot.slane %v249_v32, 1  ;;  %v1018_v43 = vpack.i.bf16 %v1319_v31, %v1207_v45  ;;  %v1348_v47 = vsel %vm233_vm0, 0.0, %v222_v41  ;;  %v250_v48 = vsel %vm233_vm0, %v222_v41, 0.0 }
  0x22   : > { %969 = vrot.lane.b32.xlu0 %v968_v62, %s1084_s28  ;;  %613 = vmatprep.subr.mxu0 %v1078_v0  ;;  %v338_v44 = vsel %vm317_vm2, %v336_v37, %v337_v38  ;;  %v290_v50 = vrot.slane %v1348_v47, 1  ;;  %v291_v51 = vrot.slane %v250_v48, 1  ;;  %v339_v55 = vrot.slane %v1348_v47, 2 }
  0x23   : > { %979 = vrot.lane.b32.xlu1 %v978_v1, %s1080_s12  ;;  %614 = vmatpush1.msra.mxu0 %v1265_v8  ;;  %v289_v46 = vsel %vm268_vm1, %v287_v39, %v288_v40  ;;  %v340_v56 = vrot.slane %v250_v48, 2  ;;  %v242_v62 = vsel %vm233_vm0, 0.0, %v223_v57  ;;  %vm539_vm8 = vcmask 785408  }
  0x24   : > { %615 = vmatprep.subr.mxu0 %v1078_v0  ;;  %899 = vmatprep.subr.mxu1 %v1078_v0  ;;  %v1028_v49 = vpack.i.bf16 %v289_v46, %v1233_v58  ;;  %v292_v54 = vsel %vm268_vm1, %v290_v50, %v291_v51  ;;  %v392_v3 = vrot.slane %v242_v62, 1  ;;  %v1053_v6 = vpack.i.bf16 %v242_v62, %v1348_v47 }
  0x25   : > { %616 = vmatpush1.msra.mxu0 %v1277_v11  ;;  %917 = vmatpush1.msra.mxu1 %v564_v53  ;;  %v1038_v53 = vpack.i.bf16 %v338_v44, %v1283_v13  ;;  %v1033_v58 = vpack.i.bf16 %v292_v54, %v289_v46  ;;  %v1375_v61 = vsel %vm317_vm2, %v339_v55, %v340_v56  ;;  %vm548_vm9 = vcmask 916480  }
  0x26   : > { %974 = vrot.lane.b32.xlu0 %v973_v9, %s1085_s7  ;;  %617 = vmatprep.subr.mxu0 %v1078_v0  ;;  %v1043_v1 = vpack.i.bf16 %v1375_v61, %v338_v44  ;;  %v1058_v2 = vpack.i.bf16 %v292_v54, %v1288_v15 }
  0x27   : > { %989 = vrot.lane.b32.xlu1 %v988_v12, %s1079_s9  ;;  %618 = vmatpush1.msra.mxu0 %v559_v19 }
  0x28   : > { %619 = vmatprep.subr.mxu0 %v1078_v0  ;;  %900 = vmatprep.subr.mxu1 %v1078_v0 }
  0x29   : > { %620 = vmatpush1.msra.mxu0 %v558_v26  ;;  %918 = vmatpush1.msra.mxu1 %v1239_v59  ;;  %v1048_v59 = vpack.i.bf16 %v1348_v47, %v1242_v60 }
  0x2a   : > { %984 = vrot.lane.b32.xlu0 %v983_v25, %s1082_s20  ;;  %621 = vmatprep.subr.mxu0 %v1078_v0 }
  0x2b   : > { %999 = vrot.lane.b32.xlu1 %v998_v27, %s1080_s12  ;;  %622 = vmatpush1.msra.mxu0 %v557_v30 }
  0x2c   : > { %651 = vmatprep.subr.mxu0 %v1078_v0  ;;  %901 = vmatprep.subr.mxu1 %v1078_v0 }
  0x2d   : > { %652 = vmatpush2.msra.mxu0 %v574_v35  ;;  %919 = vmatpush1.msra.mxu1 %v1252_v63  ;;  %v251_v63 = vsel %vm233_vm0, %v223_v57, 0.0 }
  0x2e   : > { %994 = vrot.lane.b32.xlu0 %v998_v27, %s1083_s24  ;;  %653 = vmatprep.subr.mxu0 %v1078_v0  ;;  %v393_v5 = vrot.slane %v251_v63, 1  ;;  %v420_v9 = vrot.slane %v251_v63, 2 }
  0x2f   : > { %1009 = vrot.lane.b32.xlu1 %v1008_v36, %s1082_s20  ;;  %654 = vmatpush2.msra.mxu0 %v573_v42 }
  0x30   : > { %902 = vmatprep.subr.mxu1 %v1078_v0  ;;  %881 = vmatprep.mubr.msk.f32.mxu1 %vm494_vm3, %v338_v44  ;;  %v394_v7 = vsel %vm268_vm1, %v392_v3, %v393_v5 }
  0x31   : > { %920 = vmatpush1.msra.mxu1 %v1265_v8  ;;  %v419_v8 = vrot.slane %v242_v62, 2 }
  0x32   : > { %1004 = vrot.lane.b32.xlu0 %v1008_v36, %s1084_s28  ;;  %903 = vmatprep.subr.mxu1 %v1078_v0 }
  0x33   : > { %1019 = vrot.lane.b32.xlu1 %v1018_v43, %s1079_s9  ;;  %921 = vmatpush1.msra.mxu1 %v1277_v11  ;;  %v1395_v10 = vsel %vm317_vm2, %v419_v8, %v420_v9 }
  0x34   : > { %904 = vmatprep.subr.mxu1 %v1078_v0 }
  0x35   : > { %922 = vmatpush1.msra.mxu1 %v559_v19 }
  0x36   : > { %1014 = vrot.lane.b32.xlu0 %v1018_v43, %s1081_s17  ;;  %905 = vmatprep.subr.mxu1 %v1078_v0 }
  0x37   : > { %1029 = vrot.lane.b32.xlu1 %v1028_v49, %s1083_s24  ;;  %923 = vmatpush1.msra.mxu1 %v558_v26 }
  0x38   : > { %906 = vmatprep.subr.mxu1 %v1078_v0 }
  0x39   : > { %924 = vmatpush1.msra.mxu1 %v557_v30 }
  0x3a   : > { %1024 = vrot.lane.b32.xlu0 %v1028_v49, %s1085_s7  ;;  %907 = vmatprep.subr.mxu1 %v1078_v0 }
  0x3b   : > { %1039 = vrot.lane.b32.xlu1 %v1038_v53, %s1084_s28  ;;  %925 = vmatpush2.msra.mxu1 %v574_v35 }
  0x3c   : > { %908 = vmatprep.subr.mxu1 %v1078_v0  ;;  %v1063_v0 = vpack.i.bf16 %v394_v7, %v292_v54 }
  0x3d   : > { %926 = vmatpush2.msra.mxu1 %v573_v42 }
  0x3e   : > { %1034 = vrot.lane.b32.xlu0 %v1033_v58, %s1080_s12 }
  0x3f   : > { %1049 = vrot.lane.b32.xlu1 %v1048_v59, %s1081_s17 }
  0x42   : > { %1044 = vrot.lane.b32.xlu0 %v1043_v1, %s1082_s20 }
  0x43   : > { %1059 = vrot.lane.b32.xlu1 %v1058_v2, %s1085_s7 }
  0x46   : > { %1054 = vrot.lane.b32.xlu0 %v1053_v6, %s1079_s9 }
  0x47   : > { %434 = vrot.lane.b32.xlu1 %v1375_v61, %s1084_s28 }
  0x4a   : > { %1064 = vrot.lane.b32.xlu0 %v1063_v0, %s1083_s24  ;;  %s197_s24 = scalar_lea.vmem %s1521_s4, %s889_s23 }
  0x4b   : > { %482 = vrot.lane.b32.xlu1 %v394_v7, %s1085_s7 }
  0x4e   : > { %458 = vrot.lane.b32.xlu0 %v242_v62, %s1081_s17 }
  0x4f   : > { %460 = vrot.lane.b32.xlu1 %v1131_v4, %s1081_s17 }
  0x52   : > { %436 = vrot.lane.b32.xlu0 %v1395_v10, %s1084_s28 }
  0x56   : > { %484 = vrot.lane.b32.xlu0 %v1164_v20, %s1085_s7 }
  0x89   : > { %v945_v11 = vpop.permute.xlu1 %944 }
  0x8a   : > { %v946_v25 = vunpack.i.l.bf16 %v945_v11  ;;  %v947_v30 = vunpack.i.h.bf16 %v945_v11 }
  0x8c   : > { %v955_v12 = vpop.permute.xlu0 %954 }
  0x8d   : > { %v950_v14 = vpop.permute.xlu1 %949  ;;  %v957_v15 = vunpack.i.h.bf16 %v955_v12  ;;  %v956_v16 = vunpack.i.l.bf16 %v955_v12 }
  0x8e   : > { %v951_v42 = vunpack.i.l.bf16 %v950_v14  ;;  %v952_v53 = vunpack.i.h.bf16 %v950_v14 }
  0x8f   : > { %v496_v26 = vsel %vm494_vm3, %v1170_v23, %v957_v15  ;;  %v495_v27 = vsel %vm494_vm3, %v1131_v4, %v956_v16 }
  0x90   : > { %v960_v17 = vpop.permute.xlu0 %959 }
  0x91   : > { %v962_v18 = vunpack.i.h.bf16 %v960_v17  ;;  %v961_v19 = vunpack.i.l.bf16 %v960_v17  ;;  %v965_v22 = vpop.permute.xlu1 %964 }
  0x92   : > { %v966_v20 = vunpack.i.l.bf16 %v965_v22  ;;  %v967_v35 = vunpack.i.h.bf16 %v965_v22 }
  0x93   : > { %v504_v32 = vsel %vm503_vm4, %v495_v27, %v961_v19  ;;  %v505_v33 = vsel %vm503_vm4, %v496_v26, %v962_v18 }
  0x94   : > { %v513_v36 = vsel %vm512_vm5, %v504_v32, %v946_v25  ;;  %v970_v37 = vpop.permute.xlu0 %969  ;;  %v514_v38 = vsel %vm512_vm5, %v505_v33, %v947_v30 }
  0x95   : > { %v522_v39 = vsel %vm521_vm6, %v513_v36, %v966_v20  ;;  %v971_v40 = vunpack.i.l.bf16 %v970_v37  ;;  %v980_v23 = vpop.permute.xlu1 %979  ;;  %v972_v41 = vunpack.i.h.bf16 %v970_v37  ;;  %v523_v43 = vsel %vm521_vm6, %v514_v38, %v967_v35 }
  0x96   : > { %v982_v59 = vunpack.i.h.bf16 %v980_v23  ;;  %v981_v62 = vunpack.i.l.bf16 %v980_v23 }
  0x97   : > { %v531_v4 = vsel %vm530_vm7, %v522_v39, %v971_v40  ;;  %v532_v52 = vsel %vm530_vm7, %v523_v43, %v972_v41 }
  0x98   : > { %v975_v44 = vpop.permute.xlu0 %974  ;;  %v540_v49 = vsel %vm539_vm8, %v531_v4, %v951_v42  ;;  %v541_v56 = vsel %vm539_vm8, %v532_v52, %v952_v53  ;;  %v499_v5 = vsel %vm494_vm3, %v1207_v45, %v982_v59 }
  0x99   : > { %v976_v46 = vunpack.i.l.bf16 %v975_v44  ;;  %v990_v48 = vpop.permute.xlu1 %989  ;;  %v977_v50 = vunpack.i.h.bf16 %v975_v44 }
  0x9a   : > { %v992_v7 = vunpack.i.h.bf16 %v990_v48  ;;  %v991_v0 = vunpack.i.l.bf16 %v990_v48 }
  0x9b   : > { %v549_v51 = vsel %vm548_vm9, %v540_v49, %v976_v46  ;;  %v550_v57 = vsel %vm548_vm9, %v541_v56, %v977_v50 }
  0x9c   : > { %v985_v54 = vpop.permute.xlu0 %984  ;;  %656 = vmatmul.mubr.f32.vlgmr.msra.gmra.mxu0 %v549_v51 }
  0x9d   : > { %v1000_v55 = vpop.permute.xlu1 %999  ;;  %878 = vmatprep.mubr.msk.f32.mxu0 %vm494_vm3, %v1308_v28  ;;  %v987_v1 = vunpack.i.h.bf16 %v985_v54  ;;  %v986_v2 = vunpack.i.l.bf16 %v985_v54  ;;  %v497_v28 = vsel %vm494_vm3, %v1173_v24, %v981_v62 }
  0x9e   : > { %v1002_v17 = vunpack.i.h.bf16 %v1000_v55  ;;  %v1001_v18 = vunpack.i.l.bf16 %v1000_v55 }
  0x9f   : > { %v508_v8 = vsel %vm503_vm4, %v499_v5, %v987_v1  ;;  %v506_v9 = vsel %vm503_vm4, %v497_v28, %v986_v2 }
  0xa0   : > { %v995_v58 = vpop.permute.xlu0 %994  ;;  %661 = vmatmul.mubr.f32.gmra.mxu0 %v550_v57  ;;  %v515_v22 = vsel %vm512_vm5, %v506_v9, %v991_v0  ;;  %v517_v24 = vsel %vm512_vm5, %v508_v8, %v992_v7  ;;  %v500_v38 = vsel %vm494_vm3, %v1242_v60, %v1002_v17  ;;  %v498_v39 = vsel %vm494_vm3, %v1187_v34, %v1001_v18 }
  0xa1   : > { %v1010_v63 = vpop.permute.xlu1 %1009  ;;  %879 = vmatprep.mubr.msk.f32.mxu0 %vm494_vm3, %v1283_v13  ;;  %v997_v11 = vunpack.i.h.bf16 %v995_v58  ;;  %v996_v12 = vunpack.i.l.bf16 %v995_v58 }
  0xa2   : > { %v1012_v27 = vunpack.i.h.bf16 %v1010_v63  ;;  %v1011_v20 = vunpack.i.l.bf16 %v1010_v63 }
  0xa3   : > { %v524_v25 = vsel %vm521_vm6, %v515_v22, %v996_v12  ;;  %v526_v26 = vsel %vm521_vm6, %v517_v24, %v997_v11 }
  0xa4   : > { %v1005_v3 = vpop.permute.xlu0 %1004  ;;  %v507_v46 = vsel %vm503_vm4, %v498_v39, %v1011_v20  ;;  %v509_v60 = vsel %vm503_vm4, %v500_v38, %v1012_v27 }
  0xa5   : > { %v1020_v6 = vpop.permute.xlu1 %1019  ;;  %v1007_v13 = vunpack.i.h.bf16 %v1005_v3  ;;  %v1006_v15 = vunpack.i.l.bf16 %v1005_v3 }
  0xa6   : > { %v1022_v42 = vunpack.i.h.bf16 %v1020_v6  ;;  %v1021_v43 = vunpack.i.l.bf16 %v1020_v6 }
  0xa7   : > { %v533_v36 = vsel %vm530_vm7, %v524_v25, %v1006_v15  ;;  %v535_v37 = vsel %vm530_vm7, %v526_v26, %v1007_v13 }
  0xa8   : > { %v1015_v14 = vpop.permute.xlu0 %1014  ;;  %v516_v54 = vsel %vm512_vm5, %v507_v46, %v1021_v43  ;;  %v518_v55 = vsel %vm512_vm5, %v509_v60, %v1022_v42 }
  0xa9   : > { %v1030_v16 = vpop.permute.xlu1 %1029  ;;  %v1017_v19 = vunpack.i.h.bf16 %v1015_v14  ;;  %v1016_v45 = vunpack.i.l.bf16 %v1015_v14 }
  0xaa   : > { %v1032_v48 = vunpack.i.h.bf16 %v1030_v16  ;;  %v1031_v49 = vunpack.i.l.bf16 %v1030_v16 }
  0xab   : > { %v542_v40 = vsel %vm539_vm8, %v533_v36, %v1016_v45  ;;  %v544_v23 = vsel %vm539_vm8, %v535_v37, %v1017_v19 }
  0xac   : > { %v1025_v30 = vpop.permute.xlu0 %1024  ;;  %v525_v57 = vsel %vm521_vm6, %v516_v54, %v1031_v49  ;;  %v527_v58 = vsel %vm521_vm6, %v518_v55, %v1032_v48 }
  0xad   : > { %v1027_v32 = vunpack.i.h.bf16 %v1025_v30  ;;  %v1026_v33 = vunpack.i.l.bf16 %v1025_v30  ;;  %v1040_v35 = vpop.permute.xlu1 %1039 }
  0xae   : > { %v1042_v50 = vunpack.i.h.bf16 %v1040_v35  ;;  %v1041_v51 = vunpack.i.l.bf16 %v1040_v35 }
  0xaf   : > { %v551_v41 = vsel %vm548_vm9, %v542_v40, %v1026_v33  ;;  %v553_v4 = vsel %vm548_vm9, %v544_v23, %v1027_v32 }
  0xb0   : > { %v1035_v44 = vpop.permute.xlu0 %1034  ;;  %666 = vmatmul.mubr.f32.gmra.mxu0 %v551_v41  ;;  %676 = vmatmul.mubr.f32.vlgmr.msra.gmra.mxu1 %v553_v4 }
  0xb1   : > { %v1050_v34 = vpop.permute.xlu1 %1049  ;;  %880 = vmatprep.mubr.msk.f32.mxu0 %vm494_vm3, %v1311_v29  ;;  %882 = vmatprep.mubr.msk.f32.mxu1 %vm494_vm3, %v1375_v61  ;;  %v534_v29 = vsel %vm530_vm7, %v525_v57, %v1041_v51  ;;  %v536_v61 = vsel %vm530_vm7, %v527_v58, %v1042_v50  ;;  %v1036_v3 = vunpack.i.l.bf16 %v1035_v44  ;;  %v1037_v12 = vunpack.i.h.bf16 %v1035_v44 }
  0xb2   : > { %v1052_v52 = vunpack.i.h.bf16 %v1050_v34  ;;  %v1051_v53 = vunpack.i.l.bf16 %v1050_v34 }
  0xb3   : > { %v501_v9 = vsel %vm494_vm3, %v1319_v31, %v1036_v3 }
  0xb4   : > { %v1045_v56 = vpop.permute.xlu0 %1044  ;;  %v543_v1 = vsel %vm539_vm8, %v534_v29, %v1051_v53  ;;  %v545_v2 = vsel %vm539_vm8, %v536_v61, %v1052_v52 }
  0xb5   : > { %v1060_v59 = vpop.permute.xlu1 %1059  ;;  %v1046_v7 = vunpack.i.l.bf16 %v1045_v56  ;;  %v1047_v15 = vunpack.i.h.bf16 %v1045_v56 }
  0xb6   : > { %v1062_v62 = vunpack.i.h.bf16 %v1060_v59  ;;  %v1061_v63 = vunpack.i.l.bf16 %v1060_v59 }
  0xb7   : > { %v510_v14 = vsel %vm503_vm4, %v501_v9, %v1046_v7 }
  0xb8   : > { %v1055_v5 = vpop.permute.xlu0 %1054  ;;  %v552_v28 = vsel %vm548_vm9, %v543_v1, %v1061_v63  ;;  %v554_v6 = vsel %vm548_vm9, %v545_v2, %v1062_v62 }
  0xb9   : > { %671 = vmatmul.mubr.f32.gmra.mxu0 %v552_v28  ;;  %681 = vmatmul.mubr.f32.gmra.mxu1 %v554_v6  ;;  %v435_v0 = vpop.permute.xlu1 %434  ;;  %v1056_v8 = vunpack.i.l.bf16 %v1055_v5  ;;  %v1057_v17 = vunpack.i.h.bf16 %v1055_v5 }
  0xba   : > { %883 = vmatprep.mubr.msk.f32.mxu1 %vm494_vm3, %v1395_v10  ;;  %v502_v10 = vsel %vm494_vm3, %v1348_v47, %v1037_v12 }
  0xbb   : > { %v519_v16 = vsel %vm512_vm5, %v510_v14, %v1056_v8  ;;  %v511_v25 = vsel %vm503_vm4, %v502_v10, %v1047_v15 }
  0xbc   : > { %v1065_v11 = vpop.permute.xlu0 %1064  ;;  %v520_v27 = vsel %vm512_vm5, %v511_v25, %v1057_v17 }
  0xbd   : > { %v1066_v13 = vunpack.i.l.bf16 %v1065_v11  ;;  %v483_v19 = vpop.permute.xlu1 %482  ;;  %v1067_v45 = vunpack.i.h.bf16 %v1065_v11 }
  0xbf   : > { %v528_v18 = vsel %vm521_vm6, %v519_v16, %v1066_v13  ;;  %v529_v30 = vsel %vm521_vm6, %v520_v27, %v1067_v45 }
  0xc0   : > { %v537_v22 = vsel %vm530_vm7, %v528_v18, %v435_v0  ;;  %v459_v24 = vpop.permute.xlu0 %458 }
  0xc1   : > { %v546_v31 = vsel %vm539_vm8, %v537_v22, %v459_v24  ;;  %v461_v33 = vpop.permute.xlu1 %460 }
  0xc2   : > { %v555_v26 = vsel %vm548_vm9, %v546_v31, %v483_v19 }
  0xc3   : > { %686 = vmatmul.mubr.f32.gmra.mxu1 %v555_v26 }
  0xc4   : > { %v437_v20 = vpop.permute.xlu0 %436  ;;  %884 = vmatprep.mubr.msk.f32.mxu1 %vm494_vm3, %v1167_v21 }
  0xc5   : > { %v538_v32 = vsel %vm530_vm7, %v529_v30, %v437_v20 }
  0xc6   : > { %v547_v47 = vsel %vm539_vm8, %v538_v32, %v461_v33 }
  0xc8   : > { %v485_v35 = vpop.permute.xlu0 %484 }
  0xc9   : > { %v556_v36 = vsel %vm548_vm9, %v547_v47, %v485_v35 }
  0xca   : > { %691 = vmatmul.mubr.f32.gmra.mxu1 %v556_v36 }
 0x15c   : > { %v657_v37 = vpop.f32.mrf.mxu0 }
 0x15d   : > { %v696_v46 = vsel %vm494_vm3, %v657_v37, 0.0 }
 0x15e   : > { %v659_v38 = vpop.f32.mrf.mxu0 }
 0x160   : > { %v662_v39 = vpop.f32.mrf.mxu0 }
 0x161   : > { %v697_v43 = vsel %vm494_vm3, %v662_v39, 0.0 }
 0x162   : > { %v664_v40 = vpop.f32.mrf.mxu0  ;;  %v698_v34 = vadd.f32 %v697_v43, %v696_v46 }
 0x170   : > { %v667_v23 = vpop.f32.mrf.mxu0  ;;  %v677_v41 = vpop.f32.mrf.mxu1 }
 0x171   : > { %v699_v60 = vsel %vm494_vm3, %v667_v23, 0.0  ;;  %v703_v53 = vsel %vm494_vm3, %v677_v41, 0.0 }
 0x172   : > { %v669_v4 = vpop.f32.mrf.mxu0  ;;  %v679_v42 = vpop.f32.mrf.mxu1  ;;  %v700_v51 = vadd.f32 %v699_v60, %v698_v34 }
 0x179   : > { %v672_v21 = vpop.f32.mrf.mxu0  ;;  %v682_v44 = vpop.f32.mrf.mxu1 }
 0x17a   : > { %v701_v50 = vsel %vm494_vm3, %v672_v21, 0.0  ;;  %v705_v57 = vsel %vm494_vm3, %v682_v44, 0.0 }
 0x17b   : > { %v674_v48 = vpop.f32.mrf.mxu0  ;;  %v684_v49 = vpop.f32.mrf.mxu1  ;;  %v702_v52 = vadd.f32 %v701_v50, %v700_v51 }
 0x17c   : > { %v885_v49 = vld [vmem:[%s1519_s2] ss:$0 sm:$0xff] }
 0x17d   : > { %v704_v55 = vadd.f32 %v703_v53, %v702_v52 }
 0x17f   : > { %v706_v59 = vadd.f32 %v705_v57, %v704_v55  ;;  %v886_v57 = vld [vmem:[%s1520_s3] ss:$0 sm:$0xff] }
 0x183   : > { %v687_v54 = vpop.f32.mrf.mxu1 }
 0x184   : > { %v707_v58 = vsel %vm494_vm3, %v687_v54, 0.0 }
 0x185   : > { %v689_v56 = vpop.f32.mrf.mxu1  ;;  %v708_v62 = vadd.f32 %v707_v58, %v706_v59 }
 0x18a   : > { %v692_v63 = vpop.f32.mrf.mxu1 }
 0x18b   : > { %v709_v29 = vsel %vm494_vm3, %v692_v63, 0.0 }
 0x18c   : > { %v710_v61 = vadd.f32 %v709_v29, %v708_v62  ;;  %v694_v1 = vpop.f32.mrf.mxu1 }
 0x18e   : > { %v711_v2 = vrot.slane %v710_v61, 4 }
 0x190   : > { %v712_v3 = vadd.f32 %v711_v2, %v710_v61 }
 0x192   : > { %v713_v5 = vrot.slane %v712_v3, 2 }
 0x194   : > { %v714_v28 = vadd.f32 %v713_v5, %v712_v3 }
 0x196   : > { %v715_v6 = vrot.slane %v714_v28, 1 }
 0x198   : > { %v716_v7 = vadd.f32 %v715_v6, %v714_v28 }
 0x19a   : > { %v718_v0 = vmul.f32 0.015625, %v716_v7 }
 0x19c   : > { %v719_v8 = vsub.f32 %v657_v37, %v718_v0  ;;  %v720_v9 = vsub.f32 %v662_v39, %v718_v0  ;;  %v721_v11 = vsub.f32 %v667_v23, %v718_v0  ;;  %v722_v12 = vsub.f32 %v672_v21, %v718_v0 }
 0x19d   : > { %v723_v14 = vsub.f32 %v677_v41, %v718_v0  ;;  %v724_v17 = vsub.f32 %v682_v44, %v718_v0  ;;  %v725_v24 = vsub.f32 %v687_v54, %v718_v0  ;;  %v726_v26 = vsub.f32 %v692_v63, %v718_v0 }
 0x19e   : > { %v727_v13 = vmul.f32 %v719_v8, %v719_v8  ;;  %v728_v15 = vmul.f32 %v720_v9, %v720_v9  ;;  %v729_v16 = vmul.f32 %v721_v11, %v721_v11  ;;  %v730_v18 = vmul.f32 %v722_v12, %v722_v12 }
 0x19f   : > { %v731_v10 = vmul.f32 %v723_v14, %v723_v14  ;;  %v732_v27 = vmul.f32 %v724_v17, %v724_v17  ;;  %v733_v32 = vmul.f32 %v725_v24, %v725_v24  ;;  %v734_v35 = vmul.f32 %v726_v26, %v726_v26 }
 0x1a0   : > { %v735_v19 = vsel %vm494_vm3, %v727_v13, 0.0  ;;  %v736_v45 = vsel %vm494_vm3, %v728_v15, 0.0  ;;  %v738_v31 = vsel %vm494_vm3, %v729_v16, 0.0  ;;  %v740_v20 = vsel %vm494_vm3, %v730_v18, 0.0 }
 0x1a1   : > { %v737_v22 = vadd.f32 %v736_v45, %v735_v19  ;;  %v742_v33 = vsel %vm494_vm3, %v731_v10, 0.0  ;;  %v744_v36 = vsel %vm494_vm3, %v732_v27, 0.0  ;;  %v746_v38 = vsel %vm494_vm3, %v733_v32, 0.0 }
 0x1a2   : > { %v748_v40 = vsel %vm494_vm3, %v734_v35, 0.0 }
 0x1a3   : > { %v739_v25 = vadd.f32 %v738_v31, %v737_v22 }
 0x1a5   : > { %v741_v30 = vadd.f32 %v740_v20, %v739_v25 }
 0x1a7   : > { %v743_v47 = vadd.f32 %v742_v33, %v741_v30 }
 0x1a9   : > { %v745_v37 = vadd.f32 %v744_v36, %v743_v47 }
 0x1ab   : > { %v747_v39 = vadd.f32 %v746_v38, %v745_v37 }
 0x1ad   : > { %v749_v23 = vadd.f32 %v748_v40, %v747_v39 }
 0x1af   : > { %v750_v41 = vrot.slane %v749_v23, 4 }
 0x1b1   : > { %v751_v4 = vadd.f32 %v750_v41, %v749_v23 }
 0x1b3   : > { %v752_v42 = vrot.slane %v751_v4, 2 }
 0x1b5   : > { %v753_v43 = vadd.f32 %v752_v42, %v751_v4 }
 0x1b7   : > { %v754_v21 = vrot.slane %v753_v43, 1 }
 0x1b9   : > { %v755_v44 = vadd.f32 %v754_v21, %v753_v43 }
 0x1bb   : > { %v756_v46 = vmul.f32 0.015625, %v755_v44 }
 0x1bd   : > { %v757_v60 = vadd.f32 1e-05, %v756_v46 }
 0x1bf   : > { %1068 = vrsqrt.f32 %v757_v60 }
 0x1cc   : > { %v1069_v48 = vpop.eup %1068 }
 0x1cd   : > { %v759_v34 = vmul.f32 %v1069_v48, %v719_v8  ;;  %v760_v50 = vmul.f32 %v1069_v48, %v720_v9  ;;  %v761_v51 = vmul.f32 %v1069_v48, %v721_v11  ;;  %v762_v52 = vmul.f32 %v1069_v48, %v722_v12 }
 0x1ce   : > { %v763_v53 = vmul.f32 %v1069_v48, %v723_v14  ;;  %v764_v54 = vmul.f32 %v1069_v48, %v724_v17  ;;  %v765_v55 = vmul.f32 %v1069_v48, %v725_v24  ;;  %v766_v56 = vmul.f32 %v1069_v48, %v726_v26 }
 0x1cf   : > { %v774_v58 = vmul.f32 %v885_v49, %v759_v34  ;;  %v775_v59 = vmul.f32 %v885_v49, %v760_v50  ;;  %v776_v62 = vmul.f32 %v885_v49, %v761_v51  ;;  %v777_v63 = vmul.f32 %v885_v49, %v762_v52 }
 0x1d0   : > { %v778_v29 = vmul.f32 %v885_v49, %v763_v53  ;;  %v779_v61 = vmul.f32 %v885_v49, %v764_v54  ;;  %v780_v1 = vmul.f32 %v885_v49, %v765_v55  ;;  %v781_v2 = vmul.f32 %v885_v49, %v766_v56 }
 0x1d1   : > { %v789_v3 = vadd.f32 %v886_v57, %v774_v58  ;;  %v790_v5 = vadd.f32 %v886_v57, %v775_v59  ;;  %v791_v28 = vadd.f32 %v886_v57, %v776_v62  ;;  %v792_v6 = vadd.f32 %v886_v57, %v777_v63 }
 0x1d2   : > { %v793_v7 = vadd.f32 %v886_v57, %v778_v29  ;;  %v794_v0 = vadd.f32 %v886_v57, %v779_v61  ;;  %v795_v8 = vadd.f32 %v886_v57, %v780_v1  ;;  %v796_v9 = vadd.f32 %v886_v57, %v781_v2 }
 0x1d3   : > { %v797_v11 = vmax.f32 %v789_v3, 0.0  ;;  %v798_v12 = vmax.f32 %v790_v5, 0.0  ;;  %v799_v14 = vmax.f32 %v791_v28, 0.0  ;;  %v800_v13 = vmax.f32 %v792_v6, 0.0 }
 0x1d4   : > { %v801_v15 = vmax.f32 %v793_v7, 0.0  ;;  %v802_v16 = vmax.f32 %v794_v0, 0.0  ;;  %v803_v17 = vmax.f32 %v795_v8, 0.0  ;;  %v804_v18 = vmax.f32 %v796_v9, 0.0 }
 0x1d5   : > { %805 = vst.msk [vmem:[%s197_s24] sm:$0xff] %vm494_vm3, %v797_v11  ;;  %806 = vst.msk [vmem:[%s197_s24 + $0x8] sm:$0xff] %vm494_vm3, %v798_v12 }
 0x1d6   : > { %807 = vst.msk [vmem:[%s197_s24 + $0x10] sm:$0xff] %vm494_vm3, %v799_v14  ;;  %808 = vst.msk [vmem:[%s197_s24 + $0x18] sm:$0xff] %vm494_vm3, %v800_v13 }
 0x1d7   : > { %809 = vst.msk [vmem:[%s197_s24 + $0x20] sm:$0xff] %vm494_vm3, %v801_v15  ;;  %810 = vst.msk [vmem:[%s197_s24 + $0x28] sm:$0xff] %vm494_vm3, %v802_v16 }
 0x1d8   : > { %811 = vst.msk [vmem:[%s197_s24 + $0x30] sm:$0xff] %vm494_vm3, %v803_v17  ;;  %812 = vst.msk [vmem:[%s197_s24 + $0x38] sm:$0xff] %vm494_vm3, %v804_v18 }
 0x1d9 PF: > { %s14_s15 = sadd.s32 1, %s1076_s15  }
 0x1da   : > { %p11_p4 = scmp.ge.s32.totalorder %s14_s15, 4  }
 0x1dc   :  { %13 = sbr.rel (!%p11_p4) target bundleno = 1 (0x1), region = 66 }

// kernel: net_recurse_forward.13
= control target key start
LH: loop header
LB: loop body
LE: loop exit
PB: predicated region body
PF: predicated region fallthrough
CT: control target
= control target key end

     0   :  { %s729_s15 = smov 0   ;;  %s866_s0 = inlined_call_operand.vmem [shape: f32[2,64,16], index: 0, kind: input, shape index: {}]   ;;  %s867_s1 = inlined_call_operand.vmem [shape: f32[16,32], index: 1, kind: input, shape index: {}]   ;;  %s868_s2 = inlined_call_operand.vmem [shape: f32[1,32], index: 2, kind: input, shape index: {}]   ;;  %s869_s3 = inlined_call_operand.vmem [shape: f32[1,32], index: 3, kind: input, shape index: {}]   ;;  %s870_s4 = inlined_call_operand.vmem [shape: f32[2,8,2,8,16], index: 4, kind: output, shape index: {}]  }
   0x1 LB: > { %s613_s16 = sadd.s32 4294967295, %s696_s15   ;;  %p617_p0 = scmp.ge.s32.totalorder %s696_s15, 1  ;;  %s696_s15 = sphi %s729_s15, %s14_s15  }
   0x2   : > { %p162_p1 = scmp.lt.s32.totalorder %s696_s15, 3 }
   0x4   : > { %p163_p2 = pnand %p617_p0, %p162_p1 }
   0x5   : > { %p188_p3 = scmp.lt.s32.totalorder (!%p163_p2), %s613_s16, 1  ;;  %s698_s25 = smov (!%p163_p2), 104  }
   0x6   : > { %166 = sbr.rel (%p163_p2) target bundleno = 916 (0x394), region = 36  ;;  %s699_s26 = smov (!%p163_p2), 120  }
   0x7   : > { %s700_s27 = smov (!%p163_p2), 112   ;;  %s701_s28 = smov (!%p163_p2), 16  }
   0x8   : > { %s702_s29 = smov (!%p163_p2), 8   ;;  %s703_s30 = smov (!%p163_p2), 24  }
   0xb   : > { %v207_v0 = vld [vmem:[%s867_s1 + $0x8] sm:$0xff]  ;;  %v206_v1 = vld [vmem:[%s867_s1] sm:$0xff]  ;;  %s872_s16 = smov (!%p188_p3, %s613_s16), 1  ;;  %vm208_vm0 = vcmask 130048   ;;  %vm338_vm1 = vcmask 261120   ;;  %v389_v46 = vlaneseq  ;;  %vm384_vm2 = vcmask 64512  }
   0xc   : > { %654 = vmatprep.subr.mxu0 %v207_v0  ;;  %670 = vmatprep.subr.mxu1 %v207_v0  ;;  %s642_s21 = sshll.u32 %s872_s16, 6  ;;  %vm387_vm3 = vcmask 195584   ;;  %s643_s9 = sshll.u32 %s872_s16, 7 }
   0xd   : > { %655 = vmatpush3.msra.mxu0 %v207_v0  ;;  %672 = vmatpush3.msra.mxu1 %v207_v0  ;;  %s192_s24 = scalar_lea.vmem %s866_s0, %s642_s21  ;;  %v777_v47 = vshrl.u32 %v389_v46, 7  ;;  %s821_s12 = scalar_lea.vmem %s870_s4, %s643_s9 }
   0xe   : > { %656 = vmatprep.subr.mxu0 %v206_v1  ;;  %671 = vmatprep.subr.mxu1 %v206_v1  ;;  %v198_v2 = vld [vmem:[%s192_s24] sm:$0xff]  ;;  %v199_v3 = vld [vmem:[%s192_s24 + $0x8] sm:$0xff]  ;;  %v200_v4 = vld [vmem:[%s192_s24 + $0x10] sm:$0xff] }
   0xf   : > { %657 = vmatpush3.msra.mxu0 %v206_v1  ;;  %673 = vmatpush3.msra.mxu1 %v206_v1  ;;  %v202_v5 = vld [vmem:[%s192_s24 + $0x20] sm:$0xff]  ;;  %v203_v6 = vld [vmem:[%s192_s24 + $0x28] sm:$0xff]  ;;  %v204_v7 = vld [vmem:[%s192_s24 + $0x30] sm:$0xff]  ;;  %v391_v51 = vsub.s32 0, %v777_v47 }
  0x10   : > { %658 = vmatprep.mubr.msk.f32.mxu0 %vm208_vm0, %v198_v2  ;;  %664 = vmatprep.mubr.msk.f32.mxu1 %vm208_vm0, %v202_v5  ;;  %v201_v8 = vld [vmem:[%s192_s24 + $0x18] sm:$0xff] }
  0x11   : > { %659 = vmatmul.mubr.msk.f32.vlgmr.msra.gmra.mxu0 %vm208_vm0, %v199_v3  ;;  %665 = vmatmul.mubr.msk.f32.vlgmr.msra.gmra.mxu1 %vm208_vm0, %v203_v6  ;;  %v205_v9 = vld [vmem:[%s192_s24 + $0x38] sm:$0xff] }
  0x12   : > { %661 = vmatprep.mubr.msk.f32.mxu0 %vm208_vm0, %v200_v4  ;;  %667 = vmatprep.mubr.msk.f32.mxu1 %vm208_vm0, %v204_v7 }
  0x15   : > { %662 = vmatmul.mubr.msk.f32.gmra.mxu0 %vm208_vm0, %v201_v8  ;;  %668 = vmatmul.mubr.msk.f32.gmra.mxu1 %vm208_vm0, %v205_v9 }
  0xd1   : > { %v660_v10 = vpop.f32.mrf.mxu0  ;;  %v757_v11 = vpop.f32.mrf.mxu1 }
  0xd2   : > { %v340_v16 = vsel %vm338_vm1, %v660_v10, 0.0  ;;  %v348_v27 = vsel %vm338_vm1, %v757_v11, 0.0 }
  0xd3   : > { %v299_v12 = vpop.f32.mrf.mxu0  ;;  %v319_v15 = vpop.f32.mrf.mxu1 }
  0xd4   : > { %v339_v13 = vsel %vm338_vm1, %v299_v12, 0.0  ;;  %v346_v24 = vsel %vm338_vm1, %v319_v15, 0.0 }
  0xd5   : > { %v663_v14 = vpop.f32.mrf.mxu0  ;;  %v341_v17 = vadd.f32 %v340_v16, %v339_v13  ;;  %v762_v21 = vpop.f32.mrf.mxu1 }
  0xd6   : > { %v344_v22 = vsel %vm338_vm1, %v663_v14, 0.0  ;;  %v352_v31 = vsel %vm338_vm1, %v762_v21, 0.0 }
  0xd7   : > { %v309_v18 = vpop.f32.mrf.mxu0  ;;  %v329_v26 = vpop.f32.mrf.mxu1 }
  0xd8   : > { %v342_v19 = vsel %vm338_vm1, %v309_v18, 0.0  ;;  %v350_v29 = vsel %vm338_vm1, %v329_v26, 0.0 }
  0xd9   : > { %v343_v20 = vadd.f32 %v342_v19, %v341_v17 }
  0xdb   : > { %v345_v23 = vadd.f32 %v344_v22, %v343_v20 }
  0xdd   : > { %v347_v25 = vadd.f32 %v346_v24, %v345_v23 }
  0xdf   : > { %v349_v28 = vadd.f32 %v348_v27, %v347_v25 }
  0xe1   : > { %v351_v30 = vadd.f32 %v350_v29, %v349_v28 }
  0xe3   : > { %v353_v32 = vadd.f32 %v352_v31, %v351_v30 }
  0xe5   : > { %v354_v33 = vrot.slane %v353_v32, 4 }
  0xe7   : > { %v355_v34 = vadd.f32 %v354_v33, %v353_v32 }
  0xe9   : > { %v356_v35 = vrot.slane %v355_v34, 2 }
  0xeb   : > { %v357_v36 = vadd.f32 %v356_v35, %v355_v34 }
  0xed   : > { %v358_v37 = vrot.slane %v357_v36, 1 }
  0xef   : > { %v359_v38 = vadd.f32 %v358_v37, %v357_v36 }
  0xf1   : > { %369 = vrot.lane.b32.xlu1 %v359_v38, %s698_s25  ;;  %361 = vrot.lane.b32.xlu0 %v359_v38, %s699_s26 }
  0xf5   : > { %365 = vrot.lane.b32.xlu0 %v359_v38, %s700_s27 }
 0x163   : > { %v362_v39 = vpop.permute.xlu0 %361  ;;  %v370_v43 = vpop.permute.xlu1 %369 }
 0x164   : > { %v364_v40 = vadd.f32 %v362_v39, %v359_v38 }
 0x167   : > { %v366_v41 = vpop.permute.xlu0 %365 }
 0x168   : > { %v368_v42 = vadd.f32 %v366_v41, %v364_v40 }
 0x16a   : > { %v372_v44 = vadd.f32 %v370_v43, %v368_v42 }
 0x16c   : > { %v373_v45 = vmul.f32 0.00390625, %v372_v44 }
 0x16e   : > { %378 = vrot.lane.b32.xlu0 %v373_v45, %s701_s28  ;;  %375 = vrot.lane.b32.xlu1 %v373_v45, %s702_s29 }
 0x172   : > { %381 = vrot.lane.b32.xlu1 %v373_v45, %s703_s30 }
 0x1e0   : > { %v376_v48 = vpop.permute.xlu1 %375  ;;  %v379_v49 = vpop.permute.xlu0 %378 }
 0x1e1   : > { %v385_v50 = vsel %vm384_vm2, %v373_v45, %v376_v48  ;;  %v630_v45 = vld [vmem:[%s868_s2] ss:$0 sm:$0xff] }
 0x1e2   : > { %v386_v52 = vsel %vm208_vm0, %v385_v50, %v379_v49 }
 0x1e4   : > { %v382_v53 = vpop.permute.xlu1 %381 }
 0x1e5   : > { %v388_v54 = vsel %vm387_vm3, %v386_v52, %v382_v53  ;;  %v631_v52 = vld [vmem:[%s869_s3] ss:$0 sm:$0xff] }
 0x1e6   : > { %v392_v55 = vrot.slane %v388_v54, %v391_v51 }
 0x1e8   : > { %v393_v56 = vsub.f32 %v299_v12, %v392_v55  ;;  %v394_v57 = vsub.f32 %v660_v10, %v392_v55  ;;  %v395_v58 = vsub.f32 %v309_v18, %v392_v55  ;;  %v396_v59 = vsub.f32 %v663_v14, %v392_v55 }
 0x1e9   : > { %v785_v60 = vsub.f32 %v319_v15, %v392_v55  ;;  %v398_v0 = vsub.f32 %v757_v11, %v392_v55  ;;  %v399_v5 = vsub.f32 %v329_v26, %v392_v55  ;;  %v400_v9 = vsub.f32 %v762_v21, %v392_v55 }
 0x1ea   : > { %v401_v61 = vmul.f32 %v393_v56, %v393_v56  ;;  %v402_v62 = vmul.f32 %v394_v57, %v394_v57  ;;  %v403_v63 = vmul.f32 %v395_v58, %v395_v58  ;;  %v404_v1 = vmul.f32 %v396_v59, %v396_v59 }
 0x1eb   : > { %v405_v6 = vmul.f32 %v785_v60, %v785_v60  ;;  %v406_v10 = vmul.f32 %v398_v0, %v398_v0  ;;  %v407_v11 = vmul.f32 %v399_v5, %v399_v5  ;;  %v408_v16 = vmul.f32 %v400_v9, %v400_v9 }
 0x1ec   : > { %v409_v2 = vsel %vm338_vm1, %v401_v61, 0.0  ;;  %v410_v3 = vsel %vm338_vm1, %v402_v62, 0.0  ;;  %v412_v7 = vsel %vm338_vm1, %v403_v63, 0.0  ;;  %v414_v12 = vsel %vm338_vm1, %v404_v1, 0.0 }
 0x1ed   : > { %v411_v4 = vadd.f32 %v410_v3, %v409_v2  ;;  %v416_v14 = vsel %vm338_vm1, %v405_v6, 0.0  ;;  %v418_v17 = vsel %vm338_vm1, %v406_v10, 0.0  ;;  %v420_v19 = vsel %vm338_vm1, %v407_v11, 0.0 }
 0x1ee   : > { %v422_v22 = vsel %vm338_vm1, %v408_v16, 0.0 }
 0x1ef   : > { %v413_v8 = vadd.f32 %v412_v7, %v411_v4 }
 0x1f1   : > { %v415_v13 = vadd.f32 %v414_v12, %v413_v8 }
 0x1f3   : > { %v417_v15 = vadd.f32 %v416_v14, %v415_v13 }
 0x1f5   : > { %v419_v18 = vadd.f32 %v418_v17, %v417_v15 }
 0x1f7   : > { %v421_v20 = vadd.f32 %v420_v19, %v419_v18 }
 0x1f9   : > { %v423_v23 = vadd.f32 %v422_v22, %v421_v20 }
 0x1fb   : > { %v424_v24 = vrot.slane %v423_v23, 4 }
 0x1fd   : > { %v425_v21 = vadd.f32 %v424_v24, %v423_v23 }
 0x1ff   : > { %v426_v25 = vrot.slane %v425_v21, 2 }
 0x201   : > { %v427_v26 = vadd.f32 %v426_v25, %v425_v21 }
 0x203   : > { %v428_v27 = vrot.slane %v427_v26, 1 }
 0x205   : > { %v429_v28 = vadd.f32 %v428_v27, %v427_v26 }
 0x207   : > { %435 = vrot.lane.b32.xlu1 %v429_v28, %s700_s27  ;;  %431 = vrot.lane.b32.xlu0 %v429_v28, %s699_s26 }
 0x20b   : > { %439 = vrot.lane.b32.xlu0 %v429_v28, %s698_s25 }
 0x279   : > { %v432_v29 = vpop.permute.xlu0 %431  ;;  %v436_v31 = vpop.permute.xlu1 %435 }
 0x27a   : > { %v434_v30 = vadd.f32 %v432_v29, %v429_v28 }
 0x27c   : > { %v438_v32 = vadd.f32 %v436_v31, %v434_v30 }
 0x27d   : > { %v440_v33 = vpop.permute.xlu0 %439 }
 0x27e   : > { %v442_v34 = vadd.f32 %v440_v33, %v438_v32 }
 0x280   : > { %v443_v35 = vmul.f32 0.00390625, %v442_v34 }
 0x282   : > { %v444_v36 = vadd.f32 1e-05, %v443_v35 }
 0x284   : > { %688 = vrsqrt.f32 %v444_v36 }
 0x291   : > { %v689_v37 = vpop.eup %688 }
 0x292   : > { %450 = vrot.lane.b32.xlu0 %v689_v37, %s701_s28  ;;  %447 = vrot.lane.b32.xlu1 %v689_v37, %s702_s29 }
 0x296   : > { %453 = vrot.lane.b32.xlu1 %v689_v37, %s703_s30 }
 0x304   : > { %v448_v38 = vpop.permute.xlu1 %447  ;;  %v451_v39 = vpop.permute.xlu0 %450 }
 0x305   : > { %v456_v40 = vsel %vm384_vm2, %v689_v37, %v448_v38 }
 0x306   : > { %v457_v41 = vsel %vm208_vm0, %v456_v40, %v451_v39 }
 0x308   : > { %v454_v42 = vpop.permute.xlu1 %453 }
 0x309   : > { %v458_v43 = vsel %vm387_vm3, %v457_v41, %v454_v42 }
 0x30a   : > { %v462_v44 = vrot.slane %v458_v43, %v391_v51 }
 0x30c   : > { %v464_v46 = vmul.f32 %v462_v44, %v394_v57  ;;  %v463_v48 = vmul.f32 %v462_v44, %v393_v56  ;;  %v466_v49 = vmul.f32 %v462_v44, %v396_v59  ;;  %v465_v50 = vmul.f32 %v462_v44, %v395_v58 }
 0x30d   : > { %v468_v53 = vmul.f32 %v462_v44, %v398_v0  ;;  %v467_v54 = vmul.f32 %v462_v44, %v785_v60  ;;  %v470_v55 = vmul.f32 %v462_v44, %v400_v9  ;;  %v469_v61 = vmul.f32 %v462_v44, %v399_v5 }
 0x30e   : > { %v479_v47 = vmul.f32 %v630_v45, %v464_v46  ;;  %v478_v51 = vmul.f32 %v630_v45, %v463_v48  ;;  %v481_v62 = vmul.f32 %v630_v45, %v466_v49  ;;  %v480_v63 = vmul.f32 %v630_v45, %v465_v50 }
 0x30f   : > { %v483_v1 = vmul.f32 %v630_v45, %v468_v53  ;;  %v482_v2 = vmul.f32 %v630_v45, %v467_v54  ;;  %v485_v57 = vmul.f32 %v630_v45, %v470_v55  ;;  %v484_v56 = vmul.f32 %v630_v45, %v469_v61 }
 0x310   : > { %v494_v59 = vadd.f32 %v631_v52, %v479_v47  ;;  %v493_v58 = vadd.f32 %v631_v52, %v478_v51  ;;  %v496_v3 = vadd.f32 %v631_v52, %v481_v62  ;;  %v495_v4 = vadd.f32 %v631_v52, %v480_v63 }
 0x311   : > { %v498_v60 = vadd.f32 %v631_v52, %v483_v1  ;;  %v497_v0 = vadd.f32 %v631_v52, %v482_v2  ;;  %v500_v5 = vadd.f32 %v631_v52, %v485_v57  ;;  %v499_v6 = vadd.f32 %v631_v52, %v484_v56 }
 0x312   : > { %v502_v7 = vmax.f32 %v494_v59, 0.0  ;;  %v501_v8 = vmax.f32 %v493_v58, 0.0  ;;  %v504_v9 = vmax.f32 %v496_v3, 0.0  ;;  %v503_v10 = vmax.f32 %v495_v4, 0.0 }
 0x313   : > { %v506_v12 = vmax.f32 %v498_v60, 0.0  ;;  %v505_v13 = vmax.f32 %v497_v0, 0.0  ;;  %v508_v11 = vmax.f32 %v500_v5, 0.0  ;;  %v507_v14 = vmax.f32 %v499_v6, 0.0 }
 0x314   : > { %527 = vrot.lane.b32.xlu1 %v502_v7, %s700_s27  ;;  %510 = vst.msk [vmem:[%s821_s12 + $0x10] sm:$0xff] %vm208_vm0, %v502_v7  ;;  %525 = vrot.lane.b32.xlu0 %v501_v8, %s700_s27  ;;  %509 = vst.msk [vmem:[%s821_s12] sm:$0xff] %vm208_vm0, %v501_v8 }
 0x315   : > { %512 = vst.msk [vmem:[%s821_s12 + $0x30] sm:$0xff] %vm208_vm0, %v504_v9  ;;  %511 = vst.msk [vmem:[%s821_s12 + $0x20] sm:$0xff] %vm208_vm0, %v503_v10 }
 0x316   : > { %514 = vst.msk [vmem:[%s821_s12 + $0x50] sm:$0xff] %vm208_vm0, %v506_v12  ;;  %513 = vst.msk [vmem:[%s821_s12 + $0x40] sm:$0xff] %vm208_vm0, %v505_v13 }
 0x317   : > { %516 = vst.msk [vmem:[%s821_s12 + $0x70] sm:$0xff] %vm208_vm0, %v508_v11  ;;  %515 = vst.msk [vmem:[%s821_s12 + $0x60] sm:$0xff] %vm208_vm0, %v507_v14 }
 0x318   : > { %531 = vrot.lane.b32.xlu1 %v504_v9, %s700_s27  ;;  %529 = vrot.lane.b32.xlu0 %v503_v10, %s700_s27 }
 0x31c   : > { %535 = vrot.lane.b32.xlu1 %v506_v12, %s700_s27  ;;  %533 = vrot.lane.b32.xlu0 %v505_v13, %s700_s27 }
 0x320   : > { %539 = vrot.lane.b32.xlu1 %v508_v11, %s700_s27  ;;  %537 = vrot.lane.b32.xlu0 %v507_v14, %s700_s27 }
 0x386   : > { %v528_v15 = vpop.permute.xlu1 %527  ;;  %v526_v16 = vpop.permute.xlu0 %525 }
 0x387   : > { %633 = vst.msk [vmem:[%s821_s12 + $0x18] sm:$0xff] %vm208_vm0, %v528_v15  ;;  %632 = vst.msk [vmem:[%s821_s12 + $0x8] sm:$0xff] %vm208_vm0, %v526_v16 }
 0x38a   : > { %v532_v17 = vpop.permute.xlu1 %531  ;;  %v530_v18 = vpop.permute.xlu0 %529 }
 0x38b   : > { %635 = vst.msk [vmem:[%s821_s12 + $0x38] sm:$0xff] %vm208_vm0, %v532_v17  ;;  %634 = vst.msk [vmem:[%s821_s12 + $0x28] sm:$0xff] %vm208_vm0, %v530_v18 }
 0x38e   : > { %v536_v19 = vpop.permute.xlu1 %535  ;;  %v534_v20 = vpop.permute.xlu0 %533 }
 0x38f   : > { %637 = vst.msk [vmem:[%s821_s12 + $0x58] sm:$0xff] %vm208_vm0, %v536_v19  ;;  %636 = vst.msk [vmem:[%s821_s12 + $0x48] sm:$0xff] %vm208_vm0, %v534_v20 }
 0x392   : > { %v540_v22 = vpop.permute.xlu1 %539  ;;  %v538_v23 = vpop.permute.xlu0 %537 }
 0x393   : > { %639 = vst.msk [vmem:[%s821_s12 + $0x78] sm:$0xff] %vm208_vm0, %v540_v22  ;;  %638 = vst.msk [vmem:[%s821_s12 + $0x68] sm:$0xff] %vm208_vm0, %v538_v23 }
 0x394 PF: > { %s14_s15 = sadd.s32 1, %s696_s15  }
 0x395   : > { %p11_p4 = scmp.ge.s32.totalorder %s14_s15, 4  }
 0x397   :  { %13 = sbr.rel (!%p11_p4) target bundleno = 1 (0x1), region = 67 }

// kernel: net_recurse_forward.14
= control target key start
LH: loop header
LB: loop body
LE: loop exit
PB: predicated region body
PF: predicated region fallthrough
CT: control target
= control target key end

     0   :  { %s3203_s18 = smov 0   ;;  %s5126_s0 = inlined_call_operand.vmem [shape: f32[2,16,16,8], index: 0, kind: input, shape index: {}]   ;;  %s5127_s1 = inlined_call_operand.vmem [shape: f32[2,16,16,8], index: 1, kind: input, shape index: {}]   ;;  %s5128_s2 = inlined_call_operand.vmem [shape: f32[144,8], index: 2, kind: input, shape index: {}]   ;;  %s5129_s3 = inlined_call_operand.vmem [shape: f32[1,8], index: 3, kind: input, shape index: {}]   ;;  %s5130_s4 = inlined_call_operand.vmem [shape: f32[1,8], index: 4, kind: input, shape index: {}]   ;;  %s5131_s5 = inlined_call_operand.vmem [shape: f32[2,16,16,8], index: 5, kind: output, shape index: {}]  }
   0x1 LB: > { %s2501_s19 = sadd.s32 4294967295, %s3162_s18   ;;  %p2505_p0 = scmp.ge.s32.totalorder %s3162_s18, 1  ;;  %s3162_s18 = sphi %s3203_s18, %s15_s18  }
   0x2   : > { %p197_p1 = scmp.lt.s32.totalorder %s3162_s18, 3 }
   0x4   : > { %p198_p2 = pnand %p2505_p0, %p197_p1 }
   0x6   : > { %201 = sbr.rel (%p198_p2) target bundleno = 833 (0x341), region = 40 }
   0xb   : > { %p230_p3 = scmp.lt.s32.totalorder %s2501_s19, 1  ;;  %v3164_v0 = vmov 0.0   ;;  %s3165_s24 = smov 8   ;;  %vm503_vm0 = vcmask 1040384   ;;  %vm669_vm1 = vcmask 1046528   ;;  %vm846_vm2 = vcmask 1045504  }
   0xc   : > { %1828 = vmatprep.subr.mxu0 %v3164_v0  ;;  %2551 = vmatprep.subr.mxu1 %v3164_v0  ;;  %v3256_v20 = vrot.slane %v3164_v0, 7  ;;  %s3166_s25 = smov 16   ;;  %s3167_s26 = smov 32   ;;  %v1761_v49 = vld [vmem:[%s5128_s2 + $0x78] sm:$0xff]  ;;  %v1760_v50 = vld [vmem:[%s5128_s2 + $0x70] sm:$0xff]  ;;  %v1759_v51 = vld [vmem:[%s5128_s2 + $0x68] sm:$0xff] }
   0xd   : > { %s5243_s19 = smov (!%p230_p3, %s2501_s19), 1  ;;  %1829 = vmatpush1.msra.mxu0 %v1761_v49  ;;  %2569 = vmatpush1.msra.mxu1 %v1761_v49  ;;  %v1758_v53 = vld [vmem:[%s5128_s2 + $0x60] sm:$0xff]  ;;  %v1757_v54 = vld [vmem:[%s5128_s2 + $0x58] sm:$0xff]  ;;  %vm437_vm3 = vcmask 64512   ;;  %v1756_v59 = vld [vmem:[%s5128_s2 + $0x50] sm:$0xff]  ;;  %s3168_s29 = smov 48  }
   0xe   : > { %s3213_s20 = sshll.u32 %s5243_s19, 8  ;;  %5165 = vst [vmem:[#allocation2_spill] sm:$0xff] %v3256_v20  ;;  %v3264_v23 = vsel %vm503_vm0, 0.0, %v3256_v20  ;;  %v620_v24 = vsel %vm503_vm0, %v3256_v20, 0.0  ;;  %v671_v28 = vrot.slane %v3256_v20, 1  ;;  %v848_v36 = vrot.slane %v3256_v20, 2  ;;  %1830 = vmatprep.subr.mxu0 %v3164_v0  ;;  %2552 = vmatprep.subr.mxu1 %v3164_v0 }
   0xf   : > { %s3219_s23 = scalar_lea.vmem %s5127_s1, %s3213_s20  ;;  %5166 = vst [vmem:[#allocation3_spill] sm:$0xff] %v3264_v23  ;;  %v670_v27 = vrot.slane %v3264_v23, 1  ;;  %v673_v29 = vrot.slane %v620_v24, 1  ;;  %v847_v35 = vrot.slane %v3264_v23, 2  ;;  %v850_v37 = vrot.slane %v620_v24, 2  ;;  %1831 = vmatpush1.msra.mxu0 %v1760_v50  ;;  %2570 = vmatpush1.msra.mxu1 %v1760_v50  ;;  %s3332_s10 = scalar_lea.vmem %s5126_s0, %s3213_s20 }
  0x10   : > { %v280_v1 = vld [vmem:[%s3219_s23 + $0x18] sm:$0xff]  ;;  %v277_v2 = vld [vmem:[%s3219_s23] sm:$0xff]  ;;  %v278_v3 = vld [vmem:[%s3219_s23 + $0x8] sm:$0xff]  ;;  %1832 = vmatprep.subr.mxu0 %v3164_v0  ;;  %2553 = vmatprep.subr.mxu1 %v3164_v0  ;;  %s3169_s30 = smov 96   ;;  %vm1515_vm4 = vcmask 130048   ;;  %s3171_s28 = smov 80  }
  0x11   : > { %347 = vrot.lane.b32.xlu1 %v280_v1, %s3165_s24  ;;  %v2604_v4 = vpack.i.bf16 %v278_v3, %v277_v2  ;;  %v281_v5 = vld [vmem:[%s3219_s23 + $0x20] sm:$0xff]  ;;  %v279_v6 = vld [vmem:[%s3219_s23 + $0x10] sm:$0xff]  ;;  %v282_v8 = vld [vmem:[%s3219_s23 + $0x28] sm:$0xff]  ;;  %v3278_v32 = vsel %vm669_vm1, %v670_v27, %v671_v28  ;;  %v3281_v33 = vsel %vm669_vm1, %v671_v28, %v673_v29  ;;  %v3293_v40 = vsel %vm846_vm2, %v847_v35, %v848_v36  ;;  %s3172_s6 = smov 112   ;;  %s5037_s8 = scalar_lea.vmem %s5131_s5, %s3213_s20 }
  0x12   : > { %v283_v7 = vld [vmem:[%s3219_s23 + $0x30] sm:$0xff]  ;;  %v285_v9 = vld [vmem:[%s3219_s23 + $0x40] sm:$0xff]  ;;  %v284_v10 = vld [vmem:[%s3219_s23 + $0x38] sm:$0xff]  ;;  %5167 = vst [vmem:[#allocation4_spill] sm:$0xff] %v3278_v32  ;;  %v2609_v38 = vpack.i.bf16 %v3281_v33, %v3278_v32  ;;  %v3296_v41 = vsel %vm846_vm2, %v848_v36, %v850_v37  ;;  %1833 = vmatpush1.msra.mxu0 %v1759_v51  ;;  %2571 = vmatpush1.msra.mxu1 %v1759_v51  ;;  %vm1548_vm5 = vcmask 261120   ;;  %vm1581_vm6 = vcmask 392192  }
  0x13   : > { %2605 = vrot.lane.b32.xlu0 %v2604_v4, %s3165_s24  ;;  %v291_v11 = vld [vmem:[%s3219_s23 + $0x70] sm:$0xff]  ;;  %v286_v12 = vld [vmem:[%s3219_s23 + $0x48] sm:$0xff]  ;;  %v293_v13 = vld [vmem:[%s3219_s23 + $0x80] sm:$0xff]  ;;  %5168 = vst [vmem:[#allocation5_spill] sm:$0xff] %v3281_v33  ;;  %v2614_v43 = vpack.i.bf16 %v3296_v41, %v3293_v40  ;;  %1834 = vmatprep.subr.mxu0 %v3164_v0  ;;  %vm1614_vm7 = vcmask 523264   ;;  %vm1647_vm8 = vcmask 654336  }
  0x14   : > { %v292_v14 = vld [vmem:[%s3219_s23 + $0x78] sm:$0xff]  ;;  %v287_v15 = vld [vmem:[%s3219_s23 + $0x50] sm:$0xff]  ;;  %v294_v16 = vld [vmem:[%s3219_s23 + $0x88] sm:$0xff]  ;;  %5169 = vst [vmem:[#allocation6_spill] sm:$0xff] %v3293_v40  ;;  %2554 = vmatprep.subr.mxu1 %v3164_v0  ;;  %1835 = vmatpush1.msra.mxu0 %v1758_v53  ;;  %vm1680_vm9 = vcmask 785408   ;;  %vm1713_vm10 = vcmask 916480  }
  0x15   : > { %349 = vrot.lane.b32.xlu1 %v281_v5, %s3165_s24  ;;  %v295_v17 = vld [vmem:[%s3219_s23 + $0x90] sm:$0xff]  ;;  %v288_v18 = vld [vmem:[%s3219_s23 + $0x58] sm:$0xff]  ;;  %v289_v19 = vld [vmem:[%s3219_s23 + $0x60] sm:$0xff]  ;;  %5170 = vst [vmem:[#allocation7_spill] sm:$0xff] %v3296_v41  ;;  %2572 = vmatpush1.msra.mxu1 %v1758_v53 }
  0x16   : > { %v296_v21 = vld [vmem:[%s3219_s23 + $0x98] sm:$0xff]  ;;  %v297_v22 = vld [vmem:[%s3219_s23 + $0xa0] sm:$0xff]  ;;  %v290_v25 = vld [vmem:[%s3219_s23 + $0x68] sm:$0xff]  ;;  %1836 = vmatprep.subr.mxu0 %v3164_v0  ;;  %2555 = vmatprep.subr.mxu1 %v3164_v0 }
  0x17   : > { %345 = vrot.lane.b32.xlu0 %v279_v6, %s3165_s24  ;;  %v299_v26 = vld [vmem:[%s3219_s23 + $0xb0] sm:$0xff]  ;;  %v298_v30 = vld [vmem:[%s3219_s23 + $0xa8] sm:$0xff]  ;;  %v301_v31 = vld [vmem:[%s3219_s23 + $0xc0] sm:$0xff]  ;;  %1837 = vmatpush1.msra.mxu0 %v1757_v54 }
  0x18   : > { %v300_v34 = vld [vmem:[%s3219_s23 + $0xb8] sm:$0xff]  ;;  %v302_v39 = vld [vmem:[%s3219_s23 + $0xc8] sm:$0xff]  ;;  %v305_v44 = vld [vmem:[%s3219_s23 + $0xe0] sm:$0xff]  ;;  %2573 = vmatpush1.msra.mxu1 %v1757_v54  ;;  %1838 = vmatprep.subr.mxu0 %v3164_v0 }
  0x19   : > { %353 = vrot.lane.b32.xlu1 %v283_v7, %s3165_s24  ;;  %v304_v42 = vld [vmem:[%s3219_s23 + $0xd8] sm:$0xff]  ;;  %v303_v45 = vld [vmem:[%s3219_s23 + $0xd0] sm:$0xff]  ;;  %v306_v47 = vld [vmem:[%s3219_s23 + $0xe8] sm:$0xff]  ;;  %2556 = vmatprep.subr.mxu1 %v3164_v0 }
  0x1a   : > { %v308_v46 = vld [vmem:[%s3219_s23 + $0xf8] sm:$0xff]  ;;  %v307_v48 = vld [vmem:[%s3219_s23 + $0xf0] sm:$0xff]  ;;  %v245_v57 = vld [vmem:[%s3332_s10] sm:$0xff]  ;;  %1839 = vmatpush1.msra.mxu0 %v1756_v59  ;;  %2574 = vmatpush1.msra.mxu1 %v1756_v59  ;;  %s3170_s23 = smov 64  }
  0x1b   : > { %351 = vrot.lane.b32.xlu0 %v282_v8, %s3165_s24  ;;  %v248_v55 = vld [vmem:[%s3332_s10 + $0x18] sm:$0xff]  ;;  %v246_v58 = vld [vmem:[%s3332_s10 + $0x8] sm:$0xff]  ;;  %v247_v1 = vld [vmem:[%s3332_s10 + $0x10] sm:$0xff]  ;;  %1840 = vmatprep.subr.mxu0 %v3164_v0 }
  0x1c   : > { %v249_v4 = vld [vmem:[%s3332_s10 + $0x20] sm:$0xff]  ;;  %v1755_v5 = vld [vmem:[%s5128_s2 + $0x48] sm:$0xff]  ;;  %2557 = vmatprep.subr.mxu1 %v3164_v0  ;;  %v252_v35 = vld [vmem:[%s3332_s10 + $0x38] sm:$0xff] }
  0x1d   : > { %357 = vrot.lane.b32.xlu1 %v285_v9, %s3165_s24  ;;  %v1754_v9 = vld [vmem:[%s5128_s2 + $0x40] sm:$0xff]  ;;  %1841 = vmatpush1.msra.mxu0 %v1755_v5  ;;  %v254_v53 = vld [vmem:[%s3332_s10 + $0x48] sm:$0xff] }
  0x1e   : > { %2575 = vmatpush1.msra.mxu1 %v1755_v5  ;;  %1842 = vmatprep.subr.mxu0 %v3164_v0 }
  0x1f   : > { %355 = vrot.lane.b32.xlu0 %v284_v10, %s3165_s24  ;;  %2558 = vmatprep.subr.mxu1 %v3164_v0 }
  0x20   : > { %1843 = vmatpush1.msra.mxu0 %v1754_v9  ;;  %2576 = vmatpush1.msra.mxu1 %v1754_v9 }
  0x21   : > { %369 = vrot.lane.b32.xlu1 %v291_v11, %s3165_s24  ;;  %1844 = vmatprep.subr.mxu0 %v3164_v0 }
  0x22   : > { %2559 = vmatprep.subr.mxu1 %v3164_v0 }
  0x23   : > { %359 = vrot.lane.b32.xlu0 %v286_v12, %s3165_s24 }
  0x25   : > { %373 = vrot.lane.b32.xlu1 %v293_v13, %s3165_s24 }
  0x27   : > { %371 = vrot.lane.b32.xlu0 %v292_v14, %s3165_s24 }
  0x29   : > { %361 = vrot.lane.b32.xlu1 %v287_v15, %s3165_s24  ;;  %v250_v15 = vld [vmem:[%s3332_s10 + $0x28] sm:$0xff] }
  0x2b   : > { %375 = vrot.lane.b32.xlu0 %v294_v16, %s3165_s24 }
  0x2d   : > { %377 = vrot.lane.b32.xlu1 %v295_v17, %s3165_s24 }
  0x2f   : > { %363 = vrot.lane.b32.xlu0 %v288_v18, %s3165_s24  ;;  %v251_v18 = vld [vmem:[%s3332_s10 + $0x30] sm:$0xff] }
  0x31   : > { %365 = vrot.lane.b32.xlu1 %v289_v19, %s3165_s24 }
  0x33   : > { %379 = vrot.lane.b32.xlu0 %v296_v21, %s3165_s24  ;;  %v1753_v21 = vld [vmem:[%s5128_s2 + $0x38] sm:$0xff] }
  0x34   : > { %1845 = vmatpush1.msra.mxu0 %v1753_v21  ;;  %2577 = vmatpush1.msra.mxu1 %v1753_v21 }
  0x35   : > { %381 = vrot.lane.b32.xlu1 %v297_v22, %s3165_s24  ;;  %1846 = vmatprep.subr.mxu0 %v3164_v0 }
  0x36   : > { %2560 = vmatprep.subr.mxu1 %v3164_v0 }
  0x37   : > { %367 = vrot.lane.b32.xlu0 %v290_v25, %s3165_s24 }
  0x39   : > { %385 = vrot.lane.b32.xlu1 %v299_v26, %s3165_s24  ;;  %v1752_v26 = vld [vmem:[%s5128_s2 + $0x30] sm:$0xff] }
  0x3a   : > { %1847 = vmatpush1.msra.mxu0 %v1752_v26  ;;  %2578 = vmatpush1.msra.mxu1 %v1752_v26  ;;  %v1746_v26 = vld [vmem:[%s5128_s2] sm:$0xff] }
  0x3b   : > { %383 = vrot.lane.b32.xlu0 %v298_v30, %s3165_s24  ;;  %1848 = vmatprep.subr.mxu0 %v3164_v0 }
  0x3c   : > { %2561 = vmatprep.subr.mxu1 %v3164_v0 }
  0x3d   : > { %389 = vrot.lane.b32.xlu1 %v301_v31, %s3165_s24 }
  0x3f   : > { %387 = vrot.lane.b32.xlu0 %v300_v34, %s3165_s24 }
  0x41   : > { %2610 = vrot.lane.b32.xlu1 %v2609_v38, %s3166_s25  ;;  %v253_v38 = vld [vmem:[%s3332_s10 + $0x40] sm:$0xff] }
  0x43   : > { %391 = vrot.lane.b32.xlu0 %v302_v39, %s3165_s24  ;;  %v1751_v39 = vld [vmem:[%s5128_s2 + $0x28] sm:$0xff] }
  0x44   : > { %1849 = vmatpush1.msra.mxu0 %v1751_v39  ;;  %2579 = vmatpush1.msra.mxu1 %v1751_v39 }
  0x45   : > { %395 = vrot.lane.b32.xlu1 %v304_v42, %s3165_s24  ;;  %1850 = vmatprep.subr.mxu0 %v3164_v0 }
  0x46   : > { %2562 = vmatprep.subr.mxu1 %v3164_v0 }
  0x47   : > { %2615 = vrot.lane.b32.xlu0 %v2614_v43, %s3167_s26 }
  0x49   : > { %397 = vrot.lane.b32.xlu1 %v305_v44, %s3165_s24 }
  0x4b   : > { %393 = vrot.lane.b32.xlu0 %v303_v45, %s3165_s24 }
  0x4d   : > { %403 = vrot.lane.b32.xlu1 %v308_v46, %s3165_s24 }
  0x4f   : > { %399 = vrot.lane.b32.xlu0 %v306_v47, %s3165_s24  ;;  %v1750_v47 = vld [vmem:[%s5128_s2 + $0x20] sm:$0xff] }
  0x50   : > { %1851 = vmatpush1.msra.mxu0 %v1750_v47  ;;  %2580 = vmatpush1.msra.mxu1 %v1750_v47 }
  0x51   : > { %1852 = vmatprep.subr.mxu0 %v3164_v0  ;;  %2563 = vmatprep.subr.mxu1 %v3164_v0 }
  0x53   : > { %401 = vrot.lane.b32.xlu0 %v307_v48, %s3165_s24 }
  0x83   : > { %v348_v52 = vpop.permute.xlu1 %347 }
  0x84   : > { %v3351_v62 = vsel %vm437_vm3, %v248_v55, %v348_v52 }
  0x85   : > { %v2606_v56 = vpop.permute.xlu0 %2605  ;;  %v510_v10 = vrot.slane %v3351_v62, 7 }
  0x86   : > { %v2608_v60 = vunpack.i.h.bf16 %v2606_v56  ;;  %v2607_v61 = vunpack.i.l.bf16 %v2606_v56 }
  0x87   : > { %v350_v63 = vpop.permute.xlu1 %349 }
  0x88   : > { %v438_v2 = vsel %vm437_vm3, %v245_v57, %v2607_v61  ;;  %v3358_v3 = vsel %vm437_vm3, %v246_v58, %v2608_v60  ;;  %v442_v12 = vsel %vm437_vm3, %v249_v4, %v350_v63  ;;  %v261_v57 = vld [vmem:[%s3332_s10 + $0x80] sm:$0xff] }
  0x89   : > { %v506_v6 = vrot.slane %v438_v2, 7  ;;  %v507_v7 = vrot.slane %v3358_v3, 7  ;;  %v346_v8 = vpop.permute.xlu0 %345  ;;  %v512_v27 = vrot.slane %v442_v12, 7 }
  0x8a   : > { %v440_v11 = vsel %vm437_vm3, %v247_v1, %v346_v8  ;;  %v1749_v1 = vld [vmem:[%s5128_s2 + $0x18] sm:$0xff] }
  0x8b   : > { %v509_v13 = vrot.slane %v440_v11, 7  ;;  %v354_v14 = vpop.permute.xlu1 %353  ;;  %v3377_v16 = vsel %vm503_vm0, %v506_v6, %v507_v7  ;;  %v3380_v17 = vsel %vm503_vm0, 0.0, %v506_v6  ;;  %v3428_v44 = vsel %vm503_vm0, 0.0, %v512_v27  ;;  %1853 = vmatpush1.msra.mxu0 %v1749_v1  ;;  %v1748_v6 = vld [vmem:[%s5128_s2 + $0x10] sm:$0xff]  ;;  %2581 = vmatpush1.msra.mxu1 %v1749_v1 }
  0x8c   : > { %v2619_v19 = vpack.i.bf16 %v3377_v16, %v3380_v17  ;;  %v444_v30 = vsel %vm437_vm3, %v251_v18, %v354_v14  ;;  %v621_v54 = vsel %vm503_vm0, %v507_v7, 0.0  ;;  %v675_v58 = vrot.slane %v3380_v17, 1  ;;  %1854 = vmatprep.subr.mxu0 %v3164_v0  ;;  %2564 = vmatprep.subr.mxu1 %v3164_v0 }
  0x8d   : > { %v3393_v22 = vsel %vm503_vm0, %v509_v13, %v510_v10  ;;  %v3396_v24 = vsel %vm503_vm0, 0.0, %v509_v13  ;;  %v352_v25 = vpop.permute.xlu0 %351  ;;  %v515_v45 = vrot.slane %v444_v30, 7  ;;  %v676_v63 = vrot.slane %v3377_v16, 1  ;;  %1855 = vmatpush1.msra.mxu0 %v1748_v6  ;;  %v1747_v13 = vld [vmem:[%s5128_s2 + $0x8] sm:$0xff]  ;;  %2582 = vmatpush1.msra.mxu1 %v1748_v6 }
  0x8e   : > { %v3404_v28 = vsel %vm437_vm3, %v250_v15, %v352_v25  ;;  %2620 = vrot.lane.b32.xlu1 %v2619_v19, %s3168_s29  ;;  %v2624_v29 = vpack.i.bf16 %v3393_v22, %v3396_v24  ;;  %v857_v36 = vrot.slane %v3396_v24, 2  ;;  %v858_v37 = vrot.slane %v3393_v22, 2  ;;  %1856 = vmatprep.subr.mxu0 %v3164_v0 }
  0x8f   : > { %v513_v31 = vrot.slane %v3404_v28, 7  ;;  %v358_v34 = vpop.permute.xlu1 %357  ;;  %v3465_v59 = vsel %vm503_vm0, 0.0, %v515_v45  ;;  %v678_v5 = vrot.slane %v621_v54, 1  ;;  %v677_v12 = vsel %vm669_vm1, %v675_v58, %v676_v63  ;;  %1857 = vmatpush1.msra.mxu0 %v1747_v13  ;;  %2565 = vmatprep.subr.mxu1 %v3164_v0  ;;  %v1762_v28 = vld [vmem:[%s5128_s2 + $0x80] sm:$0xff] }
  0x90   : > { %2625 = vrot.lane.b32.xlu0 %v2624_v29, %s3169_s30  ;;  %v446_v48 = vsel %vm437_vm3, %v253_v38, %v358_v34  ;;  %v3441_v50 = vsel %vm846_vm2, %v857_v36, %v858_v37  ;;  %5172 = vst [vmem:[#allocation9_spill] sm:$0xff] %v3465_v59  ;;  %v852_v19 = vrot.slane %v3380_v17, 2  ;;  %v853_v21 = vrot.slane %v3377_v16, 2  ;;  %1858 = vmatprep.subr.mxu0 %v3164_v0 }
  0x91   : > { %v3423_v42 = vsel %vm503_vm0, %v512_v27, %v513_v31  ;;  %v356_v43 = vpop.permute.xlu0 %355  ;;  %2512 = vmatprep.mubr.msk.f32.mxu0 %vm1515_vm4, %v3441_v50  ;;  %v518_v60 = vrot.slane %v446_v48, 7  ;;  %v679_v15 = vsel %vm669_vm1, %v676_v63, %v678_v5  ;;  %v855_v25 = vrot.slane %v621_v54, 2  ;;  %1859 = vmatpush1.msra.mxu0 %v1746_v26 }
  0x92   : > { %v3431_v46 = vsel %vm437_vm3, %v252_v35, %v356_v43  ;;  %v2634_v52 = vpack.i.bf16 %v3423_v42, %v3428_v44  ;;  %v622_v27 = vsel %vm503_vm0, %v510_v10, 0.0  ;;  %v2664_v34 = vpack.i.bf16 %v679_v15, %v677_v12  ;;  %v1763_v35 = vld [vmem:[%s5128_s2 + $0x88] sm:$0xff]  ;;  %1888 = vmatprep.subr.mxu0 %v3164_v0  ;;  %2583 = vmatpush1.msra.mxu1 %v1747_v13 }
  0x93   : > { %v516_v49 = vrot.slane %v3431_v46, 7  ;;  %v3443_v51 = vpop.permute.xlu1 %369  ;;  %v3494_v9 = vsel %vm503_vm0, 0.0, %v518_v60  ;;  %v3533_v36 = vsel %vm503_vm0, %v513_v31, 0.0  ;;  %v854_v62 = vsel %vm846_vm2, %v852_v19, %v853_v21  ;;  %1889 = vmatpush2.msra.mxu0 %v1763_v35  ;;  %2566 = vmatprep.subr.mxu1 %v3164_v0 }
  0x94   : > { %2630 = vrot.lane.b32.xlu0 %v2624_v29, %s3168_s29  ;;  %2635 = vrot.lane.b32.xlu1 %v2634_v52, %s3169_s30  ;;  %5174 = vst [vmem:[#allocation11_spill] sm:$0xff] %v3494_v9  ;;  %v680_v29 = vrot.slane %v3396_v24, 1  ;;  %v856_v10 = vsel %vm846_vm2, %v853_v21, %v855_v25  ;;  %v681_v38 = vrot.slane %v3393_v22, 1  ;;  %v683_v31 = vrot.slane %v622_v27, 1  ;;  %v262_v21 = vld [vmem:[%s3332_s10 + $0x88] sm:$0xff]  ;;  %v263_v25 = vld [vmem:[%s3332_s10 + $0x90] sm:$0xff] }
  0x95   : > { %v3459_v55 = vsel %vm503_vm0, %v515_v45, %v516_v49  ;;  %v360_v56 = vpop.permute.xlu0 %359  ;;  %v860_v39 = vrot.slane %v622_v27, 2  ;;  %v688_v43 = vrot.slane %v3533_v36, 1  ;;  %v2669_v47 = vpack.i.bf16 %v856_v10, %v854_v62  ;;  %1890 = vmatprep.subr.mxu0 %v3164_v0  ;;  %2584 = vmatpush1.msra.mxu1 %v1746_v26  ;;  %v264_v26 = vld [vmem:[%s3332_s10 + $0x98] sm:$0xff] }
  0x96   : > { %5171 = vst [vmem:[#allocation8_spill] sm:$0xff] %v3459_v55  ;;  %v3468_v61 = vsel %vm437_vm3, %v254_v53, %v360_v56  ;;  %v2644_v4 = vpack.i.bf16 %v3459_v55, %v3465_v59  ;;  %v682_v48 = vsel %vm669_vm1, %v680_v29, %v681_v38  ;;  %v686_v54 = vrot.slane %v3423_v42, 1  ;;  %1891 = vmatpush2.msra.mxu0 %v1762_v28 }
  0x97   : > { %v519_v2 = vrot.slane %v3468_v61, 7  ;;  %v374_v3 = vpop.permute.xlu1 %373  ;;  %v3552_v53 = vsel %vm846_vm2, %v858_v37, %v860_v39  ;;  %2567 = vmatprep.subr.mxu1 %v3164_v0  ;;  %v685_v56 = vrot.slane %v3428_v44, 1  ;;  %v865_v5 = vrot.slane %v3533_v36, 2 }
  0x98   : > { %v3483_v7 = vsel %vm437_vm3, %v261_v57, %v374_v3  ;;  %2645 = vrot.lane.b32.xlu0 %v2644_v4, %s3169_s30  ;;  %2640 = vrot.lane.b32.xlu1 %v2634_v52, %s3168_s29  ;;  %v684_v52 = vsel %vm669_vm1, %v681_v38, %v683_v31  ;;  %v2694_v37 = vpack.i.bf16 %v3552_v53, %v3441_v50  ;;  %v260_v50 = vld [vmem:[%s3332_s10 + $0x78] sm:$0xff]  ;;  %v624_v6 = vsel %vm503_vm0, %v516_v49, 0.0 }
  0x99   : > { %v3489_v8 = vsel %vm503_vm0, %v518_v60, %v519_v2  ;;  %v530_v11 = vrot.slane %v3483_v7, 7  ;;  %v372_v45 = vpop.permute.xlu0 %371  ;;  %2585 = vmatpush2.msra.mxu1 %v1763_v35  ;;  %v2674_v57 = vpack.i.bf16 %v684_v52, %v682_v48  ;;  %v687_v58 = vsel %vm669_vm1, %v685_v56, %v686_v54 }
  0x9a   : > { %5173 = vst [vmem:[#allocation10_spill] sm:$0xff] %v3489_v8  ;;  %v2654_v14 = vpack.i.bf16 %v3489_v8, %v3494_v9  ;;  %2568 = vmatprep.subr.mxu1 %v3164_v0  ;;  %v689_v60 = vsel %vm669_vm1, %v686_v54, %v688_v43  ;;  %v259_v0 = vld [vmem:[%s3332_s10 + $0x70] sm:$0xff]  ;;  %v863_v12 = vrot.slane %v3423_v42, 2  ;;  %v862_v13 = vrot.slane %v3428_v44, 2 }
  0x9b   : > { %v3509_v18 = vsel %vm503_vm0, 0.0, %v530_v11  ;;  %2586 = vmatpush2.msra.mxu1 %v1762_v28  ;;  %v2699_v1 = vpack.i.bf16 %v689_v60, %v687_v58  ;;  %v3570_v3 = vpop.permute.xlu1 %361  ;;  %v453_v15 = vsel %vm437_vm3, %v260_v50, %v372_v45  ;;  %v693_v19 = vrot.slane %v624_v6, 1 }
  0x9c   : > { %2650 = vrot.lane.b32.xlu0 %v2644_v4, %s3168_s29  ;;  %2655 = vrot.lane.b32.xlu1 %v2654_v14, %s3169_s30  ;;  %v2659_v30 = vpack.i.bf16 %v3509_v18, %v3494_v9  ;;  %v452_v14 = vsel %vm437_vm3, %v259_v0, %v3443_v51  ;;  %v691_v46 = vrot.slane %v3459_v55, 1  ;;  %v870_v49 = vrot.slane %v624_v6, 2 }
  0x9d   : > { %v376_v63 = vpop.permute.xlu0 %375  ;;  %v3592_v27 = vsel %vm503_vm0, %v519_v2, 0.0  ;;  %v3595_v29 = vsel %vm846_vm2, %v862_v13, %v863_v12  ;;  %v690_v51 = vrot.slane %v3465_v59, 1  ;;  %v528_v35 = vrot.slane %v453_v15, 7  ;;  %v255_v15 = vld [vmem:[%s3332_s10 + $0x50] sm:$0xff] }
  0x9e   : > { %v868_v61 = vrot.slane %v3459_v55, 2  ;;  %v527_v2 = vrot.slane %v452_v14, 7  ;;  %v3606_v10 = vsel %vm437_vm3, %v262_v21, %v376_v63  ;;  %v698_v31 = vrot.slane %v3592_v27, 1 }
  0x9f   : > { %v378_v36 = vpop.permute.xlu1 %377  ;;  %v692_v43 = vsel %vm669_vm1, %v690_v51, %v691_v46  ;;  %v3617_v45 = vsel %vm669_vm1, %v691_v46, %v693_v19  ;;  %v696_v52 = vrot.slane %v3489_v8, 1  ;;  %v531_v56 = vrot.slane %v3606_v10, 7  ;;  %v256_v19 = vld [vmem:[%s3332_s10 + $0x58] sm:$0xff] }
  0xa0   : > { %2660 = vrot.lane.b32.xlu1 %v2659_v30, %s3168_s29  ;;  %2665 = vrot.lane.b32.xlu0 %v2664_v34, %s3170_s23  ;;  %v3598_v30 = vsel %vm846_vm2, %v863_v12, %v865_v5  ;;  %v456_v38 = vsel %vm437_vm3, %v263_v25, %v378_v36  ;;  %v3623_v48 = vsel %vm846_vm2, %v868_v61, %v870_v49  ;;  %v695_v58 = vrot.slane %v3494_v9, 1 }
  0xa1   : > { %v3572_v4 = vpop.permute.xlu0 %363  ;;  %v2719_v39 = vpack.i.bf16 %v3598_v30, %v3595_v29  ;;  %v3627_v54 = vsel %vm503_vm0, %v527_v2, %v528_v35  ;;  %v3635_v60 = vsel %vm503_vm0, 0.0, %v527_v2  ;;  %v2724_v63 = vpack.i.bf16 %v3617_v45, %v692_v43 }
  0xa2   : > { %5175 = vst [vmem:[#allocation12_spill] sm:$0xff] %v3627_v54  ;;  %v697_v50 = vsel %vm669_vm1, %v695_v58, %v696_v52  ;;  %v3642_v5 = vsel %vm669_vm1, %v696_v52, %v698_v31  ;;  %v888_v6 = vrot.slane %v3627_v54, 2  ;;  %v887_v14 = vrot.slane %v3635_v60, 2 }
  0xa3   : > { %v628_v7 = vsel %vm503_vm0, %v528_v35, 0.0  ;;  %v711_v21 = vrot.slane %v3627_v54, 1  ;;  %v448_v51 = vsel %vm437_vm3, %v255_v15, %v3570_v3  ;;  %v715_v35 = vrot.slane %v3509_v18, 1 }
  0xa4   : > { %2670 = vrot.lane.b32.xlu1 %v2669_v47, %s3171_s28  ;;  %2680 = vrot.lane.b32.xlu0 %v2664_v34, %s3166_s25  ;;  %v867_v34 = vrot.slane %v3465_v59, 2  ;;  %v3669_v25 = vsel %vm846_vm2, %v887_v14, %v888_v6  ;;  %v449_v36 = vsel %vm437_vm3, %v256_v19, %v3572_v4  ;;  %v521_v2 = vrot.slane %v448_v51, 7 }
  0xa5   : > { %v380_v62 = vpop.permute.xlu0 %379  ;;  %v892_v52 = vrot.slane %v3509_v18, 2  ;;  %v872_v58 = vrot.slane %v3494_v9, 2  ;;  %v890_v15 = vrot.slane %v628_v7, 2 }
  0xa6   : > { %v3610_v28 = vsel %vm437_vm3, %v264_v26, %v380_v62  ;;  %v3706_v19 = vsel %vm503_vm0, 0.0, %v521_v2 }
  0xa7   : > { %5178 = vst [vmem:[#allocation15_spill] sm:$0xff] %v3706_v19  ;;  %v877_v41 = vrot.slane %v3706_v19, 2 }
  0xa8   : > { %2675 = vrot.lane.b32.xlu1 %v2674_v57, %s3172_s6  ;;  %2695 = vrot.lane.b32.xlu0 %v2694_v37, %s3171_s28 }
  0xac   : > { %2685 = vrot.lane.b32.xlu1 %v2669_v47, %s3167_s26  ;;  %2700 = vrot.lane.b32.xlu0 %v2699_v1, %s3172_s6  ;;  %v3620_v47 = vsel %vm846_vm2, %v867_v34, %v868_v61  ;;  %v710_v34 = vrot.slane %v3635_v60, 1  ;;  %v713_v61 = vrot.slane %v628_v7, 1 }
  0xad   : > { %v2744_v0 = vpack.i.bf16 %v3623_v48, %v3620_v47  ;;  %v2759_v3 = vpack.i.bf16 %v3669_v25, %v3620_v47 }
  0xb0   : > { %2690 = vrot.lane.b32.xlu1 %v2674_v57, %s3170_s23  ;;  %2710 = vrot.lane.b32.xlu0 %v2694_v37, %s3167_s26  ;;  %v534_v37 = vrot.slane %v3610_v28, 7 }
  0xb4   : > { %2705 = vrot.lane.b32.xlu1 %v2674_v57, %s3166_s25  ;;  %2715 = vrot.lane.b32.xlu0 %v2699_v1, %s3170_s23  ;;  %v533_v57 = vrot.slane %v456_v38, 7  ;;  %v3692_v38 = vsel %vm669_vm1, %v710_v34, %v711_v21  ;;  %v3729_v34 = vsel %vm846_vm2, %v888_v6, %v890_v15 }
  0xb6   : > { %v3653_v12 = vsel %vm503_vm0, 0.0, %v533_v57  ;;  %v3658_v13 = vsel %vm503_vm0, %v533_v57, %v534_v37  ;;  %v873_v57 = vrot.slane %v3489_v8, 2 }
  0xb7   : > { %5176 = vst [vmem:[#allocation13_spill] sm:$0xff] %v3653_v12  ;;  %5177 = vst [vmem:[#allocation14_spill] sm:$0xff] %v3658_v13  ;;  %v897_v46 = vrot.slane %v3653_v12, 2  ;;  %v5132_v49 = vrot.slane %v3658_v13, 2  ;;  %v720_v51 = vrot.slane %v3653_v12, 1 }
  0xb8   : > { %2720 = vrot.lane.b32.xlu1 %v2719_v39, %s3171_s28  ;;  %2730 = vrot.lane.b32.xlu0 %v2699_v1, %s3166_s25  ;;  %v3650_v1 = vsel %vm503_vm0, %v530_v11, %v531_v56  ;;  %v2749_v11 = vpack.i.bf16 %v3642_v5, %v697_v50 }
  0xb9   : > { %v716_v26 = vrot.slane %v3650_v1, 1  ;;  %v3685_v62 = vsel %vm846_vm2, %v897_v46, %v5132_v49  ;;  %v893_v4 = vrot.slane %v3650_v1, 2  ;;  %v2789_v10 = vpack.i.bf16 %v3650_v1, %v3489_v8 }
  0xba   : > { %2528 = vmatprep.mubr.msk.f32.mxu1 %vm1515_vm4, %v3685_v62 }
  0xbb   : > { %v3695_v31 = vsel %vm669_vm1, %v715_v35, %v716_v26 }
  0xbc   : > { %2725 = vrot.lane.b32.xlu1 %v2724_v63, %s3172_s6  ;;  %2745 = vrot.lane.b32.xlu0 %v2744_v0, %s3171_s28  ;;  %v2754_v0 = vpack.i.bf16 %v3692_v38, %v692_v43  ;;  %v2764_v14 = vpack.i.bf16 %v3695_v31, %v697_v50  ;;  %v3720_v43 = vsel %vm846_vm2, %v872_v58, %v873_v57  ;;  %v700_v50 = vrot.slane %v3706_v19, 1 }
  0xc0   : > { %2735 = vrot.lane.b32.xlu1 %v2719_v39, %s3167_s26  ;;  %2750 = vrot.lane.b32.xlu0 %v2749_v11, %s3172_s6  ;;  %v522_v39 = vrot.slane %v449_v36, 7  ;;  %v3709_v11 = vsel %vm669_vm1, %v711_v21, %v713_v61  ;;  %v721_v36 = vrot.slane %v3658_v13, 1  ;;  %v629_v61 = vsel %vm503_vm0, %v531_v56, 0.0 }
  0xc1   : > { %v2769_v7 = vpack.i.bf16 %v3709_v11, %v3617_v45  ;;  %v2779_v45 = vpack.i.bf16 %v3653_v12, %v3706_v19  ;;  %v718_v6 = vrot.slane %v629_v61, 1  ;;  %v895_v58 = vrot.slane %v629_v61, 2 }
  0xc2   : > { %v3715_v46 = vsel %vm503_vm0, %v521_v2, %v522_v39 }
  0xc3   : > { %5180 = vst [vmem:[#allocation17_spill] sm:$0xff] %v3715_v46  ;;  %v701_v35 = vrot.slane %v3715_v46, 1  ;;  %v3751_v15 = vsel %vm669_vm1, %v716_v26, %v718_v6  ;;  %v3760_v61 = vsel %vm846_vm2, %v893_v4, %v895_v58  ;;  %v3768_v26 = vsel %vm503_vm0, %v534_v37, 0.0  ;;  %v257_v6 = vld [vmem:[%s3332_s10 + $0x60] sm:$0xff] }
  0xc4   : > { %2740 = vrot.lane.b32.xlu1 %v2724_v63, %s3170_s23  ;;  %2760 = vrot.lane.b32.xlu0 %v2759_v3, %s3167_s26  ;;  %v3712_v63 = vsel %vm846_vm2, %v892_v52, %v893_v4  ;;  %v2784_v3 = vpack.i.bf16 %v3729_v34, %v3623_v48  ;;  %v722_v52 = vsel %vm669_vm1, %v720_v51, %v721_v36  ;;  %v265_v4 = vld [vmem:[%s3332_s10 + $0xa0] sm:$0xff]  ;;  %v723_v37 = vrot.slane %v3768_v26, 1 }
  0xc5   : > { %5179 = vst [vmem:[#allocation16_spill] sm:$0xff] %v3712_v63  ;;  %v2774_v21 = vpack.i.bf16 %v3712_v63, %v3720_v43  ;;  %v702_v2 = vsel %vm669_vm1, %v700_v50, %v701_v35  ;;  %v366_v50 = vpop.permute.xlu1 %365  ;;  %v2799_v51 = vpack.i.bf16 %v3751_v15, %v3642_v5  ;;  %5181 = vst [vmem:[#allocation18_spill] sm:$0xff] %v3760_v61 }
  0xc6   : > { %v3748_v56 = vpack.i.bf16 %v722_v52, %v702_v2  ;;  %v258_v52 = vld [vmem:[%s3332_s10 + $0x68] sm:$0xff]  ;;  %v2819_v49 = vpack.i.bf16 %v3658_v13, %v3715_v46  ;;  %v724_v63 = vsel %vm669_vm1, %v721_v36, %v723_v37 }
  0xc8   : > { %2755 = vrot.lane.b32.xlu1 %v2754_v0, %s3166_s25  ;;  %2765 = vrot.lane.b32.xlu0 %v2764_v14, %s3170_s23  ;;  %v368_v0 = vpop.permute.xlu0 %367 }
  0xc9   : > { %v382_v5 = vpop.permute.xlu1 %381  ;;  %v451_v58 = vsel %vm437_vm3, %v258_v52, %v368_v0 }
  0xcc   : > { %2770 = vrot.lane.b32.xlu1 %v2769_v7, %s3166_s25  ;;  %2775 = vrot.lane.b32.xlu0 %v2774_v21, %s3171_s28  ;;  %v875_v7 = vrot.slane %v3592_v27, 2  ;;  %v384_v27 = vpop.permute.xlu0 %383 }
  0xce   : > { %v3774_v2 = vsel %vm846_vm2, %v873_v57, %v875_v7  ;;  %v458_v57 = vsel %vm437_vm3, %v265_v4, %v382_v5  ;;  %v386_v5 = vpop.permute.xlu1 %385 }
  0xcf   : > { %5182 = vst [vmem:[#allocation19_spill] sm:$0xff] %v3774_v2 }
  0xd0   : > { %2785 = vrot.lane.b32.xlu1 %v2784_v3, %s3167_s26  ;;  %2780 = vrot.lane.b32.xlu0 %v2779_v45, %s3169_s30  ;;  %v3763_v3 = vsel %vm503_vm0, %v522_v39, 0.0  ;;  %v2809_v39 = vpack.i.bf16 %v3760_v61, %v3774_v2  ;;  %v388_v40 = vpop.permute.xlu0 %387 }
  0xd1   : > { %v703_v28 = vrot.slane %v3763_v3, 1 }
  0xd3   : > { %v704_v61 = vsel %vm669_vm1, %v701_v35, %v703_v28 }
  0xd4   : > { %2790 = vrot.lane.b32.xlu1 %v2789_v10, %s3168_s29  ;;  %2795 = vrot.lane.b32.xlu0 %v3748_v56, %s3172_s6  ;;  %v266_v10 = vld [vmem:[%s3332_s10 + $0xa8] sm:$0xff]  ;;  %v3797_v0 = vpack.i.bf16 %v724_v63, %v704_v61  ;;  %v3820_v63 = vpop.permute.xlu1 %389 }
  0xd5   : > { %v459_v7 = vsel %vm437_vm3, %v266_v10, %v384_v27 }
  0xd6   : > { %v537_v4 = vrot.slane %v459_v7, 7 }
  0xd8   : > { %2800 = vrot.lane.b32.xlu1 %v2799_v51, %s3170_s23  ;;  %2805 = vrot.lane.b32.xlu0 %v2764_v14, %s3166_s25  ;;  %v450_v14 = vsel %vm437_vm3, %v257_v6, %v366_v50  ;;  %v536_v50 = vrot.slane %v458_v57, 7  ;;  %v525_v6 = vrot.slane %v451_v58, 7  ;;  %v3834_v58 = vpop.permute.xlu1 %2610 }
  0xd9   : > { %v524_v12 = vrot.slane %v450_v14, 7 }
  0xda   : > { %v3806_v36 = vsel %vm503_vm0, 0.0, %v536_v50  ;;  %v3812_v10 = vsel %vm503_vm0, %v536_v50, %v537_v4 }
  0xdb   : > { %v3803_v35 = vsel %vm503_vm0, 0.0, %v524_v12  ;;  %5185 = vst [vmem:[#allocation22_spill] sm:$0xff] %v3806_v36  ;;  %v3809_v52 = vsel %vm503_vm0, %v524_v12, %v525_v6  ;;  %5187 = vst [vmem:[#allocation24_spill] sm:$0xff] %v3812_v10  ;;  %v725_v12 = vrot.slane %v3806_v36, 1  ;;  %v726_v37 = vrot.slane %v3812_v10, 1 }
  0xdc   : > { %2810 = vrot.lane.b32.xlu1 %v2809_v39, %s3171_s28  ;;  %2815 = vrot.lane.b32.xlu0 %v2774_v21, %s3167_s26  ;;  %v878_v21 = vrot.slane %v3715_v46, 2  ;;  %5184 = vst [vmem:[#allocation21_spill] sm:$0xff] %v3803_v35  ;;  %5186 = vst [vmem:[#allocation23_spill] sm:$0xff] %v3809_v52  ;;  %v705_v61 = vrot.slane %v3803_v35, 1  ;;  %v706_v28 = vrot.slane %v3809_v52, 1  ;;  %v2854_v57 = vpack.i.bf16 %v3806_v36, %v3803_v35 }
  0xdd   : > { %v727_v7 = vsel %vm669_vm1, %v725_v12, %v726_v37  ;;  %v900_v46 = vrot.slane %v3768_v26, 2  ;;  %v5189_v12 = vrot.slane %v3658_v13, 2  ;;  %v3863_v26 = vsel %vm503_vm0, %v537_v4, 0.0 }
  0xde   : > { %v3800_v27 = vsel %vm846_vm2, %v877_v41, %v878_v21  ;;  %v3818_v41 = vpop.permute.xlu0 %391  ;;  %v728_v4 = vrot.slane %v3863_v26, 1  ;;  %v902_v13 = vrot.slane %v3806_v36, 2  ;;  %v2889_v8 = vpack.i.bf16 %v3812_v10, %v3809_v52 }
  0xdf   : > { %5183 = vst [vmem:[#allocation20_spill] sm:$0xff] %v3800_v27  ;;  %v883_v32 = vrot.slane %v3809_v52, 2  ;;  %v903_v9 = vrot.slane %v3812_v10, 2  ;;  %v270_v10 = vld [vmem:[%s3332_s10 + $0xc8] sm:$0xff] }
  0xe0   : > { %2820 = vrot.lane.b32.xlu1 %v2819_v49, %s3169_s30  ;;  %2825 = vrot.lane.b32.xlu0 %v2779_v45, %s3168_s29  ;;  %v2844_v45 = vpack.i.bf16 %v3685_v62, %v3800_v27  ;;  %v707_v62 = vsel %vm669_vm1, %v705_v61, %v706_v28  ;;  %v3849_v61 = vpop.permute.xlu1 %395 }
  0xe1   : > { %v3840_v50 = vpack.i.bf16 %v727_v7, %v707_v62  ;;  %v3857_v62 = vsel %vm846_vm2, %v5189_v12, %v900_v46  ;;  %v882_v12 = vrot.slane %v3803_v35, 2 }
  0xe2   : > { %v3830_v14 = vpop.permute.xlu0 %2615  ;;  %5190 = vst [vmem:[#allocation26_spill] sm:$0xff] %v3857_v62 }
  0xe4   : > { %2830 = vrot.lane.b32.xlu1 %v3797_v0, %s3172_s6  ;;  %2835 = vrot.lane.b32.xlu0 %v3748_v56, %s3170_s23  ;;  %v3872_v7 = vpop.permute.xlu1 %397 }
  0xe6   : > { %v3844_v19 = vpop.permute.xlu0 %393 }
  0xe8   : > { %2840 = vrot.lane.b32.xlu1 %v2799_v51, %s3166_s25  ;;  %2845 = vrot.lane.b32.xlu0 %v2844_v45, %s3171_s28  ;;  %v880_v51 = vrot.slane %v3763_v3, 2  ;;  %v3860_v3 = vsel %vm503_vm0, %v525_v6, 0.0 }
  0xe9   : > { %v708_v6 = vrot.slane %v3860_v3, 1 }
  0xec   : > { %2850 = vrot.lane.b32.xlu1 %v2809_v39, %s3167_s26  ;;  %2855 = vrot.lane.b32.xlu0 %v2854_v57, %s3169_s30  ;;  %v3852_v39 = vsel %vm846_vm2, %v878_v21, %v880_v51  ;;  %v268_v21 = vld [vmem:[%s3332_s10 + $0xb8] sm:$0xff]  ;;  %v267_v51 = vld [vmem:[%s3332_s10 + $0xb0] sm:$0xff] }
  0xed   : > { %5188 = vst [vmem:[#allocation25_spill] sm:$0xff] %v3852_v39  ;;  %v2879_v46 = vpack.i.bf16 %v3857_v62, %v3852_v39  ;;  %v460_v33 = vsel %vm437_vm3, %v267_v51, %v386_v5  ;;  %v709_v62 = vsel %vm669_vm1, %v706_v28, %v708_v6  ;;  %v3893_v39 = vpop.permute.xlu1 %403  ;;  %v3903_v51 = vsel %vm846_vm2, %v902_v13, %v903_v9 }
  0xee   : > { %5192 = vst [vmem:[#allocation28_spill] sm:$0xff] %v3893_v39  ;;  %5194 = vst [vmem:[#allocation30_spill] sm:$0xff] %v3903_v51 }
  0xf0   : > { %2860 = vrot.lane.b32.xlu1 %v2819_v49, %s3168_s29  ;;  %2865 = vrot.lane.b32.xlu0 %v3840_v50, %s3172_s6  ;;  %v3869_v49 = vpop.permute.xlu0 %399 }
  0xf4   : > { %2870 = vrot.lane.b32.xlu1 %v3797_v0, %s3170_s23  ;;  %2875 = vrot.lane.b32.xlu0 %v3748_v56, %s3166_s25  ;;  %v461_v56 = vsel %vm437_vm3, %v268_v21, %v388_v40  ;;  %v3889_v55 = vpop.permute.xlu0 %401  ;;  %v539_v40 = vrot.slane %v460_v33, 7  ;;  %v3900_v21 = vsel %vm846_vm2, %v882_v12, %v883_v32 }
  0xf5   : > { %5191 = vst [vmem:[#allocation27_spill] sm:$0xff] %v3889_v55  ;;  %v540_v35 = vrot.slane %v461_v56, 7  ;;  %5193 = vst [vmem:[#allocation29_spill] sm:$0xff] %v3900_v21  ;;  %v2914_v13 = vpack.i.bf16 %v3903_v51, %v3900_v21  ;;  %v905_v21 = vrot.slane %v3863_v26, 2 }
  0xf7   : > { %v3906_v28 = vsel %vm503_vm0, %v539_v40, %v540_v35  ;;  %v3968_v26 = vsel %vm846_vm2, %v903_v9, %v905_v21  ;;  %v2613_v9 = vunpack.i.h.bf16 %v3834_v58 }
  0xf8   : > { %2880 = vrot.lane.b32.xlu1 %v2879_v46, %s3171_s28  ;;  %2885 = vrot.lane.b32.xlu0 %v2844_v45, %s3167_s26  ;;  %v729_v45 = vsel %vm669_vm1, %v726_v37, %v728_v4  ;;  %5195 = vst [vmem:[#allocation31_spill] sm:$0xff] %v3906_v28  ;;  %v3915_v37 = vsel %vm503_vm0, 0.0, %v539_v40  ;;  %v731_v6 = vrot.slane %v3906_v28, 1  ;;  %5198 = vst [vmem:[#allocation34_spill] sm:$0xff] %v3968_v26 }
  0xf9   : > { %v3897_v5 = vpack.i.bf16 %v729_v45, %v709_v62  ;;  %5196 = vst [vmem:[#allocation32_spill] sm:$0xff] %v3915_v37  ;;  %v730_v62 = vrot.slane %v3915_v37, 1  ;;  %v3932_v56 = vpack.i.bf16 %v3915_v37, %v3635_v60  ;;  %v269_v45 = vld [vmem:[%s3332_s10 + $0xc0] sm:$0xff] }
  0xfb   : > { %v3936_v40 = vsel %vm669_vm1, %v730_v62, %v731_v6  ;;  %v885_v62 = vrot.slane %v3860_v3, 2 }
  0xfc   : > { %2890 = vrot.lane.b32.xlu1 %v2889_v8, %s3169_s30  ;;  %2895 = vrot.lane.b32.xlu0 %v2854_v57, %s3168_s29  ;;  %v3950_v51 = vpack.i.bf16 %v3936_v40, %v3692_v38 }
  0xfd   : > { %v3965_v3 = vsel %vm846_vm2, %v883_v32, %v885_v62 }
  0xfe   : > { %5197 = vst [vmem:[#allocation33_spill] sm:$0xff] %v3965_v3 }
 0x100   : > { %2900 = vrot.lane.b32.xlu1 %v3897_v5, %s3172_s6  ;;  %2905 = vrot.lane.b32.xlu0 %v3840_v50, %s3170_s23  ;;  %v3917_v57 = vpop.permute.xlu1 %2620 }
 0x102   : > { %v3912_v33 = vpop.permute.xlu0 %2625 }
 0x104   : > { %2910 = vrot.lane.b32.xlu1 %v3797_v0, %s3166_s25  ;;  %2915 = vrot.lane.b32.xlu0 %v2914_v13, %s3171_s28  ;;  %v462_v0 = vsel %vm437_vm3, %v269_v45, %v3820_v63  ;;  %v632_v45 = vsel %vm503_vm0, %v540_v35, 0.0  ;;  %v907_v35 = vrot.slane %v3915_v37, 2  ;;  %v2623_v37 = vunpack.i.h.bf16 %v3917_v57 }
 0x105   : > { %v542_v63 = vrot.slane %v462_v0, 7  ;;  %v910_v27 = vrot.slane %v632_v45, 2  ;;  %v2617_v0 = vunpack.i.l.bf16 %v3830_v14 }
 0x106   : > { %v3926_v4 = vpop.permute.xlu0 %2630  ;;  %v3928_v12 = vpop.permute.xlu1 %2635 }
 0x107   : > { %v3978_v32 = vsel %vm503_vm0, 0.0, %v542_v63 }
 0x108   : > { %2920 = vrot.lane.b32.xlu1 %v2879_v46, %s3167_s26  ;;  %2925 = vrot.lane.b32.xlu0 %v3932_v56, %s3169_s30  ;;  %v463_v46 = vsel %vm437_vm3, %v270_v10, %v3818_v41  ;;  %v2612_v10 = vunpack.i.l.bf16 %v3834_v58  ;;  %v908_v41 = vrot.slane %v3906_v28, 2 }
 0x109   : > { %v543_v55 = vrot.slane %v463_v46, 7 }
 0x10a   : > { %v3944_v52 = vpop.permute.xlu0 %2645  ;;  %v3946_v36 = vpop.permute.xlu1 %2640  ;;  %v1516_v58 = vsel %vm1515_vm4, %v3264_v23, %v2612_v10  ;;  %v1517_v10 = vsel %vm1515_vm4, %v3256_v20, %v2613_v9  ;;  %v4016_v23 = vpack.i.bf16 %v3906_v28, %v3627_v54 }
 0x10b   : > { %v3982_v21 = vsel %vm503_vm0, %v542_v63, %v543_v55  ;;  %v2622_v63 = vunpack.i.l.bf16 %v3917_v57  ;;  %v4003_v59 = vsel %vm503_vm0, %v543_v55, 0.0 }
 0x10c   : > { %2930 = vrot.lane.b32.xlu1 %v2889_v8, %s3168_s29  ;;  %2935 = vrot.lane.b32.xlu0 %v3950_v51, %s3172_s6  ;;  %v733_v8 = vrot.slane %v632_v45, 1 }
 0x10e   : > { %v3960_v39 = vpop.permute.xlu0 %2650  ;;  %v3962_v38 = vpop.permute.xlu1 %2655  ;;  %v3997_v2 = vsel %vm669_vm1, %v731_v6, %v733_v8  ;;  %v2618_v6 = vunpack.i.h.bf16 %v3830_v14  ;;  %v272_v8 = vld [vmem:[%s3332_s10 + $0xd8] sm:$0xff] }
 0x10f   : > { %v4024_v20 = vsel %vm437_vm3, %v272_v8, %v3849_v61  ;;  %v2627_v61 = vunpack.i.l.bf16 %v3912_v33 }
 0x110   : > { %2940 = vrot.lane.b32.xlu1 %v3897_v5, %s3170_s23  ;;  %2945 = vrot.lane.b32.xlu0 %v3840_v50, %s3166_s25  ;;  %v3989_v50 = vpack.i.bf16 %v3968_v26, %v3965_v3  ;;  %v1550_v57 = vsel %vm1548_vm5, %v1517_v10, %v2618_v6  ;;  %v271_v10 = vld [vmem:[%s3332_s10 + $0xd0] sm:$0xff]  ;;  %v273_v6 = vld [vmem:[%s3332_s10 + $0xe0] sm:$0xff] }
 0x112   : > { %v3985_v62 = vpop.permute.xlu1 %2660  ;;  %v2666_v46 = vpop.permute.xlu0 %2665 }
 0x113   : > { %5199 = vst [vmem:[#allocation35_spill] sm:$0xff] %v3985_v62  ;;  %v4000_v62 = vsel %vm846_vm2, %v908_v41, %v910_v27  ;;  %v2667_v26 = vunpack.i.l.bf16 %v2666_v46  ;;  %v1549_v27 = vsel %vm1548_vm5, %v1516_v58, %v2617_v0  ;;  %v2668_v0 = vunpack.i.h.bf16 %v2666_v46 }
 0x114   : > { %2950 = vrot.lane.b32.xlu1 %v3989_v50, %s3171_s28  ;;  %2955 = vrot.lane.b32.xlu0 %v2914_v13, %s3167_s26  ;;  %v738_v13 = vrot.slane %v4003_v59, 1  ;;  %v1582_v3 = vsel %vm1581_vm6, %v1549_v27, %v2622_v63 }
 0x115   : > { %v1615_v58 = vsel %vm1614_vm7, %v1582_v3, %v2667_v26  ;;  %v4038_v3 = vpack.i.bf16 %v3997_v2, %v3709_v11  ;;  %v5200_v26 = vrot.slane %v3982_v21, 1 }
 0x116   : > { %v2671_v45 = vpop.permute.xlu1 %2670  ;;  %v2681_v55 = vpop.permute.xlu0 %2680 }
 0x117   : > { %v2672_v9 = vunpack.i.l.bf16 %v2671_v45  ;;  %v2673_v63 = vunpack.i.h.bf16 %v2671_v45  ;;  %v4043_v45 = vsel %vm846_vm2, %v907_v35, %v908_v41  ;;  %v2682_v28 = vunpack.i.l.bf16 %v2681_v55 }
 0x118   : > { %2960 = vrot.lane.b32.xlu1 %v4016_v23, %s3169_s30  ;;  %2965 = vrot.lane.b32.xlu0 %v3932_v56, %s3168_s29  ;;  %v1583_v56 = vsel %vm1581_vm6, %v1550_v57, %v2623_v37  ;;  %v915_v37 = vrot.slane %v4003_v59, 2 }
 0x119   : > { %v1648_v27 = vsel %vm1647_vm8, %v1615_v58, %v2672_v9  ;;  %v1616_v9 = vsel %vm1614_vm7, %v1583_v56, %v2668_v0  ;;  %v2683_v58 = vunpack.i.h.bf16 %v2681_v55  ;;  %v4059_v0 = vsel %vm669_vm1, %v5200_v26, %v738_v13 }
 0x11a   : > { %v2676_v8 = vpop.permute.xlu1 %2675  ;;  %v4034_v46 = vpop.permute.xlu0 %2695  ;;  %v1681_v11 = vsel %vm1680_vm9, %v1648_v27, %v2627_v61  ;;  %v1649_v35 = vsel %vm1647_vm8, %v1616_v9, %v2673_v63  ;;  %v2628_v55 = vunpack.i.h.bf16 %v3912_v33  ;;  %v4068_v27 = vsel %vm437_vm3, %v271_v10, %v3844_v19 }
 0x11b   : > { %v2677_v14 = vunpack.i.l.bf16 %v2676_v8  ;;  %v2678_v57 = vunpack.i.h.bf16 %v2676_v8  ;;  %v5201_v33 = vrot.slane %v4024_v20, 7  ;;  %v1519_v8 = vsel %vm1515_vm4, %v3377_v16, %v2683_v58 }
 0x11c   : > { %2970 = vrot.lane.b32.xlu1 %v4038_v3, %s3172_s6  ;;  %2975 = vrot.lane.b32.xlu0 %v3950_v51, %s3170_s23  ;;  %v2984_v51 = vpack.i.bf16 %v4043_v45, %v3669_v25  ;;  %v1518_v19 = vsel %vm1515_vm4, %v3380_v17, %v2682_v28  ;;  %v5203_v16 = vrot.slane %v3978_v32, 1  ;;  %v2633_v17 = vunpack.i.h.bf16 %v3926_v4 }
 0x11d   : > { %v1714_v41 = vsel %vm1713_vm10, %v1681_v11, %v2677_v14  ;;  %v4072_v14 = vsel %vm437_vm3, %v273_v6, %v3872_v7  ;;  %v4079_v61 = vsel %vm503_vm0, %v5201_v33, 0.0  ;;  %v1682_v7 = vsel %vm1680_vm9, %v1649_v35, %v2628_v55 }
 0x11e   : > { %v2686_v56 = vpop.permute.xlu1 %2685  ;;  %v4062_v54 = vpop.permute.xlu0 %2700  ;;  %1893 = vmatmul.mubr.f32.vlgmr.msra.gmra.mxu0 %v1714_v41  ;;  %v1715_v10 = vsel %vm1713_vm10, %v1682_v7, %v2678_v57  ;;  %v5202_v6 = vrot.slane %v3982_v21, 1  ;;  %v2994_v11 = vpack.i.bf16 %v3978_v32, %v3509_v18  ;;  %v545_v41 = vrot.slane %v4068_v27, 7 }
 0x11f   : > { %v2688_v63 = vunpack.i.h.bf16 %v2686_v56  ;;  %v2687_v13 = vunpack.i.l.bf16 %v2686_v56  ;;  %2513 = vmatprep.mubr.msk.f32.mxu0 %vm1515_vm4, %v3552_v53  ;;  %v2697_v55 = vunpack.i.l.bf16 %v4034_v46  ;;  %v2638_v33 = vunpack.i.h.bf16 %v3928_v12 }
 0x120   : > { %2980 = vrot.lane.b32.xlu1 %v3897_v5, %s3166_s25  ;;  %2985 = vrot.lane.b32.xlu0 %v2984_v51, %s3171_s28  ;;  %v4097_v9 = vsel %vm669_vm1, %v5203_v16, %v5202_v6  ;;  %v2632_v5 = vunpack.i.l.bf16 %v3926_v4  ;;  %v2643_v6 = vunpack.i.h.bf16 %v3946_v36 }
 0x121   : > { %v1551_v53 = vsel %vm1548_vm5, %v1518_v19, %v2687_v13  ;;  %v1552_v26 = vsel %vm1548_vm5, %v1519_v8, %v2688_v63  ;;  %v3004_v4 = vpack.i.bf16 %v4097_v9, %v3695_v31  ;;  %v2698_v63 = vunpack.i.h.bf16 %v4034_v46 }
 0x122   : > { %v2691_v28 = vpop.permute.xlu1 %2690  ;;  %v2711_v58 = vpop.permute.xlu0 %2710  ;;  %1898 = vmatmul.mubr.f32.gmra.mxu0 %v1715_v10  ;;  %v1584_v56 = vsel %vm1581_vm6, %v1551_v53, %v2632_v5  ;;  %v1585_v51 = vsel %vm1581_vm6, %v1552_v26, %v2633_v17  ;;  %v2637_v8 = vunpack.i.l.bf16 %v3928_v12  ;;  %v2702_v26 = vunpack.i.l.bf16 %v4062_v54 }
 0x123   : > { %v2693_v57 = vunpack.i.h.bf16 %v2691_v28  ;;  %v2692_v35 = vunpack.i.l.bf16 %v2691_v28  ;;  %2514 = vmatprep.mubr.msk.f32.mxu0 %vm1515_vm4, %v3595_v29  ;;  %v2713_v16 = vunpack.i.h.bf16 %v2711_v58  ;;  %v2712_v17 = vunpack.i.l.bf16 %v2711_v58 }
 0x124   : > { %2990 = vrot.lane.b32.xlu1 %v3989_v50, %s3167_s26  ;;  %2995 = vrot.lane.b32.xlu0 %v2994_v11, %s3169_s30  ;;  %v3014_v50 = vpack.i.bf16 %v3997_v2, %v3936_v40  ;;  %v2642_v5 = vunpack.i.l.bf16 %v3946_v36  ;;  %v2703_v36 = vunpack.i.h.bf16 %v4062_v54 }
 0x125   : > { %v1617_v13 = vsel %vm1614_vm7, %v1584_v56, %v2692_v35  ;;  %v1618_v29 = vsel %vm1614_vm7, %v1585_v51, %v2693_v57  ;;  %v5204_v51 = vrot.slane %v3982_v21, 2 }
 0x126   : > { %v2706_v19 = vpop.permute.xlu1 %2705  ;;  %v2716_v7 = vpop.permute.xlu0 %2715  ;;  %v1650_v53 = vsel %vm1647_vm8, %v1617_v13, %v2697_v55  ;;  %v1651_v46 = vsel %vm1647_vm8, %v1618_v29, %v2698_v63  ;;  %v548_v63 = vrot.slane %v4072_v14, 7  ;;  %v743_v29 = vrot.slane %v4079_v61, 1 }
 0x127   : > { %v2708_v31 = vunpack.i.h.bf16 %v2706_v19  ;;  %v2707_v10 = vunpack.i.l.bf16 %v2706_v19  ;;  %v1683_v12 = vsel %vm1680_vm9, %v1650_v53, %v2637_v8  ;;  %v2717_v57 = vunpack.i.l.bf16 %v2716_v7 }
 0x128   : > { %3000 = vrot.lane.b32.xlu1 %v4016_v23, %s3168_s29  ;;  %3005 = vrot.lane.b32.xlu0 %v3004_v4, %s3172_s6  ;;  %v1716_v28 = vsel %vm1713_vm10, %v1683_v12, %v2702_v26  ;;  %v1684_v55 = vsel %vm1680_vm9, %v1651_v46, %v2638_v33  ;;  %v4148_v4 = vsel %vm846_vm2, %v5204_v51, %v915_v37  ;;  %v2718_v13 = vunpack.i.h.bf16 %v2716_v7 }
 0x129   : > { %v1521_v2 = vsel %vm1515_vm4, %v3393_v22, %v2708_v31  ;;  %v1520_v40 = vsel %vm1515_vm4, %v3396_v24, %v2707_v10  ;;  %1903 = vmatmul.mubr.f32.gmra.mxu0 %v1716_v28  ;;  %v1717_v59 = vsel %vm1713_vm10, %v1684_v55, %v2703_v36  ;;  %v2647_v37 = vunpack.i.l.bf16 %v3944_v52 }
 0x12a   : > { %v1553_v11 = vsel %vm1548_vm5, %v1520_v40, %v2712_v17  ;;  %v1554_v58 = vsel %vm1548_vm5, %v1521_v2, %v2713_v16  ;;  %v2721_v23 = vpop.permute.xlu1 %2720  ;;  %v2731_v35 = vpop.permute.xlu0 %2730  ;;  %2515 = vmatprep.mubr.msk.f32.mxu0 %vm1515_vm4, %v3598_v30  ;;  %v274_v30 = vld [vmem:[%s3332_s10 + $0xe8] sm:$0xff]  ;;  %v3024_v53 = vpack.i.bf16 %v4000_v62, %v4043_v45  ;;  %v5205_v26 = vrot.slane %v4024_v20, 7 }
 0x12b   : > { %v1586_v22 = vsel %vm1581_vm6, %v1553_v11, %v2642_v5  ;;  %v1587_v56 = vsel %vm1581_vm6, %v1554_v58, %v2643_v6  ;;  %v2722_v24 = vunpack.i.l.bf16 %v2721_v23  ;;  %v2723_v33 = vunpack.i.h.bf16 %v2721_v23 }
 0x12c   : > { %v1619_v54 = vsel %vm1614_vm7, %v1586_v22, %v2717_v57  ;;  %3010 = vrot.lane.b32.xlu1 %v4038_v3, %s3170_s23  ;;  %3015 = vrot.lane.b32.xlu0 %v3014_v50, %s3166_s25  ;;  %v1620_v14 = vsel %vm1614_vm7, %v1587_v56, %v2718_v13  ;;  %v3019_v3 = vpack.i.bf16 %v4000_v62, %v3729_v34  ;;  %v920_v50 = vrot.slane %v4079_v61, 2 }
 0x12d   : > { %v1652_v8 = vsel %vm1647_vm8, %v1619_v54, %v2722_v24  ;;  %1908 = vmatmul.mubr.f32.gmra.mxu0 %v1717_v59  ;;  %v4173_v31 = vsel %vm503_vm0, %v545_v41, %v5205_v26  ;;  %v4178_v10 = vsel %vm503_vm0, 0.0, %v545_v41  ;;  %v467_v6 = vsel %vm437_vm3, %v274_v30, %v3869_v49 }
 0x12e   : > { %v2726_v19 = vpop.permute.xlu1 %2725  ;;  %v4161_v7 = vpop.permute.xlu0 %2745  ;;  %2516 = vmatprep.mubr.msk.f32.mxu0 %vm1515_vm4, %v3620_v47  ;;  %v2733_v16 = vunpack.i.h.bf16 %v2731_v35  ;;  %v2732_v17 = vunpack.i.l.bf16 %v2731_v35  ;;  %v1685_v20 = vsel %vm1680_vm9, %v1652_v8, %v2647_v37  ;;  %v4188_v27 = vsel %vm503_vm0, 0.0, %v548_v63 }
 0x12f   : > { %v2727_v46 = vunpack.i.l.bf16 %v2726_v19  ;;  %v2728_v41 = vunpack.i.h.bf16 %v2726_v19  ;;  %v1653_v5 = vsel %vm1647_vm8, %v1620_v14, %v2723_v33  ;;  %v740_v47 = vrot.slane %v4178_v10, 1 }
 0x130   : > { %3020 = vrot.lane.b32.xlu1 %v3019_v3, %s3171_s28  ;;  %3025 = vrot.lane.b32.xlu0 %v3024_v53, %s3167_s26  ;;  %v2648_v49 = vunpack.i.h.bf16 %v3944_v52  ;;  %v3029_v28 = vpack.i.bf16 %v3982_v21, %v3650_v1  ;;  %v3034_v11 = vpack.i.bf16 %v3982_v21, %v3978_v32  ;;  %v741_v58 = vrot.slane %v4173_v31, 1 }
 0x131   : > { %v1718_v12 = vsel %vm1713_vm10, %v1685_v20, %v2727_v46  ;;  %v549_v57 = vrot.slane %v467_v6, 7  ;;  %v917_v52 = vrot.slane %v4178_v10, 2  ;;  %v1523_v55 = vsel %vm1515_vm4, %v3423_v42, %v2733_v16 }
 0x132   : > { %v2736_v2 = vpop.permute.xlu1 %2735  ;;  %v4194_v40 = vpop.permute.xlu0 %2750  ;;  %1913 = vmatmul.mubr.f32.gmra.mxu0 %v1718_v12  ;;  %v1522_v36 = vsel %vm1515_vm4, %v3428_v44, %v2732_v17  ;;  %v1686_v22 = vsel %vm1680_vm9, %v1653_v5, %v2648_v49  ;;  %v3039_v51 = vpack.i.bf16 %v4059_v0, %v3751_v15  ;;  %v2653_v42 = vunpack.i.h.bf16 %v3960_v39 }
 0x133   : > { %v2738_v23 = vunpack.i.h.bf16 %v2736_v2  ;;  %v2737_v35 = vunpack.i.l.bf16 %v2736_v2  ;;  %2517 = vmatprep.mubr.msk.f32.mxu0 %vm1515_vm4, %v3623_v48  ;;  %v1719_v48 = vsel %vm1713_vm10, %v1686_v22, %v2728_v41  ;;  %v2652_v13 = vunpack.i.l.bf16 %v3960_v39 }
 0x134   : > { %3030 = vrot.lane.b32.xlu1 %v3029_v28, %s3169_s30  ;;  %3035 = vrot.lane.b32.xlu0 %v3034_v11, %s3168_s29  ;;  %v3044_v30 = vpack.i.bf16 %v4059_v0, %v4097_v9  ;;  %v5206_v33 = vrot.slane %v3982_v21, 2  ;;  %v5207_v59 = vrot.slane %v3978_v32, 2  ;;  %v4228_v37 = vsel %vm503_vm0, %v548_v63, %v549_v57 }
 0x135   : > { %v1555_v56 = vsel %vm1548_vm5, %v1522_v36, %v2737_v35  ;;  %v1556_v24 = vsel %vm1548_vm5, %v1523_v55, %v2738_v23  ;;  %v4231_v15 = vsel %vm503_vm0, %v549_v57, 0.0  ;;  %v2747_v0 = vunpack.i.l.bf16 %v4161_v7 }
 0x136   : > { %v2741_v44 = vpop.permute.xlu1 %2740  ;;  %v2761_v54 = vpop.permute.xlu0 %2760  ;;  %1918 = vmatmul.mubr.f32.gmra.mxu0 %v1719_v48  ;;  %v4225_v8 = vsel %vm846_vm2, %v5207_v59, %v5206_v33  ;;  %v1588_v9 = vsel %vm1581_vm6, %v1555_v56, %v2652_v13  ;;  %v1589_v19 = vsel %vm1581_vm6, %v1556_v24, %v2653_v42  ;;  %v3054_v63 = vpack.i.bf16 %v4173_v31, %v4178_v10  ;;  %v5209_v24 = vld [vmem:[#allocation35_spill] sm:$0xff] }
 0x137   : > { %v2743_v39 = vunpack.i.h.bf16 %v2741_v44  ;;  %v2742_v14 = vunpack.i.l.bf16 %v2741_v44  ;;  %2518 = vmatprep.mubr.msk.f32.mxu0 %vm1515_vm4, %v3720_v43  ;;  %v2748_v3 = vunpack.i.h.bf16 %v4161_v7  ;;  %v3049_v43 = vpack.i.bf16 %v4148_v4, %v4225_v8  ;;  %v5210_v13 = vld [vmem:[#allocation19_spill] sm:$0xff] }
 0x138   : > { %3040 = vrot.lane.b32.xlu1 %v3039_v51, %s3172_s6  ;;  %3045 = vrot.lane.b32.xlu0 %v3044_v30, %s3170_s23  ;;  %v2657_v46 = vunpack.i.l.bf16 %v3962_v38  ;;  %v742_v20 = vsel %vm669_vm1, %v740_v47, %v741_v58  ;;  %v744_v41 = vsel %vm669_vm1, %v741_v58, %v743_v29  ;;  %v2752_v7 = vunpack.i.l.bf16 %v4194_v40  ;;  %v5208_v29 = vld [vmem:[#allocation9_spill] sm:$0xff] }
 0x139   : > { %v1621_v53 = vsel %vm1614_vm7, %v1588_v9, %v2742_v14  ;;  %v1622_v26 = vsel %vm1614_vm7, %v1589_v19, %v2743_v39  ;;  %v2658_v2 = vunpack.i.h.bf16 %v3962_v38  ;;  %v2763_v28 = vunpack.i.h.bf16 %v2761_v54  ;;  %v276_v14 = vld [vmem:[%s3332_s10 + $0xf8] sm:$0xff] }
 0x13a   : > { %v2756_v6 = vpop.permute.xlu1 %2755  ;;  %v2766_v16 = vpop.permute.xlu0 %2765  ;;  %v1654_v17 = vsel %vm1647_vm8, %v1621_v53, %v2747_v0  ;;  %v1655_v49 = vsel %vm1647_vm8, %v1622_v26, %v2748_v3  ;;  %v2762_v11 = vunpack.i.l.bf16 %v2761_v54  ;;  %v4268_v22 = vpack.i.bf16 %v744_v41, %v742_v20  ;;  %v275_v0 = vld [vmem:[%s3332_s10 + $0xf0] sm:$0xff] }
 0x13b   : > { %v2758_v12 = vunpack.i.h.bf16 %v2756_v6  ;;  %v2757_v5 = vunpack.i.l.bf16 %v2756_v6  ;;  %v1687_v47 = vsel %vm1680_vm9, %v1654_v17, %v2657_v46  ;;  %v1688_v56 = vsel %vm1680_vm9, %v1655_v49, %v2658_v2  ;;  %v5211_v6 = vld [vmem:[#allocation20_spill] sm:$0xff] }
 0x13c   : > { %3050 = vrot.lane.b32.xlu1 %v3049_v43, %s3171_s28  ;;  %3055 = vrot.lane.b32.xlu0 %v3054_v63, %s3169_s30  ;;  %v1720_v23 = vsel %vm1713_vm10, %v1687_v47, %v2752_v7  ;;  %v2663_v48 = vunpack.i.h.bf16 %v5209_v24  ;;  %v2662_v51 = vunpack.i.l.bf16 %v5209_v24  ;;  %v2753_v42 = vunpack.i.h.bf16 %v4194_v40 }
 0x13d   : > { %v1532_v57 = vsel %vm1515_vm4, %v3635_v60, %v2758_v12  ;;  %v1524_v58 = vsel %vm1515_vm4, %v5208_v29, %v2757_v5  ;;  %1923 = vmatmul.mubr.f32.gmra.mxu0 %v1720_v23  ;;  %v918_v60 = vrot.slane %v4173_v31, 2  ;;  %v745_v44 = vrot.slane %v4188_v27, 1  ;;  %v5212_v12 = vld [vmem:[#allocation28_spill] sm:$0xff] }
 0x13e   : > { %v1557_v35 = vsel %vm1548_vm5, %v1524_v58, %v2762_v11  ;;  %v1565_v38 = vsel %vm1548_vm5, %v1532_v57, %v2763_v28  ;;  %v4266_v55 = vpop.permute.xlu1 %2770  ;;  %v2776_v36 = vpop.permute.xlu0 %2775  ;;  %2519 = vmatprep.mubr.msk.f32.mxu0 %vm1515_vm4, %v5210_v13  ;;  %v746_v54 = vrot.slane %v4228_v37, 1  ;;  %v748_v33 = vrot.slane %v4231_v15, 1  ;;  %v5214_v13 = vld [vmem:[#allocation25_spill] sm:$0xff] }
 0x13f   : > { %v1590_v59 = vsel %vm1581_vm6, %v1557_v35, %v2662_v51  ;;  %v1598_v39 = vsel %vm1581_vm6, %v1565_v38, %v2663_v48  ;;  %v1721_v40 = vsel %vm1713_vm10, %v1688_v56, %v2753_v42  ;;  %v2768_v9 = vunpack.i.h.bf16 %v2766_v16 }
 0x140   : > { %3060 = vrot.lane.b32.xlu1 %v4268_v22, %s3172_s6  ;;  %3065 = vrot.lane.b32.xlu0 %v3044_v30, %s3166_s25  ;;  %v2767_v19 = vunpack.i.l.bf16 %v2766_v16  ;;  %v2778_v26 = vunpack.i.h.bf16 %v2776_v36  ;;  %v2777_v46 = vunpack.i.l.bf16 %v2776_v36  ;;  %v4295_v30 = vsel %vm846_vm2, %v917_v52, %v918_v60  ;;  %v5213_v52 = vld [vmem:[#allocation27_spill] sm:$0xff] }
 0x141   : > { %1928 = vmatmul.mubr.f32.gmra.mxu0 %v1721_v40  ;;  %v4300_v17 = vsel %vm846_vm2, %v918_v60, %v920_v50  ;;  %v1631_v20 = vsel %vm1614_vm7, %v1598_v39, %v2768_v9  ;;  %v469_v5 = vsel %vm437_vm3, %v276_v14, %v5212_v12  ;;  %v468_v49 = vsel %vm437_vm3, %v275_v0, %v5213_v52 }
 0x142   : > { %v4288_v3 = vpop.permute.xlu1 %2785  ;;  %v2781_v53 = vpop.permute.xlu0 %2780  ;;  %2520 = vmatprep.mubr.msk.f32.mxu0 %vm1515_vm4, %v5211_v6  ;;  %v1623_v16 = vsel %vm1614_vm7, %v1590_v59, %v2767_v19  ;;  %v749_v61 = vsel %vm669_vm1, %v746_v54, %v748_v33  ;;  %v3084_v28 = vpack.i.bf16 %v4300_v17, %v4295_v30  ;;  %v747_v11 = vsel %vm669_vm1, %v745_v44, %v746_v54  ;;  %v5215_v44 = vld [vmem:[#allocation26_spill] sm:$0xff] }
 0x143   : > { %v2783_v41 = vunpack.i.h.bf16 %v2781_v53  ;;  %v2782_v7 = vunpack.i.l.bf16 %v2781_v53  ;;  %v1664_v57 = vsel %vm1647_vm8, %v1631_v20, %v2778_v26  ;;  %v552_v23 = vrot.slane %v469_v5, 7 }
 0x144   : > { %3070 = vrot.lane.b32.xlu1 %v3049_v43, %s3167_s26  ;;  %3075 = vrot.lane.b32.xlu0 %v3054_v63, %s3168_s29  ;;  %v1656_v63 = vsel %vm1647_vm8, %v1623_v16, %v2777_v46  ;;  %v551_v35 = vrot.slane %v468_v49, 7  ;;  %v3089_v24 = vpack.i.bf16 %v4228_v37, %v4188_v27  ;;  %v4329_v48 = vpack.i.bf16 %v749_v61, %v747_v11 }
 0x145   : > { %v1689_v29 = vsel %vm1680_vm9, %v1656_v63, %v2782_v7  ;;  %v1697_v58 = vsel %vm1680_vm9, %v1664_v57, %v2783_v41  ;;  %v923_v51 = vrot.slane %v4228_v37, 2  ;;  %v925_v42 = vrot.slane %v4231_v15, 2 }
 0x146   : > { %v4311_v50 = vpop.permute.xlu1 %2790  ;;  %v2796_v2 = vpop.permute.xlu0 %2795  ;;  %v4341_v54 = vsel %vm503_vm0, %v552_v23, 0.0  ;;  %v4344_v33 = vsel %vm503_vm0, 0.0, %v551_v35  ;;  %v922_v59 = vrot.slane %v4188_v27, 2  ;;  %v4348_v15 = vsel %vm503_vm0, %v551_v35, %v552_v23 }
 0x147   : > { %v2798_v47 = vunpack.i.h.bf16 %v2796_v2  ;;  %v2797_v43 = vunpack.i.l.bf16 %v2796_v2  ;;  %v4353_v14 = vsel %vm846_vm2, %v923_v51, %v925_v42  ;;  %v2773_v0 = vunpack.i.h.bf16 %v4266_v55 }
 0x148   : > { %3080 = vrot.lane.b32.xlu1 %v4268_v22, %s3170_s23  ;;  %3085 = vrot.lane.b32.xlu0 %v3084_v28, %s3171_s28  ;;  %v2772_v9 = vunpack.i.l.bf16 %v4266_v55  ;;  %v1124_v19 = vrot.slane %v4341_v54, 1  ;;  %v1121_v53 = vrot.slane %v4344_v33, 1  ;;  %v2788_v26 = vunpack.i.h.bf16 %v4288_v3 }
 0x149   : > { %v1722_v38 = vsel %vm1713_vm10, %v1689_v29, %v2797_v43  ;;  %v1730_v36 = vsel %vm1713_vm10, %v1697_v58, %v2798_v47  ;;  %v2787_v46 = vunpack.i.l.bf16 %v4288_v3  ;;  %v1122_v6 = vrot.slane %v4348_v15, 1  ;;  %v5216_v3 = vld [vmem:[#allocation12_spill] sm:$0xff] }
 0x14a   : > { %v2801_v56 = vpop.permute.xlu1 %2800  ;;  %v4325_v60 = vpop.permute.xlu0 %2805  ;;  %1933 = vmatmul.mubr.f32.gmra.mxu0 %v1722_v38  ;;  %1973 = vmatmul.mubr.f32.vlgmr.msra.gmra.mxu1 %v1730_v36  ;;  %v2793_v16 = vunpack.i.h.bf16 %v4311_v50  ;;  %v2792_v20 = vunpack.i.l.bf16 %v4311_v50  ;;  %v4370_v5 = vsel %vm846_vm2, %v922_v59, %v923_v51  ;;  %v1533_v52 = vsel %vm1515_vm4, %v5216_v3, %v2773_v0 }
 0x14b   : > { %2521 = vmatprep.mubr.msk.f32.mxu0 %vm1515_vm4, %v5214_v13  ;;  %2529 = vmatprep.mubr.msk.f32.mxu1 %vm1515_vm4, %v5215_v44  ;;  %v2803_v55 = vunpack.i.h.bf16 %v2801_v56  ;;  %v2802_v41 = vunpack.i.l.bf16 %v2801_v56  ;;  %v1566_v50 = vsel %vm1548_vm5, %v1533_v52, %v2788_v26  ;;  %v3119_v57 = vpack.i.bf16 %v4353_v14, %v4370_v5 }
 0x14c   : > { %3090 = vrot.lane.b32.xlu1 %v3089_v24, %s3169_s30  ;;  %3095 = vrot.lane.b32.xlu0 %v4329_v48, %s3172_s6  ;;  %v1599_v63 = vsel %vm1581_vm6, %v1566_v50, %v2793_v16  ;;  %v3124_v29 = vpack.i.bf16 %v4348_v15, %v4344_v33  ;;  %v1123_v36 = vsel %vm669_vm1, %v1121_v53, %v1122_v6  ;;  %v2808_v26 = vunpack.i.h.bf16 %v4325_v60  ;;  %v5219_v16 = vld [vmem:[#allocation30_spill] sm:$0xff] }
 0x14d   : > { %v1632_v23 = vsel %vm1614_vm7, %v1599_v63, %v2803_v55  ;;  %v1125_v56 = vsel %vm669_vm1, %v1122_v6, %v1124_v19  ;;  %v5218_v6 = vld [vmem:[#allocation29_spill] sm:$0xff]  ;;  %v1223_v3 = vrot.slane %v4348_v15, 2 }
 0x14e   : > { %v2811_v39 = vpop.permute.xlu1 %2810  ;;  %v4350_v40 = vpop.permute.xlu0 %2815  ;;  %v3129_v53 = vpack.i.bf16 %v1125_v56, %v1123_v36 }
 0x14f   : > { %v2813_v61 = vunpack.i.h.bf16 %v2811_v39  ;;  %v2812_v2 = vunpack.i.l.bf16 %v2811_v39  ;;  %v2817_v55 = vunpack.i.l.bf16 %v4350_v40 }
 0x150   : > { %3100 = vrot.lane.b32.xlu1 %v4268_v22, %s3166_s25  ;;  %3105 = vrot.lane.b32.xlu0 %v3084_v28, %s3167_s26  ;;  %v5217_v22 = vld [vmem:[#allocation8_spill] sm:$0xff] }
 0x151   : > { %v1525_v49 = vsel %vm1515_vm4, %v5217_v22, %v2772_v9  ;;  %v1665_v13 = vsel %vm1647_vm8, %v1632_v23, %v2813_v61 }
 0x152   : > { %v2821_v7 = vpop.permute.xlu1 %2820  ;;  %v4367_v12 = vpop.permute.xlu0 %2825  ;;  %v1558_v28 = vsel %vm1548_vm5, %v1525_v49, %v2787_v46  ;;  %v2807_v46 = vunpack.i.l.bf16 %v4325_v60  ;;  %v1222_v60 = vrot.slane %v4344_v33, 2 }
 0x153   : > { %v2823_v11 = vunpack.i.h.bf16 %v2821_v7  ;;  %v2822_v47 = vunpack.i.l.bf16 %v2821_v7  ;;  %v1591_v43 = vsel %vm1581_vm6, %v1558_v28, %v2792_v20  ;;  %v2818_v20 = vunpack.i.h.bf16 %v4350_v40 }
 0x154   : > { %3110 = vrot.lane.b32.xlu1 %v3089_v24, %s3168_s29  ;;  %3115 = vrot.lane.b32.xlu0 %v4329_v48, %s3170_s23  ;;  %v1624_v58 = vsel %vm1614_vm7, %v1591_v43, %v2802_v41  ;;  %v2828_v41 = vunpack.i.h.bf16 %v4367_v12  ;;  %v2827_v7 = vunpack.i.l.bf16 %v4367_v12  ;;  %v1534_v40 = vsel %vm1515_vm4, %v3509_v18, %v2808_v26 }
 0x155   : > { %v1657_v42 = vsel %vm1647_vm8, %v1624_v58, %v2812_v2  ;;  %v1698_v59 = vsel %vm1680_vm9, %v1665_v13, %v2823_v11  ;;  %v5220_v2 = vld [vmem:[#allocation11_spill] sm:$0xff]  ;;  %v1567_v12 = vsel %vm1548_vm5, %v1534_v40, %v2818_v20 }
 0x156   : > { %v2831_v35 = vpop.permute.xlu1 %2830  ;;  %v2836_v38 = vpop.permute.xlu0 %2835  ;;  %v1690_v44 = vsel %vm1680_vm9, %v1657_v42, %v2822_v47  ;;  %v1526_v28 = vsel %vm1515_vm4, %v5220_v2, %v2807_v46  ;;  %v1600_v43 = vsel %vm1581_vm6, %v1567_v12, %v2828_v41  ;;  %v5225_v41 = vld [vmem:[#allocation2_spill] sm:$0xff] }
 0x157   : > { %v2833_v24 = vunpack.i.h.bf16 %v2831_v35  ;;  %v2832_v51 = vunpack.i.l.bf16 %v2831_v35  ;;  %v2838_v52 = vunpack.i.h.bf16 %v2836_v38  ;;  %v2837_v22 = vunpack.i.l.bf16 %v2836_v38  ;;  %v5226_v2 = vld [vmem:[#allocation10_spill] sm:$0xff] }
 0x158   : > { %3120 = vrot.lane.b32.xlu1 %v3119_v57, %s3171_s28  ;;  %3125 = vrot.lane.b32.xlu0 %v3124_v29, %s3169_s30  ;;  %v1559_v11 = vsel %vm1548_vm5, %v1526_v28, %v2817_v55  ;;  %v4429_v35 = vsel %vm846_vm2, %v1222_v60, %v1223_v3 }
 0x159   : > { %v1723_v39 = vsel %vm1713_vm10, %v1690_v44, %v2832_v51  ;;  %v1731_v0 = vsel %vm1713_vm10, %v1698_v59, %v2833_v24  ;;  %v1592_v15 = vsel %vm1581_vm6, %v1559_v11, %v2827_v7  ;;  %v1633_v63 = vsel %vm1614_vm7, %v1600_v43, %v2838_v52 }
 0x15a   : > { %v4399_v9 = vpop.permute.xlu1 %2840  ;;  %v2846_v19 = vpop.permute.xlu0 %2845  ;;  %1938 = vmatmul.mubr.f32.gmra.mxu0 %v1723_v39  ;;  %1978 = vmatmul.mubr.f32.gmra.mxu1 %v1731_v0  ;;  %v1625_v18 = vsel %vm1614_vm7, %v1592_v15, %v2837_v22  ;;  %v1225_v59 = vrot.slane %v4341_v54, 2  ;;  %v5221_v39 = vld [vmem:[#allocation33_spill] sm:$0xff]  ;;  %v5222_v0 = vld [vmem:[#allocation34_spill] sm:$0xff] }
 0x15b   : > { %2522 = vmatprep.mubr.msk.f32.mxu0 %vm1515_vm4, %v5218_v6  ;;  %2530 = vmatprep.mubr.msk.f32.mxu1 %vm1515_vm4, %v5219_v16  ;;  %v2848_v50 = vunpack.i.h.bf16 %v2846_v19  ;;  %v2843_v6 = vunpack.i.h.bf16 %v4399_v9  ;;  %v2842_v16 = vunpack.i.l.bf16 %v4399_v9 }
 0x15c   : > { %3130 = vrot.lane.b32.xlu1 %v3129_v53, %s3172_s6  ;;  %3135 = vrot.lane.b32.xlu0 %v4329_v48, %s3166_s25  ;;  %v2847_v48 = vunpack.i.l.bf16 %v2846_v19  ;;  %v5223_v19 = vld [vmem:[#allocation3_spill] sm:$0xff]  ;;  %v4454_v54 = vsel %vm846_vm2, %v1223_v3, %v1225_v59 }
 0x15d   : > { %v1535_v9 = vsel %vm1515_vm4, %v3650_v1, %v2843_v6  ;;  %v1527_v3 = vsel %vm1515_vm4, %v5226_v2, %v2842_v16 }
 0x15e   : > { %v2851_v49 = vpop.permute.xlu1 %2850  ;;  %v2856_v61 = vpop.permute.xlu0 %2855  ;;  %v1658_v56 = vsel %vm1647_vm8, %v1625_v18, %v2847_v48 }
 0x15f   : > { %v2858_v47 = vunpack.i.h.bf16 %v2856_v61  ;;  %v2857_v33 = vunpack.i.l.bf16 %v2856_v61  ;;  %v2853_v20 = vunpack.i.h.bf16 %v2851_v49  ;;  %v2852_v55 = vunpack.i.l.bf16 %v2851_v49 }
 0x160   : > { %3140 = vrot.lane.b32.xlu1 %v3119_v57, %s3167_s26  ;;  %3145 = vrot.lane.b32.xlu0 %v3124_v29, %s3168_s29  ;;  %v1666_v57 = vsel %vm1647_vm8, %v1633_v63, %v2848_v50 }
 0x161   : > { %v1691_v29 = vsel %vm1680_vm9, %v1658_v56, %v2857_v33  ;;  %v1699_v24 = vsel %vm1680_vm9, %v1666_v57, %v2858_v47  ;;  %v1560_v50 = vsel %vm1548_vm5, %v1527_v3, %v2852_v55  ;;  %v1568_v48 = vsel %vm1548_vm5, %v1535_v9, %v2853_v20  ;;  %v5227_v47 = vld [vmem:[#allocation5_spill] sm:$0xff] }
 0x162   : > { %v2861_v58 = vpop.permute.xlu1 %2860  ;;  %v2866_v23 = vpop.permute.xlu0 %2865  ;;  %v5228_v55 = vld [vmem:[#allocation13_spill] sm:$0xff] }
 0x163   : > { %v2868_v38 = vunpack.i.h.bf16 %v2866_v23  ;;  %v2867_v36 = vunpack.i.l.bf16 %v2866_v23  ;;  %v2863_v7 = vunpack.i.h.bf16 %v2861_v58  ;;  %v2862_v60 = vunpack.i.l.bf16 %v2861_v58 }
 0x164   : > { %3150 = vrot.lane.b32.xlu1 %v3129_v53, %s3170_s23  ;;  %1287 = vrot.lane.b32.xlu0 %v4429_v35, %s3171_s28  ;;  %v5224_v53 = vld [vmem:[#allocation4_spill] sm:$0xff] }
 0x165   : > { %v1724_v51 = vsel %vm1713_vm10, %v1691_v29, %v2867_v36  ;;  %v1732_v42 = vsel %vm1713_vm10, %v1699_v24, %v2868_v38  ;;  %v1593_v33 = vsel %vm1581_vm6, %v1560_v50, %v2862_v60  ;;  %v1601_v15 = vsel %vm1581_vm6, %v1568_v48, %v2863_v7  ;;  %v5229_v7 = vld [vmem:[#allocation15_spill] sm:$0xff] }
 0x166   : > { %v2871_v13 = vpop.permute.xlu1 %2870  ;;  %v4440_v44 = vpop.permute.xlu0 %2875  ;;  %1943 = vmatmul.mubr.f32.gmra.mxu0 %v1724_v51  ;;  %1983 = vmatmul.mubr.f32.gmra.mxu1 %v1732_v42 }
 0x167   : > { %2523 = vmatprep.mubr.msk.f32.mxu0 %vm1515_vm4, %v5221_v39  ;;  %2531 = vmatprep.mubr.msk.f32.mxu1 %vm1515_vm4, %v5222_v0  ;;  %v2873_v52 = vunpack.i.h.bf16 %v2871_v13  ;;  %v2872_v22 = vunpack.i.l.bf16 %v2871_v13  ;;  %v2878_v13 = vunpack.i.h.bf16 %v4440_v44  ;;  %v2877_v59 = vunpack.i.l.bf16 %v4440_v44 }
 0x168   : > { %1383 = vrot.lane.b32.xlu1 %v5223_v19, %s3169_s30  ;;  %1479 = vrot.lane.b32.xlu0 %v5224_v53, %s3172_s6 }
 0x169   : > { %v1626_v1 = vsel %vm1614_vm7, %v1593_v33, %v2872_v22  ;;  %v1634_v43 = vsel %vm1614_vm7, %v1601_v15, %v2873_v52  ;;  %v1528_v44 = vsel %vm1515_vm4, %v5229_v7, %v2877_v59  ;;  %v5230_v59 = vld [vmem:[#allocation14_spill] sm:$0xff] }
 0x16a   : > { %v2881_v26 = vpop.permute.xlu1 %2880  ;;  %v2886_v46 = vpop.permute.xlu0 %2885 }
 0x16b   : > { %v2883_v28 = vunpack.i.h.bf16 %v2881_v26  ;;  %v2882_v49 = vunpack.i.l.bf16 %v2881_v26  ;;  %v2888_v39 = vunpack.i.h.bf16 %v2886_v46  ;;  %v2887_v0 = vunpack.i.l.bf16 %v2886_v46 }
 0x16c   : > { %1289 = vrot.lane.b32.xlu1 %v4454_v54, %s3171_s28  ;;  %1385 = vrot.lane.b32.xlu0 %v5225_v41, %s3169_s30  ;;  %v1536_v41 = vsel %vm1515_vm4, %v5228_v55, %v2878_v13 }
 0x16d   : > { %v1659_v38 = vsel %vm1647_vm8, %v1626_v1, %v2882_v49  ;;  %v1667_v36 = vsel %vm1647_vm8, %v1634_v43, %v2883_v28 }
 0x16e   : > { %v2891_v61 = vpop.permute.xlu1 %2890  ;;  %v2896_v40 = vpop.permute.xlu0 %2895 }
 0x16f   : > { %v2893_v11 = vunpack.i.h.bf16 %v2891_v61  ;;  %v2892_v12 = vunpack.i.l.bf16 %v2891_v61  ;;  %v2898_v19 = vunpack.i.h.bf16 %v2896_v40  ;;  %v2897_v53 = vunpack.i.l.bf16 %v2896_v40 }
 0x170   : > { %1481 = vrot.lane.b32.xlu1 %v5227_v47, %s3172_s6 }
 0x171   : > { %v1692_v56 = vsel %vm1680_vm9, %v1659_v38, %v2892_v12  ;;  %v1700_v57 = vsel %vm1680_vm9, %v1667_v36, %v2893_v11 }
 0x172   : > { %v2901_v18 = vpop.permute.xlu1 %2900  ;;  %v2906_v63 = vpop.permute.xlu0 %2905 }
 0x173   : > { %v2903_v58 = vunpack.i.h.bf16 %v2901_v18  ;;  %v2902_v23 = vunpack.i.l.bf16 %v2901_v18  ;;  %v2908_v26 = vunpack.i.h.bf16 %v2906_v63  ;;  %v2907_v6 = vunpack.i.l.bf16 %v2906_v63 }
 0x175   : > { %v1725_v29 = vsel %vm1713_vm10, %v1692_v56, %v2902_v23  ;;  %v1733_v24 = vsel %vm1713_vm10, %v1700_v57, %v2903_v58 }
 0x176   : > { %v2911_v51 = vpop.permute.xlu1 %2910  ;;  %v2916_v42 = vpop.permute.xlu0 %2915  ;;  %1948 = vmatmul.mubr.f32.gmra.mxu0 %v1725_v29  ;;  %1988 = vmatmul.mubr.f32.gmra.mxu1 %v1733_v24 }
 0x177   : > { %2524 = vmatprep.mubr.msk.f32.mxu0 %vm1515_vm4, %v3669_v25  ;;  %2532 = vmatprep.mubr.msk.f32.mxu1 %vm1515_vm4, %v4043_v45  ;;  %v2918_v60 = vunpack.i.h.bf16 %v2916_v42  ;;  %v2917_v52 = vunpack.i.l.bf16 %v2916_v42  ;;  %v1561_v25 = vsel %vm1548_vm5, %v1528_v44, %v2887_v0  ;;  %v1569_v45 = vsel %vm1548_vm5, %v1536_v41, %v2888_v39  ;;  %v5231_v0 = vld [vmem:[#allocation17_spill] sm:$0xff] }
 0x178   : > { %v1594_v61 = vsel %vm1581_vm6, %v1561_v25, %v2897_v53  ;;  %v1602_v40 = vsel %vm1581_vm6, %v1569_v45, %v2898_v19  ;;  %v2913_v58 = vunpack.i.h.bf16 %v2911_v51  ;;  %v2912_v23 = vunpack.i.l.bf16 %v2911_v51 }
 0x179   : > { %v1627_v9 = vsel %vm1614_vm7, %v1594_v61, %v2907_v6  ;;  %v1635_v2 = vsel %vm1614_vm7, %v1602_v40, %v2908_v26 }
 0x17a   : > { %v2921_v16 = vpop.permute.xlu1 %2920  ;;  %v2926_v20 = vpop.permute.xlu0 %2925  ;;  %v1660_v48 = vsel %vm1647_vm8, %v1627_v9, %v2917_v52  ;;  %v1668_v11 = vsel %vm1647_vm8, %v1635_v2, %v2918_v60  ;;  %v1537_v39 = vsel %vm1515_vm4, %v5230_v59, %v2913_v58 }
 0x17b   : > { %v2928_v22 = vunpack.i.h.bf16 %v2926_v20  ;;  %v2927_v46 = vunpack.i.l.bf16 %v2926_v20  ;;  %v2923_v38 = vunpack.i.h.bf16 %v2921_v16  ;;  %v2922_v36 = vunpack.i.l.bf16 %v2921_v16 }
 0x17d   : > { %v1693_v12 = vsel %vm1680_vm9, %v1660_v48, %v2927_v46  ;;  %v1701_v47 = vsel %vm1680_vm9, %v1668_v11, %v2928_v22  ;;  %v1570_v51 = vsel %vm1548_vm5, %v1537_v39, %v2923_v38 }
 0x17e   : > { %v2931_v3 = vpop.permute.xlu1 %2930  ;;  %v2936_v28 = vpop.permute.xlu0 %2935 }
 0x17f   : > { %v2938_v49 = vunpack.i.h.bf16 %v2936_v28  ;;  %v2937_v50 = vunpack.i.l.bf16 %v2936_v28  ;;  %v2933_v56 = vunpack.i.h.bf16 %v2931_v3  ;;  %v2932_v57 = vunpack.i.l.bf16 %v2931_v3 }
 0x181   : > { %v1726_v33 = vsel %vm1713_vm10, %v1693_v12, %v2937_v50  ;;  %v1734_v15 = vsel %vm1713_vm10, %v1701_v47, %v2938_v49  ;;  %v1603_v20 = vsel %vm1581_vm6, %v1570_v51, %v2933_v56  ;;  %v5232_v49 = vld [vmem:[#allocation16_spill] sm:$0xff] }
 0x182   : > { %v2941_v1 = vpop.permute.xlu1 %2940  ;;  %v2946_v43 = vpop.permute.xlu0 %2945  ;;  %1953 = vmatmul.mubr.f32.gmra.mxu0 %v1726_v33  ;;  %1993 = vmatmul.mubr.f32.gmra.mxu1 %v1734_v15 }
 0x183   : > { %2525 = vmatprep.mubr.msk.f32.mxu0 %vm1515_vm4, %v3729_v34  ;;  %2533 = vmatprep.mubr.msk.f32.mxu1 %vm1515_vm4, %v4000_v62  ;;  %v2943_v29 = vunpack.i.h.bf16 %v2941_v1  ;;  %v2942_v24 = vunpack.i.l.bf16 %v2941_v1  ;;  %v1529_v34 = vsel %vm1515_vm4, %v5231_v0, %v2912_v23  ;;  %v2948_v3 = vunpack.i.h.bf16 %v2946_v43  ;;  %v5234_v23 = vld [vmem:[#allocation21_spill] sm:$0xff] }
 0x184   : > { %v1562_v53 = vsel %vm1548_vm5, %v1529_v34, %v2922_v36  ;;  %v2947_v28 = vunpack.i.l.bf16 %v2946_v43 }
 0x185   : > { %v1595_v16 = vsel %vm1581_vm6, %v1562_v53, %v2932_v57  ;;  %v1636_v41 = vsel %vm1614_vm7, %v1603_v20, %v2943_v29 }
 0x186   : > { %v2951_v18 = vpop.permute.xlu1 %2950  ;;  %v2956_v63 = vpop.permute.xlu0 %2955  ;;  %v1628_v55 = vsel %vm1614_vm7, %v1595_v16, %v2942_v24  ;;  %v1530_v43 = vsel %vm1515_vm4, %v5234_v23, %v2947_v28 }
 0x187   : > { %v2953_v19 = vunpack.i.h.bf16 %v2951_v18  ;;  %v2952_v62 = vunpack.i.l.bf16 %v2951_v18  ;;  %v2958_v50 = vunpack.i.h.bf16 %v2956_v63  ;;  %v2957_v48 = vunpack.i.l.bf16 %v2956_v63  ;;  %v5233_v18 = vld [vmem:[#allocation22_spill] sm:$0xff] }
 0x188   : > { %v1538_v58 = vsel %vm1515_vm4, %v5233_v18, %v2948_v3 }
 0x189   : > { %v1661_v25 = vsel %vm1647_vm8, %v1628_v55, %v2952_v62  ;;  %v1669_v45 = vsel %vm1647_vm8, %v1636_v41, %v2953_v19  ;;  %v1563_v56 = vsel %vm1548_vm5, %v1530_v43, %v2957_v48  ;;  %v5235_v55 = vld [vmem:[#allocation18_spill] sm:$0xff] }
 0x18a   : > { %v2961_v42 = vpop.permute.xlu1 %2960  ;;  %v2966_v13 = vpop.permute.xlu0 %2965 }
 0x18b   : > { %v2963_v26 = vunpack.i.h.bf16 %v2961_v42  ;;  %v2962_v6 = vunpack.i.l.bf16 %v2961_v42  ;;  %v2968_v11 = vunpack.i.h.bf16 %v2966_v13  ;;  %v2967_v12 = vunpack.i.l.bf16 %v2966_v13 }
 0x18d   : > { %v1694_v22 = vsel %vm1680_vm9, %v1661_v25, %v2962_v6  ;;  %v1702_v46 = vsel %vm1680_vm9, %v1669_v45, %v2963_v26  ;;  %v1596_v29 = vsel %vm1581_vm6, %v1563_v56, %v2967_v12 }
 0x18e   : > { %v2971_v7 = vpop.permute.xlu1 %2970  ;;  %v2976_v44 = vpop.permute.xlu0 %2975 }
 0x18f   : > { %v2973_v60 = vunpack.i.h.bf16 %v2971_v7  ;;  %v2972_v52 = vunpack.i.l.bf16 %v2971_v7  ;;  %v2978_v47 = vunpack.i.h.bf16 %v2976_v44  ;;  %v2977_v33 = vunpack.i.l.bf16 %v2976_v44 }
 0x191   : > { %v1727_v61 = vsel %vm1713_vm10, %v1694_v22, %v2972_v52  ;;  %v1735_v40 = vsel %vm1713_vm10, %v1702_v46, %v2973_v60  ;;  %v1629_v42 = vsel %vm1614_vm7, %v1596_v29, %v2977_v33 }
 0x192   : > { %v2981_v9 = vpop.permute.xlu1 %2980  ;;  %v2986_v2 = vpop.permute.xlu0 %2985  ;;  %1958 = vmatmul.mubr.f32.gmra.mxu0 %v1727_v61  ;;  %1998 = vmatmul.mubr.f32.gmra.mxu1 %v1735_v40  ;;  %v5236_v61 = vld [vmem:[#allocation23_spill] sm:$0xff] }
 0x193   : > { %2526 = vmatprep.mubr.msk.f32.mxu0 %vm1515_vm4, %v5232_v49  ;;  %2534 = vmatprep.mubr.msk.f32.mxu1 %vm1515_vm4, %v4225_v8  ;;  %v2988_v38 = vunpack.i.h.bf16 %v2986_v2  ;;  %v2987_v36 = vunpack.i.l.bf16 %v2986_v2  ;;  %v1571_v8 = vsel %vm1548_vm5, %v1538_v58, %v2958_v50  ;;  %v2982_v41 = vunpack.i.l.bf16 %v2981_v9  ;;  %v5237_v50 = vld [vmem:[#allocation24_spill] sm:$0xff] }
 0x194   : > { %v1604_v24 = vsel %vm1581_vm6, %v1571_v8, %v2968_v11  ;;  %v2983_v60 = vunpack.i.h.bf16 %v2981_v9 }
 0x195   : > { %v1637_v13 = vsel %vm1614_vm7, %v1604_v24, %v2978_v47  ;;  %v1662_v19 = vsel %vm1647_vm8, %v1629_v42, %v2987_v36  ;;  %v1531_v40 = vsel %vm1515_vm4, %v5236_v61, %v2982_v41 }
 0x196   : > { %v2991_v15 = vpop.permute.xlu1 %2990  ;;  %v2996_v1 = vpop.permute.xlu0 %2995  ;;  %v1670_v62 = vsel %vm1647_vm8, %v1637_v13, %v2988_v38  ;;  %v1539_v48 = vsel %vm1515_vm4, %v5237_v50, %v2983_v60 }
 0x197   : > { %v2998_v57 = vunpack.i.h.bf16 %v2996_v1  ;;  %v2997_v63 = vunpack.i.l.bf16 %v2996_v1  ;;  %v2992_v52 = vunpack.i.l.bf16 %v2991_v15  ;;  %v2993_v25 = vunpack.i.h.bf16 %v2991_v15 }
 0x199   : > { %v1695_v53 = vsel %vm1680_vm9, %v1662_v19, %v2997_v63  ;;  %v1703_v51 = vsel %vm1680_vm9, %v1670_v62, %v2998_v57  ;;  %v1572_v9 = vsel %vm1548_vm5, %v1539_v48, %v2993_v25 }
 0x19a   : > { %v3001_v59 = vpop.permute.xlu1 %3000  ;;  %v3006_v39 = vpop.permute.xlu0 %3005 }
 0x19b   : > { %v3008_v0 = vunpack.i.h.bf16 %v3006_v39  ;;  %v3007_v34 = vunpack.i.l.bf16 %v3006_v39  ;;  %v3002_v45 = vunpack.i.l.bf16 %v3001_v59  ;;  %v3003_v22 = vunpack.i.h.bf16 %v3001_v59  ;;  %v5238_v59 = vld [vmem:[#allocation32_spill] sm:$0xff] }
 0x19d   : > { %v1728_v26 = vsel %vm1713_vm10, %v1695_v53, %v3007_v34  ;;  %v1736_v6 = vsel %vm1713_vm10, %v1703_v51, %v3008_v0  ;;  %v1605_v15 = vsel %vm1581_vm6, %v1572_v9, %v3003_v22 }
 0x19e   : > { %v3011_v16 = vpop.permute.xlu1 %3010  ;;  %v3016_v20 = vpop.permute.xlu0 %3015  ;;  %1963 = vmatmul.mubr.f32.gmra.mxu0 %v1728_v26  ;;  %2003 = vmatmul.mubr.f32.gmra.mxu1 %v1736_v6 }
 0x19f   : > { %2527 = vmatprep.mubr.msk.f32.mxu0 %vm1515_vm4, %v5235_v55  ;;  %2535 = vmatprep.mubr.msk.f32.mxu1 %vm1515_vm4, %v4148_v4  ;;  %v3012_v46 = vunpack.i.l.bf16 %v3011_v16  ;;  %v3013_v2 = vunpack.i.h.bf16 %v3011_v16  ;;  %v1564_v4 = vsel %vm1548_vm5, %v1531_v40, %v2992_v52  ;;  %v3017_v18 = vunpack.i.l.bf16 %v3016_v20 }
 0x1a0   : > { %v1597_v12 = vsel %vm1581_vm6, %v1564_v4, %v3002_v45  ;;  %v3018_v13 = vunpack.i.h.bf16 %v3016_v20 }
 0x1a1   : > { %v1630_v1 = vsel %vm1614_vm7, %v1597_v12, %v3012_v46  ;;  %v1638_v58 = vsel %vm1614_vm7, %v1605_v15, %v3013_v2  ;;  %v1540_v39 = vsel %vm1515_vm4, %v5238_v59, %v3017_v18 }
 0x1a2   : > { %v3021_v7 = vpop.permute.xlu1 %3020  ;;  %v3026_v44 = vpop.permute.xlu0 %3025 }
 0x1a3   : > { %v3022_v3 = vunpack.i.l.bf16 %v3021_v7  ;;  %v3023_v11 = vunpack.i.h.bf16 %v3021_v7  ;;  %v3027_v23 = vunpack.i.l.bf16 %v3026_v44  ;;  %v3028_v19 = vunpack.i.h.bf16 %v3026_v44  ;;  %v5239_v7 = vld [vmem:[#allocation31_spill] sm:$0xff] }
 0x1a4   : > { %v1541_v44 = vsel %vm1515_vm4, %v5239_v7, %v3018_v13 }
 0x1a5   : > { %v1663_v36 = vsel %vm1647_vm8, %v1630_v1, %v3022_v3  ;;  %v1671_v63 = vsel %vm1647_vm8, %v1638_v58, %v3023_v11  ;;  %v1573_v62 = vsel %vm1548_vm5, %v1540_v39, %v3027_v23  ;;  %v1574_v25 = vsel %vm1548_vm5, %v1541_v44, %v3028_v19 }
 0x1a6   : > { %v3031_v28 = vpop.permute.xlu1 %3030  ;;  %v3036_v49 = vpop.permute.xlu0 %3035 }
 0x1a7   : > { %v3033_v47 = vunpack.i.h.bf16 %v3031_v28  ;;  %v3032_v33 = vunpack.i.l.bf16 %v3031_v28  ;;  %v3037_v56 = vunpack.i.l.bf16 %v3036_v49  ;;  %v3038_v26 = vunpack.i.h.bf16 %v3036_v49 }
 0x1a9   : > { %v1696_v24 = vsel %vm1680_vm9, %v1663_v36, %v3032_v33  ;;  %v1704_v42 = vsel %vm1680_vm9, %v1671_v63, %v3033_v47  ;;  %v1606_v6 = vsel %vm1581_vm6, %v1573_v62, %v3037_v56  ;;  %v1607_v46 = vsel %vm1581_vm6, %v1574_v25, %v3038_v26 }
 0x1aa   : > { %v3041_v43 = vpop.permute.xlu1 %3040  ;;  %v3046_v38 = vpop.permute.xlu0 %3045 }
 0x1ab   : > { %v3043_v8 = vunpack.i.h.bf16 %v3041_v43  ;;  %v3042_v57 = vunpack.i.l.bf16 %v3041_v43  ;;  %v3047_v29 = vunpack.i.l.bf16 %v3046_v38  ;;  %v3048_v20 = vunpack.i.h.bf16 %v3046_v38 }
 0x1ad   : > { %v1729_v0 = vsel %vm1713_vm10, %v1696_v24, %v3042_v57  ;;  %v1737_v34 = vsel %vm1713_vm10, %v1704_v42, %v3043_v8  ;;  %v1639_v55 = vsel %vm1614_vm7, %v1606_v6, %v3047_v29  ;;  %v1640_v40 = vsel %vm1614_vm7, %v1607_v46, %v3048_v20 }
 0x1ae   : > { %v3051_v53 = vpop.permute.xlu1 %3050  ;;  %v3056_v51 = vpop.permute.xlu0 %3055  ;;  %1968 = vmatmul.mubr.f32.gmra.mxu0 %v1729_v0  ;;  %2008 = vmatmul.mubr.f32.gmra.mxu1 %v1737_v34 }
 0x1af   : > { %v3052_v16 = vunpack.i.l.bf16 %v3051_v53  ;;  %2536 = vmatprep.mubr.msk.f32.mxu1 %vm1515_vm4, %v4295_v30  ;;  %v3057_v41 = vunpack.i.l.bf16 %v3056_v51  ;;  %v3053_v60 = vunpack.i.h.bf16 %v3051_v53  ;;  %v3058_v30 = vunpack.i.h.bf16 %v3056_v51 }
 0x1b1   : > { %v1672_v52 = vsel %vm1647_vm8, %v1639_v55, %v3052_v16  ;;  %v1673_v50 = vsel %vm1647_vm8, %v1640_v40, %v3053_v60 }
 0x1b2   : > { %v3061_v45 = vpop.permute.xlu1 %3060  ;;  %v3066_v22 = vpop.permute.xlu0 %3065  ;;  %v1705_v3 = vsel %vm1680_vm9, %v1672_v52, %v3057_v41  ;;  %v1706_v15 = vsel %vm1680_vm9, %v1673_v50, %v3058_v30 }
 0x1b3   : > { %v3062_v61 = vunpack.i.l.bf16 %v3061_v45  ;;  %v3067_v2 = vunpack.i.l.bf16 %v3066_v22  ;;  %v3063_v28 = vunpack.i.h.bf16 %v3061_v45  ;;  %v3068_v48 = vunpack.i.h.bf16 %v3066_v22 }
 0x1b5   : > { %v1738_v49 = vsel %vm1713_vm10, %v1705_v3, %v3062_v61  ;;  %v1542_v47 = vsel %vm1515_vm4, %v3978_v32, %v3067_v2  ;;  %v1739_v18 = vsel %vm1713_vm10, %v1706_v15, %v3063_v28  ;;  %v1543_v58 = vsel %vm1515_vm4, %v3982_v21, %v3068_v48 }
 0x1b6   : > { %v3071_v4 = vpop.permute.xlu1 %3070  ;;  %v3076_v11 = vpop.permute.xlu0 %3075  ;;  %2013 = vmatmul.mubr.f32.gmra.mxu1 %v1738_v49 }
 0x1b7   : > { %v3073_v9 = vunpack.i.h.bf16 %v3071_v4  ;;  %v3072_v12 = vunpack.i.l.bf16 %v3071_v4  ;;  %2537 = vmatprep.mubr.msk.f32.mxu1 %vm1515_vm4, %v4300_v17  ;;  %v3077_v33 = vunpack.i.l.bf16 %v3076_v11  ;;  %v3078_v23 = vunpack.i.h.bf16 %v3076_v11 }
 0x1b9   : > { %v1575_v1 = vsel %vm1548_vm5, %v1542_v47, %v3072_v12  ;;  %v1576_v36 = vsel %vm1548_vm5, %v1543_v58, %v3073_v9 }
 0x1ba   : > { %v3081_v43 = vpop.permute.xlu1 %3080  ;;  %v3086_v38 = vpop.permute.xlu0 %3085  ;;  %2018 = vmatmul.mubr.f32.gmra.mxu1 %v1739_v18  ;;  %v1608_v32 = vsel %vm1581_vm6, %v1575_v1, %v3077_v33  ;;  %v1609_v63 = vsel %vm1581_vm6, %v1576_v36, %v3078_v23 }
 0x1bb   : > { %v3083_v17 = vunpack.i.h.bf16 %v3081_v43  ;;  %v3082_v56 = vunpack.i.l.bf16 %v3081_v43  ;;  %2538 = vmatprep.mubr.msk.f32.mxu1 %vm1515_vm4, %v4370_v5  ;;  %v3087_v8 = vunpack.i.l.bf16 %v3086_v38  ;;  %v3088_v29 = vunpack.i.h.bf16 %v3086_v38 }
 0x1bd   : > { %v1641_v57 = vsel %vm1614_vm7, %v1608_v32, %v3082_v56  ;;  %v1642_v42 = vsel %vm1614_vm7, %v1609_v63, %v3083_v17 }
 0x1be   : > { %v3091_v21 = vpop.permute.xlu1 %3090  ;;  %v3096_v24 = vpop.permute.xlu0 %3095  ;;  %v1674_v0 = vsel %vm1647_vm8, %v1641_v57, %v3087_v8  ;;  %v1675_v51 = vsel %vm1647_vm8, %v1642_v42, %v3088_v29 }
 0x1bf   : > { %v3093_v13 = vunpack.i.h.bf16 %v3091_v21  ;;  %v3092_v59 = vunpack.i.l.bf16 %v3091_v21  ;;  %v3097_v39 = vunpack.i.l.bf16 %v3096_v24  ;;  %v3098_v5 = vunpack.i.h.bf16 %v3096_v24  ;;  %v5240_v21 = vld [vmem:[#allocation6_spill] sm:$0xff] }
 0x1c1   : > { %v1707_v34 = vsel %vm1680_vm9, %v1674_v0, %v3092_v59  ;;  %v1708_v6 = vsel %vm1680_vm9, %v1675_v51, %v3093_v13 }
 0x1c2   : > { %v3101_v19 = vpop.permute.xlu1 %3100  ;;  %v3106_v62 = vpop.permute.xlu0 %3105  ;;  %v1740_v53 = vsel %vm1713_vm10, %v1707_v34, %v3097_v39  ;;  %v1741_v44 = vsel %vm1713_vm10, %v1708_v6, %v3098_v5 }
 0x1c3   : > { %v3102_v26 = vunpack.i.l.bf16 %v3101_v19  ;;  %2023 = vmatmul.mubr.f32.gmra.mxu1 %v1740_v53  ;;  %v3107_v16 = vunpack.i.l.bf16 %v3106_v62  ;;  %v3103_v20 = vunpack.i.h.bf16 %v3101_v19  ;;  %v3108_v52 = vunpack.i.h.bf16 %v3106_v62 }
 0x1c4   : > { %2539 = vmatprep.mubr.msk.f32.mxu1 %vm1515_vm4, %v4353_v14 }
 0x1c5   : > { %v1544_v55 = vsel %vm1515_vm4, %v4178_v10, %v3102_v26  ;;  %v1545_v14 = vsel %vm1515_vm4, %v4173_v31, %v3103_v20  ;;  %v5241_v26 = vld [vmem:[#allocation7_spill] sm:$0xff] }
 0x1c6   : > { %v3111_v41 = vpop.permute.xlu1 %3110  ;;  %v3116_v7 = vpop.permute.xlu0 %3115  ;;  %v1577_v25 = vsel %vm1548_vm5, %v1544_v55, %v3107_v16  ;;  %v1578_v30 = vsel %vm1548_vm5, %v1545_v14, %v3108_v52 }
 0x1c7   : > { %v3112_v60 = vunpack.i.l.bf16 %v3111_v41  ;;  %2028 = vmatmul.mubr.f32.gmra.mxu1 %v1741_v44  ;;  %v3117_v45 = vunpack.i.l.bf16 %v3116_v7  ;;  %v3113_v22 = vunpack.i.h.bf16 %v3111_v41  ;;  %v3118_v2 = vunpack.i.h.bf16 %v3116_v7 }
 0x1c8   : > { %2540 = vmatprep.mubr.msk.f32.mxu1 %vm1515_vm4, %v4429_v35 }
 0x1c9   : > { %v1610_v46 = vsel %vm1581_vm6, %v1577_v25, %v3112_v60  ;;  %v1611_v49 = vsel %vm1581_vm6, %v1578_v30, %v3113_v22 }
 0x1ca   : > { %v3121_v10 = vpop.permute.xlu1 %3120  ;;  %v3126_v61 = vpop.permute.xlu0 %3125  ;;  %v1643_v3 = vsel %vm1614_vm7, %v1610_v46, %v3117_v45  ;;  %v1644_v11 = vsel %vm1614_vm7, %v1611_v49, %v3118_v2 }
 0x1cb   : > { %v3122_v40 = vunpack.i.l.bf16 %v3121_v10  ;;  %v3127_v28 = vunpack.i.l.bf16 %v3126_v61  ;;  %v3123_v50 = vunpack.i.h.bf16 %v3121_v10  ;;  %v3128_v9 = vunpack.i.h.bf16 %v3126_v61 }
 0x1cd   : > { %v1676_v35 = vsel %vm1647_vm8, %v1643_v3, %v3122_v40  ;;  %v1677_v1 = vsel %vm1647_vm8, %v1644_v11, %v3123_v50 }
 0x1ce   : > { %v3131_v48 = vpop.permute.xlu1 %3130  ;;  %v3136_v4 = vpop.permute.xlu0 %3135  ;;  %v1709_v47 = vsel %vm1680_vm9, %v1676_v35, %v3127_v28  ;;  %v1710_v36 = vsel %vm1680_vm9, %v1677_v1, %v3128_v9 }
 0x1cf   : > { %v3132_v31 = vunpack.i.l.bf16 %v3131_v48  ;;  %v3137_v12 = vunpack.i.l.bf16 %v3136_v4  ;;  %v3133_v33 = vunpack.i.h.bf16 %v3131_v48  ;;  %v3138_v17 = vunpack.i.h.bf16 %v3136_v4 }
 0x1d1   : > { %v1742_v15 = vsel %vm1713_vm10, %v1709_v47, %v3132_v31  ;;  %v1546_v43 = vsel %vm1515_vm4, %v4188_v27, %v3137_v12  ;;  %v1743_v32 = vsel %vm1713_vm10, %v1710_v36, %v3133_v33  ;;  %v1547_v27 = vsel %vm1515_vm4, %v4228_v37, %v3138_v17 }
 0x1d2   : > { %v3141_v18 = vpop.permute.xlu1 %3140  ;;  %v3146_v58 = vpop.permute.xlu0 %3145  ;;  %2033 = vmatmul.mubr.f32.gmra.mxu1 %v1742_v15 }
 0x1d3   : > { %v3142_v23 = vunpack.i.l.bf16 %v3141_v18  ;;  %2541 = vmatprep.mubr.msk.f32.mxu1 %vm1515_vm4, %v4454_v54  ;;  %v3147_v38 = vunpack.i.l.bf16 %v3146_v58  ;;  %v3143_v8 = vunpack.i.h.bf16 %v3141_v18  ;;  %v3148_v24 = vunpack.i.h.bf16 %v3146_v58 }
 0x1d5   : > { %v1579_v56 = vsel %vm1548_vm5, %v1546_v43, %v3142_v23  ;;  %v1580_v13 = vsel %vm1548_vm5, %v1547_v27, %v3143_v8 }
 0x1d6   : > { %v3151_v57 = vpop.permute.xlu1 %3150  ;;  %v1288_v63 = vpop.permute.xlu0 %1287  ;;  %2038 = vmatmul.mubr.f32.gmra.mxu1 %v1743_v32  ;;  %v1612_v54 = vsel %vm1581_vm6, %v1579_v56, %v3147_v38  ;;  %v1613_v62 = vsel %vm1581_vm6, %v1580_v13, %v3148_v24 }
 0x1d7   : > { %v3152_v29 = vunpack.i.l.bf16 %v3151_v57  ;;  %2542 = vmatprep.mubr.msk.f32.mxu1 %vm1515_vm4, %v5240_v21  ;;  %v3153_v59 = vunpack.i.h.bf16 %v3151_v57 }
 0x1d9   : > { %v1645_v42 = vsel %vm1614_vm7, %v1612_v54, %v3152_v29  ;;  %v1646_v37 = vsel %vm1614_vm7, %v1613_v62, %v3153_v59 }
 0x1da   : > { %v1678_v39 = vsel %vm1647_vm8, %v1645_v42, %v1288_v63  ;;  %v1384_v0 = vpop.permute.xlu1 %1383  ;;  %v1480_v34 = vpop.permute.xlu0 %1479 }
 0x1db   : > { %v1711_v5 = vsel %vm1680_vm9, %v1678_v39, %v1384_v0 }
 0x1dc   : > { %v1744_v19 = vsel %vm1713_vm10, %v1711_v5, %v1480_v34 }
 0x1dd   : > { %2043 = vmatmul.mubr.f32.gmra.mxu1 %v1744_v19 }
 0x1de   : > { %v1290_v53 = vpop.permute.xlu1 %1289  ;;  %v4635_v51 = vpop.f32.mrf.mxu0  ;;  %2543 = vmatprep.mubr.msk.f32.mxu1 %vm1515_vm4, %v5241_v26 }
 0x1df   : > { %v1679_v6 = vsel %vm1647_vm8, %v1646_v37, %v1290_v53  ;;  %v1386_v16 = vpop.permute.xlu0 %1385  ;;  %v2053_v8 = vsel %vm437_vm3, %v4635_v51, 0.0 }
 0x1e0   : > { %v1896_v20 = vpop.f32.mrf.mxu0  ;;  %v1712_v55 = vsel %vm1680_vm9, %v1679_v6, %v1386_v16 }
 0x1e2   : > { %v1482_v41 = vpop.permute.xlu1 %1481  ;;  %v4641_v7 = vpop.f32.mrf.mxu0 }
 0x1e3   : > { %v1745_v44 = vsel %vm1713_vm10, %v1712_v55, %v1482_v41  ;;  %v2054_v17 = vsel %vm437_vm3, %v4641_v7, 0.0 }
 0x1e4   : > { %v1901_v60 = vpop.f32.mrf.mxu0  ;;  %2048 = vmatmul.mubr.f32.gmra.mxu1 %v1745_v44  ;;  %v2055_v63 = vadd.f32 %v2054_v17, %v2053_v8 }
 0x1e9   : > { %v4644_v52 = vpop.f32.mrf.mxu0 }
 0x1ea   : > { %v2056_v57 = vsel %vm437_vm3, %v4644_v52, 0.0 }
 0x1eb   : > { %v1906_v25 = vpop.f32.mrf.mxu0  ;;  %v2057_v27 = vadd.f32 %v2056_v57, %v2055_v63 }
 0x1ed   : > { %v4646_v45 = vpop.f32.mrf.mxu0 }
 0x1ee   : > { %v2058_v54 = vsel %vm437_vm3, %v4646_v45, 0.0 }
 0x1ef   : > { %v1911_v14 = vpop.f32.mrf.mxu0  ;;  %v2059_v42 = vadd.f32 %v2058_v54, %v2057_v27 }
 0x1f2   : > { %v4648_v22 = vpop.f32.mrf.mxu0 }
 0x1f3   : > { %v2060_v24 = vsel %vm437_vm3, %v4648_v22, 0.0 }
 0x1f4   : > { %v1916_v46 = vpop.f32.mrf.mxu0  ;;  %v2061_v59 = vadd.f32 %v2060_v24, %v2059_v42 }
 0x1f6   : > { %v4650_v10 = vpop.f32.mrf.mxu0 }
 0x1f7   : > { %v2062_v13 = vsel %vm437_vm3, %v4650_v10, 0.0 }
 0x1f8   : > { %v1921_v61 = vpop.f32.mrf.mxu0  ;;  %v2063_v0 = vadd.f32 %v2062_v13, %v2061_v59 }
 0x1fd   : > { %v4652_v40 = vpop.f32.mrf.mxu0 }
 0x1fe   : > { %v2064_v39 = vsel %vm437_vm3, %v4652_v40, 0.0 }
 0x1ff   : > { %v1926_v30 = vpop.f32.mrf.mxu0  ;;  %v2065_v5 = vadd.f32 %v2064_v39, %v2063_v0 }
 0x201   : > { %v4654_v2 = vpop.f32.mrf.mxu0 }
 0x202   : > { %v2066_v34 = vsel %vm437_vm3, %v4654_v2, 0.0 }
 0x203   : > { %v1931_v3 = vpop.f32.mrf.mxu0  ;;  %v2067_v37 = vadd.f32 %v2066_v34, %v2065_v5 }
 0x20a   : > { %v4656_v28 = vpop.f32.mrf.mxu0  ;;  %v4658_v49 = vpop.f32.mrf.mxu1 }
 0x20b   : > { %v2068_v53 = vsel %vm437_vm3, %v4656_v28, 0.0 }
 0x20c   : > { %v1936_v50 = vpop.f32.mrf.mxu0  ;;  %v1976_v35 = vpop.f32.mrf.mxu1  ;;  %v2069_v20 = vadd.f32 %v2068_v53, %v2067_v37 }
 0x21a   : > { %v4660_v48 = vpop.f32.mrf.mxu0  ;;  %v4662_v4 = vpop.f32.mrf.mxu1 }
 0x21b   : > { %v2070_v16 = vsel %vm437_vm3, %v4660_v48, 0.0 }
 0x21c   : > { %v1941_v31 = vpop.f32.mrf.mxu0  ;;  %v1981_v11 = vpop.f32.mrf.mxu1  ;;  %v2071_v41 = vadd.f32 %v2070_v16, %v2069_v20 }
 0x226   : > { %v4664_v9 = vpop.f32.mrf.mxu0  ;;  %v4666_v12 = vpop.f32.mrf.mxu1 }
 0x227   : > { %v2072_v55 = vsel %vm437_vm3, %v4664_v9, 0.0  ;;  %v2088_v63 = vsel %vm437_vm3, %v4666_v12, 0.0 }
 0x228   : > { %v1946_v47 = vpop.f32.mrf.mxu0  ;;  %v1986_v33 = vpop.f32.mrf.mxu1  ;;  %v2073_v60 = vadd.f32 %v2072_v55, %v2071_v41 }
 0x236   : > { %v4668_v15 = vpop.f32.mrf.mxu0  ;;  %v4670_v1 = vpop.f32.mrf.mxu1 }
 0x237   : > { %v2074_v44 = vsel %vm437_vm3, %v4668_v15, 0.0  ;;  %v2090_v27 = vsel %vm437_vm3, %v4670_v1, 0.0 }
 0x238   : > { %v1951_v18 = vpop.f32.mrf.mxu0  ;;  %v1991_v58 = vpop.f32.mrf.mxu1  ;;  %v2075_v14 = vadd.f32 %v2074_v44, %v2073_v60 }
 0x239   : > { %v2084_v58 = vsel %vm437_vm3, %v4658_v49, 0.0 }
 0x242   : > { %v4672_v23 = vpop.f32.mrf.mxu0  ;;  %v4674_v43 = vpop.f32.mrf.mxu1 }
 0x243   : > { %v2076_v25 = vsel %vm437_vm3, %v4672_v23, 0.0  ;;  %v2092_v42 = vsel %vm437_vm3, %v4674_v43, 0.0 }
 0x244   : > { %v1956_v38 = vpop.f32.mrf.mxu0  ;;  %v1996_v36 = vpop.f32.mrf.mxu1  ;;  %v2077_v61 = vadd.f32 %v2076_v25, %v2075_v14 }
 0x245   : > { %v2086_v36 = vsel %vm437_vm3, %v4662_v4, 0.0 }
 0x252   : > { %v4678_v56 = vpop.f32.mrf.mxu0  ;;  %v4680_v32 = vpop.f32.mrf.mxu1 }
 0x253   : > { %v2078_v46 = vsel %vm437_vm3, %v4678_v56, 0.0  ;;  %v2094_v39 = vsel %vm437_vm3, %v4680_v32, 0.0 }
 0x254   : > { %v1961_v29 = vpop.f32.mrf.mxu0  ;;  %v2001_v21 = vpop.f32.mrf.mxu1  ;;  %v2079_v3 = vadd.f32 %v2078_v46, %v2077_v61 }
 0x25e   : > { %v4696_v19 = vpop.f32.mrf.mxu0  ;;  %v4698_v62 = vpop.f32.mrf.mxu1 }
 0x25f   : > { %v2080_v30 = vsel %vm437_vm3, %v4696_v19, 0.0  ;;  %v2096_v53 = vsel %vm437_vm3, %v4698_v62, 0.0 }
 0x260   : > { %v1966_v26 = vpop.f32.mrf.mxu0  ;;  %v2006_v6 = vpop.f32.mrf.mxu1  ;;  %v2081_v50 = vadd.f32 %v2080_v30, %v2079_v3 }
 0x26e   : > { %v4714_v35 = vpop.f32.mrf.mxu0  ;;  %v4716_v31 = vpop.f32.mrf.mxu1 }
 0x26f   : > { %v2082_v11 = vsel %vm437_vm3, %v4714_v35, 0.0  ;;  %v2098_v6 = vsel %vm437_vm3, %v4716_v31, 0.0 }
 0x270   : > { %v2083_v47 = vadd.f32 %v2082_v11, %v2081_v50  ;;  %v1971_v33 = vpop.f32.mrf.mxu0  ;;  %v2011_v18 = vpop.f32.mrf.mxu1 }
 0x272   : > { %v2085_v38 = vadd.f32 %v2084_v58, %v2083_v47 }
 0x274   : > { %v2087_v17 = vadd.f32 %v2086_v36, %v2085_v38 }
 0x276   : > { %v4724_v8 = vpop.f32.mrf.mxu1  ;;  %v2089_v29 = vadd.f32 %v2088_v63, %v2087_v17 }
 0x277   : > { %v2100_v20 = vsel %vm437_vm3, %v4724_v8, 0.0 }
 0x278   : > { %v2016_v57 = vpop.f32.mrf.mxu1  ;;  %v2091_v24 = vadd.f32 %v2090_v27, %v2089_v29 }
 0x27a   : > { %v4728_v21 = vpop.f32.mrf.mxu1  ;;  %v2093_v13 = vadd.f32 %v2092_v42, %v2091_v24 }
 0x27b   : > { %v2102_v60 = vsel %vm437_vm3, %v4728_v21, 0.0 }
 0x27c   : > { %v2021_v54 = vpop.f32.mrf.mxu1  ;;  %v2095_v34 = vadd.f32 %v2094_v39, %v2093_v13 }
 0x27e   : > { %v2097_v26 = vadd.f32 %v2096_v53, %v2095_v34 }
 0x280   : > { %v2099_v16 = vadd.f32 %v2098_v6, %v2097_v26 }
 0x282   : > { %v2101_v55 = vadd.f32 %v2100_v20, %v2099_v16 }
 0x283   : > { %v4734_v59 = vpop.f32.mrf.mxu1 }
 0x284   : > { %v2103_v25 = vadd.f32 %v2102_v60, %v2101_v55  ;;  %v2104_v46 = vsel %vm437_vm3, %v4734_v59, 0.0 }
 0x285   : > { %v2026_v0 = vpop.f32.mrf.mxu1 }
 0x286   : > { %v2105_v30 = vadd.f32 %v2104_v46, %v2103_v25 }
 0x287   : > { %v4738_v5 = vpop.f32.mrf.mxu1 }
 0x288   : > { %v2106_v3 = vsel %vm437_vm3, %v4738_v5, 0.0 }
 0x289   : > { %v2031_v37 = vpop.f32.mrf.mxu1  ;;  %v2107_v47 = vadd.f32 %v2106_v3, %v2105_v30 }
 0x292   : > { %v4746_v41 = vpop.f32.mrf.mxu1 }
 0x293   : > { %v2108_v50 = vsel %vm437_vm3, %v4746_v41, 0.0 }
 0x294   : > { %v2036_v44 = vpop.f32.mrf.mxu1  ;;  %v2109_v58 = vadd.f32 %v2108_v50, %v2107_v47 }
 0x296   : > { %v4750_v14 = vpop.f32.mrf.mxu1 }
 0x297   : > { %v2110_v33 = vsel %vm437_vm3, %v4750_v14, 0.0 }
 0x298   : > { %v2041_v61 = vpop.f32.mrf.mxu1  ;;  %v2111_v36 = vadd.f32 %v2110_v33, %v2109_v58 }
 0x29d   : > { %v4758_v11 = vpop.f32.mrf.mxu1 }
 0x29e   : > { %v2112_v38 = vsel %vm437_vm3, %v4758_v11, 0.0 }
 0x29f   : > { %v2046_v18 = vpop.f32.mrf.mxu1  ;;  %v2113_v17 = vadd.f32 %v2112_v38, %v2111_v36 }
 0x2a4   : > { %v4764_v57 = vpop.f32.mrf.mxu1 }
 0x2a5   : > { %v2114_v63 = vsel %vm437_vm3, %v4764_v57, 0.0 }
 0x2a6   : > { %v2115_v29 = vadd.f32 %v2114_v63, %v2113_v17  ;;  %v2051_v54 = vpop.f32.mrf.mxu1 }
 0x2a8   : > { %v2116_v27 = vrot.slane %v2115_v29, 4 }
 0x2aa   : > { %v2117_v24 = vadd.f32 %v2116_v27, %v2115_v29 }
 0x2ac   : > { %v2118_v42 = vrot.slane %v2117_v24, 2 }
 0x2ae   : > { %v2119_v13 = vadd.f32 %v2118_v42, %v2117_v24 }
 0x2b0   : > { %v2120_v39 = vrot.slane %v2119_v13, 1 }
 0x2b2   : > { %v2121_v0 = vadd.f32 %v2120_v39, %v2119_v13 }
 0x2b4   : > { %v4768_v34 = vmul.f32 0.00390625, %v2121_v0 }
 0x2b6   : > { %v4772_v53 = vsub.f32 %v4635_v51, %v4768_v34  ;;  %v4776_v37 = vsub.f32 %v4641_v7, %v4768_v34  ;;  %v4780_v26 = vsub.f32 %v4644_v52, %v4768_v34  ;;  %v4784_v6 = vsub.f32 %v4646_v45, %v4768_v34 }
 0x2b7   : > { %v4792_v51 = vsub.f32 %v4648_v22, %v4768_v34  ;;  %v4798_v52 = vsub.f32 %v4650_v10, %v4768_v34  ;;  %v4806_v25 = vsub.f32 %v4652_v40, %v4768_v34  ;;  %v4813_v10 = vsub.f32 %v4654_v2, %v4768_v34 }
 0x2b8   : > { %v2156_v16 = vmul.f32 %v4772_v53, %v4772_v53  ;;  %v2157_v20 = vmul.f32 %v4776_v37, %v4776_v37  ;;  %v2158_v7 = vmul.f32 %v4780_v26, %v4780_v26  ;;  %v2159_v45 = vmul.f32 %v4784_v6, %v4784_v6 }
 0x2b9   : > { %v2160_v22 = vmul.f32 %v4792_v51, %v4792_v51  ;;  %v2161_v30 = vmul.f32 %v4798_v52, %v4798_v52  ;;  %v4820_v40 = vsub.f32 %v4656_v28, %v4768_v34  ;;  %v2162_v47 = vmul.f32 %v4806_v25, %v4806_v25 }
 0x2ba   : > { %v2188_v55 = vsel %vm437_vm3, %v2156_v16, 0.0  ;;  %v2189_v44 = vsel %vm437_vm3, %v2157_v20, 0.0  ;;  %v2191_v46 = vsel %vm437_vm3, %v2158_v7, 0.0  ;;  %v2193_v3 = vsel %vm437_vm3, %v2159_v45, 0.0 }
 0x2bb   : > { %v2190_v60 = vadd.f32 %v2189_v44, %v2188_v55  ;;  %v2195_v33 = vsel %vm437_vm3, %v2160_v22, 0.0  ;;  %v4827_v2 = vsub.f32 %v4660_v48, %v4768_v34  ;;  %v2163_v58 = vmul.f32 %v4813_v10, %v4813_v10 }
 0x2bc   : > { %v2197_v38 = vsel %vm437_vm3, %v2161_v30, 0.0  ;;  %v4834_v28 = vsub.f32 %v4664_v9, %v4768_v34  ;;  %v2164_v17 = vmul.f32 %v4820_v40, %v4820_v40  ;;  %v2199_v63 = vsel %vm437_vm3, %v2162_v47, 0.0 }
 0x2bd   : > { %v2192_v61 = vadd.f32 %v2191_v46, %v2190_v60  ;;  %v4841_v48 = vsub.f32 %v4668_v15, %v4768_v34  ;;  %v2165_v54 = vmul.f32 %v4827_v2, %v4827_v2  ;;  %v2201_v27 = vsel %vm437_vm3, %v2163_v58, 0.0 }
 0x2be   : > { %v4848_v9 = vsub.f32 %v4672_v23, %v4768_v34  ;;  %v2166_v42 = vmul.f32 %v4834_v28, %v4834_v28  ;;  %v2203_v13 = vsel %vm437_vm3, %v2164_v17, 0.0  ;;  %v4855_v15 = vsub.f32 %v4678_v56, %v4768_v34 }
 0x2bf   : > { %v2194_v50 = vadd.f32 %v2193_v3, %v2192_v61  ;;  %v2167_v0 = vmul.f32 %v4841_v48, %v4841_v48  ;;  %v2205_v16 = vsel %vm437_vm3, %v2165_v54, 0.0  ;;  %v4862_v23 = vsub.f32 %v4696_v19, %v4768_v34 }
 0x2c0   : > { %v2168_v7 = vmul.f32 %v4848_v9, %v4848_v9  ;;  %v2207_v45 = vsel %vm437_vm3, %v2166_v42, 0.0  ;;  %v4869_v56 = vsub.f32 %v4714_v35, %v4768_v34  ;;  %v2169_v44 = vmul.f32 %v4855_v15, %v4855_v15 }
 0x2c1   : > { %v2196_v18 = vadd.f32 %v2195_v33, %v2194_v50  ;;  %v2209_v60 = vsel %vm437_vm3, %v2167_v0, 0.0  ;;  %v4876_v19 = vsub.f32 %v4658_v49, %v4768_v34  ;;  %v2170_v46 = vmul.f32 %v4862_v23, %v4862_v23 }
 0x2c2   : > { %v2211_v61 = vsel %vm437_vm3, %v2168_v7, 0.0  ;;  %v4883_v35 = vsub.f32 %v4662_v4, %v4768_v34  ;;  %v2171_v3 = vmul.f32 %v4869_v56, %v4869_v56  ;;  %v2213_v50 = vsel %vm437_vm3, %v2169_v44, 0.0 }
 0x2c3   : > { %v2198_v36 = vadd.f32 %v2197_v38, %v2196_v18  ;;  %v4890_v49 = vsub.f32 %v4666_v12, %v4768_v34  ;;  %v2172_v33 = vmul.f32 %v4876_v19, %v4876_v19  ;;  %v2215_v18 = vsel %vm437_vm3, %v2170_v46, 0.0 }
 0x2c4   : > { %v4897_v4 = vsub.f32 %v4670_v1, %v4768_v34  ;;  %v2173_v38 = vmul.f32 %v4883_v35, %v4883_v35  ;;  %v4904_v12 = vsub.f32 %v4674_v43, %v4768_v34  ;;  %v4911_v1 = vsub.f32 %v4680_v32, %v4768_v34 }
 0x2c5   : > { %v2200_v29 = vadd.f32 %v2199_v63, %v2198_v36  ;;  %v2217_v36 = vsel %vm437_vm3, %v2171_v3, 0.0  ;;  %v2174_v63 = vmul.f32 %v4890_v49, %v4890_v49  ;;  %v4918_v43 = vsub.f32 %v4698_v62, %v4768_v34 }
 0x2c6   : > { %v4925_v32 = vsub.f32 %v4716_v31, %v4768_v34  ;;  %v4932_v62 = vsub.f32 %v4724_v8, %v4768_v34  ;;  %v4939_v31 = vsub.f32 %v4728_v21, %v4768_v34  ;;  %v4946_v8 = vsub.f32 %v4734_v59, %v4768_v34 }
 0x2c7   : > { %v2202_v24 = vadd.f32 %v2201_v27, %v2200_v29  ;;  %v2219_v29 = vsel %vm437_vm3, %v2172_v33, 0.0  ;;  %v2175_v27 = vmul.f32 %v4897_v4, %v4897_v4  ;;  %v4953_v21 = vsub.f32 %v4738_v5, %v4768_v34 }
 0x2c8   : > { %v4960_v59 = vsub.f32 %v4746_v41, %v4768_v34  ;;  %v2153_v5 = vsub.f32 %v4750_v14, %v4768_v34 }
 0x2c9   : > { %v2204_v39 = vadd.f32 %v2203_v13, %v2202_v24  ;;  %v2221_v24 = vsel %vm437_vm3, %v2173_v38, 0.0  ;;  %v2176_v13 = vmul.f32 %v4904_v12, %v4904_v12 }
 0x2ca   : > { %v2184_v41 = vmul.f32 %v4960_v59, %v4960_v59 }
 0x2cb   : > { %v2206_v20 = vadd.f32 %v2205_v16, %v2204_v39  ;;  %v2223_v39 = vsel %vm437_vm3, %v2174_v63, 0.0  ;;  %v2177_v16 = vmul.f32 %v4911_v1, %v4911_v1 }
 0x2cd   : > { %v2208_v55 = vadd.f32 %v2207_v45, %v2206_v20  ;;  %v2225_v20 = vsel %vm437_vm3, %v2175_v27, 0.0  ;;  %v2178_v45 = vmul.f32 %v4918_v43, %v4918_v43 }
 0x2cf   : > { %v2210_v22 = vadd.f32 %v2209_v60, %v2208_v55  ;;  %v2227_v55 = vsel %vm437_vm3, %v2176_v13, 0.0  ;;  %v2179_v60 = vmul.f32 %v4925_v32, %v4925_v32 }
 0x2d1   : > { %v2212_v30 = vadd.f32 %v2211_v61, %v2210_v22  ;;  %v2229_v22 = vsel %vm437_vm3, %v2177_v16, 0.0  ;;  %v2180_v61 = vmul.f32 %v4932_v62, %v4932_v62 }
 0x2d3   : > { %v2214_v47 = vadd.f32 %v2213_v50, %v2212_v30  ;;  %v2231_v30 = vsel %vm437_vm3, %v2178_v45, 0.0  ;;  %v2181_v50 = vmul.f32 %v4939_v31, %v4939_v31 }
 0x2d5   : > { %v2216_v58 = vadd.f32 %v2215_v18, %v2214_v47  ;;  %v2233_v47 = vsel %vm437_vm3, %v2179_v60, 0.0  ;;  %v2182_v18 = vmul.f32 %v4946_v8, %v4946_v8 }
 0x2d7   : > { %v2218_v17 = vadd.f32 %v2217_v36, %v2216_v58  ;;  %v2235_v58 = vsel %vm437_vm3, %v2180_v61, 0.0  ;;  %v2183_v36 = vmul.f32 %v4953_v21, %v4953_v21 }
 0x2d9   : > { %v2220_v54 = vadd.f32 %v2219_v29, %v2218_v17  ;;  %v2237_v17 = vsel %vm437_vm3, %v2181_v50, 0.0  ;;  %v2154_v29 = vsub.f32 %v4758_v11, %v4768_v34  ;;  %v2241_v14 = vsel %vm437_vm3, %v2183_v36, 0.0 }
 0x2db   : > { %v2222_v42 = vadd.f32 %v2221_v24, %v2220_v54  ;;  %v2239_v54 = vsel %vm437_vm3, %v2182_v18, 0.0  ;;  %v2155_v24 = vsub.f32 %v4764_v57, %v4768_v34 }
 0x2dd   : > { %v2224_v0 = vadd.f32 %v2223_v39, %v2222_v42  ;;  %v2185_v42 = vmul.f32 %v2153_v5, %v2153_v5  ;;  %v2186_v39 = vmul.f32 %v2154_v29, %v2154_v29 }
 0x2df   : > { %v2226_v7 = vadd.f32 %v2225_v20, %v2224_v0  ;;  %v2243_v0 = vsel %vm437_vm3, %v2184_v41, 0.0  ;;  %v2187_v20 = vmul.f32 %v2155_v24, %v2155_v24  ;;  %v2245_v11 = vsel %vm437_vm3, %v2185_v42, 0.0 }
 0x2e0   : > { %v2247_v45 = vsel %vm437_vm3, %v2186_v39, 0.0 }
 0x2e1   : > { %v2228_v44 = vadd.f32 %v2227_v55, %v2226_v7 }
 0x2e3   : > { %v2230_v46 = vadd.f32 %v2229_v22, %v2228_v44  ;;  %v2249_v44 = vsel %vm437_vm3, %v2187_v20, 0.0 }
 0x2e5   : > { %v2232_v3 = vadd.f32 %v2231_v30, %v2230_v46 }
 0x2e7   : > { %v2234_v33 = vadd.f32 %v2233_v47, %v2232_v3 }
 0x2e9   : > { %v2236_v38 = vadd.f32 %v2235_v58, %v2234_v33 }
 0x2eb   : > { %v2238_v63 = vadd.f32 %v2237_v17, %v2236_v38 }
 0x2ed   : > { %v2240_v27 = vadd.f32 %v2239_v54, %v2238_v63 }
 0x2ef   : > { %v2242_v13 = vadd.f32 %v2241_v14, %v2240_v27 }
 0x2f1   : > { %v2244_v16 = vadd.f32 %v2243_v0, %v2242_v13 }
 0x2f3   : > { %v2246_v7 = vadd.f32 %v2245_v11, %v2244_v16 }
 0x2f5   : > { %v2248_v55 = vadd.f32 %v2247_v45, %v2246_v7 }
 0x2f7   : > { %v2250_v60 = vadd.f32 %v2249_v44, %v2248_v55 }
 0x2f9   : > { %v2251_v22 = vrot.slane %v2250_v60, 4 }
 0x2fb   : > { %v2252_v57 = vadd.f32 %v2251_v22, %v2250_v60 }
 0x2fd   : > { %v2253_v34 = vrot.slane %v2252_v57, 2 }
 0x2ff   : > { %v2254_v46 = vadd.f32 %v2253_v34, %v2252_v57  ;;  %v2545_v34 = vld [vmem:[%s5130_s4] ss:$0 sm:$0xff] }
 0x301   : > { %v2255_v61 = vrot.slane %v2254_v46, 1 }
 0x303   : > { %v2256_v30 = vadd.f32 %v2255_v61, %v2254_v46 }
 0x305   : > { %v2257_v3 = vmul.f32 0.00390625, %v2256_v30 }
 0x307   : > { %v2258_v50 = vadd.f32 1e-05, %v2257_v3 }
 0x309   : > { %3154 = vrsqrt.f32 %v2258_v50 }
 0x316   : > { %v3155_v47 = vpop.eup %3154 }
 0x317   : > { %v2260_v33 = vmul.f32 %v3155_v47, %v4772_v53  ;;  %v2261_v18 = vmul.f32 %v3155_v47, %v4776_v37  ;;  %v2262_v58 = vmul.f32 %v3155_v47, %v4780_v26  ;;  %v2263_v38 = vmul.f32 %v3155_v47, %v4784_v6 }
 0x318   : > { %v2264_v36 = vmul.f32 %v3155_v47, %v4792_v51  ;;  %v2265_v17 = vmul.f32 %v3155_v47, %v4798_v52  ;;  %v2266_v63 = vmul.f32 %v3155_v47, %v4806_v25  ;;  %v2267_v41 = vmul.f32 %v3155_v47, %v4813_v10 }
 0x319   : > { %v2268_v54 = vmul.f32 %v3155_v47, %v4820_v40  ;;  %v2269_v27 = vmul.f32 %v3155_v47, %v4827_v2  ;;  %v2270_v53 = vmul.f32 %v3155_v47, %v4834_v28  ;;  %v2271_v37 = vmul.f32 %v3155_v47, %v4841_v48 }
 0x31a   : > { %v2272_v26 = vmul.f32 %v3155_v47, %v4848_v9  ;;  %v2273_v6 = vmul.f32 %v3155_v47, %v4855_v15  ;;  %v2274_v51 = vmul.f32 %v3155_v47, %v4862_v23  ;;  %v2275_v52 = vmul.f32 %v3155_v47, %v4869_v56  ;;  %v2544_v23 = vld [vmem:[%s5129_s3] ss:$0 sm:$0xff] }
 0x31b   : > { %v2276_v25 = vmul.f32 %v3155_v47, %v4876_v19  ;;  %v2277_v10 = vmul.f32 %v3155_v47, %v4883_v35  ;;  %v2278_v40 = vmul.f32 %v3155_v47, %v4890_v49  ;;  %v2279_v2 = vmul.f32 %v3155_v47, %v4897_v4 }
 0x31c   : > { %v2280_v28 = vmul.f32 %v3155_v47, %v4904_v12  ;;  %v2281_v48 = vmul.f32 %v3155_v47, %v4911_v1  ;;  %v2282_v9 = vmul.f32 %v3155_v47, %v4918_v43  ;;  %v2283_v15 = vmul.f32 %v3155_v47, %v4925_v32 }
 0x31d   : > { %v2284_v56 = vmul.f32 %v3155_v47, %v4932_v62  ;;  %v2285_v19 = vmul.f32 %v3155_v47, %v4939_v31  ;;  %v2286_v35 = vmul.f32 %v3155_v47, %v4946_v8  ;;  %v2287_v49 = vmul.f32 %v3155_v47, %v4953_v21 }
 0x31e   : > { %v2288_v4 = vmul.f32 %v3155_v47, %v4960_v59  ;;  %v2289_v12 = vmul.f32 %v3155_v47, %v2153_v5  ;;  %v2290_v1 = vmul.f32 %v3155_v47, %v2154_v29  ;;  %v2291_v42 = vmul.f32 %v3155_v47, %v2155_v24 }
 0x31f   : > { %v2299_v43 = vmul.f32 %v2544_v23, %v2260_v33  ;;  %v2300_v14 = vmul.f32 %v2544_v23, %v2261_v18  ;;  %v2301_v32 = vmul.f32 %v2544_v23, %v2262_v58  ;;  %v2302_v13 = vmul.f32 %v2544_v23, %v2263_v38 }
 0x320   : > { %v2303_v39 = vmul.f32 %v2544_v23, %v2264_v36  ;;  %v2304_v0 = vmul.f32 %v2544_v23, %v2265_v17  ;;  %v2305_v16 = vmul.f32 %v2544_v23, %v2266_v63  ;;  %v2306_v20 = vmul.f32 %v2544_v23, %v2267_v41 }
 0x321   : > { %v2307_v62 = vmul.f32 %v2544_v23, %v2268_v54  ;;  %v2308_v11 = vmul.f32 %v2544_v23, %v2269_v27  ;;  %v2309_v31 = vmul.f32 %v2544_v23, %v2270_v53  ;;  %v2310_v7 = vmul.f32 %v2544_v23, %v2271_v37 }
 0x322   : > { %v2311_v8 = vmul.f32 %v2544_v23, %v2272_v26  ;;  %v2312_v45 = vmul.f32 %v2544_v23, %v2273_v6  ;;  %v2313_v21 = vmul.f32 %v2544_v23, %v2274_v51  ;;  %v2314_v55 = vmul.f32 %v2544_v23, %v2275_v52 }
 0x323   : > { %v2315_v59 = vmul.f32 %v2544_v23, %v2276_v25  ;;  %v2316_v5 = vmul.f32 %v2544_v23, %v2277_v10  ;;  %v2317_v29 = vmul.f32 %v2544_v23, %v2278_v40  ;;  %v2318_v24 = vmul.f32 %v2544_v23, %v2279_v2 }
 0x324   : > { %v2319_v44 = vmul.f32 %v2544_v23, %v2280_v28  ;;  %v2320_v60 = vmul.f32 %v2544_v23, %v2281_v48  ;;  %v2321_v22 = vmul.f32 %v2544_v23, %v2282_v9  ;;  %v2322_v57 = vmul.f32 %v2544_v23, %v2283_v15 }
 0x325   : > { %v2323_v46 = vmul.f32 %v2544_v23, %v2284_v56  ;;  %v2324_v61 = vmul.f32 %v2544_v23, %v2285_v19  ;;  %v2325_v30 = vmul.f32 %v2544_v23, %v2286_v35  ;;  %v2326_v3 = vmul.f32 %v2544_v23, %v2287_v49 }
 0x326   : > { %v2327_v50 = vmul.f32 %v2544_v23, %v2288_v4  ;;  %v2328_v47 = vmul.f32 %v2544_v23, %v2289_v12  ;;  %v2329_v33 = vmul.f32 %v2544_v23, %v2290_v1  ;;  %v2330_v18 = vmul.f32 %v2544_v23, %v2291_v42 }
 0x327   : > { %v2338_v58 = vadd.f32 %v2545_v34, %v2299_v43  ;;  %v2339_v38 = vadd.f32 %v2545_v34, %v2300_v14  ;;  %v2340_v36 = vadd.f32 %v2545_v34, %v2301_v32  ;;  %v2341_v17 = vadd.f32 %v2545_v34, %v2302_v13 }
 0x328   : > { %v2342_v63 = vadd.f32 %v2545_v34, %v2303_v39  ;;  %v2343_v41 = vadd.f32 %v2545_v34, %v2304_v0  ;;  %v2344_v54 = vadd.f32 %v2545_v34, %v2305_v16  ;;  %v2345_v27 = vadd.f32 %v2545_v34, %v2306_v20 }
 0x329   : > { %v2346_v53 = vadd.f32 %v2545_v34, %v2307_v62  ;;  %v2347_v37 = vadd.f32 %v2545_v34, %v2308_v11  ;;  %v2348_v26 = vadd.f32 %v2545_v34, %v2309_v31  ;;  %v2349_v6 = vadd.f32 %v2545_v34, %v2310_v7 }
 0x32a   : > { %v2350_v51 = vadd.f32 %v2545_v34, %v2311_v8  ;;  %v2351_v52 = vadd.f32 %v2545_v34, %v2312_v45  ;;  %v2352_v25 = vadd.f32 %v2545_v34, %v2313_v21  ;;  %v2353_v10 = vadd.f32 %v2545_v34, %v2314_v55 }
 0x32b   : > { %v2354_v40 = vadd.f32 %v2545_v34, %v2315_v59  ;;  %v2355_v2 = vadd.f32 %v2545_v34, %v2316_v5  ;;  %v2356_v28 = vadd.f32 %v2545_v34, %v2317_v29  ;;  %v2357_v48 = vadd.f32 %v2545_v34, %v2318_v24 }
 0x32c   : > { %v5017_v9 = vadd.f32 %v2545_v34, %v2319_v44  ;;  %v5019_v15 = vadd.f32 %v2545_v34, %v2320_v60  ;;  %v5021_v23 = vadd.f32 %v2545_v34, %v2321_v22  ;;  %v5023_v56 = vadd.f32 %v2545_v34, %v2322_v57 }
 0x32d   : > { %v5025_v19 = vadd.f32 %v2545_v34, %v2323_v46  ;;  %v5027_v35 = vadd.f32 %v2545_v34, %v2324_v61  ;;  %v5029_v49 = vadd.f32 %v2545_v34, %v2325_v30  ;;  %v5031_v4 = vadd.f32 %v2545_v34, %v2326_v3 }
 0x32e   : > { %v5039_v12 = vadd.f32 %v2545_v34, %v2327_v50  ;;  %v5041_v1 = vadd.f32 %v2545_v34, %v2328_v47  ;;  %v5043_v42 = vadd.f32 %v2545_v34, %v2329_v33  ;;  %v5045_v43 = vadd.f32 %v2545_v34, %v2330_v18 }
 0x32f   : > { %v2370_v14 = vmax.f32 %v2338_v58, 0.0  ;;  %v2371_v32 = vmax.f32 %v2339_v38, 0.0  ;;  %v2372_v13 = vmax.f32 %v2340_v36, 0.0  ;;  %v2373_v39 = vmax.f32 %v2341_v17, 0.0 }
 0x330   : > { %v2374_v0 = vmax.f32 %v2342_v63, 0.0  ;;  %v2375_v16 = vmax.f32 %v2343_v41, 0.0  ;;  %v2376_v20 = vmax.f32 %v2344_v54, 0.0  ;;  %v2377_v62 = vmax.f32 %v2345_v27, 0.0 }
 0x331   : > { %v2378_v11 = vmax.f32 %v2346_v53, 0.0  ;;  %v2379_v31 = vmax.f32 %v2347_v37, 0.0  ;;  %v2380_v7 = vmax.f32 %v2348_v26, 0.0  ;;  %v2381_v8 = vmax.f32 %v2349_v6, 0.0  ;;  %2402 = vst.msk [vmem:[%s5037_s8] sm:$0xff] %vm437_vm3, %v2370_v14  ;;  %2403 = vst.msk [vmem:[%s5037_s8 + $0x8] sm:$0xff] %vm437_vm3, %v2371_v32 }
 0x332   : > { %2404 = vst.msk [vmem:[%s5037_s8 + $0x10] sm:$0xff] %vm437_vm3, %v2372_v13  ;;  %2405 = vst.msk [vmem:[%s5037_s8 + $0x18] sm:$0xff] %vm437_vm3, %v2373_v39  ;;  %v2382_v45 = vmax.f32 %v2350_v51, 0.0  ;;  %v2383_v21 = vmax.f32 %v2351_v52, 0.0  ;;  %v2384_v55 = vmax.f32 %v2352_v25, 0.0  ;;  %v2385_v59 = vmax.f32 %v2353_v10, 0.0 }
 0x333   : > { %2406 = vst.msk [vmem:[%s5037_s8 + $0x20] sm:$0xff] %vm437_vm3, %v2374_v0  ;;  %2407 = vst.msk [vmem:[%s5037_s8 + $0x28] sm:$0xff] %vm437_vm3, %v2375_v16  ;;  %v2386_v5 = vmax.f32 %v2354_v40, 0.0  ;;  %v2387_v29 = vmax.f32 %v2355_v2, 0.0  ;;  %v2388_v24 = vmax.f32 %v2356_v28, 0.0  ;;  %v2389_v44 = vmax.f32 %v2357_v48, 0.0 }
 0x334   : > { %2408 = vst.msk [vmem:[%s5037_s8 + $0x30] sm:$0xff] %vm437_vm3, %v2376_v20  ;;  %2409 = vst.msk [vmem:[%s5037_s8 + $0x38] sm:$0xff] %vm437_vm3, %v2377_v62  ;;  %v2390_v60 = vmax.f32 %v5017_v9, 0.0  ;;  %v2391_v22 = vmax.f32 %v5019_v15, 0.0  ;;  %v2392_v57 = vmax.f32 %v5021_v23, 0.0  ;;  %v2393_v34 = vmax.f32 %v5023_v56, 0.0 }
 0x335   : > { %2410 = vst.msk [vmem:[%s5037_s8 + $0x40] sm:$0xff] %vm437_vm3, %v2378_v11  ;;  %2411 = vst.msk [vmem:[%s5037_s8 + $0x48] sm:$0xff] %vm437_vm3, %v2379_v31  ;;  %v2394_v46 = vmax.f32 %v5025_v19, 0.0  ;;  %v2395_v61 = vmax.f32 %v5027_v35, 0.0  ;;  %v2396_v30 = vmax.f32 %v5029_v49, 0.0  ;;  %v2397_v3 = vmax.f32 %v5031_v4, 0.0 }
 0x336   : > { %2412 = vst.msk [vmem:[%s5037_s8 + $0x50] sm:$0xff] %vm437_vm3, %v2380_v7  ;;  %2413 = vst.msk [vmem:[%s5037_s8 + $0x58] sm:$0xff] %vm437_vm3, %v2381_v8  ;;  %v2398_v50 = vmax.f32 %v5039_v12, 0.0  ;;  %v2399_v47 = vmax.f32 %v5041_v1, 0.0  ;;  %v2400_v33 = vmax.f32 %v5043_v42, 0.0  ;;  %v2401_v18 = vmax.f32 %v5045_v43, 0.0 }
 0x337   : > { %2414 = vst.msk [vmem:[%s5037_s8 + $0x60] sm:$0xff] %vm437_vm3, %v2382_v45  ;;  %2415 = vst.msk [vmem:[%s5037_s8 + $0x68] sm:$0xff] %vm437_vm3, %v2383_v21 }
 0x338   : > { %2416 = vst.msk [vmem:[%s5037_s8 + $0x70] sm:$0xff] %vm437_vm3, %v2384_v55  ;;  %2417 = vst.msk [vmem:[%s5037_s8 + $0x78] sm:$0xff] %vm437_vm3, %v2385_v59 }
 0x339   : > { %2418 = vst.msk [vmem:[%s5037_s8 + $0x80] sm:$0xff] %vm437_vm3, %v2386_v5  ;;  %2419 = vst.msk [vmem:[%s5037_s8 + $0x88] sm:$0xff] %vm437_vm3, %v2387_v29 }
 0x33a   : > { %2420 = vst.msk [vmem:[%s5037_s8 + $0x90] sm:$0xff] %vm437_vm3, %v2388_v24  ;;  %2421 = vst.msk [vmem:[%s5037_s8 + $0x98] sm:$0xff] %vm437_vm3, %v2389_v44 }
 0x33b   : > { %2422 = vst.msk [vmem:[%s5037_s8 + $0xa0] sm:$0xff] %vm437_vm3, %v2390_v60  ;;  %2423 = vst.msk [vmem:[%s5037_s8 + $0xa8] sm:$0xff] %vm437_vm3, %v2391_v22 }
 0x33c   : > { %2424 = vst.msk [vmem:[%s5037_s8 + $0xb0] sm:$0xff] %vm437_vm3, %v2392_v57  ;;  %2425 = vst.msk [vmem:[%s5037_s8 + $0xb8] sm:$0xff] %vm437_vm3, %v2393_v34 }
 0x33d   : > { %2426 = vst.msk [vmem:[%s5037_s8 + $0xc0] sm:$0xff] %vm437_vm3, %v2394_v46  ;;  %2427 = vst.msk [vmem:[%s5037_s8 + $0xc8] sm:$0xff] %vm437_vm3, %v2395_v61 }
 0x33e   : > { %2428 = vst.msk [vmem:[%s5037_s8 + $0xd0] sm:$0xff] %vm437_vm3, %v2396_v30  ;;  %2429 = vst.msk [vmem:[%s5037_s8 + $0xd8] sm:$0xff] %vm437_vm3, %v2397_v3 }
 0x33f   : > { %2430 = vst.msk [vmem:[%s5037_s8 + $0xe0] sm:$0xff] %vm437_vm3, %v2398_v50  ;;  %2431 = vst.msk [vmem:[%s5037_s8 + $0xe8] sm:$0xff] %vm437_vm3, %v2399_v47 }
 0x340   : > { %2432 = vst.msk [vmem:[%s5037_s8 + $0xf0] sm:$0xff] %vm437_vm3, %v2400_v33  ;;  %2433 = vst.msk [vmem:[%s5037_s8 + $0xf8] sm:$0xff] %vm437_vm3, %v2401_v18 }
 0x341 PF: > { %s15_s18 = sadd.s32 1, %s3162_s18  }
 0x342   : > { %p12_p4 = scmp.ge.s32.totalorder %s15_s18, 4  }
 0x344   :  { %14 = sbr.rel (!%p12_p4) target bundleno = 1 (0x1), region = 73 }

</bundles_post_ra>
